<compile_context>
chip_gen: v5e
topology: v5e:2x2
jax: 0.10.0
libtpu: 0.0.40
codegen_flags: <defaults>
</compile_context>

<pallas_src>
import functools

import jax
import jax.numpy as jnp
from jax import lax
from jax.experimental import pallas as pl
from jax.experimental.pallas import tpu as pltpu

_LEAKY_SLOPE = 0.2


def _leaky(v):
    # slope < 1  =>  max(v, slope*v) == LeakyReLU(v)
    return jnp.maximum(v, _LEAKY_SLOPE * v)


def _deep_feature_kernel(x_ref, w1_ref, w2_ref, bias_ref, mask_ref,
                         o_ref,
                         x_stage, patches, mid, *,
                         h, w, w_pad, lpad, l_len,
                         k1, halo1, a_off_x,
                         kmax, halo2, a_off_m,
                         c_in, out_ch):
    f32 = jnp.float32

    # ---- zero the staging buffers (halo rows/cols must be zero on EVERY
    #      grid step since scratch persists; full zero is a few vreg stores).
    x_stage[...] = jnp.zeros_like(x_stage)
    mid[...] = jnp.zeros_like(mid)

    # ---- place the unpadded input rows into the zero-padded staging buffer.
    for r in range(h):
        dst = a_off_x + r * w_pad + lpad
        x_stage[:, dst:dst + w] = x_ref[:, r * w:(r + 1) * w].astype(f32)

    # ---- stage 1: build the K-stacked im2col operand, one big MXU dot. ----
    for ky in range(k1):
        for kx in range(k1):
            t = ky * k1 + kx
            s = a_off_x + (ky - halo1) * w_pad + (kx - halo1)
            patches[t * c_in:(t + 1) * c_in, :] = x_stage[:, s:s + l_len]

    deep = jnp.dot(w1_ref[...].astype(f32), patches[...],
                   preferred_element_type=f32)
    deep = _leaky(deep + bias_ref[:, 0:1].astype(f32))

    # Zero the horizontal-pad lanes (precomputed mask, no in-kernel modulo)
    # so the branch convolutions see true zero padding, and stash into mid.
    mid[:, a_off_m:a_off_m + l_len] = deep * mask_ref[...].astype(f32)
    # `deep` is dead from here on; the residual is re-read from `mid` so its
    # vregs are not live across the unrolled stage-2 taps.

    # ---- stage 2: 49 block-diagonal taps, one (C,C)@(C,L) dot per tap. ----
    acc = jnp.zeros((out_ch, l_len), f32)
    for ky in range(kmax):
        for kx in range(kmax):
            t = ky * kmax + kx
            s = a_off_m + (ky - halo2) * w_pad + (kx - halo2)
            acc = acc + jnp.dot(w2_ref[t].astype(f32), mid[:, s:s + l_len],
                                preferred_element_type=f32)
    branch = _leaky(acc + bias_ref[:, 1:2].astype(f32))

    # Residual add against the stage-1 feature map; lane-dense (L = 3*128).
    o_ref[...] = (mid[:, a_off_m:a_off_m + l_len] + branch).astype(o_ref.dtype)


def deep_feature_extract_forward(x, w1, b1, branch_ws, branch_bs, ksize):
    """x: (b, in_ch, h, w); w1: (out_ch, in_ch, k, k); branch_ws[i]:
    (sub, sub, ki, ki), ki in (1,3,5,7). Returns (b, out_ch, h, w)."""
    b, c_in, h, w = x.shape
    out_ch = w1.shape[0]
    sub = out_ch // 4
    branch_ks = tuple(bw.shape[2] for bw in branch_ws)
    kmax = max(branch_ks)
    halo1 = ksize // 2
    halo2 = kmax // 2
    halo = max(halo1, halo2)
    dt = x.dtype

    # Padded width chosen so the flattened spatial (lane) dim is 128-aligned.
    w_pad = w + 2 * halo
    grow = 0
    while (h * w_pad) % 128 != 0 and grow < 128:
        w_pad += 1
        grow += 1
    lpad = halo + (w_pad - w - 2 * halo) // 2
    l_len = h * w_pad                       # 16 * 24 = 384 = 3*128 for test

    vpad_x = halo1 + 1                      # rows of vertical halo (stage 1)
    vpad_m = halo2 + 1                      # rows of vertical halo (stage 2)
    a_off_x = vpad_x * w_pad
    a_off_m = vpad_m * w_pad
    ptot_x = (h + 2 * vpad_x) * w_pad
    ptot_m = (h + 2 * vpad_m) * w_pad

    # --- operand packing (done once per call, tiny) -------------------------
    # stage-1 weights -> (out_ch, k*k*in_ch), column order (ky, kx, ci)
    w1p = jnp.transpose(w1, (0, 2, 3, 1)).reshape(out_ch,
                                                  ksize * ksize * c_in).astype(dt)
    # branch weights -> one block-diagonal (kmax*kmax, out_ch, out_ch) tensor
    w2p = jnp.zeros((kmax, kmax, out_ch, out_ch), dt)
    for gi, (bw, k) in enumerate(zip(branch_ws, branch_ks)):
        po = (kmax - k) // 2
        blk = jnp.pad(jnp.transpose(bw, (2, 3, 0, 1)),
                      ((po, po), (po, po), (0, 0), (0, 0))).astype(dt)
        w2p = w2p.at[:, :, gi * sub:(gi + 1) * sub,
                     gi * sub:(gi + 1) * sub].set(blk)
    w2p = w2p.reshape(kmax * kmax, out_ch, out_ch)
    # both biases in one (out_ch, 2) array: col 0 = stage 1, col 1 = branches
    bias_pack = jnp.stack([b1, jnp.concatenate(branch_bs)], axis=1).astype(dt)
    # precomputed valid-column (non-pad-lane) mask
    cols = jnp.arange(l_len, dtype=jnp.int32) % w_pad
    mask = ((cols >= lpad) & (cols < lpad + w)).astype(dt).reshape(1, l_len)

    x_flat = x.reshape(b, c_in, h * w)      # free reshape, no HBM pad op

    kernel = functools.partial(
        _deep_feature_kernel,
        h=h, w=w, w_pad=w_pad, lpad=lpad, l_len=l_len,
        k1=ksize, halo1=halo1, a_off_x=a_off_x,
        kmax=kmax, halo2=halo2, a_off_m=a_off_m,
        c_in=c_in, out_ch=out_ch)

    def _full(arr):
        nd = arr.ndim
        return pl.BlockSpec(arr.shape, lambda n, _z=(0,) * nd: _z)

    out_flat = pl.pallas_call(
        kernel,
        out_shape=jax.ShapeDtypeStruct((b, out_ch, l_len), dt),
        grid_spec=pltpu.PrefetchScalarGridSpec(
            num_scalar_prefetch=0,
            grid=(b,),
            in_specs=[pl.BlockSpec((None, c_in, h * w), lambda n: (n, 0, 0)),
                      _full(w1p), _full(w2p), _full(bias_pack), _full(mask)],
            out_specs=pl.BlockSpec((None, out_ch, l_len), lambda n: (n, 0, 0)),
            scratch_shapes=[
                pltpu.VMEM((c_in, ptot_x), jnp.float32),             # x_stage
                pltpu.VMEM((ksize * ksize * c_in, l_len), jnp.float32),  # im2col
                pltpu.VMEM((out_ch, ptot_m), jnp.float32),           # mid
            ]),
        compiler_params=pltpu.CompilerParams(
            dimension_semantics=("parallel",)),
    )(x_flat, w1p, w2p, bias_pack, mask)

    # Drop the horizontal padding lanes -> (b, out_ch, h, w), already NCHW.
    out = out_flat.reshape(b, out_ch, h, w_pad)[:, :, :, lpad:lpad + w]
    return out


if __name__ == "__main__":
    # Module config: DeepFeatureExtractBlock(in_ch=4, out_ch=32, ksize=3)
    in_ch, out_ch, ksize = 4, 32, 3
    b, h, w = 2, 16, 16
    sub = out_ch // 4
    branch_ks = (1, 3, 5, 7)

    key = jax.random.PRNGKey(0)
    keys = jax.random.split(key, 11)
    x = jax.random.normal(keys[0], (b, in_ch, h, w), dtype=jnp.float32)
    w1 = jax.random.normal(keys[1], (out_ch, in_ch, ksize, ksize),
                           dtype=jnp.float32) * 0.1
    b1 = jax.random.normal(keys[2], (out_ch,), dtype=jnp.float32) * 0.05
    branch_ws, branch_bs = [], []
    for i, k in enumerate(branch_ks):
        branch_ws.append(jax.random.normal(keys[3 + 2 * i], (sub, sub, k, k),
                                           dtype=jnp.float32) * 0.1)
        branch_bs.append(jax.random.normal(keys[4 + 2 * i], (sub,),
                                           dtype=jnp.float32) * 0.05)

    y = deep_feature_extract_forward(x, w1, b1, branch_ws, branch_bs, ksize)
    y = jax.block_until_ready(y)

    # Plain-JAX reference (same math as the PyTorch forward, slope = 0.2).
    def conv(xv, wv, bv, p):
        o = lax.conv_general_dilated(
            xv, wv, (1, 1), ((p, p), (p, p)),
            dimension_numbers=("NCHW", "OIHW", "NCHW"),
            precision=lax.Precision.HIGHEST)
        return o + bv.reshape(1, -1, 1, 1)

    def lrelu(v):
        return jnp.where(v > 0, v, 0.2 * v)

    deep = lrelu(conv(x, w1, b1, ksize // 2))
    outs = []
    for i, k in enumerate(branch_ks):
        f = deep[:, i * sub:(i + 1) * sub]
        outs.append(lrelu(conv(f, branch_ws[i], branch_bs[i], k // 2)))
    ref = deep + jnp.concatenate(outs, axis=1)

    assert y.shape == (b, out_ch, h, w), y.shape
    err = float(jnp.max(jnp.abs(y - ref)))
    assert jnp.allclose(y, ref, atol=1e-3, rtol=1e-3), err

    print("KERNEL_OK")
</pallas_src>

<mosaic_0001>
module attributes {stable_mosaic.version = 11 : i64} {
  func.func @_deep_feature_kernel(%arg0: i32, %arg1: memref<1x4x256xf32, #tpu.memory_space<vmem>>, %arg2: memref<32x36xf32, #tpu.memory_space<vmem>>, %arg3: memref<49x32x32xf32, #tpu.memory_space<vmem>>, %arg4: memref<32x2xf32, #tpu.memory_space<vmem>>, %arg5: memref<1x384xf32, #tpu.memory_space<vmem>>, %arg6: memref<1x32x384xf32, #tpu.memory_space<vmem>>, %arg7: memref<4x480xf32, #tpu.memory_space<vmem>>, %arg8: memref<36x384xf32, #tpu.memory_space<vmem>>, %arg9: memref<32x576xf32, #tpu.memory_space<vmem>>) attributes {dimension_semantics = [#tpu.dimension_semantics<parallel>], iteration_bounds = array<i64: 2>, scalar_prefetch = 0 : i64, scratch_operands = 3 : i64, tpu.core_type = #tpu.core_type<tc>, window_params = [{transform_indices = @transform_0, window_bounds = array<i64: 1, 4, 256>}, {pipeline_mode = #tpu.pipeline_mode<synchronous>, transform_indices = @transform_1, window_bounds = array<i64: 32, 36>}, {pipeline_mode = #tpu.pipeline_mode<synchronous>, transform_indices = @transform_2, window_bounds = array<i64: 49, 32, 32>}, {pipeline_mode = #tpu.pipeline_mode<synchronous>, transform_indices = @transform_3, window_bounds = array<i64: 32, 2>}, {pipeline_mode = #tpu.pipeline_mode<synchronous>, transform_indices = @transform_4, window_bounds = array<i64: 1, 384>}, {transform_indices = @transform_5, window_bounds = array<i64: 1, 32, 384>}]} {
    %cst = arith.constant 0.000000e+00 : f32
    %0 = vector.broadcast %cst : f32 to vector<4x480xf32>
    %c0 = arith.constant 0 : index
    %c0_0 = arith.constant 0 : index
    %1 = vector.load %arg7[%c0, %c0_0] : memref<4x480xf32, #tpu.memory_space<vmem>>, vector<4x480xf32>
    tpu.vector_store %arg7[%c0, %c0_0], %0 {strides = array<i32>} : memref<4x480xf32, #tpu.memory_space<vmem>>, vector<4x480xf32>,
    %cst_1 = arith.constant 0.000000e+00 : f32
    %2 = vector.broadcast %cst_1 : f32 to vector<32x576xf32>
    %c0_2 = arith.constant 0 : index
    %c0_3 = arith.constant 0 : index
    %3 = vector.load %arg9[%c0_2, %c0_3] : memref<32x576xf32, #tpu.memory_space<vmem>>, vector<32x576xf32>
    tpu.vector_store %arg9[%c0_2, %c0_3], %2 {strides = array<i32>} : memref<32x576xf32, #tpu.memory_space<vmem>>, vector<32x576xf32>,
    %c0_4 = arith.constant 0 : index
    %c0_5 = arith.constant 0 : index
    %c0_6 = arith.constant 0 : index
    %4 = vector.load %arg1[%c0_4, %c0_5, %c0_6] : memref<1x4x256xf32, #tpu.memory_space<vmem>>, vector<1x4x16xf32>
    %5 = vector.shape_cast %4 : vector<1x4x16xf32> to vector<4x16xf32>
    %c0_7 = arith.constant 0 : index
    %c52 = arith.constant 52 : index
    %6 = vector.load %arg7[%c0_7, %c52] : memref<4x480xf32, #tpu.memory_space<vmem>>, vector<4x16xf32>
    tpu.vector_store %arg7[%c0_7, %c52], %5 {strides = array<i32>} : memref<4x480xf32, #tpu.memory_space<vmem>>, vector<4x16xf32>,
    %c0_8 = arith.constant 0 : index
    %c0_9 = arith.constant 0 : index
    %c16 = arith.constant 16 : index
    %7 = vector.load %arg1[%c0_8, %c0_9, %c16] : memref<1x4x256xf32, #tpu.memory_space<vmem>>, vector<1x4x16xf32>
    %8 = vector.shape_cast %7 : vector<1x4x16xf32> to vector<4x16xf32>
    %c0_10 = arith.constant 0 : index
    %c76 = arith.constant 76 : index
    %9 = vector.load %arg7[%c0_10, %c76] : memref<4x480xf32, #tpu.memory_space<vmem>>, vector<4x16xf32>
    tpu.vector_store %arg7[%c0_10, %c76], %8 {strides = array<i32>} : memref<4x480xf32, #tpu.memory_space<vmem>>, vector<4x16xf32>,
    %c0_11 = arith.constant 0 : index
    %c0_12 = arith.constant 0 : index
    %c32 = arith.constant 32 : index
    %10 = vector.load %arg1[%c0_11, %c0_12, %c32] : memref<1x4x256xf32, #tpu.memory_space<vmem>>, vector<1x4x16xf32>
    %11 = vector.shape_cast %10 : vector<1x4x16xf32> to vector<4x16xf32>
    %c0_13 = arith.constant 0 : index
    %c100 = arith.constant 100 : index
    %12 = vector.load %arg7[%c0_13, %c100] : memref<4x480xf32, #tpu.memory_space<vmem>>, vector<4x16xf32>
    tpu.vector_store %arg7[%c0_13, %c100], %11 {strides = array<i32>} : memref<4x480xf32, #tpu.memory_space<vmem>>, vector<4x16xf32>,
    %c0_14 = arith.constant 0 : index
    %c0_15 = arith.constant 0 : index
    %c48 = arith.constant 48 : index
    %13 = vector.load %arg1[%c0_14, %c0_15, %c48] : memref<1x4x256xf32, #tpu.memory_space<vmem>>, vector<1x4x16xf32>
    %14 = vector.shape_cast %13 : vector<1x4x16xf32> to vector<4x16xf32>
    %c0_16 = arith.constant 0 : index
    %c124 = arith.constant 124 : index
    %15 = vector.load %arg7[%c0_16, %c124] : memref<4x480xf32, #tpu.memory_space<vmem>>, vector<4x16xf32>
    tpu.vector_store %arg7[%c0_16, %c124], %14 {strides = array<i32>} : memref<4x480xf32, #tpu.memory_space<vmem>>, vector<4x16xf32>,
    %c0_17 = arith.constant 0 : index
    %c0_18 = arith.constant 0 : index
    %c64 = arith.constant 64 : index
    %16 = vector.load %arg1[%c0_17, %c0_18, %c64] : memref<1x4x256xf32, #tpu.memory_space<vmem>>, vector<1x4x16xf32>
    %17 = vector.shape_cast %16 : vector<1x4x16xf32> to vector<4x16xf32>
    %c0_19 = arith.constant 0 : index
    %c148 = arith.constant 148 : index
    %18 = vector.load %arg7[%c0_19, %c148] : memref<4x480xf32, #tpu.memory_space<vmem>>, vector<4x16xf32>
    tpu.vector_store %arg7[%c0_19, %c148], %17 {strides = array<i32>} : memref<4x480xf32, #tpu.memory_space<vmem>>, vector<4x16xf32>,
    %c0_20 = arith.constant 0 : index
    %c0_21 = arith.constant 0 : index
    %c80 = arith.constant 80 : index
    %19 = vector.load %arg1[%c0_20, %c0_21, %c80] : memref<1x4x256xf32, #tpu.memory_space<vmem>>, vector<1x4x16xf32>
    %20 = vector.shape_cast %19 : vector<1x4x16xf32> to vector<4x16xf32>
    %c0_22 = arith.constant 0 : index
    %c172 = arith.constant 172 : index
    %21 = vector.load %arg7[%c0_22, %c172] : memref<4x480xf32, #tpu.memory_space<vmem>>, vector<4x16xf32>
    tpu.vector_store %arg7[%c0_22, %c172], %20 {strides = array<i32>} : memref<4x480xf32, #tpu.memory_space<vmem>>, vector<4x16xf32>,
    %c0_23 = arith.constant 0 : index
    %c0_24 = arith.constant 0 : index
    %c96 = arith.constant 96 : index
    %22 = vector.load %arg1[%c0_23, %c0_24, %c96] : memref<1x4x256xf32, #tpu.memory_space<vmem>>, vector<1x4x16xf32>
    %23 = vector.shape_cast %22 : vector<1x4x16xf32> to vector<4x16xf32>
    %c0_25 = arith.constant 0 : index
    %c196 = arith.constant 196 : index
    %24 = vector.load %arg7[%c0_25, %c196] : memref<4x480xf32, #tpu.memory_space<vmem>>, vector<4x16xf32>
    tpu.vector_store %arg7[%c0_25, %c196], %23 {strides = array<i32>} : memref<4x480xf32, #tpu.memory_space<vmem>>, vector<4x16xf32>,
    %c0_26 = arith.constant 0 : index
    %c0_27 = arith.constant 0 : index
    %c112 = arith.constant 112 : index
    %25 = vector.load %arg1[%c0_26, %c0_27, %c112] : memref<1x4x256xf32, #tpu.memory_space<vmem>>, vector<1x4x16xf32>
    %26 = vector.shape_cast %25 : vector<1x4x16xf32> to vector<4x16xf32>
    %c0_28 = arith.constant 0 : index
    %c220 = arith.constant 220 : index
    %27 = vector.load %arg7[%c0_28, %c220] : memref<4x480xf32, #tpu.memory_space<vmem>>, vector<4x16xf32>
    tpu.vector_store %arg7[%c0_28, %c220], %26 {strides = array<i32>} : memref<4x480xf32, #tpu.memory_space<vmem>>, vector<4x16xf32>,
    %c0_29 = arith.constant 0 : index
    %c0_30 = arith.constant 0 : index
    %c128 = arith.constant 128 : index
    %28 = vector.load %arg1[%c0_29, %c0_30, %c128] : memref<1x4x256xf32, #tpu.memory_space<vmem>>, vector<1x4x16xf32>
    %29 = vector.shape_cast %28 : vector<1x4x16xf32> to vector<4x16xf32>
    %c0_31 = arith.constant 0 : index
    %c244 = arith.constant 244 : index
    %30 = vector.load %arg7[%c0_31, %c244] : memref<4x480xf32, #tpu.memory_space<vmem>>, vector<4x16xf32>
    tpu.vector_store %arg7[%c0_31, %c244], %29 {strides = array<i32>} : memref<4x480xf32, #tpu.memory_space<vmem>>, vector<4x16xf32>,
    %c0_32 = arith.constant 0 : index
    %c0_33 = arith.constant 0 : index
    %c144 = arith.constant 144 : index
    %31 = vector.load %arg1[%c0_32, %c0_33, %c144] : memref<1x4x256xf32, #tpu.memory_space<vmem>>, vector<1x4x16xf32>
    %32 = vector.shape_cast %31 : vector<1x4x16xf32> to vector<4x16xf32>
    %c0_34 = arith.constant 0 : index
    %c268 = arith.constant 268 : index
    %33 = vector.load %arg7[%c0_34, %c268] : memref<4x480xf32, #tpu.memory_space<vmem>>, vector<4x16xf32>
    tpu.vector_store %arg7[%c0_34, %c268], %32 {strides = array<i32>} : memref<4x480xf32, #tpu.memory_space<vmem>>, vector<4x16xf32>,
    %c0_35 = arith.constant 0 : index
    %c0_36 = arith.constant 0 : index
    %c160 = arith.constant 160 : index
    %34 = vector.load %arg1[%c0_35, %c0_36, %c160] : memref<1x4x256xf32, #tpu.memory_space<vmem>>, vector<1x4x16xf32>
    %35 = vector.shape_cast %34 : vector<1x4x16xf32> to vector<4x16xf32>
    %c0_37 = arith.constant 0 : index
    %c292 = arith.constant 292 : index
    %36 = vector.load %arg7[%c0_37, %c292] : memref<4x480xf32, #tpu.memory_space<vmem>>, vector<4x16xf32>
    tpu.vector_store %arg7[%c0_37, %c292], %35 {strides = array<i32>} : memref<4x480xf32, #tpu.memory_space<vmem>>, vector<4x16xf32>,
    %c0_38 = arith.constant 0 : index
    %c0_39 = arith.constant 0 : index
    %c176 = arith.constant 176 : index
    %37 = vector.load %arg1[%c0_38, %c0_39, %c176] : memref<1x4x256xf32, #tpu.memory_space<vmem>>, vector<1x4x16xf32>
    %38 = vector.shape_cast %37 : vector<1x4x16xf32> to vector<4x16xf32>
    %c0_40 = arith.constant 0 : index
    %c316 = arith.constant 316 : index
    %39 = vector.load %arg7[%c0_40, %c316] : memref<4x480xf32, #tpu.memory_space<vmem>>, vector<4x16xf32>
    tpu.vector_store %arg7[%c0_40, %c316], %38 {strides = array<i32>} : memref<4x480xf32, #tpu.memory_space<vmem>>, vector<4x16xf32>,
    %c0_41 = arith.constant 0 : index
    %c0_42 = arith.constant 0 : index
    %c192 = arith.constant 192 : index
    %40 = vector.load %arg1[%c0_41, %c0_42, %c192] : memref<1x4x256xf32, #tpu.memory_space<vmem>>, vector<1x4x16xf32>
    %41 = vector.shape_cast %40 : vector<1x4x16xf32> to vector<4x16xf32>
    %c0_43 = arith.constant 0 : index
    %c340 = arith.constant 340 : index
    %42 = vector.load %arg7[%c0_43, %c340] : memref<4x480xf32, #tpu.memory_space<vmem>>, vector<4x16xf32>
    tpu.vector_store %arg7[%c0_43, %c340], %41 {strides = array<i32>} : memref<4x480xf32, #tpu.memory_space<vmem>>, vector<4x16xf32>,
    %c0_44 = arith.constant 0 : index
    %c0_45 = arith.constant 0 : index
    %c208 = arith.constant 208 : index
    %43 = vector.load %arg1[%c0_44, %c0_45, %c208] : memref<1x4x256xf32, #tpu.memory_space<vmem>>, vector<1x4x16xf32>
    %44 = vector.shape_cast %43 : vector<1x4x16xf32> to vector<4x16xf32>
    %c0_46 = arith.constant 0 : index
    %c364 = arith.constant 364 : index
    %45 = vector.load %arg7[%c0_46, %c364] : memref<4x480xf32, #tpu.memory_space<vmem>>, vector<4x16xf32>
    tpu.vector_store %arg7[%c0_46, %c364], %44 {strides = array<i32>} : memref<4x480xf32, #tpu.memory_space<vmem>>, vector<4x16xf32>,
    %c0_47 = arith.constant 0 : index
    %c0_48 = arith.constant 0 : index
    %c224 = arith.constant 224 : index
    %46 = vector.load %arg1[%c0_47, %c0_48, %c224] : memref<1x4x256xf32, #tpu.memory_space<vmem>>, vector<1x4x16xf32>
    %47 = vector.shape_cast %46 : vector<1x4x16xf32> to vector<4x16xf32>
    %c0_49 = arith.constant 0 : index
    %c388 = arith.constant 388 : index
    %48 = vector.load %arg7[%c0_49, %c388] : memref<4x480xf32, #tpu.memory_space<vmem>>, vector<4x16xf32>
    tpu.vector_store %arg7[%c0_49, %c388], %47 {strides = array<i32>} : memref<4x480xf32, #tpu.memory_space<vmem>>, vector<4x16xf32>,
    %c0_50 = arith.constant 0 : index
    %c0_51 = arith.constant 0 : index
    %c240 = arith.constant 240 : index
    %49 = vector.load %arg1[%c0_50, %c0_51, %c240] : memref<1x4x256xf32, #tpu.memory_space<vmem>>, vector<1x4x16xf32>
    %50 = vector.shape_cast %49 : vector<1x4x16xf32> to vector<4x16xf32>
    %c0_52 = arith.constant 0 : index
    %c412 = arith.constant 412 : index
    %51 = vector.load %arg7[%c0_52, %c412] : memref<4x480xf32, #tpu.memory_space<vmem>>, vector<4x16xf32>
    tpu.vector_store %arg7[%c0_52, %c412], %50 {strides = array<i32>} : memref<4x480xf32, #tpu.memory_space<vmem>>, vector<4x16xf32>,
    %c0_53 = arith.constant 0 : index
    %c23 = arith.constant 23 : index
    %52 = vector.load %arg7[%c0_53, %c23] : memref<4x480xf32, #tpu.memory_space<vmem>>, vector<4x384xf32>
    %c0_54 = arith.constant 0 : index
    %c0_55 = arith.constant 0 : index
    %53 = vector.load %arg8[%c0_54, %c0_55] : memref<36x384xf32, #tpu.memory_space<vmem>>, vector<4x384xf32>
    tpu.vector_store %arg8[%c0_54, %c0_55], %52 {strides = array<i32>} : memref<36x384xf32, #tpu.memory_space<vmem>>, vector<4x384xf32>,
    %c0_56 = arith.constant 0 : index
    %c24 = arith.constant 24 : index
    %54 = vector.load %arg7[%c0_56, %c24] : memref<4x480xf32, #tpu.memory_space<vmem>>, vector<4x384xf32>
    %c4 = arith.constant 4 : index
    %c0_57 = arith.constant 0 : index
    %55 = vector.load %arg8[%c4, %c0_57] : memref<36x384xf32, #tpu.memory_space<vmem>>, vector<4x384xf32>
    tpu.vector_store %arg8[%c4, %c0_57], %54 {strides = array<i32>} : memref<36x384xf32, #tpu.memory_space<vmem>>, vector<4x384xf32>,
    %c0_58 = arith.constant 0 : index
    %c25 = arith.constant 25 : index
    %56 = vector.load %arg7[%c0_58, %c25] : memref<4x480xf32, #tpu.memory_space<vmem>>, vector<4x384xf32>
    %c8 = arith.constant 8 : index
    %c0_59 = arith.constant 0 : index
    %57 = vector.load %arg8[%c8, %c0_59] : memref<36x384xf32, #tpu.memory_space<vmem>>, vector<4x384xf32>
    tpu.vector_store %arg8[%c8, %c0_59], %56 {strides = array<i32>} : memref<36x384xf32, #tpu.memory_space<vmem>>, vector<4x384xf32>,
    %c0_60 = arith.constant 0 : index
    %c47 = arith.constant 47 : index
    %58 = vector.load %arg7[%c0_60, %c47] : memref<4x480xf32, #tpu.memory_space<vmem>>, vector<4x384xf32>
    %c12 = arith.constant 12 : index
    %c0_61 = arith.constant 0 : index
    %59 = vector.load %arg8[%c12, %c0_61] : memref<36x384xf32, #tpu.memory_space<vmem>>, vector<4x384xf32>
    tpu.vector_store %arg8[%c12, %c0_61], %58 {strides = array<i32>} : memref<36x384xf32, #tpu.memory_space<vmem>>, vector<4x384xf32>,
    %c0_62 = arith.constant 0 : index
    %c48_63 = arith.constant 48 : index
    %60 = vector.load %arg7[%c0_62, %c48_63] : memref<4x480xf32, #tpu.memory_space<vmem>>, vector<4x384xf32>
    %c16_64 = arith.constant 16 : index
    %c0_65 = arith.constant 0 : index
    %61 = vector.load %arg8[%c16_64, %c0_65] : memref<36x384xf32, #tpu.memory_space<vmem>>, vector<4x384xf32>
    tpu.vector_store %arg8[%c16_64, %c0_65], %60 {strides = array<i32>} : memref<36x384xf32, #tpu.memory_space<vmem>>, vector<4x384xf32>,
    %c0_66 = arith.constant 0 : index
    %c49 = arith.constant 49 : index
    %62 = vector.load %arg7[%c0_66, %c49] : memref<4x480xf32, #tpu.memory_space<vmem>>, vector<4x384xf32>
    %c20 = arith.constant 20 : index
    %c0_67 = arith.constant 0 : index
    %63 = vector.load %arg8[%c20, %c0_67] : memref<36x384xf32, #tpu.memory_space<vmem>>, vector<4x384xf32>
    tpu.vector_store %arg8[%c20, %c0_67], %62 {strides = array<i32>} : memref<36x384xf32, #tpu.memory_space<vmem>>, vector<4x384xf32>,
    %c0_68 = arith.constant 0 : index
    %c71 = arith.constant 71 : index
    %64 = vector.load %arg7[%c0_68, %c71] : memref<4x480xf32, #tpu.memory_space<vmem>>, vector<4x384xf32>
    %c24_69 = arith.constant 24 : index
    %c0_70 = arith.constant 0 : index
    %65 = vector.load %arg8[%c24_69, %c0_70] : memref<36x384xf32, #tpu.memory_space<vmem>>, vector<4x384xf32>
    tpu.vector_store %arg8[%c24_69, %c0_70], %64 {strides = array<i32>} : memref<36x384xf32, #tpu.memory_space<vmem>>, vector<4x384xf32>,
    %c0_71 = arith.constant 0 : index
    %c72 = arith.constant 72 : index
    %66 = vector.load %arg7[%c0_71, %c72] : memref<4x480xf32, #tpu.memory_space<vmem>>, vector<4x384xf32>
    %c28 = arith.constant 28 : index
    %c0_72 = arith.constant 0 : index
    %67 = vector.load %arg8[%c28, %c0_72] : memref<36x384xf32, #tpu.memory_space<vmem>>, vector<4x384xf32>
    tpu.vector_store %arg8[%c28, %c0_72], %66 {strides = array<i32>} : memref<36x384xf32, #tpu.memory_space<vmem>>, vector<4x384xf32>,
    %c0_73 = arith.constant 0 : index
    %c73 = arith.constant 73 : index
    %68 = vector.load %arg7[%c0_73, %c73] : memref<4x480xf32, #tpu.memory_space<vmem>>, vector<4x384xf32>
    %c32_74 = arith.constant 32 : index
    %c0_75 = arith.constant 0 : index
    %69 = vector.load %arg8[%c32_74, %c0_75] : memref<36x384xf32, #tpu.memory_space<vmem>>, vector<4x384xf32>
    tpu.vector_store %arg8[%c32_74, %c0_75], %68 {strides = array<i32>} : memref<36x384xf32, #tpu.memory_space<vmem>>, vector<4x384xf32>,
    %c0_76 = arith.constant 0 : index
    %c0_77 = arith.constant 0 : index
    %70 = vector.load %arg2[%c0_76, %c0_77] : memref<32x36xf32, #tpu.memory_space<vmem>>, vector<32x36xf32>
    %c0_78 = arith.constant 0 : index
    %c0_79 = arith.constant 0 : index
    %71 = vector.load %arg8[%c0_78, %c0_79] : memref<36x384xf32, #tpu.memory_space<vmem>>, vector<36x384xf32>
    %cst_80 = arith.constant dense<0.000000e+00> : vector<32x384xf32>
    %72 = tpu.matmul %70, %71, %cst_80 {dimension_numbers = #tpu.dot_dimension_numbers<[1], [0], [0], [1], [0, 0, 1, 1], [], []>} : vector<32x36xf32>, vector<36x384xf32>, vector<32x384xf32> -> vector<32x384xf32>
    %c0_81 = arith.constant 0 : index
    %c0_82 = arith.constant 0 : index
    %73 = vector.load %arg4[%c0_81, %c0_82] : memref<32x2xf32, #tpu.memory_space<vmem>>, vector<32x1xf32>
    %74 = vector.broadcast %73 : vector<32x1xf32> to vector<32x384xf32>
    %75 = arith.addf %72, %74 : vector<32x384xf32>
    %cst_83 = arith.constant 2.000000e-01 : f32
    %76 = vector.broadcast %cst_83 : f32 to vector<32x384xf32>
    %77 = arith.mulf %76, %75 : vector<32x384xf32>
    %78 = arith.maximumf %75, %77 : vector<32x384xf32>
    %c0_84 = arith.constant 0 : index
    %c0_85 = arith.constant 0 : index
    %79 = vector.load %arg5[%c0_84, %c0_85] : memref<1x384xf32, #tpu.memory_space<vmem>>, vector<1x384xf32>
    %80 = vector.broadcast %79 : vector<1x384xf32> to vector<32x384xf32>
    %81 = arith.mulf %78, %80 : vector<32x384xf32>
    %c0_86 = arith.constant 0 : index
    %c96_87 = arith.constant 96 : index
    %82 = vector.load %arg9[%c0_86, %c96_87] : memref<32x576xf32, #tpu.memory_space<vmem>>, vector<32x384xf32>
    tpu.vector_store %arg9[%c0_86, %c96_87], %81 {strides = array<i32>} : memref<32x576xf32, #tpu.memory_space<vmem>>, vector<32x384xf32>,
    %cst_88 = arith.constant 0.000000e+00 : f32
    %83 = vector.broadcast %cst_88 : f32 to vector<32x384xf32>
    %c0_89 = arith.constant 0 : index
    %c0_90 = arith.constant 0 : index
    %c0_91 = arith.constant 0 : index
    %84 = vector.load %arg3[%c0_89, %c0_90, %c0_91] : memref<49x32x32xf32, #tpu.memory_space<vmem>>, vector<1x32x32xf32>
    %85 = vector.shape_cast %84 : vector<1x32x32xf32> to vector<32x32xf32>
    %c0_92 = arith.constant 0 : index
    %c21 = arith.constant 21 : index
    %86 = vector.load %arg9[%c0_92, %c21] : memref<32x576xf32, #tpu.memory_space<vmem>>, vector<32x384xf32>
    %cst_93 = arith.constant dense<0.000000e+00> : vector<32x384xf32>
    %87 = tpu.matmul %85, %86, %cst_93 {dimension_numbers = #tpu.dot_dimension_numbers<[1], [0], [0], [1], [0, 0, 1, 1], [], []>} : vector<32x32xf32>, vector<32x384xf32>, vector<32x384xf32> -> vector<32x384xf32>
    %88 = arith.addf %83, %87 : vector<32x384xf32>
    %c1 = arith.constant 1 : index
    %c0_94 = arith.constant 0 : index
    %c0_95 = arith.constant 0 : index
    %89 = vector.load %arg3[%c1, %c0_94, %c0_95] : memref<49x32x32xf32, #tpu.memory_space<vmem>>, vector<1x32x32xf32>
    %90 = vector.shape_cast %89 : vector<1x32x32xf32> to vector<32x32xf32>
    %c0_96 = arith.constant 0 : index
    %c22 = arith.constant 22 : index
    %91 = vector.load %arg9[%c0_96, %c22] : memref<32x576xf32, #tpu.memory_space<vmem>>, vector<32x384xf32>
    %cst_97 = arith.constant dense<0.000000e+00> : vector<32x384xf32>
    %92 = tpu.matmul %90, %91, %cst_97 {dimension_numbers = #tpu.dot_dimension_numbers<[1], [0], [0], [1], [0, 0, 1, 1], [], []>} : vector<32x32xf32>, vector<32x384xf32>, vector<32x384xf32> -> vector<32x384xf32>
    %93 = arith.addf %88, %92 : vector<32x384xf32>
    %c2 = arith.constant 2 : index
    %c0_98 = arith.constant 0 : index
    %c0_99 = arith.constant 0 : index
    %94 = vector.load %arg3[%c2, %c0_98, %c0_99] : memref<49x32x32xf32, #tpu.memory_space<vmem>>, vector<1x32x32xf32>
    %95 = vector.shape_cast %94 : vector<1x32x32xf32> to vector<32x32xf32>
    %c0_100 = arith.constant 0 : index
    %c23_101 = arith.constant 23 : index
    %96 = vector.load %arg9[%c0_100, %c23_101] : memref<32x576xf32, #tpu.memory_space<vmem>>, vector<32x384xf32>
    %cst_102 = arith.constant dense<0.000000e+00> : vector<32x384xf32>
    %97 = tpu.matmul %95, %96, %cst_102 {dimension_numbers = #tpu.dot_dimension_numbers<[1], [0], [0], [1], [0, 0, 1, 1], [], []>} : vector<32x32xf32>, vector<32x384xf32>, vector<32x384xf32> -> vector<32x384xf32>
    %98 = arith.addf %93, %97 : vector<32x384xf32>
    %c3 = arith.constant 3 : index
    %c0_103 = arith.constant 0 : index
    %c0_104 = arith.constant 0 : index
    %99 = vector.load %arg3[%c3, %c0_103, %c0_104] : memref<49x32x32xf32, #tpu.memory_space<vmem>>, vector<1x32x32xf32>
    %100 = vector.shape_cast %99 : vector<1x32x32xf32> to vector<32x32xf32>
    %c0_105 = arith.constant 0 : index
    %c24_106 = arith.constant 24 : index
    %101 = vector.load %arg9[%c0_105, %c24_106] : memref<32x576xf32, #tpu.memory_space<vmem>>, vector<32x384xf32>
    %cst_107 = arith.constant dense<0.000000e+00> : vector<32x384xf32>
    %102 = tpu.matmul %100, %101, %cst_107 {dimension_numbers = #tpu.dot_dimension_numbers<[1], [0], [0], [1], [0, 0, 1, 1], [], []>} : vector<32x32xf32>, vector<32x384xf32>, vector<32x384xf32> -> vector<32x384xf32>
    %103 = arith.addf %98, %102 : vector<32x384xf32>
    %c4_108 = arith.constant 4 : index
    %c0_109 = arith.constant 0 : index
    %c0_110 = arith.constant 0 : index
    %104 = vector.load %arg3[%c4_108, %c0_109, %c0_110] : memref<49x32x32xf32, #tpu.memory_space<vmem>>, vector<1x32x32xf32>
    %105 = vector.shape_cast %104 : vector<1x32x32xf32> to vector<32x32xf32>
    %c0_111 = arith.constant 0 : index
    %c25_112 = arith.constant 25 : index
    %106 = vector.load %arg9[%c0_111, %c25_112] : memref<32x576xf32, #tpu.memory_space<vmem>>, vector<32x384xf32>
    %cst_113 = arith.constant dense<0.000000e+00> : vector<32x384xf32>
    %107 = tpu.matmul %105, %106, %cst_113 {dimension_numbers = #tpu.dot_dimension_numbers<[1], [0], [0], [1], [0, 0, 1, 1], [], []>} : vector<32x32xf32>, vector<32x384xf32>, vector<32x384xf32> -> vector<32x384xf32>
    %108 = arith.addf %103, %107 : vector<32x384xf32>
    %c5 = arith.constant 5 : index
    %c0_114 = arith.constant 0 : index
    %c0_115 = arith.constant 0 : index
    %109 = vector.load %arg3[%c5, %c0_114, %c0_115] : memref<49x32x32xf32, #tpu.memory_space<vmem>>, vector<1x32x32xf32>
    %110 = vector.shape_cast %109 : vector<1x32x32xf32> to vector<32x32xf32>
    %c0_116 = arith.constant 0 : index
    %c26 = arith.constant 26 : index
    %111 = vector.load %arg9[%c0_116, %c26] : memref<32x576xf32, #tpu.memory_space<vmem>>, vector<32x384xf32>
    %cst_117 = arith.constant dense<0.000000e+00> : vector<32x384xf32>
    %112 = tpu.matmul %110, %111, %cst_117 {dimension_numbers = #tpu.dot_dimension_numbers<[1], [0], [0], [1], [0, 0, 1, 1], [], []>} : vector<32x32xf32>, vector<32x384xf32>, vector<32x384xf32> -> vector<32x384xf32>
    %113 = arith.addf %108, %112 : vector<32x384xf32>
    %c6 = arith.constant 6 : index
    %c0_118 = arith.constant 0 : index
    %c0_119 = arith.constant 0 : index
    %114 = vector.load %arg3[%c6, %c0_118, %c0_119] : memref<49x32x32xf32, #tpu.memory_space<vmem>>, vector<1x32x32xf32>
    %115 = vector.shape_cast %114 : vector<1x32x32xf32> to vector<32x32xf32>
    %c0_120 = arith.constant 0 : index
    %c27 = arith.constant 27 : index
    %116 = vector.load %arg9[%c0_120, %c27] : memref<32x576xf32, #tpu.memory_space<vmem>>, vector<32x384xf32>
    %cst_121 = arith.constant dense<0.000000e+00> : vector<32x384xf32>
    %117 = tpu.matmul %115, %116, %cst_121 {dimension_numbers = #tpu.dot_dimension_numbers<[1], [0], [0], [1], [0, 0, 1, 1], [], []>} : vector<32x32xf32>, vector<32x384xf32>, vector<32x384xf32> -> vector<32x384xf32>
    %118 = arith.addf %113, %117 : vector<32x384xf32>
    %c7 = arith.constant 7 : index
    %c0_122 = arith.constant 0 : index
    %c0_123 = arith.constant 0 : index
    %119 = vector.load %arg3[%c7, %c0_122, %c0_123] : memref<49x32x32xf32, #tpu.memory_space<vmem>>, vector<1x32x32xf32>
    %120 = vector.shape_cast %119 : vector<1x32x32xf32> to vector<32x32xf32>
    %c0_124 = arith.constant 0 : index
    %c45 = arith.constant 45 : index
    %121 = vector.load %arg9[%c0_124, %c45] : memref<32x576xf32, #tpu.memory_space<vmem>>, vector<32x384xf32>
    %cst_125 = arith.constant dense<0.000000e+00> : vector<32x384xf32>
    %122 = tpu.matmul %120, %121, %cst_125 {dimension_numbers = #tpu.dot_dimension_numbers<[1], [0], [0], [1], [0, 0, 1, 1], [], []>} : vector<32x32xf32>, vector<32x384xf32>, vector<32x384xf32> -> vector<32x384xf32>
    %123 = arith.addf %118, %122 : vector<32x384xf32>
    %c8_126 = arith.constant 8 : index
    %c0_127 = arith.constant 0 : index
    %c0_128 = arith.constant 0 : index
    %124 = vector.load %arg3[%c8_126, %c0_127, %c0_128] : memref<49x32x32xf32, #tpu.memory_space<vmem>>, vector<1x32x32xf32>
    %125 = vector.shape_cast %124 : vector<1x32x32xf32> to vector<32x32xf32>
    %c0_129 = arith.constant 0 : index
    %c46 = arith.constant 46 : index
    %126 = vector.load %arg9[%c0_129, %c46] : memref<32x576xf32, #tpu.memory_space<vmem>>, vector<32x384xf32>
    %cst_130 = arith.constant dense<0.000000e+00> : vector<32x384xf32>
    %127 = tpu.matmul %125, %126, %cst_130 {dimension_numbers = #tpu.dot_dimension_numbers<[1], [0], [0], [1], [0, 0, 1, 1], [], []>} : vector<32x32xf32>, vector<32x384xf32>, vector<32x384xf32> -> vector<32x384xf32>
    %128 = arith.addf %123, %127 : vector<32x384xf32>
    %c9 = arith.constant 9 : index
    %c0_131 = arith.constant 0 : index
    %c0_132 = arith.constant 0 : index
    %129 = vector.load %arg3[%c9, %c0_131, %c0_132] : memref<49x32x32xf32, #tpu.memory_space<vmem>>, vector<1x32x32xf32>
    %130 = vector.shape_cast %129 : vector<1x32x32xf32> to vector<32x32xf32>
    %c0_133 = arith.constant 0 : index
    %c47_134 = arith.constant 47 : index
    %131 = vector.load %arg9[%c0_133, %c47_134] : memref<32x576xf32, #tpu.memory_space<vmem>>, vector<32x384xf32>
    %cst_135 = arith.constant dense<0.000000e+00> : vector<32x384xf32>
    %132 = tpu.matmul %130, %131, %cst_135 {dimension_numbers = #tpu.dot_dimension_numbers<[1], [0], [0], [1], [0, 0, 1, 1], [], []>} : vector<32x32xf32>, vector<32x384xf32>, vector<32x384xf32> -> vector<32x384xf32>
    %133 = arith.addf %128, %132 : vector<32x384xf32>
    %c10 = arith.constant 10 : index
    %c0_136 = arith.constant 0 : index
    %c0_137 = arith.constant 0 : index
    %134 = vector.load %arg3[%c10, %c0_136, %c0_137] : memref<49x32x32xf32, #tpu.memory_space<vmem>>, vector<1x32x32xf32>
    %135 = vector.shape_cast %134 : vector<1x32x32xf32> to vector<32x32xf32>
    %c0_138 = arith.constant 0 : index
    %c48_139 = arith.constant 48 : index
    %136 = vector.load %arg9[%c0_138, %c48_139] : memref<32x576xf32, #tpu.memory_space<vmem>>, vector<32x384xf32>
    %cst_140 = arith.constant dense<0.000000e+00> : vector<32x384xf32>
    %137 = tpu.matmul %135, %136, %cst_140 {dimension_numbers = #tpu.dot_dimension_numbers<[1], [0], [0], [1], [0, 0, 1, 1], [], []>} : vector<32x32xf32>, vector<32x384xf32>, vector<32x384xf32> -> vector<32x384xf32>
    %138 = arith.addf %133, %137 : vector<32x384xf32>
    %c11 = arith.constant 11 : index
    %c0_141 = arith.constant 0 : index
    %c0_142 = arith.constant 0 : index
    %139 = vector.load %arg3[%c11, %c0_141, %c0_142] : memref<49x32x32xf32, #tpu.memory_space<vmem>>, vector<1x32x32xf32>
    %140 = vector.shape_cast %139 : vector<1x32x32xf32> to vector<32x32xf32>
    %c0_143 = arith.constant 0 : index
    %c49_144 = arith.constant 49 : index
    %141 = vector.load %arg9[%c0_143, %c49_144] : memref<32x576xf32, #tpu.memory_space<vmem>>, vector<32x384xf32>
    %cst_145 = arith.constant dense<0.000000e+00> : vector<32x384xf32>
    %142 = tpu.matmul %140, %141, %cst_145 {dimension_numbers = #tpu.dot_dimension_numbers<[1], [0], [0], [1], [0, 0, 1, 1], [], []>} : vector<32x32xf32>, vector<32x384xf32>, vector<32x384xf32> -> vector<32x384xf32>
    %143 = arith.addf %138, %142 : vector<32x384xf32>
    %c12_146 = arith.constant 12 : index
    %c0_147 = arith.constant 0 : index
    %c0_148 = arith.constant 0 : index
    %144 = vector.load %arg3[%c12_146, %c0_147, %c0_148] : memref<49x32x32xf32, #tpu.memory_space<vmem>>, vector<1x32x32xf32>
    %145 = vector.shape_cast %144 : vector<1x32x32xf32> to vector<32x32xf32>
    %c0_149 = arith.constant 0 : index
    %c50 = arith.constant 50 : index
    %146 = vector.load %arg9[%c0_149, %c50] : memref<32x576xf32, #tpu.memory_space<vmem>>, vector<32x384xf32>
    %cst_150 = arith.constant dense<0.000000e+00> : vector<32x384xf32>
    %147 = tpu.matmul %145, %146, %cst_150 {dimension_numbers = #tpu.dot_dimension_numbers<[1], [0], [0], [1], [0, 0, 1, 1], [], []>} : vector<32x32xf32>, vector<32x384xf32>, vector<32x384xf32> -> vector<32x384xf32>
    %148 = arith.addf %143, %147 : vector<32x384xf32>
    %c13 = arith.constant 13 : index
    %c0_151 = arith.constant 0 : index
    %c0_152 = arith.constant 0 : index
    %149 = vector.load %arg3[%c13, %c0_151, %c0_152] : memref<49x32x32xf32, #tpu.memory_space<vmem>>, vector<1x32x32xf32>
    %150 = vector.shape_cast %149 : vector<1x32x32xf32> to vector<32x32xf32>
    %c0_153 = arith.constant 0 : index
    %c51 = arith.constant 51 : index
    %151 = vector.load %arg9[%c0_153, %c51] : memref<32x576xf32, #tpu.memory_space<vmem>>, vector<32x384xf32>
    %cst_154 = arith.constant dense<0.000000e+00> : vector<32x384xf32>
    %152 = tpu.matmul %150, %151, %cst_154 {dimension_numbers = #tpu.dot_dimension_numbers<[1], [0], [0], [1], [0, 0, 1, 1], [], []>} : vector<32x32xf32>, vector<32x384xf32>, vector<32x384xf32> -> vector<32x384xf32>
    %153 = arith.addf %148, %152 : vector<32x384xf32>
    %c14 = arith.constant 14 : index
    %c0_155 = arith.constant 0 : index
    %c0_156 = arith.constant 0 : index
    %154 = vector.load %arg3[%c14, %c0_155, %c0_156] : memref<49x32x32xf32, #tpu.memory_space<vmem>>, vector<1x32x32xf32>
    %155 = vector.shape_cast %154 : vector<1x32x32xf32> to vector<32x32xf32>
    %c0_157 = arith.constant 0 : index
    %c69 = arith.constant 69 : index
    %156 = vector.load %arg9[%c0_157, %c69] : memref<32x576xf32, #tpu.memory_space<vmem>>, vector<32x384xf32>
    %cst_158 = arith.constant dense<0.000000e+00> : vector<32x384xf32>
    %157 = tpu.matmul %155, %156, %cst_158 {dimension_numbers = #tpu.dot_dimension_numbers<[1], [0], [0], [1], [0, 0, 1, 1], [], []>} : vector<32x32xf32>, vector<32x384xf32>, vector<32x384xf32> -> vector<32x384xf32>
    %158 = arith.addf %153, %157 : vector<32x384xf32>
    %c15 = arith.constant 15 : index
    %c0_159 = arith.constant 0 : index
    %c0_160 = arith.constant 0 : index
    %159 = vector.load %arg3[%c15, %c0_159, %c0_160] : memref<49x32x32xf32, #tpu.memory_space<vmem>>, vector<1x32x32xf32>
    %160 = vector.shape_cast %159 : vector<1x32x32xf32> to vector<32x32xf32>
    %c0_161 = arith.constant 0 : index
    %c70 = arith.constant 70 : index
    %161 = vector.load %arg9[%c0_161, %c70] : memref<32x576xf32, #tpu.memory_space<vmem>>, vector<32x384xf32>
    %cst_162 = arith.constant dense<0.000000e+00> : vector<32x384xf32>
    %162 = tpu.matmul %160, %161, %cst_162 {dimension_numbers = #tpu.dot_dimension_numbers<[1], [0], [0], [1], [0, 0, 1, 1], [], []>} : vector<32x32xf32>, vector<32x384xf32>, vector<32x384xf32> -> vector<32x384xf32>
    %163 = arith.addf %158, %162 : vector<32x384xf32>
    %c16_163 = arith.constant 16 : index
    %c0_164 = arith.constant 0 : index
    %c0_165 = arith.constant 0 : index
    %164 = vector.load %arg3[%c16_163, %c0_164, %c0_165] : memref<49x32x32xf32, #tpu.memory_space<vmem>>, vector<1x32x32xf32>
    %165 = vector.shape_cast %164 : vector<1x32x32xf32> to vector<32x32xf32>
    %c0_166 = arith.constant 0 : index
    %c71_167 = arith.constant 71 : index
    %166 = vector.load %arg9[%c0_166, %c71_167] : memref<32x576xf32, #tpu.memory_space<vmem>>, vector<32x384xf32>
    %cst_168 = arith.constant dense<0.000000e+00> : vector<32x384xf32>
    %167 = tpu.matmul %165, %166, %cst_168 {dimension_numbers = #tpu.dot_dimension_numbers<[1], [0], [0], [1], [0, 0, 1, 1], [], []>} : vector<32x32xf32>, vector<32x384xf32>, vector<32x384xf32> -> vector<32x384xf32>
    %168 = arith.addf %163, %167 : vector<32x384xf32>
    %c17 = arith.constant 17 : index
    %c0_169 = arith.constant 0 : index
    %c0_170 = arith.constant 0 : index
    %169 = vector.load %arg3[%c17, %c0_169, %c0_170] : memref<49x32x32xf32, #tpu.memory_space<vmem>>, vector<1x32x32xf32>
    %170 = vector.shape_cast %169 : vector<1x32x32xf32> to vector<32x32xf32>
    %c0_171 = arith.constant 0 : index
    %c72_172 = arith.constant 72 : index
    %171 = vector.load %arg9[%c0_171, %c72_172] : memref<32x576xf32, #tpu.memory_space<vmem>>, vector<32x384xf32>
    %cst_173 = arith.constant dense<0.000000e+00> : vector<32x384xf32>
    %172 = tpu.matmul %170, %171, %cst_173 {dimension_numbers = #tpu.dot_dimension_numbers<[1], [0], [0], [1], [0, 0, 1, 1], [], []>} : vector<32x32xf32>, vector<32x384xf32>, vector<32x384xf32> -> vector<32x384xf32>
    %173 = arith.addf %168, %172 : vector<32x384xf32>
    %c18 = arith.constant 18 : index
    %c0_174 = arith.constant 0 : index
    %c0_175 = arith.constant 0 : index
    %174 = vector.load %arg3[%c18, %c0_174, %c0_175] : memref<49x32x32xf32, #tpu.memory_space<vmem>>, vector<1x32x32xf32>
    %175 = vector.shape_cast %174 : vector<1x32x32xf32> to vector<32x32xf32>
    %c0_176 = arith.constant 0 : index
    %c73_177 = arith.constant 73 : index
    %176 = vector.load %arg9[%c0_176, %c73_177] : memref<32x576xf32, #tpu.memory_space<vmem>>, vector<32x384xf32>
    %cst_178 = arith.constant dense<0.000000e+00> : vector<32x384xf32>
    %177 = tpu.matmul %175, %176, %cst_178 {dimension_numbers = #tpu.dot_dimension_numbers<[1], [0], [0], [1], [0, 0, 1, 1], [], []>} : vector<32x32xf32>, vector<32x384xf32>, vector<32x384xf32> -> vector<32x384xf32>
    %178 = arith.addf %173, %177 : vector<32x384xf32>
    %c19 = arith.constant 19 : index
    %c0_179 = arith.constant 0 : index
    %c0_180 = arith.constant 0 : index
    %179 = vector.load %arg3[%c19, %c0_179, %c0_180] : memref<49x32x32xf32, #tpu.memory_space<vmem>>, vector<1x32x32xf32>
    %180 = vector.shape_cast %179 : vector<1x32x32xf32> to vector<32x32xf32>
    %c0_181 = arith.constant 0 : index
    %c74 = arith.constant 74 : index
    %181 = vector.load %arg9[%c0_181, %c74] : memref<32x576xf32, #tpu.memory_space<vmem>>, vector<32x384xf32>
    %cst_182 = arith.constant dense<0.000000e+00> : vector<32x384xf32>
    %182 = tpu.matmul %180, %181, %cst_182 {dimension_numbers = #tpu.dot_dimension_numbers<[1], [0], [0], [1], [0, 0, 1, 1], [], []>} : vector<32x32xf32>, vector<32x384xf32>, vector<32x384xf32> -> vector<32x384xf32>
    %183 = arith.addf %178, %182 : vector<32x384xf32>
    %c20_183 = arith.constant 20 : index
    %c0_184 = arith.constant 0 : index
    %c0_185 = arith.constant 0 : index
    %184 = vector.load %arg3[%c20_183, %c0_184, %c0_185] : memref<49x32x32xf32, #tpu.memory_space<vmem>>, vector<1x32x32xf32>
    %185 = vector.shape_cast %184 : vector<1x32x32xf32> to vector<32x32xf32>
    %c0_186 = arith.constant 0 : index
    %c75 = arith.constant 75 : index
    %186 = vector.load %arg9[%c0_186, %c75] : memref<32x576xf32, #tpu.memory_space<vmem>>, vector<32x384xf32>
    %cst_187 = arith.constant dense<0.000000e+00> : vector<32x384xf32>
    %187 = tpu.matmul %185, %186, %cst_187 {dimension_numbers = #tpu.dot_dimension_numbers<[1], [0], [0], [1], [0, 0, 1, 1], [], []>} : vector<32x32xf32>, vector<32x384xf32>, vector<32x384xf32> -> vector<32x384xf32>
    %188 = arith.addf %183, %187 : vector<32x384xf32>
    %c21_188 = arith.constant 21 : index
    %c0_189 = arith.constant 0 : index
    %c0_190 = arith.constant 0 : index
    %189 = vector.load %arg3[%c21_188, %c0_189, %c0_190] : memref<49x32x32xf32, #tpu.memory_space<vmem>>, vector<1x32x32xf32>
    %190 = vector.shape_cast %189 : vector<1x32x32xf32> to vector<32x32xf32>
    %c0_191 = arith.constant 0 : index
    %c93 = arith.constant 93 : index
    %191 = vector.load %arg9[%c0_191, %c93] : memref<32x576xf32, #tpu.memory_space<vmem>>, vector<32x384xf32>
    %cst_192 = arith.constant dense<0.000000e+00> : vector<32x384xf32>
    %192 = tpu.matmul %190, %191, %cst_192 {dimension_numbers = #tpu.dot_dimension_numbers<[1], [0], [0], [1], [0, 0, 1, 1], [], []>} : vector<32x32xf32>, vector<32x384xf32>, vector<32x384xf32> -> vector<32x384xf32>
    %193 = arith.addf %188, %192 : vector<32x384xf32>
    %c22_193 = arith.constant 22 : index
    %c0_194 = arith.constant 0 : index
    %c0_195 = arith.constant 0 : index
    %194 = vector.load %arg3[%c22_193, %c0_194, %c0_195] : memref<49x32x32xf32, #tpu.memory_space<vmem>>, vector<1x32x32xf32>
    %195 = vector.shape_cast %194 : vector<1x32x32xf32> to vector<32x32xf32>
    %c0_196 = arith.constant 0 : index
    %c94 = arith.constant 94 : index
    %196 = vector.load %arg9[%c0_196, %c94] : memref<32x576xf32, #tpu.memory_space<vmem>>, vector<32x384xf32>
    %cst_197 = arith.constant dense<0.000000e+00> : vector<32x384xf32>
    %197 = tpu.matmul %195, %196, %cst_197 {dimension_numbers = #tpu.dot_dimension_numbers<[1], [0], [0], [1], [0, 0, 1, 1], [], []>} : vector<32x32xf32>, vector<32x384xf32>, vector<32x384xf32> -> vector<32x384xf32>
    %198 = arith.addf %193, %197 : vector<32x384xf32>
    %c23_198 = arith.constant 23 : index
    %c0_199 = arith.constant 0 : index
    %c0_200 = arith.constant 0 : index
    %199 = vector.load %arg3[%c23_198, %c0_199, %c0_200] : memref<49x32x32xf32, #tpu.memory_space<vmem>>, vector<1x32x32xf32>
    %200 = vector.shape_cast %199 : vector<1x32x32xf32> to vector<32x32xf32>
    %c0_201 = arith.constant 0 : index
    %c95 = arith.constant 95 : index
    %201 = vector.load %arg9[%c0_201, %c95] : memref<32x576xf32, #tpu.memory_space<vmem>>, vector<32x384xf32>
    %cst_202 = arith.constant dense<0.000000e+00> : vector<32x384xf32>
    %202 = tpu.matmul %200, %201, %cst_202 {dimension_numbers = #tpu.dot_dimension_numbers<[1], [0], [0], [1], [0, 0, 1, 1], [], []>} : vector<32x32xf32>, vector<32x384xf32>, vector<32x384xf32> -> vector<32x384xf32>
    %203 = arith.addf %198, %202 : vector<32x384xf32>
    %c24_203 = arith.constant 24 : index
    %c0_204 = arith.constant 0 : index
    %c0_205 = arith.constant 0 : index
    %204 = vector.load %arg3[%c24_203, %c0_204, %c0_205] : memref<49x32x32xf32, #tpu.memory_space<vmem>>, vector<1x32x32xf32>
    %205 = vector.shape_cast %204 : vector<1x32x32xf32> to vector<32x32xf32>
    %c0_206 = arith.constant 0 : index
    %c96_207 = arith.constant 96 : index
    %206 = vector.load %arg9[%c0_206, %c96_207] : memref<32x576xf32, #tpu.memory_space<vmem>>, vector<32x384xf32>
    %cst_208 = arith.constant dense<0.000000e+00> : vector<32x384xf32>
    %207 = tpu.matmul %205, %206, %cst_208 {dimension_numbers = #tpu.dot_dimension_numbers<[1], [0], [0], [1], [0, 0, 1, 1], [], []>} : vector<32x32xf32>, vector<32x384xf32>, vector<32x384xf32> -> vector<32x384xf32>
    %208 = arith.addf %203, %207 : vector<32x384xf32>
    %c25_209 = arith.constant 25 : index
    %c0_210 = arith.constant 0 : index
    %c0_211 = arith.constant 0 : index
    %209 = vector.load %arg3[%c25_209, %c0_210, %c0_211] : memref<49x32x32xf32, #tpu.memory_space<vmem>>, vector<1x32x32xf32>
    %210 = vector.shape_cast %209 : vector<1x32x32xf32> to vector<32x32xf32>
    %c0_212 = arith.constant 0 : index
    %c97 = arith.constant 97 : index
    %211 = vector.load %arg9[%c0_212, %c97] : memref<32x576xf32, #tpu.memory_space<vmem>>, vector<32x384xf32>
    %cst_213 = arith.constant dense<0.000000e+00> : vector<32x384xf32>
    %212 = tpu.matmul %210, %211, %cst_213 {dimension_numbers = #tpu.dot_dimension_numbers<[1], [0], [0], [1], [0, 0, 1, 1], [], []>} : vector<32x32xf32>, vector<32x384xf32>, vector<32x384xf32> -> vector<32x384xf32>
    %213 = arith.addf %208, %212 : vector<32x384xf32>
    %c26_214 = arith.constant 26 : index
    %c0_215 = arith.constant 0 : index
    %c0_216 = arith.constant 0 : index
    %214 = vector.load %arg3[%c26_214, %c0_215, %c0_216] : memref<49x32x32xf32, #tpu.memory_space<vmem>>, vector<1x32x32xf32>
    %215 = vector.shape_cast %214 : vector<1x32x32xf32> to vector<32x32xf32>
    %c0_217 = arith.constant 0 : index
    %c98 = arith.constant 98 : index
    %216 = vector.load %arg9[%c0_217, %c98] : memref<32x576xf32, #tpu.memory_space<vmem>>, vector<32x384xf32>
    %cst_218 = arith.constant dense<0.000000e+00> : vector<32x384xf32>
    %217 = tpu.matmul %215, %216, %cst_218 {dimension_numbers = #tpu.dot_dimension_numbers<[1], [0], [0], [1], [0, 0, 1, 1], [], []>} : vector<32x32xf32>, vector<32x384xf32>, vector<32x384xf32> -> vector<32x384xf32>
    %218 = arith.addf %213, %217 : vector<32x384xf32>
    %c27_219 = arith.constant 27 : index
    %c0_220 = arith.constant 0 : index
    %c0_221 = arith.constant 0 : index
    %219 = vector.load %arg3[%c27_219, %c0_220, %c0_221] : memref<49x32x32xf32, #tpu.memory_space<vmem>>, vector<1x32x32xf32>
    %220 = vector.shape_cast %219 : vector<1x32x32xf32> to vector<32x32xf32>
    %c0_222 = arith.constant 0 : index
    %c99 = arith.constant 99 : index
    %221 = vector.load %arg9[%c0_222, %c99] : memref<32x576xf32, #tpu.memory_space<vmem>>, vector<32x384xf32>
    %cst_223 = arith.constant dense<0.000000e+00> : vector<32x384xf32>
    %222 = tpu.matmul %220, %221, %cst_223 {dimension_numbers = #tpu.dot_dimension_numbers<[1], [0], [0], [1], [0, 0, 1, 1], [], []>} : vector<32x32xf32>, vector<32x384xf32>, vector<32x384xf32> -> vector<32x384xf32>
    %223 = arith.addf %218, %222 : vector<32x384xf32>
    %c28_224 = arith.constant 28 : index
    %c0_225 = arith.constant 0 : index
    %c0_226 = arith.constant 0 : index
    %224 = vector.load %arg3[%c28_224, %c0_225, %c0_226] : memref<49x32x32xf32, #tpu.memory_space<vmem>>, vector<1x32x32xf32>
    %225 = vector.shape_cast %224 : vector<1x32x32xf32> to vector<32x32xf32>
    %c0_227 = arith.constant 0 : index
    %c117 = arith.constant 117 : index
    %226 = vector.load %arg9[%c0_227, %c117] : memref<32x576xf32, #tpu.memory_space<vmem>>, vector<32x384xf32>
    %cst_228 = arith.constant dense<0.000000e+00> : vector<32x384xf32>
    %227 = tpu.matmul %225, %226, %cst_228 {dimension_numbers = #tpu.dot_dimension_numbers<[1], [0], [0], [1], [0, 0, 1, 1], [], []>} : vector<32x32xf32>, vector<32x384xf32>, vector<32x384xf32> -> vector<32x384xf32>
    %228 = arith.addf %223, %227 : vector<32x384xf32>
    %c29 = arith.constant 29 : index
    %c0_229 = arith.constant 0 : index
    %c0_230 = arith.constant 0 : index
    %229 = vector.load %arg3[%c29, %c0_229, %c0_230] : memref<49x32x32xf32, #tpu.memory_space<vmem>>, vector<1x32x32xf32>
    %230 = vector.shape_cast %229 : vector<1x32x32xf32> to vector<32x32xf32>
    %c0_231 = arith.constant 0 : index
    %c118 = arith.constant 118 : index
    %231 = vector.load %arg9[%c0_231, %c118] : memref<32x576xf32, #tpu.memory_space<vmem>>, vector<32x384xf32>
    %cst_232 = arith.constant dense<0.000000e+00> : vector<32x384xf32>
    %232 = tpu.matmul %230, %231, %cst_232 {dimension_numbers = #tpu.dot_dimension_numbers<[1], [0], [0], [1], [0, 0, 1, 1], [], []>} : vector<32x32xf32>, vector<32x384xf32>, vector<32x384xf32> -> vector<32x384xf32>
    %233 = arith.addf %228, %232 : vector<32x384xf32>
    %c30 = arith.constant 30 : index
    %c0_233 = arith.constant 0 : index
    %c0_234 = arith.constant 0 : index
    %234 = vector.load %arg3[%c30, %c0_233, %c0_234] : memref<49x32x32xf32, #tpu.memory_space<vmem>>, vector<1x32x32xf32>
    %235 = vector.shape_cast %234 : vector<1x32x32xf32> to vector<32x32xf32>
    %c0_235 = arith.constant 0 : index
    %c119 = arith.constant 119 : index
    %236 = vector.load %arg9[%c0_235, %c119] : memref<32x576xf32, #tpu.memory_space<vmem>>, vector<32x384xf32>
    %cst_236 = arith.constant dense<0.000000e+00> : vector<32x384xf32>
    %237 = tpu.matmul %235, %236, %cst_236 {dimension_numbers = #tpu.dot_dimension_numbers<[1], [0], [0], [1], [0, 0, 1, 1], [], []>} : vector<32x32xf32>, vector<32x384xf32>, vector<32x384xf32> -> vector<32x384xf32>
    %238 = arith.addf %233, %237 : vector<32x384xf32>
    %c31 = arith.constant 31 : index
    %c0_237 = arith.constant 0 : index
    %c0_238 = arith.constant 0 : index
    %239 = vector.load %arg3[%c31, %c0_237, %c0_238] : memref<49x32x32xf32, #tpu.memory_space<vmem>>, vector<1x32x32xf32>
    %240 = vector.shape_cast %239 : vector<1x32x32xf32> to vector<32x32xf32>
    %c0_239 = arith.constant 0 : index
    %c120 = arith.constant 120 : index
    %241 = vector.load %arg9[%c0_239, %c120] : memref<32x576xf32, #tpu.memory_space<vmem>>, vector<32x384xf32>
    %cst_240 = arith.constant dense<0.000000e+00> : vector<32x384xf32>
    %242 = tpu.matmul %240, %241, %cst_240 {dimension_numbers = #tpu.dot_dimension_numbers<[1], [0], [0], [1], [0, 0, 1, 1], [], []>} : vector<32x32xf32>, vector<32x384xf32>, vector<32x384xf32> -> vector<32x384xf32>
    %243 = arith.addf %238, %242 : vector<32x384xf32>
    %c32_241 = arith.constant 32 : index
    %c0_242 = arith.constant 0 : index
    %c0_243 = arith.constant 0 : index
    %244 = vector.load %arg3[%c32_241, %c0_242, %c0_243] : memref<49x32x32xf32, #tpu.memory_space<vmem>>, vector<1x32x32xf32>
    %245 = vector.shape_cast %244 : vector<1x32x32xf32> to vector<32x32xf32>
    %c0_244 = arith.constant 0 : index
    %c121 = arith.constant 121 : index
    %246 = vector.load %arg9[%c0_244, %c121] : memref<32x576xf32, #tpu.memory_space<vmem>>, vector<32x384xf32>
    %cst_245 = arith.constant dense<0.000000e+00> : vector<32x384xf32>
    %247 = tpu.matmul %245, %246, %cst_245 {dimension_numbers = #tpu.dot_dimension_numbers<[1], [0], [0], [1], [0, 0, 1, 1], [], []>} : vector<32x32xf32>, vector<32x384xf32>, vector<32x384xf32> -> vector<32x384xf32>
    %248 = arith.addf %243, %247 : vector<32x384xf32>
    %c33 = arith.constant 33 : index
    %c0_246 = arith.constant 0 : index
    %c0_247 = arith.constant 0 : index
    %249 = vector.load %arg3[%c33, %c0_246, %c0_247] : memref<49x32x32xf32, #tpu.memory_space<vmem>>, vector<1x32x32xf32>
    %250 = vector.shape_cast %249 : vector<1x32x32xf32> to vector<32x32xf32>
    %c0_248 = arith.constant 0 : index
    %c122 = arith.constant 122 : index
    %251 = vector.load %arg9[%c0_248, %c122] : memref<32x576xf32, #tpu.memory_space<vmem>>, vector<32x384xf32>
    %cst_249 = arith.constant dense<0.000000e+00> : vector<32x384xf32>
    %252 = tpu.matmul %250, %251, %cst_249 {dimension_numbers = #tpu.dot_dimension_numbers<[1], [0], [0], [1], [0, 0, 1, 1], [], []>} : vector<32x32xf32>, vector<32x384xf32>, vector<32x384xf32> -> vector<32x384xf32>
    %253 = arith.addf %248, %252 : vector<32x384xf32>
    %c34 = arith.constant 34 : index
    %c0_250 = arith.constant 0 : index
    %c0_251 = arith.constant 0 : index
    %254 = vector.load %arg3[%c34, %c0_250, %c0_251] : memref<49x32x32xf32, #tpu.memory_space<vmem>>, vector<1x32x32xf32>
    %255 = vector.shape_cast %254 : vector<1x32x32xf32> to vector<32x32xf32>
    %c0_252 = arith.constant 0 : index
    %c123 = arith.constant 123 : index
    %256 = vector.load %arg9[%c0_252, %c123] : memref<32x576xf32, #tpu.memory_space<vmem>>, vector<32x384xf32>
    %cst_253 = arith.constant dense<0.000000e+00> : vector<32x384xf32>
    %257 = tpu.matmul %255, %256, %cst_253 {dimension_numbers = #tpu.dot_dimension_numbers<[1], [0], [0], [1], [0, 0, 1, 1], [], []>} : vector<32x32xf32>, vector<32x384xf32>, vector<32x384xf32> -> vector<32x384xf32>
    %258 = arith.addf %253, %257 : vector<32x384xf32>
    %c35 = arith.constant 35 : index
    %c0_254 = arith.constant 0 : index
    %c0_255 = arith.constant 0 : index
    %259 = vector.load %arg3[%c35, %c0_254, %c0_255] : memref<49x32x32xf32, #tpu.memory_space<vmem>>, vector<1x32x32xf32>
    %260 = vector.shape_cast %259 : vector<1x32x32xf32> to vector<32x32xf32>
    %c0_256 = arith.constant 0 : index
    %c141 = arith.constant 141 : index
    %261 = vector.load %arg9[%c0_256, %c141] : memref<32x576xf32, #tpu.memory_space<vmem>>, vector<32x384xf32>
    %cst_257 = arith.constant dense<0.000000e+00> : vector<32x384xf32>
    %262 = tpu.matmul %260, %261, %cst_257 {dimension_numbers = #tpu.dot_dimension_numbers<[1], [0], [0], [1], [0, 0, 1, 1], [], []>} : vector<32x32xf32>, vector<32x384xf32>, vector<32x384xf32> -> vector<32x384xf32>
    %263 = arith.addf %258, %262 : vector<32x384xf32>
    %c36 = arith.constant 36 : index
    %c0_258 = arith.constant 0 : index
    %c0_259 = arith.constant 0 : index
    %264 = vector.load %arg3[%c36, %c0_258, %c0_259] : memref<49x32x32xf32, #tpu.memory_space<vmem>>, vector<1x32x32xf32>
    %265 = vector.shape_cast %264 : vector<1x32x32xf32> to vector<32x32xf32>
    %c0_260 = arith.constant 0 : index
    %c142 = arith.constant 142 : index
    %266 = vector.load %arg9[%c0_260, %c142] : memref<32x576xf32, #tpu.memory_space<vmem>>, vector<32x384xf32>
    %cst_261 = arith.constant dense<0.000000e+00> : vector<32x384xf32>
    %267 = tpu.matmul %265, %266, %cst_261 {dimension_numbers = #tpu.dot_dimension_numbers<[1], [0], [0], [1], [0, 0, 1, 1], [], []>} : vector<32x32xf32>, vector<32x384xf32>, vector<32x384xf32> -> vector<32x384xf32>
    %268 = arith.addf %263, %267 : vector<32x384xf32>
    %c37 = arith.constant 37 : index
    %c0_262 = arith.constant 0 : index
    %c0_263 = arith.constant 0 : index
    %269 = vector.load %arg3[%c37, %c0_262, %c0_263] : memref<49x32x32xf32, #tpu.memory_space<vmem>>, vector<1x32x32xf32>
    %270 = vector.shape_cast %269 : vector<1x32x32xf32> to vector<32x32xf32>
    %c0_264 = arith.constant 0 : index
    %c143 = arith.constant 143 : index
    %271 = vector.load %arg9[%c0_264, %c143] : memref<32x576xf32, #tpu.memory_space<vmem>>, vector<32x384xf32>
    %cst_265 = arith.constant dense<0.000000e+00> : vector<32x384xf32>
    %272 = tpu.matmul %270, %271, %cst_265 {dimension_numbers = #tpu.dot_dimension_numbers<[1], [0], [0], [1], [0, 0, 1, 1], [], []>} : vector<32x32xf32>, vector<32x384xf32>, vector<32x384xf32> -> vector<32x384xf32>
    %273 = arith.addf %268, %272 : vector<32x384xf32>
    %c38 = arith.constant 38 : index
    %c0_266 = arith.constant 0 : index
    %c0_267 = arith.constant 0 : index
    %274 = vector.load %arg3[%c38, %c0_266, %c0_267] : memref<49x32x32xf32, #tpu.memory_space<vmem>>, vector<1x32x32xf32>
    %275 = vector.shape_cast %274 : vector<1x32x32xf32> to vector<32x32xf32>
    %c0_268 = arith.constant 0 : index
    %c144_269 = arith.constant 144 : index
    %276 = vector.load %arg9[%c0_268, %c144_269] : memref<32x576xf32, #tpu.memory_space<vmem>>, vector<32x384xf32>
    %cst_270 = arith.constant dense<0.000000e+00> : vector<32x384xf32>
    %277 = tpu.matmul %275, %276, %cst_270 {dimension_numbers = #tpu.dot_dimension_numbers<[1], [0], [0], [1], [0, 0, 1, 1], [], []>} : vector<32x32xf32>, vector<32x384xf32>, vector<32x384xf32> -> vector<32x384xf32>
    %278 = arith.addf %273, %277 : vector<32x384xf32>
    %c39 = arith.constant 39 : index
    %c0_271 = arith.constant 0 : index
    %c0_272 = arith.constant 0 : index
    %279 = vector.load %arg3[%c39, %c0_271, %c0_272] : memref<49x32x32xf32, #tpu.memory_space<vmem>>, vector<1x32x32xf32>
    %280 = vector.shape_cast %279 : vector<1x32x32xf32> to vector<32x32xf32>
    %c0_273 = arith.constant 0 : index
    %c145 = arith.constant 145 : index
    %281 = vector.load %arg9[%c0_273, %c145] : memref<32x576xf32, #tpu.memory_space<vmem>>, vector<32x384xf32>
    %cst_274 = arith.constant dense<0.000000e+00> : vector<32x384xf32>
    %282 = tpu.matmul %280, %281, %cst_274 {dimension_numbers = #tpu.dot_dimension_numbers<[1], [0], [0], [1], [0, 0, 1, 1], [], []>} : vector<32x32xf32>, vector<32x384xf32>, vector<32x384xf32> -> vector<32x384xf32>
    %283 = arith.addf %278, %282 : vector<32x384xf32>
    %c40 = arith.constant 40 : index
    %c0_275 = arith.constant 0 : index
    %c0_276 = arith.constant 0 : index
    %284 = vector.load %arg3[%c40, %c0_275, %c0_276] : memref<49x32x32xf32, #tpu.memory_space<vmem>>, vector<1x32x32xf32>
    %285 = vector.shape_cast %284 : vector<1x32x32xf32> to vector<32x32xf32>
    %c0_277 = arith.constant 0 : index
    %c146 = arith.constant 146 : index
    %286 = vector.load %arg9[%c0_277, %c146] : memref<32x576xf32, #tpu.memory_space<vmem>>, vector<32x384xf32>
    %cst_278 = arith.constant dense<0.000000e+00> : vector<32x384xf32>
    %287 = tpu.matmul %285, %286, %cst_278 {dimension_numbers = #tpu.dot_dimension_numbers<[1], [0], [0], [1], [0, 0, 1, 1], [], []>} : vector<32x32xf32>, vector<32x384xf32>, vector<32x384xf32> -> vector<32x384xf32>
    %288 = arith.addf %283, %287 : vector<32x384xf32>
    %c41 = arith.constant 41 : index
    %c0_279 = arith.constant 0 : index
    %c0_280 = arith.constant 0 : index
    %289 = vector.load %arg3[%c41, %c0_279, %c0_280] : memref<49x32x32xf32, #tpu.memory_space<vmem>>, vector<1x32x32xf32>
    %290 = vector.shape_cast %289 : vector<1x32x32xf32> to vector<32x32xf32>
    %c0_281 = arith.constant 0 : index
    %c147 = arith.constant 147 : index
    %291 = vector.load %arg9[%c0_281, %c147] : memref<32x576xf32, #tpu.memory_space<vmem>>, vector<32x384xf32>
    %cst_282 = arith.constant dense<0.000000e+00> : vector<32x384xf32>
    %292 = tpu.matmul %290, %291, %cst_282 {dimension_numbers = #tpu.dot_dimension_numbers<[1], [0], [0], [1], [0, 0, 1, 1], [], []>} : vector<32x32xf32>, vector<32x384xf32>, vector<32x384xf32> -> vector<32x384xf32>
    %293 = arith.addf %288, %292 : vector<32x384xf32>
    %c42 = arith.constant 42 : index
    %c0_283 = arith.constant 0 : index
    %c0_284 = arith.constant 0 : index
    %294 = vector.load %arg3[%c42, %c0_283, %c0_284] : memref<49x32x32xf32, #tpu.memory_space<vmem>>, vector<1x32x32xf32>
    %295 = vector.shape_cast %294 : vector<1x32x32xf32> to vector<32x32xf32>
    %c0_285 = arith.constant 0 : index
    %c165 = arith.constant 165 : index
    %296 = vector.load %arg9[%c0_285, %c165] : memref<32x576xf32, #tpu.memory_space<vmem>>, vector<32x384xf32>
    %cst_286 = arith.constant dense<0.000000e+00> : vector<32x384xf32>
    %297 = tpu.matmul %295, %296, %cst_286 {dimension_numbers = #tpu.dot_dimension_numbers<[1], [0], [0], [1], [0, 0, 1, 1], [], []>} : vector<32x32xf32>, vector<32x384xf32>, vector<32x384xf32> -> vector<32x384xf32>
    %298 = arith.addf %293, %297 : vector<32x384xf32>
    %c43 = arith.constant 43 : index
    %c0_287 = arith.constant 0 : index
    %c0_288 = arith.constant 0 : index
    %299 = vector.load %arg3[%c43, %c0_287, %c0_288] : memref<49x32x32xf32, #tpu.memory_space<vmem>>, vector<1x32x32xf32>
    %300 = vector.shape_cast %299 : vector<1x32x32xf32> to vector<32x32xf32>
    %c0_289 = arith.constant 0 : index
    %c166 = arith.constant 166 : index
    %301 = vector.load %arg9[%c0_289, %c166] : memref<32x576xf32, #tpu.memory_space<vmem>>, vector<32x384xf32>
    %cst_290 = arith.constant dense<0.000000e+00> : vector<32x384xf32>
    %302 = tpu.matmul %300, %301, %cst_290 {dimension_numbers = #tpu.dot_dimension_numbers<[1], [0], [0], [1], [0, 0, 1, 1], [], []>} : vector<32x32xf32>, vector<32x384xf32>, vector<32x384xf32> -> vector<32x384xf32>
    %303 = arith.addf %298, %302 : vector<32x384xf32>
    %c44 = arith.constant 44 : index
    %c0_291 = arith.constant 0 : index
    %c0_292 = arith.constant 0 : index
    %304 = vector.load %arg3[%c44, %c0_291, %c0_292] : memref<49x32x32xf32, #tpu.memory_space<vmem>>, vector<1x32x32xf32>
    %305 = vector.shape_cast %304 : vector<1x32x32xf32> to vector<32x32xf32>
    %c0_293 = arith.constant 0 : index
    %c167 = arith.constant 167 : index
    %306 = vector.load %arg9[%c0_293, %c167] : memref<32x576xf32, #tpu.memory_space<vmem>>, vector<32x384xf32>
    %cst_294 = arith.constant dense<0.000000e+00> : vector<32x384xf32>
    %307 = tpu.matmul %305, %306, %cst_294 {dimension_numbers = #tpu.dot_dimension_numbers<[1], [0], [0], [1], [0, 0, 1, 1], [], []>} : vector<32x32xf32>, vector<32x384xf32>, vector<32x384xf32> -> vector<32x384xf32>
    %308 = arith.addf %303, %307 : vector<32x384xf32>
    %c45_295 = arith.constant 45 : index
    %c0_296 = arith.constant 0 : index
    %c0_297 = arith.constant 0 : index
    %309 = vector.load %arg3[%c45_295, %c0_296, %c0_297] : memref<49x32x32xf32, #tpu.memory_space<vmem>>, vector<1x32x32xf32>
    %310 = vector.shape_cast %309 : vector<1x32x32xf32> to vector<32x32xf32>
    %c0_298 = arith.constant 0 : index
    %c168 = arith.constant 168 : index
    %311 = vector.load %arg9[%c0_298, %c168] : memref<32x576xf32, #tpu.memory_space<vmem>>, vector<32x384xf32>
    %cst_299 = arith.constant dense<0.000000e+00> : vector<32x384xf32>
    %312 = tpu.matmul %310, %311, %cst_299 {dimension_numbers = #tpu.dot_dimension_numbers<[1], [0], [0], [1], [0, 0, 1, 1], [], []>} : vector<32x32xf32>, vector<32x384xf32>, vector<32x384xf32> -> vector<32x384xf32>
    %313 = arith.addf %308, %312 : vector<32x384xf32>
    %c46_300 = arith.constant 46 : index
    %c0_301 = arith.constant 0 : index
    %c0_302 = arith.constant 0 : index
    %314 = vector.load %arg3[%c46_300, %c0_301, %c0_302] : memref<49x32x32xf32, #tpu.memory_space<vmem>>, vector<1x32x32xf32>
    %315 = vector.shape_cast %314 : vector<1x32x32xf32> to vector<32x32xf32>
    %c0_303 = arith.constant 0 : index
    %c169 = arith.constant 169 : index
    %316 = vector.load %arg9[%c0_303, %c169] : memref<32x576xf32, #tpu.memory_space<vmem>>, vector<32x384xf32>
    %cst_304 = arith.constant dense<0.000000e+00> : vector<32x384xf32>
    %317 = tpu.matmul %315, %316, %cst_304 {dimension_numbers = #tpu.dot_dimension_numbers<[1], [0], [0], [1], [0, 0, 1, 1], [], []>} : vector<32x32xf32>, vector<32x384xf32>, vector<32x384xf32> -> vector<32x384xf32>
    %318 = arith.addf %313, %317 : vector<32x384xf32>
    %c47_305 = arith.constant 47 : index
    %c0_306 = arith.constant 0 : index
    %c0_307 = arith.constant 0 : index
    %319 = vector.load %arg3[%c47_305, %c0_306, %c0_307] : memref<49x32x32xf32, #tpu.memory_space<vmem>>, vector<1x32x32xf32>
    %320 = vector.shape_cast %319 : vector<1x32x32xf32> to vector<32x32xf32>
    %c0_308 = arith.constant 0 : index
    %c170 = arith.constant 170 : index
    %321 = vector.load %arg9[%c0_308, %c170] : memref<32x576xf32, #tpu.memory_space<vmem>>, vector<32x384xf32>
    %cst_309 = arith.constant dense<0.000000e+00> : vector<32x384xf32>
    %322 = tpu.matmul %320, %321, %cst_309 {dimension_numbers = #tpu.dot_dimension_numbers<[1], [0], [0], [1], [0, 0, 1, 1], [], []>} : vector<32x32xf32>, vector<32x384xf32>, vector<32x384xf32> -> vector<32x384xf32>
    %323 = arith.addf %318, %322 : vector<32x384xf32>
    %c48_310 = arith.constant 48 : index
    %c0_311 = arith.constant 0 : index
    %c0_312 = arith.constant 0 : index
    %324 = vector.load %arg3[%c48_310, %c0_311, %c0_312] : memref<49x32x32xf32, #tpu.memory_space<vmem>>, vector<1x32x32xf32>
    %325 = vector.shape_cast %324 : vector<1x32x32xf32> to vector<32x32xf32>
    %c0_313 = arith.constant 0 : index
    %c171 = arith.constant 171 : index
    %326 = vector.load %arg9[%c0_313, %c171] : memref<32x576xf32, #tpu.memory_space<vmem>>, vector<32x384xf32>
    %cst_314 = arith.constant dense<0.000000e+00> : vector<32x384xf32>
    %327 = tpu.matmul %325, %326, %cst_314 {dimension_numbers = #tpu.dot_dimension_numbers<[1], [0], [0], [1], [0, 0, 1, 1], [], []>} : vector<32x32xf32>, vector<32x384xf32>, vector<32x384xf32> -> vector<32x384xf32>
    %328 = arith.addf %323, %327 : vector<32x384xf32>
    %c0_315 = arith.constant 0 : index
    %c1_316 = arith.constant 1 : index
    %329 = vector.load %arg4[%c0_315, %c1_316] : memref<32x2xf32, #tpu.memory_space<vmem>>, vector<32x1xf32>
    %330 = vector.broadcast %329 : vector<32x1xf32> to vector<32x384xf32>
    %331 = arith.addf %328, %330 : vector<32x384xf32>
    %cst_317 = arith.constant 2.000000e-01 : f32
    %332 = vector.broadcast %cst_317 : f32 to vector<32x384xf32>
    %333 = arith.mulf %332, %331 : vector<32x384xf32>
    %334 = arith.maximumf %331, %333 : vector<32x384xf32>
    %c0_318 = arith.constant 0 : index
    %c96_319 = arith.constant 96 : index
    %335 = vector.load %arg9[%c0_318, %c96_319] : memref<32x576xf32, #tpu.memory_space<vmem>>, vector<32x384xf32>
    %336 = arith.addf %335, %334 : vector<32x384xf32>
    %c0_320 = arith.constant 0 : index
    %c0_321 = arith.constant 0 : index
    %c0_322 = arith.constant 0 : index
    %337 = vector.load %arg6[%c0_320, %c0_321, %c0_322] : memref<1x32x384xf32, #tpu.memory_space<vmem>>, vector<1x32x384xf32>
    %338 = vector.shape_cast %337 : vector<1x32x384xf32> to vector<32x384xf32>
    %339 = vector.shape_cast %336 : vector<32x384xf32> to vector<1x32x384xf32>
    tpu.vector_store %arg6[%c0_320, %c0_321, %c0_322], %339 {strides = array<i32>} : memref<1x32x384xf32, #tpu.memory_space<vmem>>, vector<1x32x384xf32>,
    return
  }
  func.func @transform_0(%arg0: i32) -> (i32, i32, i32) {
    %c0_i32 = arith.constant 0 : i32
    %c0_i32_0 = arith.constant 0 : i32
    %c0_i32_1 = arith.constant 0 : i32
    return %arg0, %c0_i32, %c0_i32_0 : i32, i32, i32
  }
  func.func @transform_1(%arg0: i32) -> (i32, i32) {
    %c0_i32 = arith.constant 0 : i32
    %c0_i32_0 = arith.constant 0 : i32
    %c0_i32_1 = arith.constant 0 : i32
    return %c0_i32, %c0_i32_0 : i32, i32
  }
  func.func @transform_2(%arg0: i32) -> (i32, i32, i32) {
    %c0_i32 = arith.constant 0 : i32
    %c0_i32_0 = arith.constant 0 : i32
    %c0_i32_1 = arith.constant 0 : i32
    %c0_i32_2 = arith.constant 0 : i32
    return %c0_i32, %c0_i32_0, %c0_i32_1 : i32, i32, i32
  }
  func.func @transform_3(%arg0: i32) -> (i32, i32) {
    %c0_i32 = arith.constant 0 : i32
    %c0_i32_0 = arith.constant 0 : i32
    %c0_i32_1 = arith.constant 0 : i32
    return %c0_i32, %c0_i32_0 : i32, i32
  }
  func.func @transform_4(%arg0: i32) -> (i32, i32) {
    %c0_i32 = arith.constant 0 : i32
    %c0_i32_0 = arith.constant 0 : i32
    %c0_i32_1 = arith.constant 0 : i32
    return %c0_i32, %c0_i32_0 : i32, i32
  }
  func.func @transform_5(%arg0: i32) -> (i32, i32, i32) {
    %c0_i32 = arith.constant 0 : i32
    %c0_i32_0 = arith.constant 0 : i32
    %c0_i32_1 = arith.constant 0 : i32
    return %arg0, %c0_i32, %c0_i32_0 : i32, i32, i32
  }
}

</mosaic_0001>

<bundles_post_ra>
// kernel: tpu_custom_call.1
= control target key start
LH: loop header
LB: loop body
LE: loop exit
PB: predicated region body
PF: predicated region fallthrough
CT: control target
= control target key end

     0   :  { %10 = vsyncpa [#allocation6], 0  ;;  %s20462_s0 = inlined_call_operand.vmem [shape: f32[2,4,256], index: 0, kind: input, shape index: {}]   ;;  %s20463_s1 = inlined_call_operand.vmem [shape: f32[32,36], index: 1, kind: input, shape index: {}]   ;;  %s20464_s2 = inlined_call_operand.vmem [shape: f32[49,32,32], index: 2, kind: input, shape index: {}]   ;;  %s20465_s3 = inlined_call_operand.vmem [shape: f32[32,2], index: 3, kind: input, shape index: {}]   ;;  %s20466_s4 = inlined_call_operand.vmem [shape: f32[1,384], index: 4, kind: input, shape index: {}]   ;;  %s20467_s5 = inlined_call_operand.hbm [shape: f32[2,32,384], index: 5, kind: output, shape index: {}]  }
   0x1   :  { %12 = vsyncpa [#allocation6 + $0x1], 0  ;;  %s12841_s18 = smov 0   ;;  %s12843_s19 = smov 0  }
   0x2   :  { %s12845_s20 = smov 0   ;;  %s12847_s21 = smov 0  }
   0x3 LB: > { %s12862_s22 = sadd.s32 4294967295, %s12738_s21   ;;  %s9715_s23 = sadd.s32 4294967294, %s12738_s21   ;;  %s12738_s21 = sphi %s12847_s21, %s21666_s21   ;;  %s12734_s20 = sphi %s12845_s20, %s21665_s20   ;;  %s12730_s19 = sphi %s12843_s19, %s21664_s19   ;;  %s12726_s18 = sphi %s12841_s18, %s21663_s18  }
   0x4   : > { %s12866_s24 = sadd.s32 1, %s12738_s21   ;;  %s135_s25 = sadd.s32 1, %s12734_s20 }
   0x5   : > { %s132_s26 = ssub.s32 %s12738_s21, %s12866_s24  ;;  %p145_p0 = scmp.ne.s32.totalorder %s12734_s20, %s12730_s19 }
   0x6   : > { %p133_p1 = scmp.eq.s32.totalorder %s132_s26, 0  ;;  %p146_p2 = scmp.eq.s32.totalorder %s12862_s22, 1 }
   0x7   : > { %p151_p3 = scmp.ne.s32.totalorder %s12730_s19, %s12726_s18  ;;  %p152_p4 = scmp.eq.s32.totalorder %s9715_s23, 1 }
   0x8   : > { %s12877_s27 = scalar_select %p133_p1, %s12734_s20, %s135_s25  }
   0x9   : > { %p12879_p5 = por %p146_p2, %p145_p0  ;;  %p12883_p6 = por %p152_p4, %p151_p3 }
   0xa   : > { %p9718_p7 = scmp.ge.s32.totalorder %s12738_s21, 1  ;;  %p190_p8 = scmp.lt.s32.totalorder %s12738_s21, 3 }
   0xc   : > { %p191_p9 = pnand %p9718_p7, %p190_p8 }
   0xe   : > { %194 = sbr.rel (%p191_p9) target bundleno = 2444 (0x98c), region = 40 }
  0x13   : > { %p218_p10 = scmp.lt.s32.totalorder %s12862_s22, 1  ;;  %s12740_s10 = smov 68   ;;  %v12756_v16 = vmov 0.0   ;;  %vm224_vm0 = vcmask 1043456   ;;  %vm225_vm1 = vcmask 785412   ;;  %vm254_vm3 = vcmask 552352  }
  0x14   : > { %s12741_s11 = smov 52   ;;  %s12742_s12 = smov 84   ;;  %223 = vst [vmem:[#allocation2] sm:$0xff] %v12756_v16  ;;  %vm226_vm2 = vmor %vm225_vm1, %vm224_vm0  ;;  %vm261_vm4 = vcmask 749152   ;;  %vm278_vm5 = vcmask 1044448   ;;  %vm279_vm6 = vcmask 97284  }
  0x15   : > { %s219_s30 = scalar_select %p218_p10, %s12862_s22, 1  ;;  %228 = vst [vmem:[#allocation4] sm:$0xff] %v12756_v16  ;;  %vm268_vm7 = vcmask 945952   ;;  %vm275_vm8 = vcmask 621568   ;;  %vm362_vm9 = vcmask 158752   ;;  %vm280_vm10 = vmor %vm279_vm6, %vm278_vm5  ;;  %vm287_vm11 = vcmask 289952  }
  0x16   : > { %s12743_s13 = smov 76   ;;  %s12744_s14 = smov 60   ;;  %231 = vst [vmem:[#allocation4 + $0x18] sm:$0xff] %v12756_v16  ;;  %vm294_vm12 = vcmask 486752   ;;  %vm315_vm13 = vcmask 949248   ;;  %vm318_vm14 = vcmask 1044384  }
  0x17   : > { %s10519_s6 = sshll.u32 %s219_s30, 3  ;;  %s12745_s15 = smov 92   ;;  %234 = vst [vmem:[#allocation4 + $0x28] sm:$0xff] %v12756_v16  ;;  %vm319_vm15 = vcmask 31748   ;;  %vm301_vm1 = vcmask 683552   ;;  %vm334_vm5 = vcmask 421152  }
  0x18   : > { %s12894_s9 = scalar_lea.vmem %s20462_s0, %s10519_s6  ;;  %s12746_s16 = smov 100   ;;  %237 = vst [vmem:[#allocation4 + $0x40] sm:$0xff] %v12756_v16  ;;  %vm341_vm6 = vcmask 617952  }
  0x19   : > { %v263_v0 = vld [vmem:[%s12894_s9] sm:$0xf]  ;;  %v310_v8 = vld [vmem:[%s12894_s9 + $0x4] sm:$0xf]  ;;  %s12747_s17 = smov 108   ;;  %s12748_s23 = smov 116  }
  0x1a   : > { %v249_v1 = vld [vmem:[%s12894_s9] sm:$0xf]  ;;  %265 = vrot.lane.b32.xlu1 %v263_v0, %s12740_s10  ;;  %v322_v9 = vld [vmem:[%s12894_s9 + $0x4] sm:$0xf]  ;;  %s12749_s25 = smov 124   ;;  %s12750_s26 = smov 4  }
  0x1b   : > { %251 = vrot.lane.b32.xlu0 %v249_v1, %s12741_s11  ;;  %v282_v2 = vld [vmem:[%s12894_s9] sm:$0xf]  ;;  %v329_v10 = vld [vmem:[%s12894_s9 + $0x4] sm:$0xf]  ;;  %s12751_s30 = smov 12   ;;  %s12752_s6 = smov 20  }
  0x1c   : > { %284 = vrot.lane.b32.xlu2 %v282_v2, %s12742_s12  ;;  %v270_v3 = vld [vmem:[%s12894_s9] sm:$0xf]  ;;  %v336_v11 = vld [vmem:[%s12894_s9 + $0x4] sm:$0xf]  ;;  %s12753_s7 = smov 28   ;;  %s12754_s8 = smov 36  }
  0x1d   : > { %v256_v4 = vld [vmem:[%s12894_s9] sm:$0xf]  ;;  %v343_v12 = vld [vmem:[%s12894_s9 + $0x4] sm:$0xf]  ;;  %s12755_s10 = smov 44   ;;  %239 = vst [vmem:[#allocation4 + $0x50] sm:$0xff] %v12756_v16 }
  0x1e   : > { %v289_v5 = vld [vmem:[%s12894_s9] sm:$0xf]  ;;  %v350_v13 = vld [vmem:[%s12894_s9 + $0x4] sm:$0xf]  ;;  %242 = vst [vmem:[#allocation4 + $0x68] sm:$0xff] %v12756_v16  ;;  %s12758_s11 = smov 104  }
  0x1f   : > { %v296_v6 = vld [vmem:[%s12894_s9] sm:$0xf]  ;;  %v357_v14 = vld [vmem:[%s12894_s9 + $0x4] sm:$0xf]  ;;  %244 = vst [vmem:[#allocation4 + $0x78] sm:$0xff] %v12756_v16  ;;  %s12759_s12 = smov 103  }
  0x20   : > { %v303_v7 = vld [vmem:[%s12894_s9] sm:$0xf]  ;;  %v364_v15 = vld [vmem:[%s12894_s9 + $0x4] sm:$0xf]  ;;  %247 = vst [vmem:[#allocation4 + $0x90] sm:$0xff] %v12756_v16  ;;  %s12757_s9 = smov 105  }
  0x21   : > { %227 = vst.msk [vmem:[#allocation2 + $0x8] sm:$0xff] %vm226_vm2, %v12756_v16  ;;  %vm308_vm2 = vcmask 880352  }
  0x22   : > { %272 = vrot.lane.b32.xlu1 %v270_v3, %s12743_s13  ;;  %s12760_s13 = smov 81  }
  0x23   : > { %258 = vrot.lane.b32.xlu0 %v256_v4, %s12744_s14  ;;  %s12761_s14 = smov 80  }
  0x24   : > { %291 = vrot.lane.b32.xlu2 %v289_v5, %s12745_s15  ;;  %s12762_s15 = smov 79  }
  0x2a   : > { %305 = vrot.lane.b32.xlu1 %v303_v7, %s12747_s17  ;;  %s12764_s17 = smov 56  }
  0x2b   : > { %298 = vrot.lane.b32.xlu0 %v296_v6, %s12746_s16  ;;  %s12763_s16 = smov 57  }
  0x2c   : > { %312 = vrot.lane.b32.xlu2 %v310_v8, %s12748_s23  ;;  %s12765_s23 = smov 55  }
  0x32   : > { %331 = vrot.lane.b32.xlu1 %v329_v10, %s12750_s26  ;;  %s12777_s26 = smov 58  }
  0x33   : > { %324 = vrot.lane.b32.xlu0 %v322_v9, %s12749_s25 }
  0x34   : > { %338 = vrot.lane.b32.xlu2 %v336_v11, %s12751_s30  ;;  %s12792_s30 = smov 6  }
  0x3a   : > { %352 = vrot.lane.b32.xlu1 %v350_v13, %s12753_s7  ;;  %s12767_s7 = smov 96  }
  0x3b   : > { %345 = vrot.lane.b32.xlu0 %v343_v12, %s12752_s6  ;;  %s12772_s6 = smov 83  }
  0x3c   : > { %359 = vrot.lane.b32.xlu2 %v357_v14, %s12754_s8  ;;  %s12768_s8 = smov 106  }
  0x43   : > { %366 = vrot.lane.b32.xlu0 %v364_v15, %s12755_s10  ;;  %s12769_s10 = smov 107  }
  0x76   : > { %v285_v17 = vpop.permute.xlu2 %284 }
  0x7e   : > { %v292_v18 = vpop.permute.xlu2 %291 }
  0x86   : > { %v313_v19 = vpop.permute.xlu2 %312 }
  0x87   : > { %v314_v28 = vrot.slane %v313_v19, 4 }
  0x89   : > { %v316_v29 = vsel %vm315_vm13, %v314_v28, %v313_v19  ;;  %vm479_vm13 = vcmask 662528  }
  0x8c   : > { %v266_v20 = vpop.permute.xlu1 %265 }
  0x8d   : > { %v252_v21 = vpop.permute.xlu0 %251 }
  0x8e   : > { %255 = vst.msk [vmem:[#allocation2] sm:$0xf] %vm254_vm3, %v252_v21  ;;  %v339_v22 = vpop.permute.xlu2 %338  ;;  %vm320_vm3 = vmor %vm319_vm15, %vm318_vm14  ;;  %vm508_vm14 = vcmask 654336   ;;  %vm538_vm15 = vcmask 646144  }
  0x94   : > { %v273_v23 = vpop.permute.xlu1 %272 }
  0x95   : > { %v259_v24 = vpop.permute.xlu0 %258  ;;  %v274_v25 = vrot.slane %v273_v23, 4 }
  0x96   : > { %262 = vst.msk [vmem:[#allocation2] sm:$0xf] %vm261_vm4, %v259_v24  ;;  %v360_v26 = vpop.permute.xlu2 %359  ;;  %vm327_vm4 = vcmask 224352  }
  0x97   : > { %269 = vst.msk [vmem:[#allocation2] sm:$0xf] %vm268_vm7, %v266_v20  ;;  %v276_v27 = vsel %vm275_vm8, %v274_v25, %v273_v23  ;;  %vm348_vm7 = vcmask 814752   ;;  %vm355_vm8 = vcmask 1011552  }
  0x98   : > { %363 = vst.msk [vmem:[#allocation2 + $0xc] sm:$0xf] %vm362_vm9, %v360_v26  ;;  %vm369_vm9 = vcmask 355552  }
  0x99   : > { %281 = vst.msk [vmem:[#allocation2] sm:$0xff] %vm280_vm10, %v276_v27  ;;  %vm390_vm10 = vcmask 859136  }
  0x9a   : > { %288 = vst.msk [vmem:[#allocation2 + $0x4] sm:$0xf] %vm287_vm11, %v285_v17  ;;  %vm420_vm11 = vcmask 850944  }
  0x9b   : > { %295 = vst.msk [vmem:[#allocation2 + $0x4] sm:$0xf] %vm294_vm12, %v292_v18  ;;  %vm449_vm12 = vcmask 842752  }
  0x9c   : > { %v306_v31 = vpop.permute.xlu1 %305 }
  0x9d   : > { %v299_v30 = vpop.permute.xlu0 %298 }
  0x9e   : > { %302 = vst.msk [vmem:[#allocation2 + $0x4] sm:$0xf] %vm301_vm1, %v299_v30  ;;  %vm567_vm1 = vcmask 465920  }
  0x9f   : > { %309 = vst.msk [vmem:[#allocation2 + $0x4] sm:$0xf] %vm308_vm2, %v306_v31  ;;  %vm597_vm2 = vcmask 457728  }
  0xa0   : > { %321 = vst.msk [vmem:[#allocation2 + $0x4] sm:$0xff] %vm320_vm3, %v316_v29  ;;  %vm626_vm3 = vcmask 449536  }
  0xa4   : > { %v332_v33 = vpop.permute.xlu1 %331 }
  0xa5   : > { %v325_v32 = vpop.permute.xlu0 %324 }
  0xa6   : > { %328 = vst.msk [vmem:[#allocation2 + $0x8] sm:$0xf] %vm327_vm4, %v325_v32  ;;  %vm679_vm4 = vcmask 293888  }
  0xa7   : > { %v12923_v34 = vld [vmem:[#allocation2] sm:$0xff]  ;;  %335 = vst.msk [vmem:[#allocation2 + $0x8] sm:$0xf] %vm334_vm5, %v332_v33  ;;  %vm232_vm5 = vcmask 523264  }
  0xa8   : > { %375 = vst [vmem:[#allocation1] ss:$2 sm:$0xff] %v12923_v34 }
  0xa9   : > { %342 = vst.msk [vmem:[#allocation2 + $0x8] sm:$0xf] %vm341_vm6, %v339_v22  ;;  %vm868_vm6 = vcmask 785408  }
  0xaa   : > { %233 = vst.msk [vmem:[#allocation4 + $0x20] sm:$0xff] %vm232_vm5, %v12756_v16 }
  0xab   : > { %238 = vst.msk [vmem:[#allocation4 + $0x48] sm:$0xff] %vm232_vm5, %v12756_v16 }
  0xac   : > { %v353_v36 = vpop.permute.xlu1 %352  ;;  %243 = vst.msk [vmem:[#allocation4 + $0x70] sm:$0xff] %vm232_vm5, %v12756_v16 }
  0xad   : > { %v346_v35 = vpop.permute.xlu0 %345  ;;  %248 = vst.msk [vmem:[#allocation4 + $0x98] sm:$0xff] %vm232_vm5, %v12756_v16  ;;  %vm4752_vm5 = vcmask 277504  }
  0xae   : > { %349 = vst.msk [vmem:[#allocation2 + $0x8] sm:$0xf] %vm348_vm7, %v346_v35  ;;  %vm983_vm7 = vcmask 867328  }
  0xaf   : > { %v379_v37 = vld.sshfl [vmem:[#allocation1 + $0x8] sm:$0xff pattern:$0x75316420]  ;;  %v378_v38 = vld.sshfl [vmem:[#allocation1] sm:$0xff pattern:$0x75316420] }
  0xb0   : > { %384 = vrot.lane.b32.xlu2 %v379_v37, %s12757_s9  ;;  %382 = vrot.lane.b32.xlu1 %v378_v38, %s12757_s9  ;;  %405 = vst [vmem:[#allocation1 + $0x1] ss:$2 sm:$0xff] %v12923_v34 }
  0xb1   : > { %356 = vst.msk [vmem:[#allocation2 + $0x8] sm:$0xf] %vm355_vm8, %v353_v36  ;;  %vm1140_vm8 = vcmask 875520  }
  0xb5   : > { %v367_v39 = vpop.permute.xlu0 %366 }
  0xb6   : > { %370 = vst.msk [vmem:[#allocation2 + $0xc] sm:$0xf] %vm369_vm9, %v367_v39  ;;  %vm1008_vm9 = vcmask 261120  }
  0xb7   : > { %v408_v40 = vld.sshfl [vmem:[#allocation1] sm:$0xff pattern:$0x75316420]  ;;  %v409_v41 = vld.sshfl [vmem:[#allocation1 + $0x8] sm:$0xff pattern:$0x75316420] }
  0xb8   : > { %412 = vrot.lane.b32.xlu2 %v408_v40, %s12758_s11  ;;  %434 = vst [vmem:[#allocation1] ss:$2 sm:$0xff] %v12923_v34 }
  0xbd   : > { %v12931_v42 = vld [vmem:[#allocation2 + $0x8] sm:$0xff] }
  0xbe   : > { %377 = vst [vmem:[#allocation1 + $0x10] ss:$2 sm:$0xff] %v12931_v42 }
  0xbf   : > { %v437_v43 = vld.sshfl [vmem:[#allocation1] sm:$0xff pattern:$0x75316420]  ;;  %v438_v44 = vld.sshfl [vmem:[#allocation1 + $0x8] sm:$0xff pattern:$0x75316420] }
  0xc0   : > { %464 = vst [vmem:[#allocation1 + $0x1] ss:$2 sm:$0xff] %v12923_v34 }
  0xc5   : > { %v381_v45 = vld.sshfl [vmem:[#allocation1 + $0x18] sm:$0xff pattern:$0x75316420]  ;;  %v380_v46 = vld.sshfl [vmem:[#allocation1 + $0x10] sm:$0xff pattern:$0x75316420] }
  0xc6   : > { %388 = vrot.lane.b32.xlu1 %v381_v45, %s12757_s9  ;;  %386 = vrot.lane.b32.xlu0 %v380_v46, %s12757_s9  ;;  %407 = vst [vmem:[#allocation1 + $0x11] ss:$2 sm:$0xff] %v12931_v42 }
  0xc7   : > { %v467_v47 = vld.sshfl [vmem:[#allocation1] sm:$0xff pattern:$0x75316420]  ;;  %v468_v48 = vld.sshfl [vmem:[#allocation1 + $0x8] sm:$0xff pattern:$0x75316420] }
  0xc8   : > { %493 = vst [vmem:[#allocation1] ss:$2 sm:$0xff] %v12923_v34 }
  0xcd   : > { %v411_v49 = vld.sshfl [vmem:[#allocation1 + $0x18] sm:$0xff pattern:$0x75316420]  ;;  %v410_v50 = vld.sshfl [vmem:[#allocation1 + $0x10] sm:$0xff pattern:$0x75316420] }
  0xce   : > { %414 = vrot.lane.b32.xlu0 %v409_v41, %s12758_s11  ;;  %418 = vrot.lane.b32.xlu2 %v411_v49, %s12758_s11  ;;  %436 = vst [vmem:[#allocation1 + $0x10] ss:$2 sm:$0xff] %v12931_v42 }
  0xcf   : > { %416 = vrot.lane.b32.xlu1 %v410_v50, %s12758_s11  ;;  %v496_v51 = vld.sshfl [vmem:[#allocation1] sm:$0xff pattern:$0x75316420]  ;;  %v497_v52 = vld.sshfl [vmem:[#allocation1 + $0x8] sm:$0xff pattern:$0x75316420] }
  0xd0   : > { %523 = vst [vmem:[#allocation1 + $0x1] ss:$2 sm:$0xff] %v12923_v34 }
  0xd5   : > { %v439_v53 = vld.sshfl [vmem:[#allocation1 + $0x10] sm:$0xff pattern:$0x75316420]  ;;  %v440_v54 = vld.sshfl [vmem:[#allocation1 + $0x18] sm:$0xff pattern:$0x75316420] }
  0xd6   : > { %441 = vrot.lane.b32.xlu0 %v437_v43, %s12759_s12  ;;  %445 = vrot.lane.b32.xlu2 %v439_v53, %s12759_s12  ;;  %466 = vst [vmem:[#allocation1 + $0x11] ss:$2 sm:$0xff] %v12931_v42 }
  0xd7   : > { %443 = vrot.lane.b32.xlu1 %v438_v44, %s12759_s12  ;;  %v526_v55 = vld.sshfl [vmem:[#allocation1] sm:$0xff pattern:$0x75316420]  ;;  %v527_v56 = vld.sshfl [vmem:[#allocation1 + $0x8] sm:$0xff pattern:$0x75316420] }
  0xd8   : > { %552 = vst [vmem:[#allocation1] ss:$2 sm:$0xff] %v12923_v34 }
  0xdd   : > { %v470_v57 = vld.sshfl [vmem:[#allocation1 + $0x18] sm:$0xff pattern:$0x75316420]  ;;  %v469_v58 = vld.sshfl [vmem:[#allocation1 + $0x10] sm:$0xff pattern:$0x75316420] }
  0xde   : > { %447 = vrot.lane.b32.xlu0 %v440_v54, %s12759_s12  ;;  %473 = vrot.lane.b32.xlu2 %v468_v48, %s12760_s13  ;;  %495 = vst [vmem:[#allocation1 + $0x10] ss:$2 sm:$0xff] %v12931_v42 }
  0xdf   : > { %471 = vrot.lane.b32.xlu1 %v467_v47, %s12760_s13  ;;  %v555_v59 = vld.sshfl [vmem:[#allocation1] sm:$0xff pattern:$0x75316420]  ;;  %v556_v60 = vld.sshfl [vmem:[#allocation1 + $0x8] sm:$0xff pattern:$0x75316420] }
  0xe0   : > { %582 = vst [vmem:[#allocation1 + $0x1] ss:$2 sm:$0xff] %v12923_v34 }
  0xe5   : > { %v499_v61 = vld.sshfl [vmem:[#allocation1 + $0x18] sm:$0xff pattern:$0x75316420]  ;;  %v498_v62 = vld.sshfl [vmem:[#allocation1 + $0x10] sm:$0xff pattern:$0x75316420] }
  0xe6   : > { %500 = vrot.lane.b32.xlu2 %v496_v51, %s12761_s14  ;;  %475 = vrot.lane.b32.xlu0 %v469_v58, %s12760_s13  ;;  %525 = vst [vmem:[#allocation1 + $0x11] ss:$2 sm:$0xff] %v12931_v42 }
  0xe7   : > { %477 = vrot.lane.b32.xlu1 %v470_v57, %s12760_s13  ;;  %v585_v63 = vld.sshfl [vmem:[#allocation1] sm:$0xff pattern:$0x75316420]  ;;  %v586_v0 = vld.sshfl [vmem:[#allocation1 + $0x8] sm:$0xff pattern:$0x75316420] }
  0xe8   : > { %611 = vst [vmem:[#allocation1] ss:$2 sm:$0xff] %v12923_v34 }
  0xed   : > { %v528_v1 = vld.sshfl [vmem:[#allocation1 + $0x10] sm:$0xff pattern:$0x75316420]  ;;  %v529_v2 = vld.sshfl [vmem:[#allocation1 + $0x18] sm:$0xff pattern:$0x75316420] }
  0xee   : > { %502 = vrot.lane.b32.xlu0 %v497_v52, %s12761_s14  ;;  %506 = vrot.lane.b32.xlu2 %v499_v61, %s12761_s14  ;;  %554 = vst [vmem:[#allocation1 + $0x10] ss:$2 sm:$0xff] %v12931_v42 }
  0xef   : > { %504 = vrot.lane.b32.xlu1 %v498_v62, %s12761_s14  ;;  %v614_v7 = vld.sshfl [vmem:[#allocation1] sm:$0xff pattern:$0x75316420]  ;;  %v615_v9 = vld.sshfl [vmem:[#allocation1 + $0x8] sm:$0xff pattern:$0x75316420] }
  0xf5   : > { %v558_v3 = vld.sshfl [vmem:[#allocation1 + $0x18] sm:$0xff pattern:$0x75316420]  ;;  %v557_v4 = vld.sshfl [vmem:[#allocation1 + $0x10] sm:$0xff pattern:$0x75316420] }
  0xf6   : > { %530 = vrot.lane.b32.xlu0 %v526_v55, %s12762_s15  ;;  %534 = vrot.lane.b32.xlu2 %v528_v1, %s12762_s15  ;;  %584 = vst [vmem:[#allocation1 + $0x11] ss:$2 sm:$0xff] %v12931_v42 }
  0xf7   : > { %532 = vrot.lane.b32.xlu1 %v527_v56, %s12762_s15 }
  0xfd   : > { %v588_v5 = vld.sshfl [vmem:[#allocation1 + $0x18] sm:$0xff pattern:$0x75316420]  ;;  %v587_v6 = vld.sshfl [vmem:[#allocation1 + $0x10] sm:$0xff pattern:$0x75316420] }
  0xfe   : > { %536 = vrot.lane.b32.xlu0 %v529_v2, %s12762_s15  ;;  %561 = vrot.lane.b32.xlu2 %v556_v60, %s12763_s16  ;;  %613 = vst [vmem:[#allocation1 + $0x10] ss:$2 sm:$0xff] %v12931_v42 }
  0xff   : > { %559 = vrot.lane.b32.xlu1 %v555_v59, %s12763_s16 }
 0x105   : > { %v616_v8 = vld.sshfl [vmem:[#allocation1 + $0x10] sm:$0xff pattern:$0x75316420]  ;;  %v617_v11 = vld.sshfl [vmem:[#allocation1 + $0x18] sm:$0xff pattern:$0x75316420] }
 0x106   : > { %589 = vrot.lane.b32.xlu2 %v585_v63, %s12764_s17  ;;  %563 = vrot.lane.b32.xlu0 %v557_v4, %s12763_s16  ;;  %v655_v4 = vld [vmem:[%s20465_s3] sm:$0xff] }
 0x107   : > { %565 = vrot.lane.b32.xlu1 %v558_v3, %s12763_s16 }
 0x10a   : > { %v385_v10 = vpop.permute.xlu2 %384 }
 0x10e   : > { %591 = vrot.lane.b32.xlu0 %v586_v0, %s12764_s17  ;;  %595 = vrot.lane.b32.xlu2 %v588_v5, %s12764_s17  ;;  %v657_v5 = vld [vmem:[%s20465_s3 + $0x10] sm:$0xff] }
 0x10f   : > { %593 = vrot.lane.b32.xlu1 %v587_v6, %s12764_s17  ;;  %v12766_v6 = vmov 0  }
 0x110   : > { %10643 = vset.pattern.permute.xlu0 %v12766_v6  ;;  %10641 = vset.pattern.permute.xlu1 %v12766_v6 }
 0x111   : > { %10642 = vset.pattern.permute.xlu2 %v12766_v6 }
 0x112   : > { %v413_v14 = vpop.permute.xlu2 %412 }
 0x116   : > { %618 = vrot.lane.b32.xlu0 %v614_v7, %s12765_s23  ;;  %622 = vrot.lane.b32.xlu2 %v616_v8, %s12765_s23 }
 0x117   : > { %620 = vrot.lane.b32.xlu1 %v615_v9, %s12765_s23 }
 0x11e   : > { %624 = vrot.lane.b32.xlu0 %v617_v11, %s12765_s23 }
 0x11f   : > { %661 = vperm.xlu1 %10641, %v655_v4  }
 0x122   : > { %v383_v12 = vpop.permute.xlu1 %382 }
 0x123   : > { %v391_v13 = vsel %vm390_vm10, %v383_v12, %v385_v10  ;;  %v658_v12 = vld [vmem:[%s20465_s3 + $0x18] sm:$0xff] }
 0x124   : > { %397 = vst [vmem:[#allocation3 + $0x30] sm:$0xf] %v391_v13 }
 0x126   : > { %671 = vperm.xlu0 %10643, %v657_v5  }
 0x127   : > { %676 = vperm.xlu1 %10641, %v658_v12  }
 0x128   : > { %v419_v15 = vpop.permute.xlu2 %418 }
 0x130   : > { %v446_v19 = vpop.permute.xlu2 %445 }
 0x138   : > { %v389_v17 = vpop.permute.xlu1 %388  ;;  %v387_v18 = vpop.permute.xlu0 %386 }
 0x139   : > { %v392_v20 = vsel %vm390_vm10, %v385_v10, %v387_v18  ;;  %v393_v21 = vsel %vm390_vm10, %v387_v18, %v389_v17  ;;  %v474_v27 = vpop.permute.xlu2 %473 }
 0x13a   : > { %398 = vst [vmem:[#allocation3] sm:$0xf] %v392_v20 }
 0x13b   : > { %399 = vst [vmem:[#allocation3 + $0x58] sm:$0xf] %v393_v21  ;;  %v636_v21 = vld [vmem:[%s20463_s1] sm:$0xff] }
 0x140   : > { %v415_v22 = vpop.permute.xlu0 %414 }
 0x141   : > { %v421_v23 = vsel %vm420_vm11, %v413_v14, %v415_v22  ;;  %v417_v24 = vpop.permute.xlu1 %416  ;;  %v501_v32 = vpop.permute.xlu2 %500 }
 0x142   : > { %427 = vst [vmem:[#allocation3 + $0x30] sm:$0xf0] %v421_v23  ;;  %v422_v25 = vsel %vm420_vm11, %v415_v22, %v417_v24  ;;  %v423_v26 = vsel %vm420_vm11, %v417_v24, %v419_v15  ;;  %v638_v22 = vld [vmem:[%s20463_s1 + $0x10] sm:$0xff] }
 0x143   : > { %428 = vst [vmem:[#allocation3] sm:$0xf0] %v422_v25 }
 0x144   : > { %429 = vst [vmem:[#allocation3 + $0x58] sm:$0xf0] %v423_v26 }
 0x148   : > { %v442_v28 = vpop.permute.xlu0 %441 }
 0x149   : > { %v444_v29 = vpop.permute.xlu1 %443  ;;  %v507_v37 = vpop.permute.xlu2 %506  ;;  %v640_v23 = vld [vmem:[#allocation3 + $0x30] sm:$0xff] }
 0x14a   : > { %v450_v30 = vsel %vm449_vm12, %v442_v28, %v444_v29  ;;  %v451_v31 = vsel %vm449_vm12, %v444_v29, %v446_v19 }
 0x14b   : > { %456 = vst [vmem:[#allocation3 + $0x18] sm:$0xf] %v450_v30  ;;  %v637_v30 = vld [vmem:[%s20463_s1 + $0x8] sm:$0xff] }
 0x14c   : > { %457 = vst [vmem:[#allocation3 + $0x50] sm:$0xf] %v451_v31  ;;  %v639_v31 = vld [vmem:[%s20463_s1 + $0x18] sm:$0xff] }
 0x150   : > { %v448_v33 = vpop.permute.xlu0 %447 }
 0x151   : > { %v472_v34 = vpop.permute.xlu1 %471  ;;  %v452_v35 = vsel %vm449_vm12, %v446_v19, %v448_v33  ;;  %v535_v43 = vpop.permute.xlu2 %534  ;;  %v642_v33 = vld [vmem:[#allocation3 + $0x58] sm:$0xff] }
 0x152   : > { %v480_v36 = vsel %vm479_vm13, %v472_v34, %v474_v27  ;;  %458 = vst [vmem:[#allocation3 + $0x68] sm:$0xf] %v452_v35  ;;  %v641_v34 = vld [vmem:[#allocation3] sm:$0xff]  ;;  %v656_v35 = vld [vmem:[%s20465_s3 + $0x8] sm:$0xff] }
 0x153   : > { %486 = vst [vmem:[#allocation3 + $0x18] sm:$0xf0] %v480_v36  ;;  %666 = vperm.xlu2 %10642, %v656_v35  }
 0x158   : > { %v476_v38 = vpop.permute.xlu0 %475 }
 0x159   : > { %v478_v39 = vpop.permute.xlu1 %477  ;;  %v481_v40 = vsel %vm479_vm13, %v474_v27, %v476_v38  ;;  %v562_v52 = vpop.permute.xlu2 %561 }
 0x15a   : > { %v482_v41 = vsel %vm479_vm13, %v476_v38, %v478_v39  ;;  %487 = vst [vmem:[#allocation3 + $0x50] sm:$0xf0] %v481_v40  ;;  %v643_v19 = vld [vmem:[#allocation3 + $0x18] sm:$0xff]  ;;  %v812_v40 = vld [vmem:[%s20466_s4] sm:$0x7] }
 0x15b   : > { %488 = vst [vmem:[#allocation3 + $0x68] sm:$0xf0] %v482_v41 }
 0x160   : > { %v503_v42 = vpop.permute.xlu0 %502 }
 0x161   : > { %v509_v44 = vsel %vm508_vm14, %v501_v32, %v503_v42  ;;  %v505_v45 = vpop.permute.xlu1 %504  ;;  %v590_v57 = vpop.permute.xlu2 %589  ;;  %v644_v32 = vld [vmem:[#allocation3 + $0x50] sm:$0xff] }
 0x162   : > { %515 = vst [vmem:[#allocation3 + $0x8] sm:$0xf] %v509_v44  ;;  %v510_v46 = vsel %vm508_vm14, %v503_v42, %v505_v45  ;;  %v511_v47 = vsel %vm508_vm14, %v505_v45, %v507_v37  ;;  %v645_v29 = vld [vmem:[#allocation3 + $0x68] sm:$0xff]  ;;  %v814_v45 = vperm.slane %v812_v40, 0 }
 0x163   : > { %516 = vst [vmem:[#allocation3 + $0x48] sm:$0xf] %v510_v46 }
 0x164   : > { %517 = vst [vmem:[#allocation3 + $0x40] sm:$0xf] %v511_v47 }
 0x168   : > { %v531_v48 = vpop.permute.xlu0 %530 }
 0x169   : > { %v533_v49 = vpop.permute.xlu1 %532  ;;  %v596_v62 = vpop.permute.xlu2 %595 }
 0x16a   : > { %v539_v50 = vsel %vm538_vm15, %v531_v48, %v533_v49  ;;  %v540_v51 = vsel %vm538_vm15, %v533_v49, %v535_v43 }
 0x16b   : > { %545 = vst [vmem:[#allocation3 + $0x8] sm:$0xf0] %v539_v50 }
 0x16c   : > { %546 = vst [vmem:[#allocation3 + $0x48] sm:$0xf0] %v540_v51 }
 0x170   : > { %v537_v53 = vpop.permute.xlu0 %536 }
 0x171   : > { %v560_v54 = vpop.permute.xlu1 %559  ;;  %v541_v55 = vsel %vm538_vm15, %v535_v43, %v537_v53  ;;  %v623_v8 = vpop.permute.xlu2 %622 }
 0x172   : > { %v568_v56 = vsel %vm567_vm1, %v560_v54, %v562_v52  ;;  %547 = vst [vmem:[#allocation3 + $0x40] sm:$0xf0] %v541_v55  ;;  %v646_v18 = vld [vmem:[#allocation3 + $0x8] sm:$0xff] }
 0x173   : > { %574 = vst [vmem:[#allocation3 + $0x20] sm:$0xf] %v568_v56  ;;  %v647_v28 = vld [vmem:[#allocation3 + $0x48] sm:$0xff] }
 0x178   : > { %v564_v58 = vpop.permute.xlu0 %563 }
 0x179   : > { %v566_v59 = vpop.permute.xlu1 %565  ;;  %v569_v60 = vsel %vm567_vm1, %v562_v52, %v564_v58  ;;  %v648_v27 = vld [vmem:[#allocation3 + $0x40] sm:$0xff] }
 0x17a   : > { %v570_v61 = vsel %vm567_vm1, %v564_v58, %v566_v59  ;;  %575 = vst [vmem:[#allocation3 + $0x10] sm:$0xf] %v569_v60 }
 0x17b   : > { %576 = vst [vmem:[#allocation3 + $0x38] sm:$0xf] %v570_v61 }
 0x180   : > { %v592_v63 = vpop.permute.xlu0 %591 }
 0x181   : > { %v598_v0 = vsel %vm597_vm2, %v590_v57, %v592_v63  ;;  %v594_v1 = vpop.permute.xlu1 %593 }
 0x182   : > { %604 = vst [vmem:[#allocation3 + $0x20] sm:$0xf0] %v598_v0  ;;  %v599_v2 = vsel %vm597_vm2, %v592_v63, %v594_v1  ;;  %v600_v3 = vsel %vm597_vm2, %v594_v1, %v596_v62  ;;  %v816_v1 = vperm.slane %v812_v40, 2 }
 0x183   : > { %605 = vst [vmem:[#allocation3 + $0x10] sm:$0xf0] %v599_v2 }
 0x184   : > { %606 = vst [vmem:[#allocation3 + $0x38] sm:$0xf0] %v600_v3  ;;  %v815_v3 = vperm.slane %v812_v40, 1 }
 0x188   : > { %v619_v7 = vpop.permute.xlu0 %618 }
 0x189   : > { %v621_v9 = vpop.permute.xlu1 %620  ;;  %v649_v17 = vld [vmem:[#allocation3 + $0x20] sm:$0xff] }
 0x18a   : > { %v627_v10 = vsel %vm626_vm3, %v619_v7, %v621_v9  ;;  %v628_v11 = vsel %vm626_vm3, %v621_v9, %v623_v8  ;;  %v650_v26 = vld [vmem:[#allocation3 + $0x10] sm:$0xff] }
 0x18b   : > { %633 = vst [vmem:[#allocation3 + $0x60] sm:$0xf] %v627_v10  ;;  %v651_v25 = vld [vmem:[#allocation3 + $0x38] sm:$0xff] }
 0x18c   : > { %634 = vst [vmem:[#allocation3 + $0x70] sm:$0xf] %v628_v11 }
 0x190   : > { %v625_v13 = vpop.permute.xlu0 %624 }
 0x191   : > { %v629_v14 = vsel %vm626_vm3, %v623_v8, %v625_v13  ;;  %v662_v36 = vpop.permute.xlu1 %661 }
 0x192   : > { %635 = vst [vmem:[#allocation3 + $0x28] sm:$0xf] %v629_v14  ;;  %v652_v15 = vld [vmem:[#allocation3 + $0x60] sm:$0xf] }
 0x193   : > { %9721 = vmatpush.msk.msra.mxu0 %vm224_vm0, %v652_v15  ;;  %10520 = vmatpush.msk.msra.mxu1 %vm224_vm0, %v652_v15  ;;  %v653_v24 = vld [vmem:[#allocation3 + $0x70] sm:$0xf] }
 0x195   : > { %713 = vmatpush.msra.mxu0 %v649_v17  ;;  %10521 = vmatpush.msra.mxu1 %v649_v17 }
 0x197   : > { %714 = vmatpush.msra.mxu0 %v646_v18  ;;  %10522 = vmatpush.msra.mxu1 %v646_v18 }
 0x198   : > { %v672_v37 = vpop.permute.xlu0 %671 }
 0x199   : > { %715 = vmatpush.msra.mxu0 %v643_v19  ;;  %10523 = vmatpush.msra.mxu1 %v643_v19  ;;  %v654_v20 = vld [vmem:[#allocation3 + $0x28] sm:$0xf]  ;;  %v677_v49 = vpop.permute.xlu1 %676 }
 0x19a   : > { %9731 = vmatpush.msk.msra.mxu2 %vm224_vm0, %v654_v20 }
 0x19b   : > { %716 = vmatpush.msra.mxu0 %v640_v23  ;;  %10524 = vmatpush.msra.mxu1 %v640_v23 }
 0x19c   : > { %9722 = vmatmul.msk.f32.vlgmr.msra.gmra.mxu0 %vm679_vm4, %v636_v21  ;;  %9724 = vmatmul.msk.f32.vlgmr.msra.gmra.mxu1 %vm679_vm4, %v638_v22 }
 0x19d   : > { %9726 = vmatpush.msk.msrb.mxu1 %vm224_vm0, %v653_v24  ;;  %771 = vmatpush.msra.mxu2 %v651_v25  ;;  %vm893_vm0 = vcmask 1048320  }
 0x19f   : > { %742 = vmatpush.msrb.mxu1 %v650_v26  ;;  %772 = vmatpush.msra.mxu2 %v648_v27 }
 0x1a1   : > { %743 = vmatpush.msrb.mxu1 %v647_v28  ;;  %773 = vmatpush.msra.mxu2 %v645_v29 }
 0x1a3   : > { %744 = vmatpush.msrb.mxu1 %v644_v32  ;;  %774 = vmatpush.msra.mxu2 %v642_v33 }
 0x1a4   : > { %9723 = vmatmul.msk.f32.gmra.mxu0 %vm679_vm4, %v637_v30  ;;  %9725 = vmatmul.msk.f32.gmra.mxu1 %vm679_vm4, %v639_v31 }
 0x1a5   : > { %745 = vmatpush.msrb.mxu1 %v641_v34  ;;  %9732 = vmatmul.msk.f32.vlgmr.msra.gmra.mxu2 %vm679_vm4, %v636_v21 }
 0x1ac   : > { %9727 = vmatmul.msk.f32.vlgmr.msrb.gmra.mxu1 %vm679_vm4, %v636_v21 }
 0x1ad   : > { %9733 = vmatmul.msk.f32.gmra.mxu2 %vm679_vm4, %v637_v30  ;;  %v667_v48 = vpop.permute.xlu2 %666 }
 0x1b4   : > { %9728 = vmatmul.msk.f32.gmra.mxu1 %vm679_vm4, %v637_v30 }
 0x1b5   : > { %9734 = vmatmul.msk.f32.gmra.mxu2 %vm679_vm4, %v638_v22 }
 0x1bc   : > { %9729 = vmatmul.msk.f32.gmra.mxu1 %vm679_vm4, %v638_v22 }
 0x1bd   : > { %9735 = vmatmul.msk.f32.gmra.mxu2 %vm679_vm4, %v639_v31 }
 0x1c4   : > { %9730 = vmatmul.msk.f32.gmra.mxu1 %vm679_vm4, %v639_v31  ;;  %vm2336_vm4 = vcmask 670720  }
 0x219   : > { %v718_v38 = vpop.f32.mrf.mxu0  ;;  %v724_v39 = vpop.f32.mrf.mxu1 }
 0x21a   : > { %v719_v41 = vadd.f32 %v718_v38, %v662_v36  ;;  %v725_v42 = vadd.f32 %v724_v39, %v672_v37 }
 0x21c   : > { %v788_v43 = vmul.f32 0.2, %v719_v41  ;;  %v794_v44 = vmul.f32 0.2, %v725_v42 }
 0x21e   : > { %v806_v46 = vmax.f32 %v725_v42, %v794_v44  ;;  %v800_v47 = vmax.f32 %v719_v41, %v788_v43 }
 0x220   : > { %v826_v50 = vmul.f32 %v814_v45, %v806_v46  ;;  %v820_v51 = vmul.f32 %v814_v45, %v800_v47 }
 0x221   : > { %v721_v52 = vpop.f32.mrf.mxu0  ;;  %v727_v53 = vpop.f32.mrf.mxu1 }
 0x222   : > { %v722_v54 = vadd.f32 %v721_v52, %v667_v48  ;;  %856 = vrot.lane.b32.xlu0 %v826_v50, %s12767_s7  ;;  %844 = vrot.lane.b32.xlu2 %v820_v51, %s12767_s7  ;;  %v728_v55 = vadd.f32 %v727_v53, %v677_v49 }
 0x224   : > { %v791_v56 = vmul.f32 0.2, %v722_v54  ;;  %v797_v58 = vmul.f32 0.2, %v728_v55 }
 0x226   : > { %v803_v57 = vmax.f32 %v722_v54, %v791_v56  ;;  %v809_v4 = vmax.f32 %v728_v55, %v797_v58 }
 0x228   : > { %v776_v59 = vpop.f32.mrf.mxu2  ;;  %v823_v60 = vmul.f32 %v814_v45, %v803_v57  ;;  %v829_v10 = vmul.f32 %v814_v45, %v809_v4 }
 0x229   : > { %v777_v61 = vadd.f32 %v776_v59, %v662_v36  ;;  %v747_v62 = vpop.f32.mrf.mxu1 }
 0x22a   : > { %v748_v63 = vadd.f32 %v747_v62, %v662_v36  ;;  %850 = vrot.lane.b32.xlu0 %v823_v60, %s12767_s7 }
 0x22b   : > { %v790_v0 = vmul.f32 0.2, %v777_v61 }
 0x22c   : > { %v789_v2 = vmul.f32 0.2, %v748_v63 }
 0x22d   : > { %v802_v5 = vmax.f32 %v777_v61, %v790_v0 }
 0x22e   : > { %v801_v6 = vmax.f32 %v748_v63, %v789_v2 }
 0x22f   : > { %v822_v7 = vmul.f32 %v816_v1, %v802_v5 }
 0x230   : > { %v779_v8 = vpop.f32.mrf.mxu2  ;;  %v821_v9 = vmul.f32 %v815_v3, %v801_v6 }
 0x231   : > { %v780_v11 = vadd.f32 %v779_v8, %v667_v48  ;;  %848 = vrot.lane.b32.xlu2 %v822_v7, %s12767_s7  ;;  %v750_v12 = vpop.f32.mrf.mxu1 }
 0x232   : > { %v751_v13 = vadd.f32 %v750_v12, %v667_v48  ;;  %846 = vrot.lane.b32.xlu1 %v821_v9, %s12767_s7  ;;  %862 = vrot.lane.b32.xlu0 %v829_v10, %s12767_s7 }
 0x233   : > { %v793_v14 = vmul.f32 0.2, %v780_v11 }
 0x234   : > { %v792_v15 = vmul.f32 0.2, %v751_v13 }
 0x235   : > { %v805_v17 = vmax.f32 %v780_v11, %v793_v14 }
 0x236   : > { %v804_v18 = vmax.f32 %v751_v13, %v792_v15 }
 0x237   : > { %v825_v19 = vmul.f32 %v816_v1, %v805_v17 }
 0x238   : > { %v782_v20 = vpop.f32.mrf.mxu2  ;;  %v824_v21 = vmul.f32 %v815_v3, %v804_v18 }
 0x239   : > { %v783_v22 = vadd.f32 %v782_v20, %v672_v37  ;;  %854 = vrot.lane.b32.xlu2 %v825_v19, %s12767_s7  ;;  %v753_v23 = vpop.f32.mrf.mxu1 }
 0x23a   : > { %v754_v24 = vadd.f32 %v753_v23, %v672_v37  ;;  %852 = vrot.lane.b32.xlu1 %v824_v21, %s12767_s7 }
 0x23b   : > { %v796_v25 = vmul.f32 0.2, %v783_v22 }
 0x23c   : > { %v795_v26 = vmul.f32 0.2, %v754_v24 }
 0x23d   : > { %v808_v27 = vmax.f32 %v783_v22, %v796_v25 }
 0x23e   : > { %v807_v28 = vmax.f32 %v754_v24, %v795_v26 }
 0x23f   : > { %v828_v29 = vmul.f32 %v816_v1, %v808_v27 }
 0x240   : > { %v785_v30 = vpop.f32.mrf.mxu2  ;;  %v827_v31 = vmul.f32 %v815_v3, %v807_v28 }
 0x241   : > { %v786_v32 = vadd.f32 %v785_v30, %v677_v49  ;;  %860 = vrot.lane.b32.xlu2 %v828_v29, %s12767_s7  ;;  %v756_v33 = vpop.f32.mrf.mxu1 }
 0x242   : > { %v757_v34 = vadd.f32 %v756_v33, %v677_v49  ;;  %858 = vrot.lane.b32.xlu1 %v827_v31, %s12767_s7 }
 0x243   : > { %v799_v35 = vmul.f32 0.2, %v786_v32 }
 0x244   : > { %v798_v36 = vmul.f32 0.2, %v757_v34 }
 0x245   : > { %v811_v38 = vmax.f32 %v786_v32, %v799_v35 }
 0x246   : > { %v810_v37 = vmax.f32 %v757_v34, %v798_v36 }
 0x247   : > { %v831_v39 = vmul.f32 %v816_v1, %v811_v38 }
 0x248   : > { %v830_v40 = vmul.f32 %v815_v3, %v810_v37 }
 0x249   : > { %866 = vrot.lane.b32.xlu2 %v831_v39, %s12767_s7 }
 0x24a   : > { %864 = vrot.lane.b32.xlu1 %v830_v40, %s12767_s7 }
 0x27c   : > { %v845_v41 = vpop.permute.xlu2 %844 }
 0x27d   : > { %894 = vst.msk [vmem:[#allocation4] sm:$0xff] %vm893_vm0, %v845_v41 }
 0x284   : > { %v914_v49 = vld [vmem:[#allocation4] sm:$0xff] }
 0x28b   : > { %v849_v42 = vpop.permute.xlu2 %848 }
 0x28c   : > { %897 = vst.msk [vmem:[#allocation4 + $0x18] sm:$0xff] %vm868_vm6, %v849_v42 }
 0x293   : > { %v855_v43 = vpop.permute.xlu2 %854  ;;  %v917_v50 = vld [vmem:[#allocation4 + $0x18] sm:$0xff] }
 0x294   : > { %901 = vst.msk [vmem:[#allocation4 + $0x40] sm:$0xff] %vm868_vm6, %v855_v43  ;;  %v857_v44 = vpop.permute.xlu0 %856 }
 0x295   : > { %902 = vst.msk [vmem:[#allocation4 + $0x50] sm:$0xff] %vm893_vm0, %v857_v44 }
 0x29b   : > { %v861_v45 = vpop.permute.xlu2 %860  ;;  %v921_v57 = vld [vmem:[#allocation4 + $0x40] sm:$0xff] }
 0x29c   : > { %905 = vst.msk [vmem:[#allocation4 + $0x68] sm:$0xff] %vm868_vm6, %v861_v45  ;;  %v851_v46 = vpop.permute.xlu0 %850  ;;  %v922_v63 = vld [vmem:[#allocation4 + $0x50] sm:$0xff] }
 0x29d   : > { %898 = vst.msk [vmem:[#allocation4 + $0x28] sm:$0xff] %vm893_vm0, %v851_v46 }
 0x2a3   : > { %v867_v47 = vpop.permute.xlu2 %866  ;;  %v925_v0 = vld [vmem:[#allocation4 + $0x68] sm:$0xff] }
 0x2a4   : > { %909 = vst.msk [vmem:[#allocation4 + $0x90] sm:$0xff] %vm868_vm6, %v867_v47  ;;  %v847_v16 = vpop.permute.xlu1 %846  ;;  %v863_v48 = vpop.permute.xlu0 %862  ;;  %v918_v55 = vld [vmem:[#allocation4 + $0x28] sm:$0xff] }
 0x2a5   : > { %v869_v51 = vsel %vm868_vm6, %v845_v41, %v847_v16  ;;  %v870_v52 = vsel %vm868_vm6, %v847_v16, %v849_v42  ;;  %906 = vst.msk [vmem:[#allocation4 + $0x78] sm:$0xff] %vm893_vm0, %v863_v48  ;;  %vm3544_vm0 = vcmask 474112  }
 0x2a6   : > { %895 = vst [vmem:[#allocation4 + $0x8] sm:$0xff] %v869_v51  ;;  %v13077_v53 = vpack.i.bf16 %v869_v51, %v914_v49  ;;  %v13079_v54 = vpack.i.bf16 %v917_v50, %v870_v52 }
 0x2a7   : > { %896 = vst [vmem:[#allocation4 + $0x10] sm:$0xff] %v870_v52  ;;  %v13243_v52 = vld [vmem:[%s20464_s2 + $0x28] sm:$0xff] }
 0x2a8   : > { %10645 = vrot.lane.b32.xlu0 %v13077_v53, %s12768_s8  ;;  %10650 = vrot.lane.b32.xlu1 %v13079_v54, %s12768_s8 }
 0x2ab   : > { %v929_v6 = vld [vmem:[#allocation4 + $0x90] sm:$0xff] }
 0x2ac   : > { %v853_v56 = vpop.permute.xlu1 %852  ;;  %v926_v7 = vld [vmem:[#allocation4 + $0x78] sm:$0xff] }
 0x2ad   : > { %v871_v58 = vsel %vm868_vm6, %v851_v46, %v853_v56  ;;  %v872_v59 = vsel %vm868_vm6, %v853_v56, %v855_v43  ;;  %v13249_v56 = vld [vmem:[%s20464_s2 + $0x20] sm:$0xff] }
 0x2ae   : > { %899 = vst [vmem:[#allocation4 + $0x30] sm:$0xff] %v871_v58  ;;  %v13087_v60 = vpack.i.bf16 %v871_v58, %v918_v55  ;;  %v13089_v61 = vpack.i.bf16 %v921_v57, %v872_v59 }
 0x2af   : > { %900 = vst [vmem:[#allocation4 + $0x38] sm:$0xff] %v872_v59 }
 0x2b0   : > { %10655 = vrot.lane.b32.xlu2 %v13087_v60, %s12768_s8  ;;  %10660 = vrot.lane.b32.xlu0 %v13089_v61, %s12768_s8 }
 0x2b4   : > { %v859_v62 = vpop.permute.xlu1 %858 }
 0x2b5   : > { %v873_v1 = vsel %vm868_vm6, %v857_v44, %v859_v62  ;;  %v874_v2 = vsel %vm868_vm6, %v859_v62, %v861_v45 }
 0x2b6   : > { %903 = vst [vmem:[#allocation4 + $0x58] sm:$0xff] %v873_v1  ;;  %v13097_v3 = vpack.i.bf16 %v873_v1, %v922_v63  ;;  %v13099_v4 = vpack.i.bf16 %v925_v0, %v874_v2 }
 0x2b7   : > { %904 = vst [vmem:[#allocation4 + $0x60] sm:$0xff] %v874_v2 }
 0x2b8   : > { %10665 = vrot.lane.b32.xlu1 %v13097_v3, %s12768_s8  ;;  %10670 = vrot.lane.b32.xlu2 %v13099_v4, %s12768_s8 }
 0x2bc   : > { %v865_v5 = vpop.permute.xlu1 %864 }
 0x2bd   : > { %v875_v8 = vsel %vm868_vm6, %v863_v48, %v865_v5  ;;  %v876_v9 = vsel %vm868_vm6, %v865_v5, %v867_v47 }
 0x2be   : > { %907 = vst [vmem:[#allocation4 + $0x80] sm:$0xff] %v875_v8  ;;  %v13107_v10 = vpack.i.bf16 %v875_v8, %v926_v7  ;;  %v13109_v11 = vpack.i.bf16 %v929_v6, %v876_v9  ;;  %v13274_v8 = vld [vmem:[%s20464_s2 + $0x30] sm:$0xff] }
 0x2bf   : > { %908 = vst [vmem:[#allocation4 + $0x88] sm:$0xff] %v876_v9 }
 0x2c0   : > { %10675 = vrot.lane.b32.xlu0 %v13107_v10, %s12768_s8  ;;  %10680 = vrot.lane.b32.xlu2 %v13077_v53, %s12769_s10 }
 0x2c1   : > { %10690 = vrot.lane.b32.xlu1 %v13109_v11, %s12768_s8  ;;  %s12773_s8 = smov 82  }
 0x2c8   : > { %10685 = vrot.lane.b32.xlu0 %v13079_v54, %s12769_s10  ;;  %10700 = vrot.lane.b32.xlu2 %v13089_v61, %s12769_s10 }
 0x2c9   : > { %10695 = vrot.lane.b32.xlu1 %v13087_v60, %s12769_s10 }
 0x2d0   : > { %10705 = vrot.lane.b32.xlu0 %v13097_v3, %s12769_s10  ;;  %10720 = vrot.lane.b32.xlu2 %v13079_v54, %s12757_s9 }
 0x2d1   : > { %10710 = vrot.lane.b32.xlu1 %v13099_v4, %s12769_s10 }
 0x2d8   : > { %10725 = vrot.lane.b32.xlu0 %v13087_v60, %s12757_s9  ;;  %10735 = vrot.lane.b32.xlu2 %v13107_v10, %s12769_s10 }
 0x2d9   : > { %10715 = vrot.lane.b32.xlu1 %v13077_v53, %s12757_s9 }
 0x2e0   : > { %10740 = vrot.lane.b32.xlu2 %v13097_v3, %s12757_s9  ;;  %10745 = vrot.lane.b32.xlu0 %v13109_v11, %s12769_s10  ;;  %s12804_s10 = smov 88  }
 0x2e1   : > { %10730 = vrot.lane.b32.xlu1 %v13089_v61, %s12757_s9 }
 0x2e8   : > { %10770 = vrot.lane.b32.xlu2 %v13087_v60, %s12758_s11  ;;  %10750 = vrot.lane.b32.xlu0 %v13099_v4, %s12757_s9 }
 0x2e9   : > { %10755 = vrot.lane.b32.xlu1 %v13107_v10, %s12757_s9 }
 0x2f0   : > { %10785 = vrot.lane.b32.xlu2 %v13109_v11, %s12757_s9  ;;  %10760 = vrot.lane.b32.xlu0 %v13077_v53, %s12758_s11  ;;  %s12770_s9 = smov 102  }
 0x2f1   : > { %10765 = vrot.lane.b32.xlu1 %v13079_v54, %s12758_s11 }
 0x2f8   : > { %10790 = vrot.lane.b32.xlu2 %v13099_v4, %s12758_s11  ;;  %10775 = vrot.lane.b32.xlu0 %v13089_v61, %s12758_s11 }
 0x2f9   : > { %10780 = vrot.lane.b32.xlu1 %v13097_v3, %s12758_s11 }
 0x300   : > { %10805 = vrot.lane.b32.xlu2 %v13077_v53, %s12759_s12  ;;  %10795 = vrot.lane.b32.xlu0 %v13107_v10, %s12758_s11 }
 0x301   : > { %10800 = vrot.lane.b32.xlu1 %v13109_v11, %s12758_s11  ;;  %s12771_s11 = smov 101  }
 0x308   : > { %10820 = vrot.lane.b32.xlu2 %v13089_v61, %s12759_s12  ;;  %10810 = vrot.lane.b32.xlu0 %v13079_v54, %s12759_s12 }
 0x309   : > { %10815 = vrot.lane.b32.xlu1 %v13087_v60, %s12759_s12 }
 0x30a   : > { %v13163_v12 = vpop.permute.xlu2 %10655 }
 0x30b   : > { %v10658_v36 = vunpack.i.h.bf16 %v13163_v12  ;;  %v10657_v38 = vunpack.i.l.bf16 %v13163_v12 }
 0x30d   : > { %v987_v48 = vsel %vm983_vm7, %v10657_v38, %v10658_v36 }
 0x310   : > { %10840 = vrot.lane.b32.xlu2 %v13107_v10, %s12759_s12  ;;  %10825 = vrot.lane.b32.xlu0 %v13097_v3, %s12759_s12 }
 0x311   : > { %10830 = vrot.lane.b32.xlu1 %v13099_v4, %s12759_s12 }
 0x312   : > { %v13171_v13 = vpop.permute.xlu2 %10670 }
 0x313   : > { %v10673_v33 = vunpack.i.h.bf16 %v13171_v13  ;;  %v10672_v34 = vunpack.i.l.bf16 %v13171_v13 }
 0x315   : > { %v992_v47 = vsel %vm983_vm7, %v10672_v34, %v10673_v33 }
 0x318   : > { %10845 = vrot.lane.b32.xlu2 %v13079_v54, %s12770_s9  ;;  %10850 = vrot.lane.b32.xlu0 %v13109_v11, %s12759_s12  ;;  %s12775_s12 = smov 77  }
 0x319   : > { %10835 = vrot.lane.b32.xlu1 %v13077_v53, %s12770_s9 }
 0x31a   : > { %v13177_v14 = vpop.permute.xlu2 %10680  ;;  %v13179_v15 = vpop.permute.xlu0 %10645 }
 0x31b   : > { %v13184_v17 = vpop.permute.xlu1 %10650  ;;  %v10648_v43 = vunpack.i.h.bf16 %v13179_v15  ;;  %v10647_v44 = vunpack.i.l.bf16 %v13179_v15  ;;  %v10683_v13 = vunpack.i.h.bf16 %v13177_v14  ;;  %v10682_v15 = vunpack.i.l.bf16 %v13177_v14 }
 0x31c   : > { %v10653_v45 = vunpack.i.h.bf16 %v13184_v17  ;;  %v10652_v46 = vunpack.i.l.bf16 %v13184_v17 }
 0x31d   : > { %v984_v55 = vsel %vm983_vm7, %v10647_v44, %v10648_v43 }
 0x31e   : > { %v986_v57 = vsel %vm983_vm7, %v10652_v46, %v10653_v45  ;;  %v985_v9 = vsel %vm983_vm7, %v10648_v43, %v10652_v46  ;;  %v13356_v43 = vld [vmem:[%s20464_s2 + $0x10] sm:$0xff] }
 0x320   : > { %10865 = vrot.lane.b32.xlu2 %v13097_v3, %s12770_s9  ;;  %10855 = vrot.lane.b32.xlu0 %v13087_v60, %s12770_s9 }
 0x321   : > { %10860 = vrot.lane.b32.xlu1 %v13089_v61, %s12770_s9 }
 0x322   : > { %v13186_v18 = vpop.permute.xlu2 %10700  ;;  %v13193_v19 = vpop.permute.xlu0 %10660 }
 0x323   : > { %v10663_v40 = vunpack.i.h.bf16 %v13193_v19  ;;  %v10662_v41 = vunpack.i.l.bf16 %v13193_v19  ;;  %v13292_v19 = vld [vmem:[%s20464_s2] sm:$0xff] }
 0x325   : > { %v989_v51 = vsel %vm983_vm7, %v10662_v41, %v10663_v40  ;;  %v988_v62 = vsel %vm983_vm7, %v10658_v36, %v10662_v41 }
 0x328   : > { %10885 = vrot.lane.b32.xlu2 %v13087_v60, %s12771_s11  ;;  %10870 = vrot.lane.b32.xlu0 %v13099_v4, %s12770_s9 }
 0x329   : > { %10880 = vrot.lane.b32.xlu1 %v13079_v54, %s12771_s11 }
 0x32a   : > { %v13195_v20 = vpop.permute.xlu1 %10665  ;;  %v13197_v21 = vpop.permute.xlu2 %10720 }
 0x32b   : > { %v10668_v23 = vunpack.i.h.bf16 %v13195_v20  ;;  %v10667_v24 = vunpack.i.l.bf16 %v13195_v20 }
 0x32d   : > { %v990_v42 = vsel %vm983_vm7, %v10667_v24, %v10668_v23  ;;  %v991_v59 = vsel %vm983_vm7, %v10668_v23, %v10672_v34 }
 0x330   : > { %10905 = vrot.lane.b32.xlu2 %v13109_v11, %s12770_s9  ;;  %10875 = vrot.lane.b32.xlu0 %v13077_v53, %s12771_s11 }
 0x331   : > { %10895 = vrot.lane.b32.xlu1 %v13107_v10, %s12770_s9  ;;  %s12780_s9 = smov 35  }
 0x332   : > { %v10676_v22 = vpop.permute.xlu0 %10675  ;;  %v13205_v28 = vpop.permute.xlu2 %10735 }
 0x333   : > { %v10678_v25 = vunpack.i.h.bf16 %v10676_v22  ;;  %v10677_v26 = vunpack.i.l.bf16 %v10676_v22  ;;  %v10691_v27 = vpop.permute.xlu1 %10690  ;;  %v10738_v31 = vunpack.i.h.bf16 %v13205_v28  ;;  %v10737_v32 = vunpack.i.l.bf16 %v13205_v28 }
 0x334   : > { %v10693_v29 = vunpack.i.h.bf16 %v10691_v27  ;;  %v10692_v30 = vunpack.i.l.bf16 %v10691_v27  ;;  %v1141_v22 = vsel %vm1140_vm8, %v10682_v15, %v10683_v13 }
 0x335   : > { %v993_v35 = vsel %vm983_vm7, %v10677_v26, %v10678_v25  ;;  %v1150_v39 = vsel %vm1140_vm8, %v10737_v32, %v10738_v31  ;;  %v13323_v26 = vld [vmem:[%s20464_s2 + $0x8] sm:$0xff] }
 0x336   : > { %1033 = vmatpush.msrb.mxu2 %v993_v35  ;;  %10525 = vmatpush.msra.mxu3 %v993_v35  ;;  %v995_v37 = vsel %vm983_vm7, %v10692_v30, %v10693_v29  ;;  %v994_v58 = vsel %vm983_vm7, %v10678_v25, %v10692_v30  ;;  %v13310_v25 = vld [vmem:[%s20464_s2 + $0x38] sm:$0xff]  ;;  %vm4925_vm7 = vcmask 269312  }
 0x337   : > { %1091 = vmatpush.msrb.mxu0 %v995_v37  ;;  %1189 = vmatpush.msra.mxu1 %v1150_v39  ;;  %v10703_v37 = vunpack.i.h.bf16 %v13186_v18  ;;  %v10702_v39 = vunpack.i.l.bf16 %v13186_v18 }
 0x338   : > { %1034 = vmatpush.msrb.mxu2 %v990_v42  ;;  %10526 = vmatpush.msra.mxu3 %v990_v42 }
 0x339   : > { %10910 = vrot.lane.b32.xlu2 %v13099_v4, %s12771_s11  ;;  %10890 = vrot.lane.b32.xlu0 %v13089_v61, %s12771_s11  ;;  %v1146_v46 = vsel %vm1140_vm8, %v10702_v39, %v10703_v37 }
 0x33a   : > { %10900 = vrot.lane.b32.xlu1 %v13097_v3, %s12771_s11  ;;  %1092 = vmatpush.msrb.mxu0 %v992_v47  ;;  %v13232_v16 = vpop.permute.xlu0 %10685  ;;  %v13237_v50 = vpop.permute.xlu2 %10740 }
 0x33b   : > { %v13235_v49 = vpop.permute.xlu1 %10695  ;;  %1035 = vmatpush.msrb.mxu2 %v987_v48  ;;  %10527 = vmatpush.msra.mxu3 %v987_v48  ;;  %v10688_v28 = vunpack.i.h.bf16 %v13232_v16 }
 0x33c   : > { %1093 = vmatpush.msrb.mxu0 %v989_v51  ;;  %v10698_v0 = vunpack.i.h.bf16 %v13235_v49  ;;  %v10697_v1 = vunpack.i.l.bf16 %v13235_v49 }
 0x33d   : > { %1036 = vmatpush.msrb.mxu2 %v984_v55  ;;  %10528 = vmatpush.msra.mxu3 %v984_v55 }
 0x33e   : > { %1094 = vmatpush.msrb.mxu0 %v986_v57  ;;  %9741 = vmatmul.msk.f32.vlgmr.msra.gmra.mxu3 %vm1008_vm9, %v13243_v52  ;;  %v1144_v17 = vsel %vm1140_vm8, %v10697_v1, %v10698_v0  ;;  %v1145_v45 = vsel %vm1140_vm8, %v10698_v0, %v10702_v39  ;;  %v13447_v39 = vld [vmem:[%s20464_s2 + $0x48] sm:$0xff] }
 0x33f   : > { %1062 = vmatpush.msrb.mxu3 %v994_v58  ;;  %9748 = vmatmul.msk.f32.vlgmr.msrb.gmra.mxu0 %vm1008_vm9, %v13249_v56  ;;  %v10743_v58 = vunpack.i.h.bf16 %v13237_v50 }
 0x340   : > { %9740 = vmatmul.msk.f32.vlgmr.msrb.gmra.mxu2 %vm1008_vm9, %v13249_v56 }
 0x341   : > { %1063 = vmatpush.msrb.mxu3 %v991_v59  ;;  %10920 = vrot.lane.b32.xlu2 %v13077_v53, %s12772_s6 }
 0x342   : > { %10915 = vrot.lane.b32.xlu0 %v13107_v10, %s12771_s11  ;;  %10930 = vrot.lane.b32.xlu1 %v13087_v60, %s12772_s6  ;;  %v10706_v63 = vpop.permute.xlu0 %10705  ;;  %v13269_v7 = vpop.permute.xlu2 %10770 }
 0x343   : > { %1064 = vmatpush.msrb.mxu3 %v988_v62  ;;  %v10708_v2 = vunpack.i.h.bf16 %v10706_v63  ;;  %v10707_v5 = vunpack.i.l.bf16 %v10706_v63  ;;  %v10711_v6 = vpop.permute.xlu1 %10710  ;;  %v10742_v62 = vunpack.i.l.bf16 %v13237_v50 }
 0x344   : > { %v10712_v29 = vunpack.i.l.bf16 %v10711_v6  ;;  %v10713_v35 = vunpack.i.h.bf16 %v10711_v6  ;;  %v10722_v6 = vunpack.i.l.bf16 %v13197_v21 }
 0x345   : > { %1065 = vmatpush.msrb.mxu3 %v985_v9  ;;  %v1147_v12 = vsel %vm1140_vm8, %v10707_v5, %v10708_v2  ;;  %v13395_v9 = vld [vmem:[%s20464_s2 + $0x18] sm:$0xff] }
 0x346   : > { %9742 = vmatmul.msk.f32.gmra.mxu3 %vm1008_vm9, %v13274_v8  ;;  %1190 = vmatpush.msra.mxu1 %v1147_v12  ;;  %v1148_v40 = vsel %vm1140_vm8, %v10708_v2, %v10712_v29  ;;  %v1149_v41 = vsel %vm1140_vm8, %v10712_v29, %v10713_v35 }
 0x347   : > { %9749 = vmatmul.msk.f32.gmra.mxu0 %vm1008_vm9, %v13243_v52 }
 0x348   : > { %1191 = vmatpush.msra.mxu1 %v1144_v17 }
 0x349   : > { %10935 = vrot.lane.b32.xlu2 %v13089_v61, %s12772_s6 }
 0x34a   : > { %10925 = vrot.lane.b32.xlu0 %v13079_v54, %s12772_s6  ;;  %10945 = vrot.lane.b32.xlu1 %v13109_v11, %s12771_s11  ;;  %v13298_v20 = vpop.permute.xlu0 %10725  ;;  %v13305_v24 = vpop.permute.xlu2 %10785  ;;  %s12790_s11 = smov 8  }
 0x34b   : > { %v13303_v23 = vpop.permute.xlu1 %10715  ;;  %1192 = vmatpush.msra.mxu1 %v1141_v22  ;;  %v10788_v42 = vunpack.i.h.bf16 %v13305_v24  ;;  %v10787_v18 = vunpack.i.l.bf16 %v13305_v24  ;;  %v10728_v50 = vunpack.i.h.bf16 %v13298_v20  ;;  %v10727_v5 = vunpack.i.l.bf16 %v13298_v20 }
 0x34c   : > { %9752 = vmatmul.msk.f32.vlgmr.msra.gmra.mxu1 %vm1008_vm9, %v13292_v19  ;;  %v10718_v12 = vunpack.i.h.bf16 %v13303_v23 }
 0x34d   : > { %v1312_v59 = vsel %vm390_vm10, %v10787_v18, %v10788_v42 }
 0x34e   : > { %9743 = vmatmul.msk.f32.gmra.mxu3 %vm1008_vm9, %v13310_v25 }
 0x34f   : > { %9750 = vmatmul.msk.f32.gmra.mxu0 %vm1008_vm9, %v13274_v8 }
 0x351   : > { %10955 = vrot.lane.b32.xlu2 %v13107_v10, %s12772_s6 }
 0x352   : > { %10940 = vrot.lane.b32.xlu0 %v13097_v3, %s12772_s6  ;;  %10950 = vrot.lane.b32.xlu1 %v13099_v4, %s12772_s6  ;;  %v10746_v27 = vpop.permute.xlu0 %10745  ;;  %v13331_v34 = vpop.permute.xlu2 %10790 }
 0x353   : > { %v10748_v30 = vunpack.i.h.bf16 %v10746_v27  ;;  %v10747_v32 = vunpack.i.l.bf16 %v10746_v27  ;;  %v13329_v33 = vpop.permute.xlu1 %10730 }
 0x354   : > { %9753 = vmatmul.msk.f32.gmra.mxu1 %vm1008_vm9, %v13323_v26  ;;  %v10733_v1 = vunpack.i.h.bf16 %v13329_v33  ;;  %v10732_v2 = vunpack.i.l.bf16 %v13329_v33  ;;  %v1302_v33 = vsel %vm390_vm10, %v10718_v12, %v10722_v6 }
 0x355   : > { %v1151_v36 = vsel %vm1140_vm8, %v10738_v31, %v10747_v32  ;;  %v1152_v38 = vsel %vm1140_vm8, %v10747_v32, %v10748_v30  ;;  %v10687_v31 = vunpack.i.l.bf16 %v13232_v16  ;;  %v13420_v30 = vld [vmem:[%s20464_s2 + $0x40] sm:$0xff] }
 0x356   : > { %9744 = vmatmul.msk.f32.vlgmr.msrb.gmra.mxu3 %vm1008_vm9, %v13249_v56  ;;  %1218 = vmatpush.msra.mxu2 %v1151_v36  ;;  %v1306_v20 = vsel %vm390_vm10, %v10732_v2, %v10733_v1  ;;  %v1305_v27 = vsel %vm390_vm10, %v10728_v50, %v10732_v2 }
 0x357   : > { %1247 = vmatpush.msra.mxu3 %v1152_v38  ;;  %9751 = vmatmul.msk.f32.gmra.mxu0 %vm1008_vm9, %v13310_v25  ;;  %v1142_v49 = vsel %vm1140_vm8, %v10683_v13, %v10687_v31  ;;  %v1143_v57 = vsel %vm1140_vm8, %v10687_v31, %v10688_v28  ;;  %v10717_v13 = vunpack.i.l.bf16 %v13303_v23  ;;  %v1304_v23 = vsel %vm390_vm10, %v10727_v5, %v10728_v50 }
 0x358   : > { %1219 = vmatpush.msra.mxu2 %v1148_v40  ;;  %vm5270_vm8 = vcmask 252928  }
 0x359   : > { %10970 = vrot.lane.b32.xlu2 %v13079_v54, %s12773_s8  ;;  %1248 = vmatpush.msra.mxu3 %v1149_v41  ;;  %v1301_v32 = vsel %vm390_vm10, %v10717_v13, %v10718_v12 }
 0x35a   : > { %10960 = vrot.lane.b32.xlu0 %v13109_v11, %s12772_s6  ;;  %10965 = vrot.lane.b32.xlu1 %v13077_v53, %s12773_s8  ;;  %v10751_v44 = vpop.permute.xlu0 %10750  ;;  %v13366_v51 = vpop.permute.xlu2 %10805  ;;  %s12782_s6 = smov 33  }
 0x35b   : > { %v10753_v47 = vunpack.i.h.bf16 %v10751_v44  ;;  %v10752_v16 = vunpack.i.l.bf16 %v10751_v44  ;;  %v10756_v48 = vpop.permute.xlu1 %10755  ;;  %1220 = vmatpush.msra.mxu2 %v1145_v45  ;;  %1249 = vmatpush.msra.mxu3 %v1146_v46  ;;  %v13471_v45 = vld [vmem:[%s20464_s2 + $0x50] sm:$0xff] }
 0x35c   : > { %v10758_v55 = vunpack.i.h.bf16 %v10756_v48  ;;  %v10757_v56 = vunpack.i.l.bf16 %v10756_v48  ;;  %9754 = vmatmul.msk.f32.gmra.mxu1 %vm1008_vm9, %v13356_v43 }
 0x35d   : > { %1221 = vmatpush.msra.mxu2 %v1142_v49  ;;  %1250 = vmatpush.msra.mxu3 %v1143_v57  ;;  %v1309_v0 = vsel %vm390_vm10, %v10752_v16, %v10753_v47  ;;  %v1308_v15 = vsel %vm390_vm10, %v10743_v58, %v10752_v16  ;;  %v10792_v49 = vunpack.i.l.bf16 %v13331_v34  ;;  %v10773_v57 = vunpack.i.h.bf16 %v13269_v7 }
 0x35e   : > { %9745 = vmatmul.msk.f32.gmra.mxu3 %vm1008_vm9, %v13243_v52  ;;  %9756 = vmatmul.msk.f32.vlgmr.msra.gmra.mxu2 %vm1008_vm9, %v13292_v19  ;;  %v1310_v14 = vsel %vm390_vm10, %v10757_v56, %v10758_v55  ;;  %v1311_v63 = vsel %vm390_vm10, %v10758_v55, %v10787_v18  ;;  %v10723_v52 = vunpack.i.h.bf16 %v13197_v21  ;;  %v1307_v21 = vsel %vm390_vm10, %v10742_v62, %v10743_v58 }
 0x35f   : > { %1407 = vmatpush.msrb.mxu2 %v1312_v59  ;;  %1349 = vmatpush.msra.mxu0 %v1310_v14  ;;  %v10793_v56 = vunpack.i.h.bf16 %v13331_v34  ;;  %v10772_v58 = vunpack.i.l.bf16 %v13269_v7 }
 0x360   : > { %1378 = vmatpush.msrb.mxu1 %v1311_v63  ;;  %v1303_v29 = vsel %vm390_vm10, %v10722_v6, %v10723_v52  ;;  %vm1817_vm10 = vcmask 834560  }
 0x361   : > { %1408 = vmatpush.msrb.mxu2 %v1309_v0  ;;  %10985 = vrot.lane.b32.xlu2 %v13097_v3, %s12773_s8  ;;  %v1481_v2 = vsel %vm420_vm11, %v10792_v49, %v10793_v56  ;;  %v1476_v52 = vsel %vm420_vm11, %v10772_v58, %v10773_v57 }
 0x362   : > { %10975 = vrot.lane.b32.xlu0 %v13087_v60, %s12773_s8  ;;  %10980 = vrot.lane.b32.xlu1 %v13089_v61, %s12773_s8  ;;  %v13405_v17 = vpop.permute.xlu0 %10760  ;;  %v13410_v24 = vpop.permute.xlu2 %10820 }
 0x363   : > { %1350 = vmatpush.msra.mxu0 %v1307_v21  ;;  %1379 = vmatpush.msrb.mxu1 %v1308_v15  ;;  %v13408_v22 = vpop.permute.xlu1 %10765  ;;  %v10763_v34 = vunpack.i.h.bf16 %v13405_v17  ;;  %v10762_v62 = vunpack.i.l.bf16 %v13405_v17  ;;  %v13516_v21 = vld [vmem:[%s20464_s2 + $0x58] sm:$0xff] }
 0x364   : > { %1409 = vmatpush.msrb.mxu2 %v1306_v20  ;;  %9755 = vmatmul.msk.f32.gmra.mxu1 %vm1008_vm9, %v13395_v9  ;;  %v10768_v0 = vunpack.i.h.bf16 %v13408_v22  ;;  %v10767_v1 = vunpack.i.l.bf16 %v13408_v22 }
 0x365   : > { %1351 = vmatpush.msra.mxu0 %v1304_v23  ;;  %1380 = vmatpush.msrb.mxu1 %v1305_v27  ;;  %v1473_v13 = vsel %vm420_vm11, %v10762_v62, %v10763_v34 }
 0x366   : > { %1410 = vmatpush.msrb.mxu2 %v1303_v29  ;;  %9746 = vmatmul.msk.f32.gmra.mxu3 %vm1008_vm9, %v13274_v8  ;;  %v1474_v15 = vsel %vm420_vm11, %v10763_v34, %v10767_v1  ;;  %v1475_v17 = vsel %vm420_vm11, %v10767_v1, %v10768_v0  ;;  %v9782_v34 = vld [vmem:[%s20464_s2 + $0x70] sm:$0xff] }
 0x367   : > { %1352 = vmatpush.msra.mxu0 %v1301_v32  ;;  %1381 = vmatpush.msrb.mxu1 %v1302_v33  ;;  %v10808_v33 = vunpack.i.h.bf16 %v13366_v51 }
 0x368   : > { %9757 = vmatmul.msk.f32.gmra.mxu2 %vm1008_vm9, %v13323_v26  ;;  %9768 = vmatmul.msk.f32.vlgmr.msra.gmra.mxu0 %vm1008_vm9, %v13420_v30 }
 0x369   : > { %11010 = vrot.lane.b32.xlu2 %v13109_v11, %s12773_s8 }
 0x36a   : > { %10990 = vrot.lane.b32.xlu0 %v13099_v4, %s12773_s8  ;;  %11000 = vrot.lane.b32.xlu1 %v13107_v10, %s12773_s8  ;;  %v13436_v35 = vpop.permute.xlu0 %10775  ;;  %v13438_v36 = vpop.permute.xlu2 %10840  ;;  %s12776_s8 = smov 59  }
 0x36b   : > { %v10781_v8 = vpop.permute.xlu1 %10780  ;;  %v10843_v38 = vunpack.i.h.bf16 %v13438_v36  ;;  %v10842_v37 = vunpack.i.l.bf16 %v13438_v36  ;;  %v10777_v59 = vunpack.i.l.bf16 %v13436_v35 }
 0x36c   : > { %9772 = vmatmul.msk.f32.vlgmr.msrb.gmra.mxu1 %vm1008_vm9, %v13420_v30  ;;  %v10783_v47 = vunpack.i.h.bf16 %v10781_v8  ;;  %v10782_v16 = vunpack.i.l.bf16 %v10781_v8  ;;  %v9780_v8 = vld [vmem:[%s20464_s2 + $0x60] sm:$0xff] }
 0x36d   : > { %v1654_v40 = vsel %vm449_vm12, %v10842_v37, %v10843_v38  ;;  %v1477_v6 = vsel %vm420_vm11, %v10773_v57, %v10777_v59 }
 0x36e   : > { %9747 = vmatmul.msk.f32.gmra.mxu3 %vm1008_vm9, %v13310_v25  ;;  %1693 = vmatpush.msra.mxu2 %v1654_v40  ;;  %v1479_v7 = vsel %vm420_vm11, %v10782_v16, %v10783_v47  ;;  %v1480_v14 = vsel %vm420_vm11, %v10783_v47, %v10792_v49  ;;  %v10823_v47 = vunpack.i.h.bf16 %v13410_v24  ;;  %v10822_v16 = vunpack.i.l.bf16 %v13410_v24 }
 0x370   : > { %9758 = vmatmul.msk.f32.gmra.mxu2 %vm1008_vm9, %v13356_v43  ;;  %9769 = vmatmul.msk.f32.gmra.mxu0 %vm1008_vm9, %v13447_v39  ;;  %v1650_v57 = vsel %vm449_vm12, %v10822_v16, %v10823_v47 }
 0x371   : > { %11015 = vrot.lane.b32.xlu2 %v13087_v60, %s12760_s13 }
 0x372   : > { %10995 = vrot.lane.b32.xlu0 %v13077_v53, %s12760_s13  ;;  %11005 = vrot.lane.b32.xlu1 %v13079_v54, %s12760_s13  ;;  %v10796_v25 = vpop.permute.xlu0 %10795  ;;  %v13464_v42 = vpop.permute.xlu2 %10845 }
 0x373   : > { %v10798_v28 = vunpack.i.h.bf16 %v10796_v25  ;;  %v10797_v31 = vunpack.i.l.bf16 %v10796_v25  ;;  %v10801_v41 = vpop.permute.xlu1 %10800 }
 0x374   : > { %v10803_v18 = vunpack.i.h.bf16 %v10801_v41  ;;  %v10802_v44 = vunpack.i.l.bf16 %v10801_v41  ;;  %9773 = vmatmul.msk.f32.gmra.mxu1 %vm1008_vm9, %v13447_v39 }
 0x375   : > { %v1482_v46 = vsel %vm420_vm11, %v10797_v31, %v10798_v28 }
 0x376   : > { %9760 = vmatmul.msk.f32.vlgmr.msra.gmra.mxu3 %vm1008_vm9, %v13292_v19  ;;  %v1483_v48 = vsel %vm420_vm11, %v10798_v28, %v10802_v44  ;;  %v1484_v55 = vsel %vm420_vm11, %v10802_v44, %v10803_v18  ;;  %v10778_v19 = vunpack.i.h.bf16 %v13436_v35  ;;  %v10807_v35 = vunpack.i.l.bf16 %v13366_v51 }
 0x377   : > { %1521 = vmatpush.msrb.mxu3 %v1482_v46  ;;  %1550 = vmatpush.msrb.mxu0 %v1483_v48  ;;  %v9781_v46 = vld [vmem:[%s20464_s2 + $0x68] sm:$0xff] }
 0x378   : > { %9759 = vmatmul.msk.f32.gmra.mxu2 %vm1008_vm9, %v13395_v9  ;;  %9770 = vmatmul.msk.f32.gmra.mxu0 %vm1008_vm9, %v13471_v45  ;;  %v1478_v12 = vsel %vm420_vm11, %v10777_v59, %v10778_v19  ;;  %v1645_v51 = vsel %vm449_vm12, %v10807_v35, %v10808_v33  ;;  %vm2163_vm11 = vcmask 678912  }
 0x379   : > { %1579 = vmatpush.msra.mxu1 %v1484_v55  ;;  %11030 = vrot.lane.b32.xlu2 %v13099_v4, %s12760_s13 }
 0x37a   : > { %11020 = vrot.lane.b32.xlu0 %v13089_v61, %s12760_s13  ;;  %11025 = vrot.lane.b32.xlu1 %v13097_v3, %s12760_s13  ;;  %v13498_v63 = vpop.permute.xlu0 %10810  ;;  %v13505_v5 = vpop.permute.xlu2 %10865 }
 0x37b   : > { %1522 = vmatpush.msrb.mxu3 %v1479_v7  ;;  %1551 = vmatpush.msrb.mxu0 %v1480_v14  ;;  %v13503_v50 = vpop.permute.xlu1 %10815  ;;  %v10812_v48 = vunpack.i.l.bf16 %v13498_v63 }
 0x37c   : > { %1580 = vmatpush.msra.mxu1 %v1481_v2  ;;  %v10818_v20 = vunpack.i.h.bf16 %v13503_v50  ;;  %v10817_v22 = vunpack.i.l.bf16 %v13503_v50 }
 0x37d   : > { %1523 = vmatpush.msrb.mxu3 %v1476_v52  ;;  %1552 = vmatpush.msrb.mxu0 %v1477_v6  ;;  %v1646_v19 = vsel %vm449_vm12, %v10808_v33, %v10812_v48  ;;  %v9783_v6 = vld [vmem:[%s20464_s2 + $0x78] sm:$0xff] }
 0x37e   : > { %1581 = vmatpush.msra.mxu1 %v1478_v12  ;;  %9761 = vmatmul.msk.f32.gmra.mxu3 %vm1008_vm9, %v13323_v26  ;;  %v1648_v37 = vsel %vm449_vm12, %v10817_v22, %v10818_v20  ;;  %v1649_v58 = vsel %vm449_vm12, %v10818_v20, %v10822_v16  ;;  %v13627_v12 = vld [vmem:[%s20464_s2 + $0x80] sm:$0xff] }
 0x37f   : > { %9774 = vmatmul.msk.f32.gmra.mxu1 %vm1008_vm9, %v13471_v45  ;;  %1524 = vmatpush.msrb.mxu3 %v1473_v13  ;;  %v10848_v13 = vunpack.i.h.bf16 %v13464_v42 }
 0x380   : > { %1553 = vmatpush.msrb.mxu0 %v1474_v15  ;;  %1582 = vmatpush.msra.mxu1 %v1475_v17 }
 0x381   : > { %9771 = vmatmul.msk.f32.gmra.mxu0 %vm1008_vm9, %v13516_v21  ;;  %9776 = vmatmul.msk.f32.vlgmr.msrb.gmra.mxu2 %vm1008_vm9, %v13420_v30 }
 0x382   : > { %11035 = vrot.lane.b32.xlu2 %v13077_v53, %s12761_s14  ;;  %11040 = vrot.lane.b32.xlu0 %v13079_v54, %s12761_s14  ;;  %v10826_v26 = vpop.permute.xlu0 %10825  ;;  %v13534_v32 = vpop.permute.xlu2 %10885 }
 0x383   : > { %11045 = vrot.lane.b32.xlu1 %v13087_v60, %s12761_s14  ;;  %v10828_v23 = vunpack.i.h.bf16 %v10826_v26  ;;  %v10827_v27 = vunpack.i.l.bf16 %v10826_v26  ;;  %v10831_v29 = vpop.permute.xlu1 %10830 }
 0x384   : > { %v10833_v40 = vunpack.i.h.bf16 %v10831_v29  ;;  %v10832_v25 = vunpack.i.l.bf16 %v10831_v29  ;;  %v10867_v29 = vunpack.i.l.bf16 %v13505_v5 }
 0x385   : > { %v1651_v30 = vsel %vm449_vm12, %v10827_v27, %v10828_v23  ;;  %v10868_v27 = vunpack.i.h.bf16 %v13505_v5 }
 0x386   : > { %9762 = vmatmul.msk.f32.gmra.mxu3 %vm1008_vm9, %v13356_v43  ;;  %1694 = vmatpush.msra.mxu2 %v1651_v30  ;;  %v1653_v36 = vsel %vm449_vm12, %v10832_v25, %v10833_v40  ;;  %v13653_v30 = vld [vmem:[%s20464_s2 + $0x88] sm:$0xff] }
 0x387   : > { %9775 = vmatmul.msk.f32.gmra.mxu1 %vm1008_vm9, %v13516_v21 }
 0x388   : > { %1695 = vmatpush.msra.mxu2 %v1648_v37 }
 0x389   : > { %9777 = vmatmul.msk.f32.gmra.mxu2 %vm1008_vm9, %v13447_v39  ;;  %9788 = vmatmul.msk.f32.vlgmr.msrb.gmra.mxu0 %vm1008_vm9, %v9780_v8 }
 0x38a   : > { %11050 = vrot.lane.b32.xlu2 %v13089_v61, %s12761_s14  ;;  %11055 = vrot.lane.b32.xlu0 %v13107_v10, %s12760_s13  ;;  %v10851_v43 = vpop.permute.xlu0 %10850  ;;  %v13559_v39 = vpop.permute.xlu2 %10905 }
 0x38b   : > { %11065 = vrot.lane.b32.xlu1 %v13109_v11, %s12760_s13  ;;  %v10853_v28 = vunpack.i.h.bf16 %v10851_v43  ;;  %v10852_v31 = vunpack.i.l.bf16 %v10851_v43  ;;  %v13557_v41 = vpop.permute.xlu1 %10835  ;;  %1696 = vmatpush.msra.mxu2 %v1645_v51  ;;  %v10908_v55 = vunpack.i.h.bf16 %v13559_v39  ;;  %v10907_v56 = vunpack.i.l.bf16 %v13559_v39  ;;  %s12774_s13 = smov 78  }
 0x38c   : > { %v10838_v5 = vunpack.i.h.bf16 %v13557_v41  ;;  %v10837_v43 = vunpack.i.l.bf16 %v13557_v41  ;;  %v1824_v51 = vsel %vm1817_vm10, %v10867_v29, %v10868_v27 }
 0x38d   : > { %v1655_v18 = vsel %vm449_vm12, %v10843_v38, %v10852_v31  ;;  %v1656_v44 = vsel %vm449_vm12, %v10852_v31, %v10853_v28  ;;  %v10813_v38 = vunpack.i.h.bf16 %v13498_v63  ;;  %v1829_v62 = vsel %vm1817_vm10, %v10907_v56, %v10908_v55 }
 0x38e   : > { %9763 = vmatmul.msk.f32.gmra.mxu3 %vm1008_vm9, %v13395_v9  ;;  %1751 = vmatpush.msra.mxu0 %v1656_v44  ;;  %v1652_v9 = vsel %vm449_vm12, %v10828_v23, %v10832_v25  ;;  %v1818_v44 = vsel %vm1817_vm10, %v10837_v43, %v10838_v5 }
 0x38f   : > { %9792 = vmatmul.msk.f32.vlgmr.msra.gmra.mxu1 %vm1008_vm9, %v9780_v8  ;;  %1722 = vmatpush.msra.mxu3 %v1655_v18  ;;  %v1647_v59 = vsel %vm449_vm12, %v10812_v48, %v10813_v38  ;;  %v13685_v18 = vld [vmem:[%s20464_s2 + $0xa0] sm:$0xff]  ;;  %vm1990_vm12 = vcmask 826368  }
 0x390   : > { %1752 = vmatpush.msra.mxu0 %v1653_v36 }
 0x391   : > { %9778 = vmatmul.msk.f32.gmra.mxu2 %vm1008_vm9, %v13471_v45  ;;  %9789 = vmatmul.msk.f32.gmra.mxu0 %vm1008_vm9, %v9781_v46 }
 0x392   : > { %11075 = vrot.lane.b32.xlu2 %v13107_v10, %s12761_s14  ;;  %11060 = vrot.lane.b32.xlu0 %v13097_v3, %s12761_s14  ;;  %v13584_v24 = vpop.permute.xlu0 %10855 }
 0x393   : > { %11070 = vrot.lane.b32.xlu1 %v13099_v4, %s12761_s14  ;;  %1723 = vmatpush.msra.mxu3 %v1652_v9  ;;  %v13590_v45 = vpop.permute.xlu1 %10860  ;;  %v13592_v49 = vpop.permute.xlu2 %10910  ;;  %v10857_v37 = vunpack.i.l.bf16 %v13584_v24 }
 0x394   : > { %1753 = vmatpush.msra.mxu0 %v1650_v57  ;;  %v10863_v50 = vunpack.i.h.bf16 %v13590_v45  ;;  %v10862_v52 = vunpack.i.l.bf16 %v13590_v45 }
 0x395   : > { %1724 = vmatpush.msra.mxu3 %v1649_v58  ;;  %v13723_v58 = vld [vmem:[%s20464_s2 + $0x98] sm:$0xff] }
 0x396   : > { %1754 = vmatpush.msra.mxu0 %v1647_v59  ;;  %9784 = vmatmul.msk.f32.vlgmr.msrb.gmra.mxu3 %vm1008_vm9, %v9780_v8  ;;  %v1823_v15 = vsel %vm1817_vm10, %v10862_v52, %v10863_v50  ;;  %v10858_v8 = vunpack.i.h.bf16 %v13584_v24 }
 0x397   : > { %9793 = vmatmul.msk.f32.gmra.mxu1 %vm1008_vm9, %v9781_v46  ;;  %1725 = vmatpush.msra.mxu3 %v1646_v19 }
 0x398   : > { %v1821_v41 = vsel %vm1817_vm10, %v10857_v37, %v10858_v8  ;;  %v1822_v39 = vsel %vm1817_vm10, %v10858_v8, %v10862_v52 }
 0x399   : > { %1924 = vmatpush.msrb.mxu3 %v1829_v62  ;;  %9779 = vmatmul.msk.f32.gmra.mxu2 %vm1008_vm9, %v13516_v21  ;;  %v10847_v21 = vunpack.i.l.bf16 %v13464_v42  ;;  %v10887_v62 = vunpack.i.l.bf16 %v13534_v32 }
 0x39a   : > { %9790 = vmatmul.msk.f32.gmra.mxu0 %vm1008_vm9, %v9782_v34  ;;  %11085 = vrot.lane.b32.xlu2 %v13079_v54, %s12762_s15  ;;  %v10871_v7 = vpop.permute.xlu0 %10870 }
 0x39b   : > { %11090 = vrot.lane.b32.xlu0 %v13087_v60, %s12762_s15  ;;  %11080 = vrot.lane.b32.xlu1 %v13077_v53, %s12762_s15  ;;  %v10873_v14 = vunpack.i.h.bf16 %v10871_v7  ;;  %v10872_v63 = vunpack.i.l.bf16 %v10871_v7  ;;  %v13613_v0 = vpop.permute.xlu1 %10880  ;;  %v13615_v1 = vpop.permute.xlu2 %10920  ;;  %v1820_v23 = vsel %vm1817_vm10, %v10847_v21, %v10848_v13  ;;  %v1819_v47 = vsel %vm1817_vm10, %v10838_v5, %v10847_v21  ;;  %v13756_v13 = vld [vmem:[%s20464_s2 + $0xb0] sm:$0xff] }
 0x39c   : > { %v10883_v29 = vunpack.i.h.bf16 %v13613_v0 }
 0x39d   : > { %v1826_v2 = vsel %vm1817_vm10, %v10872_v63, %v10873_v14  ;;  %v1825_v40 = vsel %vm1817_vm10, %v10868_v27, %v10872_v63 }
 0x39e   : > { %9785 = vmatmul.msk.f32.gmra.mxu3 %vm1008_vm9, %v9781_v46  ;;  %v13692_v46 = vld [vmem:[%s20464_s2 + $0x90] sm:$0xff] }
 0x39f   : > { %9794 = vmatmul.msk.f32.gmra.mxu1 %vm1008_vm9, %v9782_v34  ;;  %1925 = vmatpush.msrb.mxu3 %v1826_v2 }
 0x3a1   : > { %9800 = vmatmul.msk.f32.vlgmr.msra.gmra.mxu2 %vm1008_vm9, %v13627_v12  ;;  %1926 = vmatpush.msrb.mxu3 %v1823_v15 }
 0x3a2   : > { %9791 = vmatmul.msk.f32.gmra.mxu0 %vm1008_vm9, %v9783_v6  ;;  %11100 = vrot.lane.b32.xlu2 %v13097_v3, %s12762_s15  ;;  %v13640_v17 = vpop.permute.xlu0 %10875 }
 0x3a3   : > { %11105 = vrot.lane.b32.xlu0 %v13109_v11, %s12761_s14  ;;  %11095 = vrot.lane.b32.xlu1 %v13089_v61, %s12762_s15  ;;  %v10896_v42 = vpop.permute.xlu1 %10895  ;;  %v13644_v26 = vpop.permute.xlu2 %10935  ;;  %v10878_v7 = vunpack.i.h.bf16 %v13640_v17  ;;  %v10877_v14 = vunpack.i.l.bf16 %v13640_v17  ;;  %v10913_v17 = vunpack.i.h.bf16 %v13592_v49  ;;  %s12791_s14 = smov 7  }
 0x3a4   : > { %v10898_v20 = vunpack.i.h.bf16 %v10896_v42  ;;  %v10897_v22 = vunpack.i.l.bf16 %v10896_v42  ;;  %1927 = vmatpush.msrb.mxu3 %v1820_v23  ;;  %v10912_v42 = vunpack.i.l.bf16 %v13592_v49 }
 0x3a5   : > { %v1991_v15 = vsel %vm1990_vm12, %v10877_v14, %v10878_v7 }
 0x3a6   : > { %9786 = vmatmul.msk.f32.gmra.mxu3 %vm1008_vm9, %v9782_v34  ;;  %v1827_v33 = vsel %vm1817_vm10, %v10897_v22, %v10898_v20  ;;  %v1828_v35 = vsel %vm1817_vm10, %v10898_v20, %v10907_v56  ;;  %v13716_v56 = vld [vmem:[%s20464_s2 + $0xa8] sm:$0xff]  ;;  %v10888_v34 = vunpack.i.h.bf16 %v13534_v32  ;;  %vm5443_vm10 = vcmask 244736  }
 0x3a7   : > { %9795 = vmatmul.msk.f32.gmra.mxu1 %vm1008_vm9, %v9783_v6  ;;  %1895 = vmatpush.msrb.mxu2 %v1828_v35  ;;  %v1999_v35 = vsel %vm1990_vm12, %v10912_v42, %v10913_v17 }
 0x3a8   : > { %1866 = vmatpush.msrb.mxu1 %v1827_v33  ;;  %v1994_v52 = vsel %vm1990_vm12, %v10887_v62, %v10888_v34 }
 0x3a9   : > { %9801 = vmatmul.msk.f32.gmra.mxu2 %vm1008_vm9, %v13653_v30 }
 0x3aa   : > { %9808 = vmatmul.msk.f32.vlgmr.msra.gmra.mxu0 %vm1008_vm9, %v13627_v12  ;;  %11120 = vrot.lane.b32.xlu2 %v13109_v11, %s12762_s15 }
 0x3ab   : > { %11110 = vrot.lane.b32.xlu0 %v13099_v4, %s12762_s15  ;;  %11115 = vrot.lane.b32.xlu1 %v13107_v10, %s12762_s15  ;;  %v13674_v25 = vpop.permute.xlu0 %10890  ;;  %v13676_v28 = vpop.permute.xlu2 %10955  ;;  %s12781_s15 = smov 34  }
 0x3ac   : > { %1867 = vmatpush.msrb.mxu1 %v1824_v51  ;;  %1896 = vmatpush.msrb.mxu2 %v1825_v40  ;;  %v13678_v31 = vpop.permute.xlu1 %10900  ;;  %v10958_v16 = vunpack.i.h.bf16 %v13676_v28  ;;  %v10957_v36 = vunpack.i.l.bf16 %v13676_v28  ;;  %v10893_v23 = vunpack.i.h.bf16 %v13674_v25  ;;  %v10892_v27 = vunpack.i.l.bf16 %v13674_v25 }
 0x3ad   : > { %v10903_v45 = vunpack.i.h.bf16 %v13678_v31  ;;  %v10902_v57 = vunpack.i.l.bf16 %v13678_v31  ;;  %v13801_v31 = vld [vmem:[%s20464_s2 + $0xb8] sm:$0xff] }
 0x3ae   : > { %1868 = vmatpush.msrb.mxu1 %v1821_v41  ;;  %1897 = vmatpush.msrb.mxu2 %v1822_v39  ;;  %v2173_v59 = vsel %vm2163_vm11, %v10957_v36, %v10958_v16  ;;  %v1995_v51 = vsel %vm1990_vm12, %v10888_v34, %v10892_v27  ;;  %v1996_v40 = vsel %vm1990_vm12, %v10892_v27, %v10893_v23  ;;  %v13813_v36 = vld [vmem:[%s20464_s2 + $0xc0] sm:$0xff] }
 0x3af   : > { %9787 = vmatmul.msk.f32.gmra.mxu3 %vm1008_vm9, %v9783_v6  ;;  %v1997_v32 = vsel %vm1990_vm12, %v10902_v57, %v10903_v45  ;;  %v1998_v33 = vsel %vm1990_vm12, %v10903_v45, %v10912_v42 }
 0x3b0   : > { %1869 = vmatpush.msrb.mxu1 %v1818_v44  ;;  %1898 = vmatpush.msrb.mxu2 %v1819_v47 }
 0x3b1   : > { %9816 = vmatmul.msk.f32.vlgmr.msrb.gmra.mxu1 %vm1008_vm9, %v13685_v18  ;;  %9802 = vmatmul.msk.f32.gmra.mxu2 %vm1008_vm9, %v13692_v46 }
 0x3b2   : > { %9809 = vmatmul.msk.f32.gmra.mxu0 %vm1008_vm9, %v13653_v30  ;;  %11135 = vrot.lane.b32.xlu2 %v13087_v60, %s12774_s13 }
 0x3b3   : > { %11125 = vrot.lane.b32.xlu0 %v13077_v53, %s12774_s13  ;;  %11130 = vrot.lane.b32.xlu1 %v13079_v54, %s12774_s13  ;;  %v13709_v38 = vpop.permute.xlu2 %10970 }
 0x3b4   : > { %v10916_v48 = vpop.permute.xlu0 %10915  ;;  %v13711_v9 = vpop.permute.xlu1 %10930 }
 0x3b5   : > { %v10918_v24 = vunpack.i.h.bf16 %v10916_v48  ;;  %v10917_v55 = vunpack.i.l.bf16 %v10916_v48  ;;  %v10933_v39 = vunpack.i.h.bf16 %v13711_v9  ;;  %v10932_v44 = vunpack.i.l.bf16 %v13711_v9 }
 0x3b7   : > { %9804 = vmatmul.msk.f32.vlgmr.msra.gmra.mxu3 %vm1008_vm9, %v13627_v12  ;;  %v2000_v19 = vsel %vm1990_vm12, %v10917_v55, %v10918_v24  ;;  %v10922_v55 = vunpack.i.l.bf16 %v13615_v1 }
 0x3b8   : > { %2212 = vmatpush.msra.mxu3 %v2173_v59  ;;  %2039 = vmatpush.msrb.mxu0 %v2000_v19 }
 0x3b9   : > { %9817 = vmatmul.msk.f32.gmra.mxu1 %vm1008_vm9, %v13716_v56  ;;  %9803 = vmatmul.msk.f32.gmra.mxu2 %vm1008_vm9, %v13723_v58 }
 0x3ba   : > { %9810 = vmatmul.msk.f32.gmra.mxu0 %vm1008_vm9, %v13692_v46  ;;  %11150 = vrot.lane.b32.xlu2 %v13099_v4, %s12774_s13 }
 0x3bb   : > { %11140 = vrot.lane.b32.xlu0 %v13089_v61, %s12774_s13  ;;  %11145 = vrot.lane.b32.xlu1 %v13097_v3, %s12774_s13  ;;  %v13748_v63 = vpop.permute.xlu2 %10985 }
 0x3bc   : > { %2040 = vmatpush.msrb.mxu0 %v1997_v32  ;;  %v13750_v2 = vpop.permute.xlu0 %10925  ;;  %v10946_v50 = vpop.permute.xlu1 %10945  ;;  %v13847_v32 = vld [vmem:[%s20464_s2 + $0xc8] sm:$0xff] }
 0x3bd   : > { %v10948_v6 = vunpack.i.h.bf16 %v10946_v50  ;;  %v10947_v12 = vunpack.i.l.bf16 %v10946_v50  ;;  %v13758_v21 = vpop.f32.mrf.mxu0  ;;  %v10928_v17 = vunpack.i.h.bf16 %v13750_v2 }
 0x3be   : > { %2041 = vmatpush.msrb.mxu0 %v1994_v52  ;;  %20544 = vst [vmem:[#allocation8_spill] sm:$0xff] %v13758_v21 }
 0x3bf   : > { %9805 = vmatmul.msk.f32.gmra.mxu3 %vm1008_vm9, %v13653_v30  ;;  %v2001_v20 = vsel %vm1990_vm12, %v10918_v24, %v10947_v12  ;;  %v2002_v22 = vsel %vm1990_vm12, %v10947_v12, %v10948_v6  ;;  %v10882_v30 = vunpack.i.l.bf16 %v13613_v0  ;;  %v10923_v24 = vunpack.i.h.bf16 %v13615_v1 }
 0x3c0   : > { %2042 = vmatpush.msrb.mxu0 %v1991_v15  ;;  %2097 = vmatpush.msra.mxu2 %v2002_v22  ;;  %v2167_v1 = vsel %vm2163_vm11, %v10932_v44, %v10933_v39  ;;  %v10938_v6 = vunpack.i.h.bf16 %v13644_v26  ;;  %v10937_v12 = vunpack.i.l.bf16 %v13644_v26  ;;  %v10927_v26 = vunpack.i.l.bf16 %v13750_v2 }
 0x3c1   : > { %9818 = vmatmul.msk.f32.gmra.mxu1 %vm1008_vm9, %v13756_v13  ;;  %9820 = vmatmul.msk.f32.vlgmr.msrb.gmra.mxu2 %vm1008_vm9, %v13685_v18  ;;  %v13775_v49 = vpop.f32.mrf.mxu3  ;;  %v1993_v25 = vsel %vm1990_vm12, %v10882_v30, %v10883_v29  ;;  %v1992_v47 = vsel %vm1990_vm12, %v10878_v7, %v10882_v30  ;;  %v2164_v19 = vsel %vm2163_vm11, %v10922_v55, %v10923_v24  ;;  %vm5789_vm12 = vcmask 89088  }
 0x3c2   : > { %9811 = vmatmul.msk.f32.gmra.mxu0 %vm1008_vm9, %v13723_v58  ;;  %20545 = vst [vmem:[#allocation9_spill] sm:$0xff] %v13775_v49  ;;  %2068 = vmatpush.msra.mxu1 %v2001_v20  ;;  %v2169_v23 = vsel %vm2163_vm11, %v10937_v12, %v10938_v6  ;;  %v2168_v27 = vsel %vm2163_vm11, %v10933_v39, %v10937_v12  ;;  %v10973_v6 = vunpack.i.h.bf16 %v13709_v38  ;;  %v10972_v12 = vunpack.i.l.bf16 %v13709_v38 }
 0x3c3   : > { %11155 = vrot.lane.b32.xlu2 %v13077_v53, %s12775_s12  ;;  %11160 = vrot.lane.b32.xlu0 %v13107_v10, %s12774_s13  ;;  %v13787_v8 = vpop.permute.xlu2 %11010 }
 0x3c4   : > { %11170 = vrot.lane.b32.xlu1 %v13109_v11, %s12774_s13  ;;  %2069 = vmatpush.msra.mxu1 %v1998_v33  ;;  %v13789_v0 = vpop.permute.xlu0 %10940  ;;  %v13791_v37 = vpop.permute.xlu1 %10950  ;;  %v11013_v29 = vunpack.i.h.bf16 %v13787_v8  ;;  %v11012_v30 = vunpack.i.l.bf16 %v13787_v8  ;;  %v2166_v33 = vsel %vm2163_vm11, %v10927_v26, %v10928_v17  ;;  %s12795_s13 = smov 114  }
 0x3c5   : > { %2098 = vmatpush.msra.mxu2 %v1999_v35  ;;  %v10943_v5 = vunpack.i.h.bf16 %v13789_v0  ;;  %v10942_v43 = vunpack.i.l.bf16 %v13789_v0  ;;  %v13803_v41 = vpop.f32.mrf.mxu0  ;;  %v10953_v34 = vunpack.i.h.bf16 %v13791_v37  ;;  %v10952_v62 = vunpack.i.l.bf16 %v13791_v37  ;;  %v13894_v0 = vld [vmem:[%s20464_s2 + $0xd0] sm:$0xff]  ;;  %v13896_v37 = vpop.f32.mrf.mxu2 }
 0x3c6   : > { %2070 = vmatpush.msra.mxu1 %v1995_v51  ;;  %v2165_v35 = vsel %vm2163_vm11, %v10923_v24, %v10927_v26  ;;  %20549 = vst [vmem:[#allocation13_spill] sm:$0xff] %v13896_v37  ;;  %v10988_v51 = vunpack.i.h.bf16 %v13748_v63 }
 0x3c7   : > { %2099 = vmatpush.msra.mxu2 %v1996_v40  ;;  %9806 = vmatmul.msk.f32.gmra.mxu3 %vm1008_vm9, %v13692_v46  ;;  %v2170_v48 = vsel %vm2163_vm11, %v10942_v43, %v10943_v5  ;;  %v2171_v42 = vsel %vm2163_vm11, %v10943_v5, %v10952_v62  ;;  %v10987_v40 = vunpack.i.l.bf16 %v13748_v63  ;;  %v13924_v63 = vld [vmem:[%s20464_s2 + $0xd8] sm:$0xff] }
 0x3c8   : > { %2071 = vmatpush.msra.mxu1 %v1992_v47  ;;  %2213 = vmatpush.msra.mxu3 %v2170_v48 }
 0x3c9   : > { %2100 = vmatpush.msra.mxu2 %v1993_v25  ;;  %9819 = vmatmul.msk.f32.gmra.mxu1 %vm1008_vm9, %v13801_v31  ;;  %v13822_v46 = vpop.f32.mrf.mxu3  ;;  %v13824_v9 = vpop.f32.mrf.mxu1 }
 0x3ca   : > { %9821 = vmatmul.msk.f32.gmra.mxu2 %vm1008_vm9, %v13716_v56  ;;  %20546 = vst [vmem:[#allocation10_spill] sm:$0xff] %v13824_v9  ;;  %9832 = vmatmul.msk.f32.vlgmr.msrb.gmra.mxu0 %vm1008_vm9, %v13813_v36  ;;  %v14582_v9 = vld [vmem:[%s20464_s2 + $0x170] sm:$0xff] }
 0x3cb   : > { %11180 = vrot.lane.b32.xlu2 %v13089_v61, %s12775_s12  ;;  %11165 = vrot.lane.b32.xlu0 %v13079_v54, %s12775_s12  ;;  %v13833_v45 = vpop.permute.xlu2 %11015 }
 0x3cc   : > { %11175 = vrot.lane.b32.xlu1 %v13087_v60, %s12775_s12  ;;  %2214 = vmatpush.msra.mxu3 %v2167_v1  ;;  %v10961_v57 = vpop.permute.xlu0 %10960  ;;  %v13837_v59 = vpop.permute.xlu1 %10965 }
 0x3cd   : > { %v10963_v7 = vunpack.i.h.bf16 %v10961_v57  ;;  %v10962_v14 = vunpack.i.l.bf16 %v10961_v57  ;;  %v13855_v15 = vpop.f32.mrf.mxu0  ;;  %v10968_v17 = vunpack.i.h.bf16 %v13837_v59  ;;  %v10967_v26 = vunpack.i.l.bf16 %v13837_v59 }
 0x3ce   : > { %2215 = vmatpush.msra.mxu3 %v2164_v19  ;;  %20547 = vst [vmem:[#allocation11_spill] sm:$0xff] %v13855_v15 }
 0x3cf   : > { %9807 = vmatmul.msk.f32.gmra.mxu3 %vm1008_vm9, %v13723_v58  ;;  %v2174_v50 = vsel %vm2163_vm11, %v10958_v16, %v10962_v14  ;;  %v2175_v52 = vsel %vm2163_vm11, %v10962_v14, %v10963_v7  ;;  %v2172_v16 = vsel %vm2163_vm11, %v10952_v62, %v10953_v34  ;;  %vm5616_vm11 = vcmask 236544  }
 0x3d0   : > { %2241 = vmatpush.msra.mxu0 %v2174_v50  ;;  %2270 = vmatpush.msrb.mxu1 %v2175_v52  ;;  %v2343_v52 = vsel %vm2336_vm4, %v10987_v40, %v10988_v51 }
 0x3d1   : > { %9836 = vmatmul.msk.f32.vlgmr.msra.gmra.mxu1 %vm1008_vm9, %v13813_v36  ;;  %v13861_v58 = vpop.f32.mrf.mxu3  ;;  %v13863_v28 = vpop.f32.mrf.mxu1 }
 0x3d2   : > { %9822 = vmatmul.msk.f32.gmra.mxu2 %vm1008_vm9, %v13756_v13  ;;  %20548 = vst [vmem:[#allocation12_spill] sm:$0xff] %v13863_v28  ;;  %9833 = vmatmul.msk.f32.gmra.mxu0 %vm1008_vm9, %v13847_v32 }
 0x3d3   : > { %2271 = vmatpush.msrb.mxu1 %v2172_v16  ;;  %11200 = vrot.lane.b32.xlu2 %v13079_v54, %s12776_s8  ;;  %v13875_v20 = vpop.permute.xlu2 %11030 }
 0x3d4   : > { %11185 = vrot.lane.b32.xlu0 %v13097_v3, %s12775_s12  ;;  %11190 = vrot.lane.b32.xlu1 %v13099_v4, %s12775_s12  ;;  %v13879_v2 = vpop.permute.xlu0 %10975  ;;  %v13881_v22 = vpop.permute.xlu1 %10980 }
 0x3d5   : > { %2242 = vmatpush.msra.mxu0 %v2171_v42  ;;  %2272 = vmatpush.msrb.mxu1 %v2169_v23  ;;  %v13909_v43 = vpop.f32.mrf.mxu0  ;;  %v10983_v19 = vunpack.i.h.bf16 %v13881_v22  ;;  %v10982_v34 = vunpack.i.l.bf16 %v13881_v22  ;;  %v10978_v7 = vunpack.i.h.bf16 %v13879_v2 }
 0x3d7   : > { %2243 = vmatpush.msra.mxu0 %v2168_v27  ;;  %2273 = vmatpush.msrb.mxu1 %v2166_v33  ;;  %v2342_v42 = vsel %vm2336_vm4, %v10982_v34, %v10983_v19  ;;  %v2337_v33 = vsel %vm2336_vm4, %v10967_v26, %v10968_v17 }
 0x3d8   : > { %9824 = vmatmul.msk.f32.vlgmr.msrb.gmra.mxu3 %vm1008_vm9, %v13685_v18  ;;  %v2348_v18 = vsel %vm2336_vm4, %v11012_v30, %v11013_v29  ;;  %v2341_v29 = vsel %vm2336_vm4, %v10978_v7, %v10982_v34 }
 0x3d9   : > { %2244 = vmatpush.msra.mxu0 %v2165_v35  ;;  %9837 = vmatmul.msk.f32.gmra.mxu1 %vm1008_vm9, %v13847_v32  ;;  %v1067_v8 = vpop.f32.mrf.mxu3  ;;  %v13902_v5 = vpop.f32.mrf.mxu1  ;;  %v9844_v35 = vld [vmem:[%s20464_s2 + $0xe0] sm:$0xff] }
 0x3da   : > { %9823 = vmatmul.msk.f32.gmra.mxu2 %vm1008_vm9, %v13801_v31  ;;  %9834 = vmatmul.msk.f32.gmra.mxu0 %vm1008_vm9, %v13894_v0 }
 0x3db   : > { %2443 = vmatpush.msrb.mxu0 %v2348_v18  ;;  %11215 = vrot.lane.b32.xlu2 %v13107_v10, %s12775_s12 }
 0x3dc   : > { %11205 = vrot.lane.b32.xlu0 %v13087_v60, %s12776_s8  ;;  %11195 = vrot.lane.b32.xlu1 %v13077_v53, %s12776_s8  ;;  %v10991_v25 = vpop.permute.xlu0 %10990  ;;  %v11001_v39 = vpop.permute.xlu1 %11000 }
 0x3dd   : > { %v10993_v44 = vunpack.i.h.bf16 %v10991_v25  ;;  %v10992_v47 = vunpack.i.l.bf16 %v10991_v25  ;;  %v11003_v48 = vunpack.i.h.bf16 %v11001_v39  ;;  %v11002_v24 = vunpack.i.l.bf16 %v11001_v39  ;;  %v13917_v55 = vpop.permute.xlu2 %11035 }
 0x3df   : > { %v2346_v1 = vsel %vm2336_vm4, %v11002_v24, %v11003_v48  ;;  %v2347_v57 = vsel %vm2336_vm4, %v11003_v48, %v11012_v30  ;;  %v2345_v62 = vsel %vm2336_vm4, %v10992_v47, %v10993_v44  ;;  %v2344_v38 = vsel %vm2336_vm4, %v10988_v51, %v10992_v47  ;;  %v9845_v48 = vld [vmem:[%s20464_s2 + $0xe8] sm:$0xff] }
 0x3e0   : > { %9825 = vmatmul.msk.f32.gmra.mxu3 %vm1008_vm9, %v13716_v56  ;;  %2385 = vmatpush.msrb.mxu2 %v2346_v1  ;;  %v10977_v56 = vunpack.i.l.bf16 %v13879_v2  ;;  %v2339_v30 = vsel %vm2336_vm4, %v10972_v12, %v10973_v6 }
 0x3e1   : > { %2414 = vmatpush.msrb.mxu3 %v2347_v57  ;;  %9838 = vmatmul.msk.f32.gmra.mxu1 %vm1008_vm9, %v13894_v0  ;;  %v13937_v14 = vpop.f32.mrf.mxu3  ;;  %v13939_v50 = vpop.f32.mrf.mxu1 }
 0x3e2   : > { %9840 = vmatmul.msk.f32.vlgmr.msra.gmra.mxu2 %vm1008_vm9, %v13813_v36  ;;  %20550 = vst [vmem:[#allocation14_spill] sm:$0xff] %v13937_v14  ;;  %9835 = vmatmul.msk.f32.gmra.mxu0 %vm1008_vm9, %v13924_v63  ;;  %v1223_v16 = vpop.f32.mrf.mxu2  ;;  %v2340_v27 = vsel %vm2336_vm4, %v10977_v56, %v10978_v7  ;;  %v14038_v7 = vld [vmem:[%s20464_s2 + $0xf0] sm:$0xff] }
 0x3e3   : > { %2386 = vmatpush.msrb.mxu2 %v2343_v52  ;;  %2444 = vmatpush.msrb.mxu0 %v2345_v62  ;;  %v13950_v36 = vadd.f32 %v1223_v16, %v1067_v8  ;;  %v2338_v8 = vsel %vm2336_vm4, %v10968_v17, %v10972_v12  ;;  %v14423_v14 = vld [vmem:[%s20464_s2 + $0x150] sm:$0xff]  ;;  %vm5962_vm4 = vcmask 80896  }
 0x3e4   : > { %11220 = vrot.lane.b32.xlu2 %v13097_v3, %s12776_s8  ;;  %11225 = vrot.lane.b32.xlu0 %v13109_v11, %s12775_s12  ;;  %v13958_v2 = vpop.permute.xlu0 %10995  ;;  %v13960_v22 = vpop.permute.xlu1 %11005  ;;  %s12779_s12 = smov 53  }
 0x3e5   : > { %20551 = vst [vmem:[#allocation15_spill] sm:$0xff] %v13950_v36  ;;  %11210 = vrot.lane.b32.xlu1 %v13089_v61, %s12776_s8  ;;  %2415 = vmatpush.msrb.mxu3 %v2344_v38  ;;  %v13962_v59 = vpop.permute.xlu2 %11050  ;;  %v13964_v23 = vpop.f32.mrf.mxu0 }
 0x3e6   : > { %2445 = vmatpush.msrb.mxu0 %v2342_v42  ;;  %20552 = vst [vmem:[#allocation16_spill] sm:$0xff] %v13964_v23  ;;  %2387 = vmatpush.msrb.mxu2 %v2340_v27 }
 0x3e7   : > { %2416 = vmatpush.msrb.mxu3 %v2341_v29  ;;  %v14065_v29 = vld [vmem:[%s20464_s2 + $0xf8] sm:$0xff] }
 0x3e8   : > { %2446 = vmatpush.msrb.mxu0 %v2339_v30  ;;  %2388 = vmatpush.msrb.mxu2 %v2337_v33  ;;  %v14070_v30 = vld [vmem:[%s20464_s2 + $0x100] sm:$0xff] }
 0x3e9   : > { %9826 = vmatmul.msk.f32.gmra.mxu3 %vm1008_vm9, %v13756_v13  ;;  %9839 = vmatmul.msk.f32.gmra.mxu1 %vm1008_vm9, %v13924_v63  ;;  %v13978_v18 = vpop.f32.mrf.mxu3  ;;  %v13980_v51 = vpop.f32.mrf.mxu1 }
 0x3ea   : > { %2417 = vmatpush.msrb.mxu3 %v2338_v8  ;;  %20553 = vst [vmem:[#allocation17_spill] sm:$0xff] %v13978_v18  ;;  %9841 = vmatmul.msk.f32.gmra.mxu2 %vm1008_vm9, %v13847_v32 }
 0x3eb   : > { %20554 = vst [vmem:[#allocation18_spill] sm:$0xff] %v13980_v51  ;;  %9852 = vmatmul.msk.f32.vlgmr.msra.gmra.mxu0 %vm1008_vm9, %v9844_v35  ;;  %v13987_v40 = vpop.f32.mrf.mxu2 }
 0x3ec   : > { %11250 = vrot.lane.b32.xlu2 %v13087_v60, %s12777_s26  ;;  %20555 = vst [vmem:[#allocation19_spill] sm:$0xff] %v13987_v40  ;;  %11230 = vrot.lane.b32.xlu0 %v13099_v4, %s12776_s8  ;;  %v13993_v13 = vpop.permute.xlu0 %11020  ;;  %v13995_v25 = vpop.permute.xlu1 %11025 }
 0x3ed   : > { %11235 = vrot.lane.b32.xlu1 %v13107_v10, %s12776_s8  ;;  %v13997_v39 = vpop.permute.xlu2 %11075  ;;  %v13999_v32 = vpop.f32.mrf.mxu0  ;;  %v11027_v8 = vunpack.i.l.bf16 %v13995_v25 }
 0x3ee   : > { %20556 = vst [vmem:[#allocation20_spill] sm:$0xff] %v13999_v32  ;;  %v20468_v44 = vunpack.i.h.bf16 %v13997_v39  ;;  %v11077_v47 = vunpack.i.l.bf16 %v13997_v39  ;;  %v12608_v32 = vld [vmem:[#allocation4 + $0x10] sm:$0xff] }
 0x3f0   : > { %v2690_v24 = vsel %vm508_vm14, %v11077_v47, %v20468_v44  ;;  %v11018_v44 = vunpack.i.h.bf16 %v13833_v45 }
 0x3f1   : > { %9827 = vmatmul.msk.f32.gmra.mxu3 %vm1008_vm9, %v13801_v31  ;;  %9856 = vmatmul.msk.f32.vlgmr.msrb.gmra.mxu1 %vm1008_vm9, %v9844_v35  ;;  %v14012_v1 = vpop.f32.mrf.mxu3  ;;  %v14017_v57 = vpop.f32.mrf.mxu1 }
 0x3f2   : > { %2729 = vmatpush.msra.mxu0 %v2690_v24  ;;  %20557 = vst [vmem:[#allocation21_spill] sm:$0xff] %v14012_v1  ;;  %9842 = vmatmul.msk.f32.gmra.mxu2 %vm1008_vm9, %v13894_v0 }
 0x3f3   : > { %9853 = vmatmul.msk.f32.gmra.mxu0 %vm1008_vm9, %v9845_v48  ;;  %20558 = vst [vmem:[#allocation22_spill] sm:$0xff] %v14017_v57  ;;  %v14021_v31 = vpop.f32.mrf.mxu2 }
 0x3f4   : > { %11265 = vrot.lane.b32.xlu2 %v13109_v11, %s12776_s8  ;;  %20559 = vst [vmem:[#allocation23_spill] sm:$0xff] %v14021_v31  ;;  %11240 = vrot.lane.b32.xlu0 %v13077_v53, %s12777_s26  ;;  %v14027_v19 = vpop.permute.xlu0 %11040  ;;  %s12778_s8 = smov 54  }
 0x3f5   : > { %11245 = vrot.lane.b32.xlu1 %v13079_v54, %s12777_s26  ;;  %v14029_v34 = vpop.permute.xlu1 %11045  ;;  %v14031_v0 = vpop.permute.xlu2 %11085 }
 0x3f6   : > { %v14033_v62 = vpop.f32.mrf.mxu0 }
 0x3f9   : > { %9848 = vmatmul.msk.f32.vlgmr.msra.gmra.mxu3 %vm1008_vm9, %v9844_v35  ;;  %9857 = vmatmul.msk.f32.gmra.mxu1 %vm1008_vm9, %v9845_v48  ;;  %v14042_v56 = vpop.f32.mrf.mxu3  ;;  %v11028_v35 = vunpack.i.h.bf16 %v13995_v25  ;;  %v11017_v25 = vunpack.i.l.bf16 %v13833_v45  ;;  %v11007_v45 = vunpack.i.l.bf16 %v13960_v22 }
 0x3fa   : > { %20560 = vst [vmem:[#allocation24_spill] sm:$0xff] %v14042_v56  ;;  %9843 = vmatmul.msk.f32.gmra.mxu2 %vm1008_vm9, %v13924_v63 }
 0x3fb   : > { %9854 = vmatmul.msk.f32.gmra.mxu0 %vm1008_vm9, %v14038_v7  ;;  %v14050_v52 = vpop.f32.mrf.mxu2 }
 0x3fc   : > { %11270 = vrot.lane.b32.xlu2 %v13099_v4, %s12777_s26  ;;  %20561 = vst [vmem:[#allocation25_spill] sm:$0xff] %v14050_v52  ;;  %11255 = vrot.lane.b32.xlu0 %v13089_v61, %s12777_s26  ;;  %v14056_v6 = vpop.f32.mrf.mxu1  ;;  %v11056_v12 = vpop.permute.xlu0 %11055 }
 0x3fd   : > { %11260 = vrot.lane.b32.xlu1 %v13097_v3, %s12777_s26  ;;  %20562 = vst [vmem:[#allocation26_spill] sm:$0xff] %v14056_v6  ;;  %v11058_v16 = vunpack.i.h.bf16 %v11056_v12  ;;  %v11057_v17 = vunpack.i.l.bf16 %v11056_v12  ;;  %v11066_v63 = vpop.permute.xlu1 %11065  ;;  %v14058_v26 = vpop.permute.xlu2 %11100  ;;  %v11033_v12 = vunpack.i.h.bf16 %v13875_v20 }
 0x3fe   : > { %v11068_v38 = vunpack.i.h.bf16 %v11066_v63  ;;  %v11067_v42 = vunpack.i.l.bf16 %v11066_v63  ;;  %v14060_v27 = vpop.f32.mrf.mxu0  ;;  %v11032_v63 = vunpack.i.l.bf16 %v13875_v20  ;;  %v10998_v20 = vunpack.i.h.bf16 %v13958_v2 }
 0x3ff   : > { %20563 = vst [vmem:[#allocation27_spill] sm:$0xff] %v14060_v27  ;;  %v2518_v33 = vsel %vm479_vm13, %v11057_v17, %v11058_v16 }
 0x400   : > { %2557 = vmatpush.msra.mxu1 %v2518_v33  ;;  %v2519_v47 = vsel %vm479_vm13, %v11058_v16, %v11067_v42  ;;  %v2520_v24 = vsel %vm479_vm13, %v11067_v42, %v11068_v38  ;;  %v11023_v16 = vunpack.i.h.bf16 %v13993_v13  ;;  %v10997_v38 = vunpack.i.l.bf16 %v13958_v2 }
 0x401   : > { %9849 = vmatmul.msk.f32.gmra.mxu3 %vm1008_vm9, %v9845_v48  ;;  %9858 = vmatmul.msk.f32.gmra.mxu1 %vm1008_vm9, %v14038_v7  ;;  %v14082_v17 = vpop.f32.mrf.mxu3  ;;  %v11022_v48 = vunpack.i.l.bf16 %v13993_v13  ;;  %v2515_v13 = vsel %vm479_vm13, %v11027_v8, %v11028_v35  ;;  %v2517_v2 = vsel %vm479_vm13, %v11032_v63, %v11033_v12 }
 0x402   : > { %2586 = vmatpush.msra.mxu2 %v2519_v47  ;;  %2615 = vmatpush.msra.mxu3 %v2520_v24  ;;  %v2516_v47 = vsel %vm479_vm13, %v11028_v35, %v11032_v63  ;;  %v2512_v35 = vsel %vm479_vm13, %v11017_v25, %v11018_v44  ;;  %v2509_v63 = vsel %vm479_vm13, %v10997_v38, %v10998_v20  ;;  %v11037_v38 = vunpack.i.l.bf16 %v13917_v55 }
 0x403   : > { %9855 = vmatmul.msk.f32.gmra.mxu0 %vm1008_vm9, %v14065_v29  ;;  %9864 = vmatmul.msk.f32.vlgmr.msrb.gmra.mxu2 %vm1008_vm9, %v14070_v30  ;;  %v2514_v12 = vsel %vm479_vm13, %v11022_v48, %v11023_v16  ;;  %v20469_v16 = vunpack.i.h.bf16 %v13917_v55 }
 0x404   : > { %11285 = vrot.lane.b32.xlu2 %v13077_v53, %s12763_s16  ;;  %11275 = vrot.lane.b32.xlu0 %v13107_v10, %s12777_s26  ;;  %v14101_v42 = vpop.f32.mrf.mxu1  ;;  %v14103_v33 = vpop.f32.mrf.mxu2  ;;  %v11008_v53 = vunpack.i.h.bf16 %v13960_v22  ;;  %v2513_v22 = vsel %vm479_vm13, %v11018_v44, %v11022_v48  ;;  %v20470_v44 = vunpack.i.h.bf16 %v14029_v34  ;;  %v11047_v48 = vunpack.i.l.bf16 %v14029_v34 }
 0x405   : > { %11280 = vrot.lane.b32.xlu1 %v13109_v11, %s12777_s26  ;;  %20564 = vst [vmem:[#allocation28_spill] sm:$0xff] %v14101_v42  ;;  %2558 = vmatpush.msra.mxu1 %v2515_v13  ;;  %v14109_v24 = vpop.permute.xlu0 %11060  ;;  %v14111_v6 = vpop.permute.xlu1 %11070  ;;  %v2510_v13 = vsel %vm479_vm13, %v10998_v20, %v11007_v45  ;;  %s12786_s26 = smov 29  }
 0x406   : > { %20565 = vst [vmem:[#allocation29_spill] sm:$0xff] %v14103_v33  ;;  %2587 = vmatpush.msra.mxu2 %v2516_v47  ;;  %2616 = vmatpush.msra.mxu3 %v2517_v2  ;;  %v20471_v57 = vunpack.i.h.bf16 %v14109_v24  ;;  %v11062_v42 = vunpack.i.l.bf16 %v14109_v24  ;;  %v14115_v33 = vpop.permute.xlu2 %11120  ;;  %v14117_v8 = vpop.f32.mrf.mxu0  ;;  %v14127_v47 = vld [vmem:[%s20464_s2 + $0x108] sm:$0xff]  ;;  %v2511_v25 = vsel %vm479_vm13, %v11007_v45, %v11008_v53  ;;  %vm3025_vm13 = vcmask 637952  }
 0x407   : > { %20566 = vst [vmem:[#allocation30_spill] sm:$0xff] %v14117_v8  ;;  %2559 = vmatpush.msra.mxu1 %v2512_v35  ;;  %v2684_v35 = vsel %vm508_vm14, %v11047_v48, %v20470_v44 }
 0x408   : > { %2588 = vmatpush.msra.mxu2 %v2513_v22  ;;  %2617 = vmatpush.msra.mxu3 %v2514_v12  ;;  %v2687_v20 = vsel %vm508_vm14, %v11062_v42, %v20471_v57  ;;  %v2681_v12 = vsel %vm508_vm14, %v11037_v38, %v20469_v16  ;;  %v11072_v16 = vunpack.i.l.bf16 %v14111_v6  ;;  %v11073_v57 = vunpack.i.h.bf16 %v14111_v6 }
 0x409   : > { %2560 = vmatpush.msra.mxu1 %v2509_v63  ;;  %v14130_v2 = vpop.f32.mrf.mxu3  ;;  %9850 = vmatmul.msk.f32.gmra.mxu3 %vm1008_vm9, %v14038_v7  ;;  %v11042_v6 = vunpack.i.l.bf16 %v14027_v19 }
 0x40a   : > { %2589 = vmatpush.msra.mxu2 %v2510_v13  ;;  %20567 = vst [vmem:[#allocation31_spill] sm:$0xff] %v14130_v2  ;;  %2618 = vmatpush.msra.mxu3 %v2511_v25 }
 0x40b   : > { %9859 = vmatmul.msk.f32.gmra.mxu1 %vm1008_vm9, %v14065_v29  ;;  %9865 = vmatmul.msk.f32.gmra.mxu2 %vm1008_vm9, %v14127_v47 }
 0x40c   : > { %9872 = vmatmul.msk.f32.vlgmr.msrb.gmra.mxu0 %vm1008_vm9, %v14070_v30  ;;  %11300 = vrot.lane.b32.xlu2 %v13089_v61, %s12763_s16  ;;  %v14149_v45 = vpop.f32.mrf.mxu2  ;;  %v14151_v53 = vpop.f32.mrf.mxu1 }
 0x40d   : > { %20568 = vst [vmem:[#allocation32_spill] sm:$0xff] %v14151_v53  ;;  %2730 = vmatpush.msra.mxu0 %v2687_v20  ;;  %11290 = vrot.lane.b32.xlu0 %v13079_v54, %s12763_s16  ;;  %v14155_v7 = vpop.permute.xlu0 %11090  ;;  %v14157_v42 = vpop.permute.xlu1 %11080  ;;  %v14171_v54 = vld [vmem:[%s20464_s2 + $0x120] sm:$0xff]  ;;  %v11052_v53 = vunpack.i.l.bf16 %v13962_v59 }
 0x40e   : > { %11295 = vrot.lane.b32.xlu1 %v13087_v60, %s12763_s16  ;;  %v14164_v61 = vpop.permute.xlu2 %11135  ;;  %v14166_v22 = vpop.f32.mrf.mxu0  ;;  %v14179_v60 = vld [vmem:[%s20464_s2 + $0x110] sm:$0xff] }
 0x40f   : > { %20569 = vst [vmem:[#allocation33_spill] sm:$0xff] %v14166_v22  ;;  %2731 = vmatpush.msra.mxu0 %v2684_v35  ;;  %v11053_v22 = vunpack.i.h.bf16 %v13962_v59  ;;  %v12609_v59 = vld [vmem:[#allocation4] sm:$0xff] }
 0x411   : > { %2732 = vmatpush.msra.mxu0 %v2681_v12  ;;  %v14181_v63 = vpop.f32.mrf.mxu3  ;;  %9851 = vmatmul.msk.f32.gmra.mxu3 %vm1008_vm9, %v14065_v29 }
 0x413   : > { %9880 = vmatmul.msk.f32.vlgmr.msra.gmra.mxu1 %vm1008_vm9, %v14171_v54  ;;  %9866 = vmatmul.msk.f32.gmra.mxu2 %vm1008_vm9, %v14179_v60 }
 0x414   : > { %9873 = vmatmul.msk.f32.gmra.mxu0 %vm1008_vm9, %v14127_v47  ;;  %11320 = vrot.lane.b32.xlu2 %v13107_v10, %s12763_s16  ;;  %v14193_v13 = vpop.f32.mrf.mxu2  ;;  %v14195_v25 = vpop.f32.mrf.mxu1  ;;  %v14210_v10 = vld [vmem:[%s20464_s2 + $0x128] sm:$0xff] }
 0x415   : > { %20570 = vst [vmem:[#allocation34_spill] sm:$0xff] %v14193_v13  ;;  %11305 = vrot.lane.b32.xlu0 %v13097_v3, %s12763_s16  ;;  %v11106_v48 = vpop.permute.xlu0 %11105  ;;  %v14199_v20 = vpop.permute.xlu1 %11095  ;;  %v14216_v3 = vld [vmem:[%s20464_s2 + $0x118] sm:$0xff]  ;;  %v12607_v13 = vld [vmem:[#allocation4 + $0x18] sm:$0xff] }
 0x416   : > { %11310 = vrot.lane.b32.xlu1 %v13099_v4, %s12763_s16  ;;  %v11108_v29 = vunpack.i.h.bf16 %v11106_v48  ;;  %v11107_v38 = vunpack.i.l.bf16 %v11106_v48  ;;  %v14203_v35 = vpop.permute.xlu2 %11150  ;;  %v20572_v4 = vunpack.i.h.bf16 %v13997_v39  ;;  %v14229_v39 = vpack.i.bf16 %v12607_v13, %v12608_v32 }
 0x417   : > { %v14205_v12 = vpop.f32.mrf.mxu0 }
 0x418   : > { %20571 = vst [vmem:[#allocation35_spill] sm:$0xff] %v14205_v12  ;;  %v2691_v48 = vsel %vm508_vm14, %v20572_v4, %v11107_v38  ;;  %v2692_v44 = vsel %vm508_vm14, %v11107_v38, %v11108_v29  ;;  %v20575_v38 = vunpack.i.h.bf16 %v14109_v24  ;;  %v11043_v4 = vunpack.i.h.bf16 %v14027_v19 }
 0x419   : > { %2758 = vmatpush.msrb.mxu1 %v2691_v48  ;;  %2787 = vmatpush.msrb.mxu2 %v2692_v44  ;;  %v14223_v12 = vpop.f32.mrf.mxu3  ;;  %v12610_v44 = vld [vmem:[#allocation4 + $0x8] sm:$0xff]  ;;  %v2689_v48 = vsel %vm508_vm14, %v11072_v16, %v11073_v57  ;;  %v20577_v19 = vunpack.i.h.bf16 %v14029_v34  ;;  %v11123_v57 = vunpack.i.h.bf16 %v14115_v33  ;;  %v20578_v34 = vunpack.i.h.bf16 %v13917_v55 }
 0x41a   : > { %20573 = vst [vmem:[#allocation36_spill] sm:$0xff] %v14223_v12  ;;  %9868 = vmatmul.msk.f32.vlgmr.msrb.gmra.mxu3 %vm1008_vm9, %v14070_v30  ;;  %v14240_v29 = vpack.i.bf16 %v12610_v44, %v12609_v59  ;;  %v2688_v30 = vsel %vm508_vm14, %v20575_v38, %v11072_v16  ;;  %v11122_v16 = vunpack.i.l.bf16 %v14115_v33  ;;  %v2683_v33 = vsel %vm508_vm14, %v11042_v6, %v11043_v4 }
 0x41b   : > { %9881 = vmatmul.msk.f32.gmra.mxu1 %vm1008_vm9, %v14210_v10  ;;  %9867 = vmatmul.msk.f32.gmra.mxu2 %vm1008_vm9, %v14216_v3 }
 0x41c   : > { %9874 = vmatmul.msk.f32.gmra.mxu0 %vm1008_vm9, %v14179_v60  ;;  %11325 = vrot.lane.b32.xlu2 %v14229_v39, %s12764_s17  ;;  %v14242_v32 = vpop.f32.mrf.mxu2  ;;  %v14244_v13 = vpop.f32.mrf.mxu1 }
 0x41d   : > { %20574 = vst [vmem:[#allocation37_spill] sm:$0xff] %v14244_v13  ;;  %11330 = vrot.lane.b32.xlu0 %v13109_v11, %s12763_s16  ;;  %2759 = vmatpush.msrb.mxu1 %v2688_v30  ;;  %v14253_v12 = vpop.permute.xlu0 %11110  ;;  %v11116_v59 = vpop.permute.xlu1 %11115  ;;  %v2685_v11 = vsel %vm508_vm14, %v20577_v19, %v11052_v53  ;;  %v2686_v30 = vsel %vm508_vm14, %v11052_v53, %v11053_v22  ;;  %s12801_s16 = smov 91  }
 0x41e   : > { %11315 = vrot.lane.b32.xlu1 %v14240_v29, %s12764_s17  ;;  %2788 = vmatpush.msrb.mxu2 %v2689_v48  ;;  %v11118_v44 = vunpack.i.h.bf16 %v11116_v59  ;;  %v11117_v13 = vunpack.i.l.bf16 %v11116_v59  ;;  %v14257_v24 = vpop.permute.xlu2 %11155  ;;  %v11113_v2 = vunpack.i.h.bf16 %v14253_v12  ;;  %v11112_v48 = vunpack.i.l.bf16 %v14253_v12  ;;  %v14272_v59 = vld [vmem:[%s20464_s2 + $0x130] sm:$0xff] }
 0x41f   : > { %v14259_v38 = vpop.f32.mrf.mxu0  ;;  %2760 = vmatpush.msrb.mxu1 %v2685_v11  ;;  %v2682_v19 = vsel %vm508_vm14, %v20578_v34, %v11042_v6  ;;  %v11103_v12 = vunpack.i.h.bf16 %v14058_v26  ;;  %v11102_v11 = vunpack.i.l.bf16 %v14058_v26  ;;  %v12612_v34 = vld [vmem:[#allocation4 + $0x58] sm:$0xff]  ;;  %v11097_v6 = vunpack.i.l.bf16 %v14199_v20 }
 0x420   : > { %20576 = vst [vmem:[#allocation38_spill] sm:$0xff] %v14259_v38  ;;  %2789 = vmatpush.msrb.mxu2 %v2686_v30  ;;  %v2862_v53 = vsel %vm538_vm15, %v11117_v13, %v11118_v44  ;;  %v2863_v55 = vsel %vm538_vm15, %v11118_v44, %v11122_v16  ;;  %v12611_v30 = vld [vmem:[#allocation4 + $0x50] sm:$0xff]  ;;  %v11098_v13 = vunpack.i.h.bf16 %v14199_v20  ;;  %v2864_v26 = vsel %vm538_vm15, %v11122_v16, %v11123_v57 }
 0x421   : > { %2761 = vmatpush.msrb.mxu1 %v2682_v19  ;;  %2901 = vmatpush.msrb.mxu3 %v2862_v53  ;;  %v14279_v22 = vpop.f32.mrf.mxu3  ;;  %v14286_v38 = vpack.i.bf16 %v12612_v34, %v12611_v30  ;;  %v2861_v4 = vsel %vm538_vm15, %v11112_v48, %v11113_v2  ;;  %v11093_v44 = vunpack.i.h.bf16 %v14155_v7  ;;  %v11092_v19 = vunpack.i.l.bf16 %v14155_v7  ;;  %v12613_v53 = vld [vmem:[#allocation4 + $0x28] sm:$0xff]  ;;  %v12614_v20 = vld [vmem:[#allocation4 + $0x30] sm:$0xff]  ;;  %v12615_v2 = vld [vmem:[#allocation4 + $0x40] sm:$0xff] }
 0x422   : > { %20579 = vst [vmem:[#allocation39_spill] sm:$0xff] %v14279_v22  ;;  %2790 = vmatpush.msrb.mxu2 %v2683_v33  ;;  %9869 = vmatmul.msk.f32.gmra.mxu3 %vm1008_vm9, %v14127_v47  ;;  %v14300_v33 = vpack.i.bf16 %v12614_v20, %v12613_v53  ;;  %v11088_v30 = vunpack.i.h.bf16 %v14031_v0  ;;  %v11087_v57 = vunpack.i.l.bf16 %v14031_v0  ;;  %v12616_v7 = vld [vmem:[#allocation4 + $0x38] sm:$0xff]  ;;  %v11083_v53 = vunpack.i.h.bf16 %v14157_v42 }
 0x423   : > { %9882 = vmatmul.msk.f32.gmra.mxu1 %vm1008_vm9, %v14272_v59  ;;  %9884 = vmatmul.msk.f32.vlgmr.msra.gmra.mxu2 %vm1008_vm9, %v14171_v54  ;;  %v14308_v16 = vpack.i.bf16 %v12615_v2, %v12616_v7  ;;  %v11082_v20 = vunpack.i.l.bf16 %v14157_v42  ;;  %v2859_v0 = vsel %vm538_vm15, %v11102_v11, %v11103_v12  ;;  %v2860_v7 = vsel %vm538_vm15, %v11103_v12, %v11112_v48  ;;  %v14333_v11 = vld [vmem:[%s20464_s2 + $0x138] sm:$0xff]  ;;  %v14343_v12 = vld [vmem:[%s20464_s2 + $0x140] sm:$0xff] }
 0x424   : > { %9875 = vmatmul.msk.f32.gmra.mxu0 %vm1008_vm9, %v14216_v3  ;;  %2959 = vmatpush.msra.mxu1 %v2864_v26  ;;  %v14302_v47 = vpop.f32.mrf.mxu2  ;;  %v14325_v2 = vpop.f32.mrf.mxu1  ;;  %v2858_v42 = vsel %vm538_vm15, %v11097_v6, %v11098_v13  ;;  %v2855_v22 = vsel %vm538_vm15, %v11087_v57, %v11088_v30  ;;  %v2854_v13 = vsel %vm538_vm15, %v11083_v53, %v11087_v57  ;;  %vm3198_vm14 = vcmask 629760  }
 0x425   : > { %20580 = vst [vmem:[#allocation40_spill] sm:$0xff] %v14302_v47  ;;  %2930 = vmatpush.msrb.mxu0 %v2863_v55  ;;  %11345 = vrot.lane.b32.xlu2 %v14286_v38, %s12764_s17  ;;  %v14310_v34 = vpop.permute.xlu0 %11125  ;;  %v14312_v26 = vpop.permute.xlu1 %11130  ;;  %v2853_v48 = vsel %vm538_vm15, %v11082_v20, %v11083_v53 }
 0x426   : > { %2960 = vmatpush.msra.mxu1 %v2861_v4  ;;  %11335 = vrot.lane.b32.xlu0 %v14300_v33, %s12764_s17  ;;  %v14319_v55 = vpop.permute.xlu2 %11180  ;;  %v2856_v4 = vsel %vm538_vm15, %v11092_v19, %v11093_v44 }
 0x427   : > { %v14321_v47 = vpop.f32.mrf.mxu0  ;;  %11340 = vrot.lane.b32.xlu1 %v14308_v16, %s12764_s17  ;;  %2902 = vmatpush.msrb.mxu3 %v2859_v0  ;;  %v14379_v0 = vld [vmem:[%s20464_s2 + $0x148] sm:$0xff] }
 0x428   : > { %20581 = vst [vmem:[#allocation41_spill] sm:$0xff] %v14321_v47  ;;  %2931 = vmatpush.msrb.mxu0 %v2860_v7  ;;  %2961 = vmatpush.msra.mxu1 %v2858_v42  ;;  %v2857_v47 = vsel %vm538_vm15, %v11093_v44, %v11097_v6  ;;  %v12617_v6 = vld [vmem:[#allocation4 + $0x68] sm:$0xff]  ;;  %v12618_v44 = vld [vmem:[#allocation4 + $0x60] sm:$0xff]  ;;  %v12619_v7 = vld [vmem:[#allocation4 + $0x90] sm:$0xff]  ;;  %vm3371_vm15 = vcmask 482304  }
 0x429   : > { %2903 = vmatpush.msrb.mxu3 %v2856_v4  ;;  %v14337_v15 = vpop.f32.mrf.mxu3  ;;  %v12620_v42 = vld [vmem:[#allocation4 + $0x88] sm:$0xff] }
 0x42a   : > { %2932 = vmatpush.msrb.mxu0 %v2857_v47  ;;  %2962 = vmatpush.msra.mxu1 %v2855_v22  ;;  %v14350_v22 = vpack.i.bf16 %v12617_v6, %v12618_v44  ;;  %v14385_v4 = vpack.i.bf16 %v12619_v7, %v12620_v42  ;;  %v12621_v44 = vld [vmem:[#allocation4 + $0x78] sm:$0xff] }
 0x42b   : > { %2904 = vmatpush.msrb.mxu3 %v2853_v48  ;;  %9883 = vmatmul.msk.f32.gmra.mxu1 %vm1008_vm9, %v14333_v11 }
 0x42c   : > { %2933 = vmatpush.msrb.mxu0 %v2854_v13  ;;  %9870 = vmatmul.msk.f32.gmra.mxu3 %vm1008_vm9, %v14179_v60  ;;  %v14352_v19 = vpop.f32.mrf.mxu2 }
 0x42d   : > { %20582 = vst [vmem:[#allocation42_spill] sm:$0xff] %v14352_v19  ;;  %9885 = vmatmul.msk.f32.gmra.mxu2 %vm1008_vm9, %v14210_v10  ;;  %9896 = vmatmul.msk.f32.vlgmr.msra.gmra.mxu0 %vm1008_vm9, %v14343_v12  ;;  %v14358_v47 = vpop.permute.xlu0 %11140  ;;  %v14360_v30 = vpop.permute.xlu1 %11145 }
 0x42e   : > { %11365 = vrot.lane.b32.xlu2 %v14300_v33, %s12765_s23  ;;  %11350 = vrot.lane.b32.xlu0 %v14350_v22, %s12764_s17  ;;  %v14366_v60 = vpop.permute.xlu2 %11200  ;;  %v14372_v53 = vpop.f32.mrf.mxu1  ;;  %v11148_v13 = vunpack.i.h.bf16 %v14360_v30  ;;  %v11147_v6 = vunpack.i.l.bf16 %v14360_v30 }
 0x42f   : > { %v14368_v57 = vpop.f32.mrf.mxu0  ;;  %11360 = vrot.lane.b32.xlu1 %v14229_v39, %s12765_s23  ;;  %20583 = vst [vmem:[#allocation43_spill] sm:$0xff] %v14372_v53  ;;  %v12622_v53 = vld [vmem:[#allocation4 + $0x80] sm:$0xff] }
 0x430   : > { %v14395_v19 = vpack.i.bf16 %v12622_v53, %v12621_v44  ;;  %v11153_v53 = vunpack.i.h.bf16 %v14203_v35  ;;  %v11152_v44 = vunpack.i.l.bf16 %v14203_v35 }
 0x432   : > { %v14374_v20 = vpop.f32.mrf.mxu3 }
 0x433   : > { %20584 = vst [vmem:[#allocation44_spill] sm:$0xff] %v14374_v20  ;;  %9900 = vmatmul.msk.f32.vlgmr.msrb.gmra.mxu1 %vm1008_vm9, %v14343_v12  ;;  %v14949_v20 = vld [vmem:[%s20464_s2 + $0x1d0] sm:$0xff] }
 0x434   : > { %9871 = vmatmul.msk.f32.gmra.mxu3 %vm1008_vm9, %v14216_v3  ;;  %v14387_v48 = vpop.f32.mrf.mxu2 }
 0x435   : > { %9886 = vmatmul.msk.f32.gmra.mxu2 %vm1008_vm9, %v14272_v59  ;;  %9897 = vmatmul.msk.f32.gmra.mxu0 %vm1008_vm9, %v14379_v0  ;;  %v11161_v3 = vpop.permute.xlu0 %11160 }
 0x436   : > { %v11171_v56 = vpop.permute.xlu1 %11170  ;;  %11385 = vrot.lane.b32.xlu2 %v14385_v4, %s12764_s17  ;;  %11355 = vrot.lane.b32.xlu0 %v14240_v29, %s12765_s23  ;;  %v11163_v30 = vunpack.i.h.bf16 %v11161_v3  ;;  %v11162_v7 = vunpack.i.l.bf16 %v11161_v3  ;;  %v14401_v52 = vpop.permute.xlu2 %11215 }
 0x437   : > { %v11173_v42 = vunpack.i.h.bf16 %v11171_v56  ;;  %v11172_v21 = vunpack.i.l.bf16 %v11171_v56  ;;  %v14403_v1 = vpop.f32.mrf.mxu0  ;;  %11375 = vrot.lane.b32.xlu1 %v14395_v19, %s12764_s17  ;;  %v20472_v31 = vunpack.i.h.bf16 %v14401_v52  ;;  %v11217_v18 = vunpack.i.l.bf16 %v14401_v52  ;;  %v14411_v40 = vpop.f32.mrf.mxu1  ;;  %s12783_s17 = smov 32  }
 0x438   : > { %20585 = vst [vmem:[#allocation45_spill] sm:$0xff] %v14403_v1  ;;  %v3035_v3 = vsel %vm3025_vm13, %v11162_v7, %v11163_v30  ;;  %v11138_v7 = vunpack.i.h.bf16 %v14164_v61 }
 0x439   : > { %20586 = vst [vmem:[#allocation46_spill] sm:$0xff] %v14411_v40  ;;  %v3037_v56 = vsel %vm3025_vm13, %v11172_v21, %v11173_v42  ;;  %3074 = vmatpush.msra.mxu2 %v3035_v3  ;;  %v3208_v35 = vsel %vm3198_vm14, %v11217_v18, %v20472_v31  ;;  %v3032_v40 = vsel %vm3025_vm13, %v11147_v6, %v11148_v13  ;;  %v11137_v42 = vunpack.i.l.bf16 %v14164_v61 }
 0x43a   : > { %3132 = vmatpush.msra.mxu0 %v3037_v56  ;;  %v14418_v1 = vpop.f32.mrf.mxu3  ;;  %3247 = vmatpush.msrb.mxu1 %v3208_v35  ;;  %v3036_v3 = vsel %vm3025_vm13, %v11163_v30, %v11172_v21  ;;  %v3034_v18 = vsel %vm3025_vm13, %v11152_v44, %v11153_v53  ;;  %v11143_v56 = vunpack.i.h.bf16 %v14358_v47  ;;  %v11142_v31 = vunpack.i.l.bf16 %v14358_v47 }
 0x43b   : > { %20587 = vst [vmem:[#allocation47_spill] sm:$0xff] %v14418_v1  ;;  %9901 = vmatmul.msk.f32.gmra.mxu1 %vm1008_vm9, %v14379_v0  ;;  %3075 = vmatpush.msra.mxu2 %v3032_v40  ;;  %v11128_v61 = vunpack.i.h.bf16 %v14310_v34  ;;  %v11127_v35 = vunpack.i.l.bf16 %v14310_v34  ;;  %v11133_v40 = vunpack.i.h.bf16 %v14312_v26  ;;  %v11132_v47 = vunpack.i.l.bf16 %v14312_v26 }
 0x43c   : > { %9888 = vmatmul.msk.f32.vlgmr.msra.gmra.mxu3 %vm1008_vm9, %v14171_v54  ;;  %v14436_v6 = vpop.f32.mrf.mxu2  ;;  %3133 = vmatpush.msra.mxu0 %v3034_v18  ;;  %v3033_v34 = vsel %vm3025_vm13, %v11148_v13, %v11152_v44  ;;  %v3029_v26 = vsel %vm3025_vm13, %v11137_v42, %v11138_v7  ;;  %v3030_v23 = vsel %vm3025_vm13, %v11138_v7, %v11142_v31  ;;  %v14473_v44 = vld [vmem:[%s20464_s2 + $0x158] sm:$0xff] }
 0x43d   : > { %20588 = vst [vmem:[#allocation48_spill] sm:$0xff] %v14436_v6  ;;  %9887 = vmatmul.msk.f32.gmra.mxu2 %vm1008_vm9, %v14333_v11  ;;  %9898 = vmatmul.msk.f32.gmra.mxu0 %vm1008_vm9, %v14423_v14  ;;  %v14444_v21 = vpop.permute.xlu0 %11165  ;;  %v3026_v28 = vsel %vm3025_vm13, %v11127_v35, %v11128_v61  ;;  %v3028_v13 = vsel %vm3025_vm13, %v11132_v47, %v11133_v40 }
 0x43e   : > { %3103 = vmatpush.msra.mxu3 %v3036_v3  ;;  %11370 = vrot.lane.b32.xlu0 %v14308_v16, %s12765_s23  ;;  %v14450_v54 = vpop.permute.xlu1 %11175  ;;  %v14452_v30 = vpop.permute.xlu2 %11220  ;;  %v3031_v3 = vsel %vm3025_vm13, %v11142_v31, %v11143_v56  ;;  %v3027_v42 = vsel %vm3025_vm13, %v11128_v61, %v11132_v47  ;;  %vm6135_vm13 = vcmask 72704  }
 0x43f   : > { %11380 = vrot.lane.b32.xlu1 %v14286_v38, %s12765_s23  ;;  %11390 = vrot.lane.b32.xlu2 %v14350_v22, %s12765_s23  ;;  %v14459_v53 = vpop.f32.mrf.mxu0  ;;  %v14461_v18 = vpop.f32.mrf.mxu1  ;;  %v11177_v35 = vunpack.i.l.bf16 %v14450_v54 }
 0x440   : > { %3104 = vmatpush.msra.mxu3 %v3033_v34  ;;  %3076 = vmatpush.msra.mxu2 %v3029_v26  ;;  %v9908_v34 = vld [vmem:[%s20464_s2 + $0x160] sm:$0xff] }
 0x441   : > { %3134 = vmatpush.msra.mxu0 %v3031_v3  ;;  %v20474_v3 = vunpack.i.h.bf16 %v14257_v24 }
 0x442   : > { %v14467_v49 = vpop.f32.mrf.mxu3  ;;  %3105 = vmatpush.msra.mxu3 %v3030_v23  ;;  %3077 = vmatpush.msra.mxu2 %v3026_v28 }
 0x443   : > { %20589 = vst [vmem:[#allocation49_spill] sm:$0xff] %v14467_v49  ;;  %3135 = vmatpush.msra.mxu0 %v3028_v13  ;;  %9902 = vmatmul.msk.f32.gmra.mxu1 %vm1008_vm9, %v14423_v14  ;;  %v11157_v13 = vunpack.i.l.bf16 %v14257_v24 }
 0x444   : > { %3106 = vmatpush.msra.mxu3 %v3027_v42  ;;  %v14478_v31 = vpop.f32.mrf.mxu2 }
 0x445   : > { %20590 = vst [vmem:[#allocation50_spill] sm:$0xff] %v14478_v31  ;;  %9889 = vmatmul.msk.f32.gmra.mxu3 %vm1008_vm9, %v14210_v10  ;;  %9899 = vmatmul.msk.f32.gmra.mxu0 %vm1008_vm9, %v14473_v44  ;;  %v20473_v10 = vunpack.i.h.bf16 %v14450_v54 }
 0x446   : > { %v14484_v28 = vpop.permute.xlu0 %11185  ;;  %9904 = vmatmul.msk.f32.vlgmr.msrb.gmra.mxu2 %vm1008_vm9, %v14343_v12  ;;  %11395 = vrot.lane.b32.xlu0 %v14395_v19, %s12765_s23  ;;  %v14492_v56 = vpop.permute.xlu1 %11190 }
 0x447   : > { %v11188_v23 = vunpack.i.h.bf16 %v14484_v28  ;;  %v11187_v7 = vunpack.i.l.bf16 %v14484_v28  ;;  %v14494_v61 = vpop.permute.xlu2 %11250  ;;  %11410 = vrot.lane.b32.xlu1 %v14300_v33, %s12778_s8  ;;  %11400 = vrot.lane.b32.xlu2 %v14240_v29, %s12778_s8  ;;  %v14502_v12 = vpop.f32.mrf.mxu1  ;;  %v3202_v42 = vsel %vm3198_vm14, %v11177_v35, %v20473_v10  ;;  %v14548_v10 = vld [vmem:[%s20464_s2 + $0x168] sm:$0xff] }
 0x448   : > { %20591 = vst [vmem:[#allocation51_spill] sm:$0xff] %v14502_v12  ;;  %v14504_v40 = vpop.f32.mrf.mxu0  ;;  %v11252_v51 = vunpack.i.l.bf16 %v14494_v61 }
 0x449   : > { %20592 = vst [vmem:[#allocation52_spill] sm:$0xff] %v14504_v40  ;;  %v3205_v47 = vsel %vm3198_vm14, %v11187_v7, %v11188_v23 }
 0x44a   : > { %3248 = vmatpush.msrb.mxu1 %v3205_v47  ;;  %v14510_v26 = vpop.f32.mrf.mxu3 }
 0x44b   : > { %20593 = vst [vmem:[#allocation53_spill] sm:$0xff] %v14510_v26  ;;  %9903 = vmatmul.msk.f32.gmra.mxu1 %vm1008_vm9, %v14473_v44  ;;  %v20601_v26 = vunpack.i.h.bf16 %v14401_v52  ;;  %v11183_v52 = vunpack.i.h.bf16 %v14319_v55 }
 0x44c   : > { %3249 = vmatpush.msrb.mxu1 %v3202_v42 }
 0x44d   : > { %v14519_v28 = vpop.f32.mrf.mxu2  ;;  %9890 = vmatmul.msk.f32.gmra.mxu3 %vm1008_vm9, %v14272_v59  ;;  %9916 = vmatmul.msk.f32.vlgmr.msrb.gmra.mxu0 %vm1008_vm9, %v9908_v34 }
 0x44e   : > { %20594 = vst [vmem:[#allocation54_spill] sm:$0xff] %v14519_v28  ;;  %9905 = vmatmul.msk.f32.gmra.mxu2 %vm1008_vm9, %v14379_v0  ;;  %11405 = vrot.lane.b32.xlu0 %v14229_v39, %s12778_s8  ;;  %v14528_v7 = vpop.permute.xlu0 %11205  ;;  %v14530_v47 = vpop.permute.xlu1 %11195  ;;  %v3199_v0 = vsel %vm3198_vm14, %v11157_v13, %v20474_v3  ;;  %v11192_v3 = vunpack.i.l.bf16 %v14492_v56 }
 0x44f   : > { %11425 = vrot.lane.b32.xlu1 %v14385_v4, %s12765_s23  ;;  %11415 = vrot.lane.b32.xlu2 %v14308_v16, %s12778_s8  ;;  %v14536_v35 = vpop.permute.xlu2 %11265  ;;  %v14543_v42 = vpop.f32.mrf.mxu1  ;;  %s12802_s23 = smov 90  }
 0x450   : > { %v14538_v59 = vpop.f32.mrf.mxu0  ;;  %20596 = vst [vmem:[#allocation56_spill] sm:$0xff] %v14543_v42  ;;  %3250 = vmatpush.msrb.mxu1 %v3199_v0 }
 0x451   : > { %20595 = vst [vmem:[#allocation55_spill] sm:$0xff] %v14538_v59 }
 0x452   : > { %v14550_v40 = vpop.f32.mrf.mxu3 }
 0x453   : > { %20597 = vst [vmem:[#allocation57_spill] sm:$0xff] %v14550_v40  ;;  %9920 = vmatmul.msk.f32.vlgmr.msra.gmra.mxu1 %vm1008_vm9, %v9908_v34 }
 0x455   : > { %v14553_v28 = vpop.f32.mrf.mxu2  ;;  %9891 = vmatmul.msk.f32.gmra.mxu3 %vm1008_vm9, %v14333_v11  ;;  %9917 = vmatmul.msk.f32.gmra.mxu0 %vm1008_vm9, %v14548_v10 }
 0x456   : > { %20598 = vst [vmem:[#allocation58_spill] sm:$0xff] %v14553_v28  ;;  %9906 = vmatmul.msk.f32.gmra.mxu2 %vm1008_vm9, %v14423_v14  ;;  %11420 = vrot.lane.b32.xlu0 %v14286_v38, %s12778_s8  ;;  %v11226_v13 = vpop.permute.xlu0 %11225 }
 0x457   : > { %v14563_v0 = vpop.permute.xlu1 %11210  ;;  %11430 = vrot.lane.b32.xlu1 %v14350_v22, %s12778_s8  ;;  %11435 = vrot.lane.b32.xlu2 %v14395_v19, %s12778_s8  ;;  %v11228_v11 = vunpack.i.h.bf16 %v11226_v13  ;;  %v11227_v28 = vunpack.i.l.bf16 %v11226_v13  ;;  %v14570_v59 = vpop.permute.xlu2 %11270  ;;  %v11193_v13 = vunpack.i.h.bf16 %v14492_v56  ;;  %v11167_v56 = vunpack.i.l.bf16 %v14444_v21 }
 0x458   : > { %v14572_v40 = vpop.f32.mrf.mxu0  ;;  %v14574_v14 = vpop.f32.mrf.mxu1 }
 0x459   : > { %20599 = vst [vmem:[#allocation59_spill] sm:$0xff] %v14572_v40  ;;  %v3209_v49 = vsel %vm3198_vm14, %v20601_v26, %v11227_v28  ;;  %v3210_v42 = vsel %vm3198_vm14, %v11227_v28, %v11228_v11  ;;  %v11182_v26 = vunpack.i.l.bf16 %v14319_v55  ;;  %v11267_v55 = vunpack.i.l.bf16 %v14536_v35 }
 0x45a   : > { %20600 = vst [vmem:[#allocation60_spill] sm:$0xff] %v14574_v14  ;;  %3276 = vmatpush.msrb.mxu2 %v3209_v49  ;;  %v3206_v14 = vsel %vm3198_vm14, %v11188_v23, %v11192_v3  ;;  %v11168_v49 = vunpack.i.h.bf16 %v14444_v21 }
 0x45b   : > { %v14584_v37 = vpop.f32.mrf.mxu3  ;;  %9921 = vmatmul.msk.f32.gmra.mxu1 %vm1008_vm9, %v14548_v10  ;;  %v3204_v1 = vsel %vm3198_vm14, %v11182_v26, %v11183_v52  ;;  %v14631_v52 = vld [vmem:[%s20464_s2 + $0x178] sm:$0xff] }
 0x45c   : > { %20602 = vst [vmem:[#allocation61_spill] sm:$0xff] %v14584_v37  ;;  %3277 = vmatpush.msrb.mxu2 %v3206_v14 }
 0x45d   : > { %v14593_v31 = vpop.f32.mrf.mxu2  ;;  %9912 = vmatmul.msk.f32.vlgmr.msrb.gmra.mxu3 %vm1008_vm9, %v9908_v34  ;;  %9918 = vmatmul.msk.f32.gmra.mxu0 %vm1008_vm9, %v14582_v9  ;;  %v3207_v34 = vsel %vm3198_vm14, %v11192_v3, %v11193_v13  ;;  %v11223_v3 = vunpack.i.h.bf16 %v14452_v30  ;;  %v11222_v13 = vunpack.i.l.bf16 %v14452_v30  ;;  %v3201_v30 = vsel %vm3198_vm14, %v11167_v56, %v11168_v49 }
 0x45e   : > { %20603 = vst [vmem:[#allocation62_spill] sm:$0xff] %v14593_v31  ;;  %9907 = vmatmul.msk.f32.gmra.mxu2 %vm1008_vm9, %v14473_v44  ;;  %3305 = vmatpush.msrb.mxu3 %v3210_v42  ;;  %v11231_v23 = vpop.permute.xlu0 %11230  ;;  %v20606_v42 = vunpack.i.h.bf16 %v14450_v54  ;;  %v20607_v54 = vunpack.i.h.bf16 %v14257_v24 }
 0x45f   : > { %v11236_v28 = vpop.permute.xlu1 %11235  ;;  %11440 = vrot.lane.b32.xlu0 %v14385_v4, %s12778_s8  ;;  %11445 = vrot.lane.b32.xlu1 %v14240_v29, %s12779_s12  ;;  %v14608_v21 = vpop.permute.xlu2 %11285  ;;  %v11233_v8 = vunpack.i.h.bf16 %v11231_v23  ;;  %v3378_v49 = vsel %vm3371_vm15, %v11222_v13, %v11223_v3  ;;  %v11197_v13 = vunpack.i.l.bf16 %v14530_v47  ;;  %s12785_s8 = smov 30  }
 0x460   : > { %v11238_v11 = vunpack.i.h.bf16 %v11236_v28  ;;  %v11237_v14 = vunpack.i.l.bf16 %v11236_v28  ;;  %v14610_v31 = vpop.f32.mrf.mxu0  ;;  %11450 = vrot.lane.b32.xlu2 %v14229_v39, %s12779_s12  ;;  %3306 = vmatpush.msrb.mxu3 %v3207_v34  ;;  %v14614_v44 = vpop.f32.mrf.mxu1  ;;  %v3203_v37 = vsel %vm3198_vm14, %v20606_v42, %v11182_v26  ;;  %v11268_v34 = vunpack.i.h.bf16 %v14536_v35 }
 0x461   : > { %20604 = vst [vmem:[#allocation63_spill] sm:$0xff] %v14610_v31  ;;  %3278 = vmatpush.msrb.mxu2 %v3203_v37  ;;  %v3200_v42 = vsel %vm3198_vm14, %v20607_v54, %v11167_v56  ;;  %v11208_v35 = vunpack.i.h.bf16 %v14528_v7  ;;  %v11207_v26 = vunpack.i.l.bf16 %v14528_v7  ;;  %v11213_v56 = vunpack.i.h.bf16 %v14563_v0 }
 0x462   : > { %20605 = vst [vmem:[#allocation64_spill] sm:$0xff] %v14614_v44  ;;  %v3381_v28 = vsel %vm3371_vm15, %v11237_v14, %v11238_v11  ;;  %v3382_v31 = vsel %vm3371_vm15, %v11238_v11, %v11267_v55  ;;  %v11232_v44 = vunpack.i.l.bf16 %v11231_v23  ;;  %3307 = vmatpush.msrb.mxu3 %v3204_v1  ;;  %v14641_v1 = vld [vmem:[%s20464_s2 + $0x180] sm:$0xff]  ;;  %v11212_v23 = vunpack.i.l.bf16 %v14563_v0 }
 0x463   : > { %3420 = vmatpush.msrb.mxu0 %v3381_v28  ;;  %v14633_v37 = vpop.f32.mrf.mxu3  ;;  %3279 = vmatpush.msrb.mxu2 %v3200_v42  ;;  %v11198_v14 = vunpack.i.h.bf16 %v14530_v47  ;;  %v3375_v54 = vsel %vm3371_vm15, %v11207_v26, %v11208_v35  ;;  %vm6308_vm14 = vcmask 64512  }
 0x464   : > { %9922 = vmatmul.msk.f32.gmra.mxu1 %vm1008_vm9, %v14582_v9  ;;  %3308 = vmatpush.msrb.mxu3 %v3201_v30  ;;  %v3380_v11 = vsel %vm3371_vm15, %v11232_v44, %v11233_v8  ;;  %v11202_v8 = vunpack.i.l.bf16 %v14366_v60  ;;  %v3379_v47 = vsel %vm3371_vm15, %v11223_v3, %v11232_v44  ;;  %v3377_v42 = vsel %vm3371_vm15, %v11212_v23, %v11213_v56 }
 0x465   : > { %3449 = vmatpush.msra.mxu1 %v3382_v31  ;;  %v14643_v24 = vpop.f32.mrf.mxu2  ;;  %9913 = vmatmul.msk.f32.gmra.mxu3 %vm1008_vm9, %v14548_v10  ;;  %v3383_v31 = vsel %vm3371_vm15, %v11267_v55, %v11268_v34  ;;  %v11203_v55 = vunpack.i.h.bf16 %v14366_v60  ;;  %v3376_v30 = vsel %vm3371_vm15, %v11208_v35, %v11212_v23  ;;  %v3372_v60 = vsel %vm3371_vm15, %v11197_v13, %v11198_v14  ;;  %v14726_v13 = vld [vmem:[%s20464_s2 + $0x190] sm:$0xff] }
 0x466   : > { %20608 = vst [vmem:[#allocation65_spill] sm:$0xff] %v14643_v24  ;;  %9919 = vmatmul.msk.f32.gmra.mxu0 %vm1008_vm9, %v14631_v52  ;;  %9928 = vmatmul.msk.f32.vlgmr.msra.gmra.mxu2 %vm1008_vm9, %v14641_v1  ;;  %v14658_v7 = vpop.permute.xlu0 %11240  ;;  %v3373_v26 = vsel %vm3371_vm15, %v11198_v14, %v11202_v8  ;;  %v14721_v14 = vld [vmem:[%s20464_s2 + $0x1a0] sm:$0xff] }
 0x467   : > { %3421 = vmatpush.msrb.mxu0 %v3378_v49  ;;  %v14660_v10 = vpop.permute.xlu1 %11245  ;;  %3478 = vmatpush.msra.mxu2 %v3383_v31  ;;  %v14666_v0 = vpop.permute.xlu2 %11300  ;;  %v14686_v49 = vld [vmem:[%s20464_s2 + $0x188] sm:$0xff]  ;;  %v3374_v3 = vsel %vm3371_vm15, %v11202_v8, %v11203_v55  ;;  %vm6481_vm15 = vcmask 56320  }
 0x468   : > { %11455 = vrot.lane.b32.xlu0 %v14300_v33, %s12779_s12  ;;  %v14668_v28 = vpop.f32.mrf.mxu0  ;;  %11460 = vrot.lane.b32.xlu1 %v14308_v16, %s12779_s12  ;;  %v14677_v34 = vpop.f32.mrf.mxu1 }
 0x469   : > { %20609 = vst [vmem:[#allocation66_spill] sm:$0xff] %v14668_v28  ;;  %11465 = vrot.lane.b32.xlu2 %v14286_v38, %s12779_s12  ;;  %3479 = vmatpush.msra.mxu2 %v3380_v11 }
 0x46a   : > { %20610 = vst [vmem:[#allocation67_spill] sm:$0xff] %v14677_v34  ;;  %3450 = vmatpush.msra.mxu1 %v3379_v47  ;;  %3422 = vmatpush.msrb.mxu0 %v3375_v54 }
 0x46b   : > { %3480 = vmatpush.msra.mxu2 %v3377_v42 }
 0x46c   : > { %3451 = vmatpush.msra.mxu1 %v3376_v30  ;;  %v14688_v44 = vpop.f32.mrf.mxu3  ;;  %3423 = vmatpush.msrb.mxu0 %v3372_v60 }
 0x46d   : > { %20611 = vst [vmem:[#allocation68_spill] sm:$0xff] %v14688_v44  ;;  %9923 = vmatmul.msk.f32.gmra.mxu1 %vm1008_vm9, %v14631_v52  ;;  %3481 = vmatpush.msra.mxu2 %v3374_v3  ;;  %v14694_v35 = vpop.f32.mrf.mxu2 }
 0x46e   : > { %3452 = vmatpush.msra.mxu1 %v3373_v26  ;;  %9914 = vmatmul.msk.f32.gmra.mxu3 %vm1008_vm9, %v14582_v9  ;;  %v14700_v56 = vpop.permute.xlu0 %11255 }
 0x46f   : > { %9929 = vmatmul.msk.f32.gmra.mxu2 %vm1008_vm9, %v14686_v49  ;;  %v14702_v23 = vpop.permute.xlu1 %11260  ;;  %9936 = vmatmul.msk.f32.vlgmr.msra.gmra.mxu0 %vm1008_vm9, %v14641_v1  ;;  %v14708_v31 = vpop.permute.xlu2 %11320 }
 0x470   : > { %11470 = vrot.lane.b32.xlu0 %v14350_v22, %s12779_s12  ;;  %v14710_v11 = vpop.f32.mrf.mxu0  ;;  %11480 = vrot.lane.b32.xlu1 %v14395_v19, %s12779_s12  ;;  %v14716_v9 = vpop.f32.mrf.mxu1  ;;  %v11263_v42 = vunpack.i.h.bf16 %v14702_v23  ;;  %v11262_v28 = vunpack.i.l.bf16 %v14702_v23  ;;  %v11248_v23 = vunpack.i.h.bf16 %v14660_v10  ;;  %v11322_v36 = vunpack.i.l.bf16 %v14708_v31 }
 0x471   : > { %20612 = vst [vmem:[#allocation69_spill] sm:$0xff] %v14710_v11  ;;  %11490 = vrot.lane.b32.xlu2 %v14385_v4, %s12779_s12  ;;  %s12788_s12 = smov 10  }
 0x472   : > { %20613 = vst [vmem:[#allocation70_spill] sm:$0xff] %v14716_v9  ;;  %v11272_v9 = vunpack.i.l.bf16 %v14570_v59 }
 0x474   : > { %v14728_v55 = vpop.f32.mrf.mxu3  ;;  %v3552_v24 = vsel %vm3544_vm0, %v11263_v42, %v11272_v9 }
 0x475   : > { %9944 = vmatmul.msk.f32.vlgmr.msrb.gmra.mxu1 %vm1008_vm9, %v14721_v14  ;;  %v14732_v8 = vpop.f32.mrf.mxu2 }
 0x476   : > { %20614 = vst [vmem:[#allocation71_spill] sm:$0xff] %v14732_v8  ;;  %9915 = vmatmul.msk.f32.gmra.mxu3 %vm1008_vm9, %v14631_v52  ;;  %v11276_v47 = vpop.permute.xlu0 %11275  ;;  %v11273_v8 = vunpack.i.h.bf16 %v14570_v59  ;;  %v14765_v59 = vld [vmem:[%s20464_s2 + $0x198] sm:$0xff] }
 0x477   : > { %9930 = vmatmul.msk.f32.gmra.mxu2 %vm1008_vm9, %v14726_v13  ;;  %v11281_v54 = vpop.permute.xlu1 %11280  ;;  %9937 = vmatmul.msk.f32.gmra.mxu0 %vm1008_vm9, %v14686_v49  ;;  %v11278_v30 = vunpack.i.h.bf16 %v11276_v47  ;;  %v14743_v26 = vpop.permute.xlu2 %11325  ;;  %v11277_v11 = vunpack.i.l.bf16 %v11276_v47 }
 0x478   : > { %11475 = vrot.lane.b32.xlu0 %v14240_v29, %s12780_s9  ;;  %v11283_v60 = vunpack.i.h.bf16 %v11281_v54  ;;  %v11282_v3 = vunpack.i.l.bf16 %v11281_v54  ;;  %v14745_v52 = vpop.f32.mrf.mxu0  ;;  %11485 = vrot.lane.b32.xlu1 %v14229_v39, %s12780_s9  ;;  %v14753_v34 = vpop.f32.mrf.mxu1  ;;  %v14758_v54 = vld [vmem:[%s20464_s2 + $0x1a8] sm:$0xff] }
 0x479   : > { %20615 = vst [vmem:[#allocation72_spill] sm:$0xff] %v14745_v52  ;;  %11495 = vrot.lane.b32.xlu2 %v14300_v33, %s12780_s9  ;;  %v3554_v12 = vsel %vm3544_vm0, %v11277_v11, %v11278_v30  ;;  %v11247_v11 = vunpack.i.l.bf16 %v14660_v10 }
 0x47a   : > { %v3555_v52 = vsel %vm3544_vm0, %v11278_v30, %v11282_v3  ;;  %v3556_v44 = vsel %vm3544_vm0, %v11282_v3, %v11283_v60  ;;  %v3553_v60 = vsel %vm3544_vm0, %v11272_v9, %v11273_v8  ;;  %v11257_v3 = vunpack.i.l.bf16 %v14700_v56 }
 0x47b   : > { %3622 = vmatpush.msra.mxu0 %v3555_v52  ;;  %3651 = vmatpush.msrb.mxu1 %v3556_v44  ;;  %v11258_v44 = vunpack.i.h.bf16 %v14700_v56 }
 0x47c   : > { %v14767_v47 = vpop.f32.mrf.mxu3 }
 0x47d   : > { %20616 = vst [vmem:[#allocation73_spill] sm:$0xff] %v14767_v47  ;;  %9945 = vmatmul.msk.f32.gmra.mxu1 %vm1008_vm9, %v14758_v54  ;;  %3623 = vmatpush.msra.mxu0 %v3552_v24  ;;  %v14777_v52 = vpop.f32.mrf.mxu2  ;;  %v11253_v47 = vunpack.i.h.bf16 %v14494_v61  ;;  %v11243_v24 = vunpack.i.h.bf16 %v14658_v7  ;;  %v11242_v61 = vunpack.i.l.bf16 %v14658_v7  ;;  %v3550_v30 = vsel %vm3544_vm0, %v11257_v3, %v11258_v44 }
 0x47e   : > { %3652 = vmatpush.msrb.mxu1 %v3553_v60  ;;  %9932 = vmatmul.msk.f32.vlgmr.msra.gmra.mxu3 %vm1008_vm9, %v14641_v1  ;;  %v3551_v1 = vsel %vm3544_vm0, %v11262_v28, %v11263_v42  ;;  %v20475_v60 = vunpack.i.h.bf16 %v14708_v31  ;;  %v14816_v42 = vld [vmem:[%s20464_s2 + $0x1b0] sm:$0xff] }
 0x47f   : > { %9931 = vmatmul.msk.f32.gmra.mxu2 %vm1008_vm9, %v14765_v59  ;;  %9938 = vmatmul.msk.f32.gmra.mxu0 %vm1008_vm9, %v14726_v13  ;;  %v14790_v56 = vpop.permute.xlu0 %11290  ;;  %v14792_v9 = vpop.permute.xlu2 %11345  ;;  %v3549_v7 = vsel %vm3544_vm0, %v11253_v47, %v11257_v3  ;;  %v3548_v28 = vsel %vm3544_vm0, %v11252_v51, %v11253_v47  ;;  %v3545_v44 = vsel %vm3544_vm0, %v11242_v61, %v11243_v24 }
 0x480   : > { %3593 = vmatpush.msra.mxu3 %v3554_v12  ;;  %11500 = vrot.lane.b32.xlu0 %v14308_v16, %s12780_s9  ;;  %v14800_v8 = vpop.permute.xlu1 %11295  ;;  %v14802_v10 = vpop.f32.mrf.mxu0  ;;  %v3726_v47 = vsel %vm567_vm1, %v11322_v36, %v20475_v60  ;;  %v14869_v60 = vld [vmem:[%s20464_s2 + $0x1c0] sm:$0xff] }
 0x481   : > { %11505 = vrot.lane.b32.xlu1 %v14286_v38, %s12780_s9  ;;  %20617 = vst [vmem:[#allocation74_spill] sm:$0xff] %v14802_v10  ;;  %11510 = vrot.lane.b32.xlu2 %v14350_v22, %s12780_s9  ;;  %v14806_v12 = vpop.f32.mrf.mxu1  ;;  %v11303_v10 = vunpack.i.h.bf16 %v14666_v0 }
 0x482   : > { %3594 = vmatpush.msra.mxu3 %v3551_v1  ;;  %20618 = vst [vmem:[#allocation75_spill] sm:$0xff] %v14806_v12  ;;  %3624 = vmatpush.msra.mxu0 %v3549_v7  ;;  %v3546_v1 = vsel %vm3544_vm0, %v11243_v24, %v11247_v11  ;;  %v3547_v12 = vsel %vm3544_vm0, %v11247_v11, %v11248_v23  ;;  %v20477_v23 = vunpack.i.h.bf16 %v14800_v8  ;;  %v11297_v11 = vunpack.i.l.bf16 %v14800_v8 }
 0x483   : > { %3653 = vmatpush.msrb.mxu1 %v3550_v30  ;;  %vm6654_vm0 = vcmask 48128  }
 0x484   : > { %3595 = vmatpush.msra.mxu3 %v3548_v28  ;;  %3625 = vmatpush.msra.mxu0 %v3546_v1  ;;  %v14821_v3 = vpop.f32.mrf.mxu3  ;;  %v11287_v1 = vunpack.i.l.bf16 %v14608_v21  ;;  %v3720_v28 = vsel %vm567_vm1, %v11297_v11, %v20477_v23 }
 0x485   : > { %3654 = vmatpush.msrb.mxu1 %v3547_v12  ;;  %20619 = vst [vmem:[#allocation76_spill] sm:$0xff] %v14821_v3  ;;  %v11302_v3 = vunpack.i.l.bf16 %v14666_v0 }
 0x486   : > { %3596 = vmatpush.msra.mxu3 %v3545_v44  ;;  %9946 = vmatmul.msk.f32.gmra.mxu1 %vm1008_vm9, %v14816_v42  ;;  %v14825_v51 = vpop.f32.mrf.mxu2  ;;  %v14861_v44 = vld [vmem:[%s20464_s2 + $0x1b8] sm:$0xff] }
 0x487   : > { %20620 = vst [vmem:[#allocation77_spill] sm:$0xff] %v14825_v51  ;;  %9933 = vmatmul.msk.f32.gmra.mxu3 %vm1008_vm9, %v14686_v49  ;;  %9948 = vmatmul.msk.f32.vlgmr.msrb.gmra.mxu2 %vm1008_vm9, %v14721_v14  ;;  %v14836_v24 = vpop.permute.xlu0 %11305 }
 0x488   : > { %9939 = vmatmul.msk.f32.gmra.mxu0 %vm1008_vm9, %v14765_v59  ;;  %3765 = vmatpush.msrb.mxu2 %v3726_v47  ;;  %v20476_v49 = vunpack.i.h.bf16 %v14836_v24  ;;  %v11307_v36 = vunpack.i.l.bf16 %v14836_v24  ;;  %v14846_v61 = vpop.permute.xlu1 %11310  ;;  %v14848_v12 = vpop.permute.xlu2 %11365 }
 0x489   : > { %11515 = vrot.lane.b32.xlu0 %v14395_v19, %s12780_s9  ;;  %11520 = vrot.lane.b32.xlu1 %v14385_v4, %s12780_s9  ;;  %v14852_v7 = vpop.f32.mrf.mxu1  ;;  %v14854_v30 = vpop.f32.mrf.mxu0  ;;  %s12784_s9 = smov 31  }
 0x48a   : > { %11525 = vrot.lane.b32.xlu2 %v14240_v29, %s12781_s15  ;;  %20621 = vst [vmem:[#allocation78_spill] sm:$0xff] %v14854_v30  ;;  %v3723_v47 = vsel %vm567_vm1, %v11307_v36, %v20476_v49  ;;  %v20624_v49 = vunpack.i.h.bf16 %v14608_v21 }
 0x48b   : > { %3766 = vmatpush.msrb.mxu2 %v3723_v47 }
 0x48c   : > { %v14880_v36 = vpop.f32.mrf.mxu3  ;;  %v3717_v30 = vsel %vm567_vm1, %v11287_v1, %v20624_v49 }
 0x48d   : > { %3767 = vmatpush.msrb.mxu2 %v3720_v28  ;;  %20622 = vst [vmem:[#allocation79_spill] sm:$0xff] %v14880_v36  ;;  %v11313_v28 = vunpack.i.h.bf16 %v14846_v61 }
 0x48e   : > { %9947 = vmatmul.msk.f32.gmra.mxu1 %vm1008_vm9, %v14861_v44  ;;  %v14882_v47 = vpop.f32.mrf.mxu2 }
 0x48f   : > { %9934 = vmatmul.msk.f32.gmra.mxu3 %vm1008_vm9, %v14726_v13  ;;  %9949 = vmatmul.msk.f32.gmra.mxu2 %vm1008_vm9, %v14758_v54  ;;  %20623 = vst [vmem:[#allocation80_spill] sm:$0xff] %v14882_v47  ;;  %v11331_v11 = vpop.permute.xlu0 %11330  ;;  %v11312_v13 = vunpack.i.l.bf16 %v14846_v61 }
 0x490   : > { %9960 = vmatmul.msk.f32.vlgmr.msrb.gmra.mxu0 %vm1008_vm9, %v14869_v60  ;;  %3768 = vmatpush.msrb.mxu2 %v3717_v30  ;;  %v11333_v23 = vunpack.i.h.bf16 %v11331_v11  ;;  %v11332_v47 = vunpack.i.l.bf16 %v11331_v11  ;;  %v14895_v51 = vpop.permute.xlu1 %11315  ;;  %v14897_v49 = vpop.permute.xlu2 %11385  ;;  %v14911_v11 = vld [vmem:[%s20464_s2 + $0x1c8] sm:$0xff] }
 0x491   : > { %11530 = vrot.lane.b32.xlu0 %v14229_v39, %s12781_s15  ;;  %11535 = vrot.lane.b32.xlu1 %v14300_v33, %s12781_s15  ;;  %v14901_v30 = vpop.f32.mrf.mxu0  ;;  %v14903_v1 = vpop.f32.mrf.mxu1  ;;  %v3725_v6 = vsel %vm567_vm1, %v11312_v13, %v11313_v28 }
 0x492   : > { %11540 = vrot.lane.b32.xlu2 %v14308_v16, %s12781_s15  ;;  %20625 = vst [vmem:[#allocation81_spill] sm:$0xff] %v14903_v1  ;;  %v3728_v61 = vsel %vm567_vm1, %v11332_v47, %v11333_v23  ;;  %v11293_v1 = vunpack.i.h.bf16 %v14790_v56  ;;  %v11292_v23 = vunpack.i.l.bf16 %v14790_v56 }
 0x493   : > { %3823 = vmatpush.msrb.mxu0 %v3728_v61 }
 0x494   : > { %v14922_v0 = vpop.f32.mrf.mxu3  ;;  %v3719_v36 = vsel %vm567_vm1, %v11292_v23, %v11293_v1 }
 0x495   : > { %3824 = vmatpush.msrb.mxu0 %v3725_v6  ;;  %20626 = vst [vmem:[#allocation82_spill] sm:$0xff] %v14922_v0 }
 0x496   : > { %9964 = vmatmul.msk.f32.vlgmr.msra.gmra.mxu1 %vm1008_vm9, %v14869_v60  ;;  %v14924_v61 = vpop.f32.mrf.mxu2 }
 0x497   : > { %9935 = vmatmul.msk.f32.gmra.mxu3 %vm1008_vm9, %v14765_v59  ;;  %9950 = vmatmul.msk.f32.gmra.mxu2 %vm1008_vm9, %v14816_v42  ;;  %20627 = vst [vmem:[#allocation83_spill] sm:$0xff] %v14924_v61  ;;  %v3722_v59 = vsel %vm567_vm1, %v11302_v3, %v11303_v10  ;;  %v20630_v10 = vunpack.i.h.bf16 %v14708_v31 }
 0x498   : > { %9961 = vmatmul.msk.f32.gmra.mxu0 %vm1008_vm9, %v14911_v11  ;;  %v14932_v6 = vpop.permute.xlu0 %11335 }
 0x499   : > { %11545 = vrot.lane.b32.xlu0 %v14286_v38, %s12781_s15  ;;  %11550 = vrot.lane.b32.xlu1 %v14350_v22, %s12781_s15  ;;  %v14937_v56 = vpop.permute.xlu1 %11340  ;;  %v14939_v28 = vpop.permute.xlu2 %11390 }
 0x49a   : > { %11555 = vrot.lane.b32.xlu2 %v14395_v19, %s12781_s15  ;;  %3825 = vmatpush.msrb.mxu0 %v3722_v59  ;;  %v14941_v0 = vpop.f32.mrf.mxu0  ;;  %v14943_v61 = vpop.f32.mrf.mxu1  ;;  %v3727_v59 = vsel %vm567_vm1, %v20630_v10, %v11332_v47 }
 0x49b   : > { %20628 = vst [vmem:[#allocation84_spill] sm:$0xff] %v14941_v0  ;;  %v20633_v0 = vunpack.i.h.bf16 %v14836_v24  ;;  %v20634_v24 = vunpack.i.h.bf16 %v14800_v8 }
 0x49c   : > { %20629 = vst [vmem:[#allocation85_spill] sm:$0xff] %v14943_v61  ;;  %3826 = vmatpush.msrb.mxu0 %v3719_v36 }
 0x49d   : > { %v14962_v36 = vpop.f32.mrf.mxu3  ;;  %v3724_v61 = vsel %vm567_vm1, %v20633_v0, %v11312_v13  ;;  %v3721_v13 = vsel %vm567_vm1, %v20634_v24, %v11302_v3 }
 0x49e   : > { %9965 = vmatmul.msk.f32.gmra.mxu1 %vm1008_vm9, %v14911_v11  ;;  %v14960_v1 = vpop.f32.mrf.mxu2  ;;  %20632 = vst [vmem:[#allocation87_spill] sm:$0xff] %v14962_v36  ;;  %v14994_v36 = vld [vmem:[%s20464_s2 + $0x1d8] sm:$0xff] }
 0x49f   : > { %9951 = vmatmul.msk.f32.gmra.mxu2 %vm1008_vm9, %v14861_v44  ;;  %9952 = vmatmul.msk.f32.vlgmr.msrb.gmra.mxu3 %vm1008_vm9, %v14721_v14  ;;  %20631 = vst [vmem:[#allocation86_spill] sm:$0xff] %v14960_v1  ;;  %v15028_v1 = vld [vmem:[%s20464_s2 + $0x1e0] sm:$0xff] }
 0x4a0   : > { %9962 = vmatmul.msk.f32.gmra.mxu0 %vm1008_vm9, %v14949_v20  ;;  %3794 = vmatpush.msrb.mxu3 %v3727_v59  ;;  %v14973_v31 = vpop.permute.xlu0 %11350  ;;  %v20636_v59 = vunpack.i.h.bf16 %v14608_v21 }
 0x4a1   : > { %11560 = vrot.lane.b32.xlu0 %v14385_v4, %s12781_s15  ;;  %11565 = vrot.lane.b32.xlu1 %v14240_v29, %s12782_s6  ;;  %v14977_v14 = vpop.permute.xlu1 %11360  ;;  %v14979_v47 = vpop.permute.xlu2 %11400  ;;  %s12797_s15 = smov 112  }
 0x4a2   : > { %3795 = vmatpush.msrb.mxu3 %v3724_v61  ;;  %11570 = vrot.lane.b32.xlu2 %v14229_v39, %s12782_s6  ;;  %v14984_v0 = vpop.f32.mrf.mxu0  ;;  %v14986_v10 = vpop.f32.mrf.mxu1  ;;  %v3718_v61 = vsel %vm567_vm1, %v20636_v59, %v11292_v23  ;;  %v20478_v23 = vunpack.i.l.bf16 %v14897_v49  ;;  %vm4233_vm1 = vcmask 441344  }
 0x4a3   : > { %20635 = vst [vmem:[#allocation88_spill] sm:$0xff] %v14986_v10 }
 0x4a4   : > { %3796 = vmatpush.msrb.mxu3 %v3721_v13 }
 0x4a5   : > { %v15002_v8 = vpop.f32.mrf.mxu3 }
 0x4a6   : > { %3797 = vmatpush.msrb.mxu3 %v3718_v61  ;;  %9966 = vmatmul.msk.f32.gmra.mxu1 %vm1008_vm9, %v14949_v20  ;;  %20637 = vst [vmem:[#allocation89_spill] sm:$0xff] %v15002_v8  ;;  %v15004_v21 = vpop.f32.mrf.mxu2  ;;  %v11348_v8 = vunpack.i.h.bf16 %v14792_v9 }
 0x4a7   : > { %9953 = vmatmul.msk.f32.gmra.mxu3 %vm1008_vm9, %v14758_v54  ;;  %9968 = vmatmul.msk.f32.vlgmr.msra.gmra.mxu2 %vm1008_vm9, %v14869_v60  ;;  %20638 = vst [vmem:[#allocation90_spill] sm:$0xff] %v15004_v21  ;;  %v11347_v21 = vunpack.i.l.bf16 %v14792_v9  ;;  %v11337_v9 = vunpack.i.l.bf16 %v14932_v6 }
 0x4a8   : > { %9963 = vmatmul.msk.f32.gmra.mxu0 %vm1008_vm9, %v14994_v36  ;;  %v15012_v3 = vpop.permute.xlu0 %11355 }
 0x4a9   : > { %11575 = vrot.lane.b32.xlu0 %v14300_v33, %s12782_s6  ;;  %11580 = vrot.lane.b32.xlu1 %v14308_v16, %s12782_s6  ;;  %v11376_v54 = vpop.permute.xlu1 %11375  ;;  %v15016_v60 = vpop.permute.xlu2 %11415 }
 0x4aa   : > { %11585 = vrot.lane.b32.xlu2 %v14286_v38, %s12782_s6  ;;  %v11378_v24 = vunpack.i.h.bf16 %v11376_v54  ;;  %v11377_v13 = vunpack.i.l.bf16 %v11376_v54  ;;  %v15019_v59 = vpop.f32.mrf.mxu1  ;;  %v15021_v61 = vpop.f32.mrf.mxu0  ;;  %v20480_v54 = vunpack.i.l.bf16 %v14973_v31 }
 0x4ab   : > { %20639 = vst [vmem:[#allocation91_spill] sm:$0xff] %v15019_v59  ;;  %v20479_v59 = vunpack.i.l.bf16 %v14743_v26 }
 0x4ac   : > { %20640 = vst [vmem:[#allocation92_spill] sm:$0xff] %v15021_v61  ;;  %v3898_v10 = vsel %vm597_vm2, %v11377_v13, %v11378_v24  ;;  %v3899_v40 = vsel %vm597_vm2, %v11378_v24, %v20478_v23  ;;  %v11338_v61 = vunpack.i.h.bf16 %v14932_v6  ;;  %v11317_v23 = vunpack.i.l.bf16 %v14895_v51 }
 0x4ad   : > { %3966 = vmatpush.msra.mxu2 %v3899_v40  ;;  %3937 = vmatpush.msra.mxu1 %v3898_v10  ;;  %v11318_v40 = vunpack.i.h.bf16 %v14895_v51  ;;  %v3896_v51 = vsel %vm597_vm2, %v11348_v8, %v20480_v54 }
 0x4ae   : > { %9967 = vmatmul.msk.f32.gmra.mxu1 %vm1008_vm9, %v14994_v36 }
 0x4af   : > { %9954 = vmatmul.msk.f32.gmra.mxu3 %vm1008_vm9, %v14816_v42  ;;  %9969 = vmatmul.msk.f32.gmra.mxu2 %vm1008_vm9, %v14911_v11  ;;  %v15046_v24 = vpop.f32.mrf.mxu3  ;;  %v3895_v11 = vsel %vm597_vm2, %v11347_v21, %v11348_v8  ;;  %v3892_v21 = vsel %vm597_vm2, %v11337_v9, %v11338_v61  ;;  %v3889_v8 = vsel %vm597_vm2, %v11317_v23, %v11318_v40 }
 0x4b0   : > { %9980 = vmatmul.msk.f32.vlgmr.msra.gmra.mxu0 %vm1008_vm9, %v15028_v1  ;;  %20641 = vst [vmem:[#allocation93_spill] sm:$0xff] %v15046_v24  ;;  %v15054_v42 = vpop.f32.mrf.mxu2  ;;  %v15057_v6 = vpop.permute.xlu0 %11370  ;;  %3938 = vmatpush.msra.mxu1 %v3895_v11  ;;  %v20645_v11 = vunpack.i.l.bf16 %v14937_v56  ;;  %v3890_v9 = vsel %vm597_vm2, %v11318_v40, %v20479_v59  ;;  %v1256_v23 = vadd.f32 %v14082_v17, %v13803_v41  ;;  %v11388_v59 = vunpack.i.h.bf16 %v14897_v49 }
 0x4b1   : > { %11590 = vrot.lane.b32.xlu0 %v14350_v22, %s12782_s6  ;;  %11595 = vrot.lane.b32.xlu1 %v14395_v19, %s12782_s6  ;;  %20642 = vst [vmem:[#allocation94_spill] sm:$0xff] %v15054_v42  ;;  %v15064_v10 = vpop.permute.xlu1 %11380  ;;  %v15066_v13 = vpop.permute.xlu2 %11435 }
 0x4b2   : > { %11600 = vrot.lane.b32.xlu2 %v14385_v4, %s12782_s6  ;;  %3967 = vmatpush.msra.mxu2 %v3896_v51  ;;  %v15068_v24 = vpop.f32.mrf.mxu0  ;;  %v15070_v42 = vpop.f32.mrf.mxu1  ;;  %v3893_v27 = vsel %vm597_vm2, %v11338_v61, %v20645_v11  ;;  %v15081_v51 = vld [vmem:[%s20464_s2 + $0x1e8] sm:$0xff]  ;;  %v11382_v40 = vunpack.i.l.bf16 %v15064_v10  ;;  %s12789_s6 = smov 9  }
 0x4b3   : > { %20643 = vst [vmem:[#allocation95_spill] sm:$0xff] %v15068_v24  ;;  %3939 = vmatpush.msra.mxu1 %v3892_v21  ;;  %v15122_v24 = vld [vmem:[%s20464_s2 + $0x1f0] sm:$0xff] }
 0x4b4   : > { %20644 = vst [vmem:[#allocation96_spill] sm:$0xff] %v15070_v42  ;;  %3968 = vmatpush.msra.mxu2 %v3893_v27  ;;  %v15182_v42 = vld [vmem:[%s20464_s2 + $0x1f8] sm:$0xff] }
 0x4b5   : > { %3940 = vmatpush.msra.mxu1 %v3889_v8 }
 0x4b6   : > { %3969 = vmatpush.msra.mxu2 %v3890_v9  ;;  %9984 = vmatmul.msk.f32.vlgmr.msrb.gmra.mxu1 %vm1008_vm9, %v15028_v1  ;;  %v1429_v9 = vadd.f32 %v14149_v45, %v1256_v23  ;;  %v11368_v23 = vunpack.i.h.bf16 %v14848_v12 }
 0x4b7   : > { %9955 = vmatmul.msk.f32.gmra.mxu3 %vm1008_vm9, %v14861_v44  ;;  %9970 = vmatmul.msk.f32.gmra.mxu2 %vm1008_vm9, %v14949_v20  ;;  %v15092_v27 = vpop.f32.mrf.mxu3 }
 0x4b8   : > { %9981 = vmatmul.msk.f32.gmra.mxu0 %vm1008_vm9, %v15081_v51  ;;  %20646 = vst [vmem:[#allocation97_spill] sm:$0xff] %v15092_v27  ;;  %v15100_v61 = vpop.f32.mrf.mxu2  ;;  %v11396_v44 = vpop.permute.xlu0 %11395  ;;  %v20649_v27 = vunpack.i.h.bf16 %v15064_v10 }
 0x4b9   : > { %11605 = vrot.lane.b32.xlu0 %v14240_v29, %s12783_s17  ;;  %20647 = vst [vmem:[#allocation98_spill] sm:$0xff] %v15100_v61  ;;  %11610 = vrot.lane.b32.xlu1 %v14229_v39, %s12783_s17  ;;  %v11398_v41 = vunpack.i.h.bf16 %v11396_v44  ;;  %v11397_v17 = vunpack.i.l.bf16 %v11396_v44  ;;  %v15108_v21 = vpop.permute.xlu1 %11410  ;;  %v1601_v44 = vadd.f32 %v14195_v25, %v1429_v9  ;;  %v11353_v61 = vunpack.i.h.bf16 %v14973_v31 }
 0x4ba   : > { %11615 = vrot.lane.b32.xlu2 %v14300_v33, %s12783_s17  ;;  %v15110_v11 = vpop.permute.xlu2 %11450  ;;  %v15112_v8 = vpop.f32.mrf.mxu0  ;;  %v4067_v45 = vsel %vm626_vm3, %v11382_v40, %v20649_v27  ;;  %v20650_v25 = vunpack.i.l.bf16 %v14897_v49  ;;  %v11328_v49 = vunpack.i.h.bf16 %v14743_v26 }
 0x4bb   : > { %v15116_v54 = vpop.f32.mrf.mxu1  ;;  %v4070_v20 = vsel %vm626_vm3, %v11397_v17, %v11398_v41  ;;  %v1773_v17 = vadd.f32 %v14368_v57, %v1601_v44 }
 0x4bc   : > { %20648 = vst [vmem:[#allocation99_spill] sm:$0xff] %v15116_v54  ;;  %4109 = vmatpush.msra.mxu0 %v4070_v20  ;;  %v11367_v54 = vunpack.i.l.bf16 %v14848_v12  ;;  %v11343_v20 = vunpack.i.h.bf16 %v14937_v56  ;;  %v3900_v27 = vsel %vm597_vm2, %v20650_v25, %v11388_v59  ;;  %v20653_v59 = vunpack.i.l.bf16 %v14973_v31 }
 0x4bd   : > { %v1946_v44 = vadd.f32 %v14633_v37, %v1773_v17 }
 0x4be   : > { %4110 = vmatpush.msra.mxu0 %v4067_v45  ;;  %9985 = vmatmul.msk.f32.gmra.mxu1 %vm1008_vm9, %v15081_v51  ;;  %v3897_v45 = vsel %vm597_vm2, %v20653_v59, %v11353_v61  ;;  %v4064_v31 = vsel %vm626_vm3, %v11367_v54, %v11368_v23  ;;  %v20654_v59 = vunpack.i.l.bf16 %v14937_v56  ;;  %v20657_v56 = vunpack.i.l.bf16 %v14743_v26 }
 0x4bf   : > { %9976 = vmatmul.msk.f32.vlgmr.msra.gmra.mxu3 %vm1008_vm9, %v15028_v1  ;;  %9971 = vmatmul.msk.f32.gmra.mxu2 %vm1008_vm9, %v14994_v36  ;;  %v15142_v40 = vpop.f32.mrf.mxu3  ;;  %v11357_v1 = vunpack.i.l.bf16 %v15012_v3  ;;  %v2119_v61 = vadd.f32 %v14694_v35, %v1946_v44  ;;  %v11392_v44 = vunpack.i.l.bf16 %v14939_v28  ;;  %v11373_v26 = vunpack.i.h.bf16 %v15057_v6 }
 0x4c0   : > { %9982 = vmatmul.msk.f32.gmra.mxu0 %vm1008_vm9, %v15122_v24  ;;  %20651 = vst [vmem:[#allocation100_spill] sm:$0xff] %v15142_v40  ;;  %3995 = vmatpush.msra.mxu3 %v3900_v27  ;;  %v15148_v57 = vpop.f32.mrf.mxu2  ;;  %v15150_v36 = vpop.permute.xlu0 %11405 }
 0x4c1   : > { %20652 = vst [vmem:[#allocation101_spill] sm:$0xff] %v15148_v57  ;;  %11620 = vrot.lane.b32.xlu0 %v14308_v16, %s12783_s17  ;;  %11625 = vrot.lane.b32.xlu1 %v14286_v38, %s12783_s17  ;;  %v11426_v25 = vpop.permute.xlu1 %11425  ;;  %v3894_v57 = vsel %vm597_vm2, %v20654_v59, %v11343_v20  ;;  %v2292_v35 = vadd.f32 %v14753_v34, %v2119_v61 }
 0x4c2   : > { %3996 = vmatpush.msra.mxu3 %v3897_v45  ;;  %11630 = vrot.lane.b32.xlu2 %v14350_v22, %s12783_s17  ;;  %v11428_v27 = vunpack.i.h.bf16 %v11426_v25  ;;  %v11427_v9 = vunpack.i.l.bf16 %v11426_v25  ;;  %v15165_v17 = vpop.f32.mrf.mxu0  ;;  %v20656_v25 = vunpack.i.h.bf16 %v15012_v3  ;;  %v3891_v20 = vsel %vm597_vm2, %v20657_v56, %v11328_v49 }
 0x4c3   : > { %v15163_v37 = vpop.permute.xlu2 %11465  ;;  %v15174_v45 = vpop.f32.mrf.mxu1  ;;  %4111 = vmatpush.msra.mxu0 %v4064_v31  ;;  %v2465_v34 = vadd.f32 %v14901_v30, %v2292_v35  ;;  %v1262_v30 = vadd.f32 %v14181_v63, %v13909_v43  ;;  %v11362_v31 = vunpack.i.l.bf16 %v14977_v14  ;;  %v20660_v43 = vunpack.i.h.bf16 %v15064_v10 }
 0x4c4   : > { %20655 = vst [vmem:[#allocation102_spill] sm:$0xff] %v15174_v45  ;;  %3997 = vmatpush.msra.mxu3 %v3894_v57  ;;  %v4061_v40 = vsel %vm626_vm3, %v11357_v1, %v20656_v25  ;;  %v4071_v54 = vsel %vm626_vm3, %v11398_v41, %v11427_v9  ;;  %v15192_v57 = vld [vmem:[%s20464_s2 + $0x200] sm:$0xff]  ;;  %v11393_v1 = vunpack.i.h.bf16 %v14939_v28  ;;  %v4072_v41 = vsel %vm626_vm3, %v11427_v9, %v11428_v27 }
 0x4c5   : > { %4112 = vmatpush.msra.mxu0 %v4061_v40  ;;  %4138 = vmatpush.msrb.mxu1 %v4071_v54  ;;  %v11372_v40 = vunpack.i.l.bf16 %v15057_v6  ;;  %v11363_v27 = vunpack.i.h.bf16 %v14977_v14  ;;  %v4068_v63 = vsel %vm626_vm3, %v20660_v43, %v11392_v44  ;;  %v1435_v54 = vadd.f32 %v14242_v32, %v1262_v30 }
 0x4c6   : > { %3998 = vmatpush.msra.mxu3 %v3891_v20  ;;  %9986 = vmatmul.msk.f32.gmra.mxu1 %vm1008_vm9, %v15122_v24  ;;  %v4069_v61 = vsel %vm626_vm3, %v11392_v44, %v11393_v1  ;;  %v20662_v20 = vunpack.i.h.bf16 %v15012_v3  ;;  %v15249_v44 = vld [vmem:[%s20464_s2 + $0x208] sm:$0xff]  ;;  %vm4406_vm2 = vcmask 433152  }
 0x4c7   : > { %9977 = vmatmul.msk.f32.gmra.mxu3 %vm1008_vm9, %v15081_v51  ;;  %9992 = vmatmul.msk.f32.vlgmr.msrb.gmra.mxu2 %vm1008_vm9, %v15192_v57  ;;  %v4065_v35 = vsel %vm626_vm3, %v11368_v23, %v11372_v40  ;;  %v4066_v10 = vsel %vm626_vm3, %v11372_v40, %v11373_v26  ;;  %v1607_v56 = vadd.f32 %v14325_v2, %v1435_v54 }
 0x4c8   : > { %9983 = vmatmul.msk.f32.gmra.mxu0 %vm1008_vm9, %v15182_v42  ;;  %v2623_v28 = vpop.f32.mrf.mxu3  ;;  %v15208_v9 = vpop.permute.xlu0 %11420  ;;  %4167 = vmatpush.msrb.mxu2 %v4072_v41  ;;  %v4062_v1 = vsel %vm626_vm3, %v20662_v20, %v11362_v31  ;;  %v4063_v32 = vsel %vm626_vm3, %v11362_v31, %v11363_v27  ;;  %v11438_v41 = vunpack.i.h.bf16 %v15066_v13  ;;  %vm4579_vm3 = vcmask 285696  }
 0x4c9   : > { %11635 = vrot.lane.b32.xlu0 %v14395_v19, %s12783_s17  ;;  %v15214_v51 = vadd.f32 %v2623_v28, %v2465_v34  ;;  %v15216_v49 = vpop.f32.mrf.mxu2  ;;  %v15218_v6 = vpop.permute.xlu1 %11430  ;;  %11640 = vrot.lane.b32.xlu1 %v14385_v4, %s12783_s17  ;;  %v1779_v12 = vadd.f32 %v14459_v53, %v1607_v56 }
 0x4ca   : > { %20659 = vst [vmem:[#allocation104_spill] sm:$0xff] %v15216_v49  ;;  %11645 = vrot.lane.b32.xlu2 %v14240_v29, %s12784_s9  ;;  %v15232_v25 = vpop.f32.mrf.mxu0  ;;  %4139 = vmatpush.msrb.mxu1 %v4068_v63  ;;  %v11432_v34 = vunpack.i.l.bf16 %v15218_v6 }
 0x4cb   : > { %20658 = vst [vmem:[#allocation103_spill] sm:$0xff] %v15214_v51  ;;  %v15230_v59 = vpop.permute.xlu2 %11490  ;;  %4168 = vmatpush.msrb.mxu2 %v4069_v61  ;;  %v15235_v14 = vpop.f32.mrf.mxu1  ;;  %v1952_v3 = vadd.f32 %v14728_v55, %v1779_v12  ;;  %v15290_v61 = vld [vmem:[%s20464_s2 + $0x220] sm:$0xff] }
 0x4cc   : > { %20661 = vst [vmem:[#allocation105_spill] sm:$0xff] %v15235_v14  ;;  %4140 = vmatpush.msrb.mxu1 %v4065_v35 }
 0x4cd   : > { %4169 = vmatpush.msrb.mxu2 %v4066_v10  ;;  %v2125_v28 = vadd.f32 %v14777_v52, %v1952_v3  ;;  %v15295_v52 = vld [vmem:[%s20464_s2 + $0x210] sm:$0xff]  ;;  %v11413_v10 = vunpack.i.h.bf16 %v15108_v21 }
 0x4ce   : > { %4141 = vmatpush.msrb.mxu1 %v4062_v1  ;;  %v11418_v1 = vunpack.i.h.bf16 %v15016_v60 }
 0x4cf   : > { %4170 = vmatpush.msrb.mxu2 %v4063_v32  ;;  %9978 = vmatmul.msk.f32.gmra.mxu3 %vm1008_vm9, %v15122_v24  ;;  %v11423_v24 = vunpack.i.h.bf16 %v15208_v9  ;;  %v2298_v63 = vadd.f32 %v14852_v7, %v2125_v28  ;;  %v11433_v7 = vunpack.i.h.bf16 %v15218_v6  ;;  %v11417_v32 = vunpack.i.l.bf16 %v15016_v60 }
 0x4d0   : > { %9987 = vmatmul.msk.f32.gmra.mxu1 %vm1008_vm9, %v15182_v42  ;;  %v15256_v2 = vpop.f32.mrf.mxu3  ;;  %9993 = vmatmul.msk.f32.gmra.mxu2 %vm1008_vm9, %v15249_v44  ;;  %v11403_v60 = vunpack.i.h.bf16 %v14979_v47 }
 0x4d1   : > { %20663 = vst [vmem:[#allocation106_spill] sm:$0xff] %v15256_v2  ;;  %10000 = vmatmul.msk.f32.vlgmr.msrb.gmra.mxu0 %vm1008_vm9, %v15192_v57  ;;  %v15263_v23 = vpop.f32.mrf.mxu2  ;;  %v11441_v53 = vpop.permute.xlu0 %11440  ;;  %11650 = vrot.lane.b32.xlu0 %v14229_v39, %s12784_s9  ;;  %v4241_v54 = vsel %vm4233_vm1, %v11423_v24, %v11432_v34  ;;  %v2471_v35 = vadd.f32 %v14984_v0, %v2298_v63  ;;  %v11407_v0 = vunpack.i.l.bf16 %v15150_v36 }
 0x4d2   : > { %20664 = vst [vmem:[#allocation107_spill] sm:$0xff] %v15263_v23  ;;  %11655 = vrot.lane.b32.xlu1 %v14300_v33, %s12784_s9  ;;  %v11442_v55 = vunpack.i.l.bf16 %v11441_v53  ;;  %v15272_v26 = vpop.permute.xlu1 %11445  ;;  %11660 = vrot.lane.b32.xlu2 %v14308_v16, %s12784_s9  ;;  %v11443_v30 = vunpack.i.h.bf16 %v11441_v53  ;;  %v15279_v27 = vpop.f32.mrf.mxu0  ;;  %v11408_v53 = vunpack.i.h.bf16 %v15150_v36  ;;  %v11437_v36 = vunpack.i.l.bf16 %v15066_v13 }
 0x4d3   : > { %v15274_v40 = vpop.permute.xlu2 %11495  ;;  %20665 = vst [vmem:[#allocation108_spill] sm:$0xff] %v15279_v27  ;;  %v15281_v31 = vpop.f32.mrf.mxu1 }
 0x4d4   : > { %20666 = vst [vmem:[#allocation109_spill] sm:$0xff] %v15281_v31  ;;  %v4244_v43 = vsel %vm4233_vm1, %v11438_v41, %v11442_v55  ;;  %v4245_v56 = vsel %vm4233_vm1, %v11442_v55, %v11443_v30  ;;  %v4242_v55 = vsel %vm4233_vm1, %v11432_v34, %v11433_v7  ;;  %v1201_v34 = vadd.f32 %v13902_v5, %v13822_v46  ;;  %v15349_v7 = vld [vmem:[%s20464_s2 + $0x218] sm:$0xff] }
 0x4d5   : > { %4311 = vmatpush.msrb.mxu0 %v4244_v43  ;;  %v4238_v43 = vsel %vm4233_vm1, %v11413_v10, %v11417_v32  ;;  %v11412_v5 = vunpack.i.l.bf16 %v15108_v21 }
 0x4d7   : > { %4312 = vmatpush.msrb.mxu0 %v4241_v54  ;;  %9979 = vmatmul.msk.f32.gmra.mxu3 %vm1008_vm9, %v15182_v42  ;;  %v4239_v54 = vsel %vm4233_vm1, %v11417_v32, %v11418_v1  ;;  %v15356_v1 = vld [vmem:[%s20464_s2 + $0x228] sm:$0xff]  ;;  %v1430_v32 = vadd.f32 %v14033_v62, %v1201_v34 }
 0x4d8   : > { %10008 = vmatmul.msk.f32.vlgmr.msra.gmra.mxu1 %vm1008_vm9, %v15290_v61  ;;  %v2629_v20 = vpop.f32.mrf.mxu3  ;;  %9994 = vmatmul.msk.f32.gmra.mxu2 %vm1008_vm9, %v15295_v52 }
 0x4d9   : > { %10001 = vmatmul.msk.f32.gmra.mxu0 %vm1008_vm9, %v15249_v44  ;;  %v15315_v6 = vadd.f32 %v2629_v20, %v2471_v35  ;;  %v15317_v12 = vpop.f32.mrf.mxu2  ;;  %4340 = vmatpush.msra.mxu1 %v4245_v56  ;;  %v4235_v35 = vsel %vm4233_vm1, %v11403_v60, %v11407_v0  ;;  %v11422_v56 = vunpack.i.l.bf16 %v15208_v9  ;;  %v4236_v20 = vsel %vm4233_vm1, %v11407_v0, %v11408_v53 }
 0x4da   : > { %20668 = vst [vmem:[#allocation111_spill] sm:$0xff] %v15317_v12  ;;  %v15319_v42 = vpop.permute.xlu0 %11455  ;;  %11665 = vrot.lane.b32.xlu0 %v14286_v38, %s12784_s9  ;;  %v15323_v3 = vpop.permute.xlu1 %11460  ;;  %11670 = vrot.lane.b32.xlu1 %v14350_v22, %s12784_s9  ;;  %v4243_v0 = vsel %vm4233_vm1, %v11437_v36, %v11438_v41 }
 0x4db   : > { %20667 = vst [vmem:[#allocation110_spill] sm:$0xff] %v15315_v6  ;;  %11675 = vrot.lane.b32.xlu2 %v14395_v19, %s12784_s9  ;;  %v15332_v28 = vpop.permute.xlu2 %11510  ;;  %v15334_v30 = vpop.f32.mrf.mxu0  ;;  %4341 = vmatpush.msra.mxu1 %v4242_v55  ;;  %v4240_v13 = vsel %vm4233_vm1, %v11422_v56, %v11423_v24 }
 0x4dc   : > { %20669 = vst [vmem:[#allocation112_spill] sm:$0xff] %v15334_v30  ;;  %v15339_v63 = vpop.f32.mrf.mxu1  ;;  %4313 = vmatpush.msrb.mxu0 %v4238_v43  ;;  %v11402_v43 = vunpack.i.l.bf16 %v14979_v47 }
 0x4dd   : > { %20670 = vst [vmem:[#allocation113_spill] sm:$0xff] %v15339_v63  ;;  %4342 = vmatpush.msra.mxu1 %v4239_v54  ;;  %v1204_v54 = vadd.f32 %v13939_v50, %v13861_v58  ;;  %v20482_v58 = vunpack.i.h.bf16 %v15163_v37  ;;  %v11467_v50 = vunpack.i.l.bf16 %v15163_v37 }
 0x4de   : > { %4314 = vmatpush.msrb.mxu0 %v4235_v35  ;;  %v4237_v35 = vsel %vm4233_vm1, %v11412_v5, %v11413_v10  ;;  %v20678_v10 = vld [vmem:[#allocation44_spill] sm:$0xff] }
 0x4df   : > { %4343 = vmatpush.msra.mxu1 %v4236_v20  ;;  %9996 = vmatmul.msk.f32.vlgmr.msrb.gmra.mxu3 %vm1008_vm9, %v15192_v57  ;;  %v1602_v57 = vadd.f32 %v14337_v15, %v1430_v32  ;;  %v4234_v20 = vsel %vm4233_vm1, %v11402_v43, %v11403_v60  ;;  %v15410_v32 = vld [vmem:[%s20464_s2 + $0x230] sm:$0xff]  ;;  %vm6827_vm1 = vcmask 39936  }
 0x4e0   : > { %v15361_v46 = vpop.f32.mrf.mxu3  ;;  %9995 = vmatmul.msk.f32.gmra.mxu2 %vm1008_vm9, %v15349_v7  ;;  %10009 = vmatmul.msk.f32.gmra.mxu1 %vm1008_vm9, %v15356_v1 }
 0x4e1   : > { %20671 = vst [vmem:[#allocation114_spill] sm:$0xff] %v15361_v46  ;;  %10002 = vmatmul.msk.f32.gmra.mxu0 %vm1008_vm9, %v15295_v52  ;;  %v15371_v53 = vpop.f32.mrf.mxu2  ;;  %4282 = vmatpush.msrb.mxu3 %v4243_v0  ;;  %v1774_v36 = vadd.f32 %v14387_v48, %v1602_v57  ;;  %v20675_v48 = vld [vmem:[#allocation27_spill] sm:$0xff] }
 0x4e2   : > { %20672 = vst [vmem:[#allocation115_spill] sm:$0xff] %v15371_v53  ;;  %v15373_v62 = vpop.permute.xlu0 %11470  ;;  %v15378_v55 = vpop.permute.xlu1 %11480  ;;  %11680 = vrot.lane.b32.xlu0 %v14385_v4, %s12784_s9  ;;  %11685 = vrot.lane.b32.xlu1 %v14240_v29, %s12785_s8  ;;  %v1433_v56 = vadd.f32 %v20675_v48, %v1204_v54  ;;  %v20676_v0 = vld [vmem:[#allocation59_spill] sm:$0xff]  ;;  %s12794_s9 = smov 115  }
 0x4e3   : > { %v15390_v41 = vpop.f32.mrf.mxu0  ;;  %4283 = vmatpush.msrb.mxu3 %v4240_v13  ;;  %11690 = vrot.lane.b32.xlu2 %v14229_v39, %s12785_s8  ;;  %v20481_v47 = vunpack.i.h.bf16 %v15378_v55  ;;  %v11482_v9 = vunpack.i.l.bf16 %v15378_v55  ;;  %v1947_v34 = vadd.f32 %v14461_v18, %v1774_v36  ;;  %v20680_v13 = vld [vmem:[#allocation79_spill] sm:$0xff] }
 0x4e4   : > { %v15388_v15 = vpop.permute.xlu2 %11525  ;;  %20673 = vst [vmem:[#allocation116_spill] sm:$0xff] %v15390_v41  ;;  %v15397_v24 = vpop.f32.mrf.mxu1  ;;  %v1605_v60 = vadd.f32 %v20678_v10, %v1433_v56  ;;  %v20682_v56 = vld [vmem:[#allocation83_spill] sm:$0xff] }
 0x4e5   : > { %20674 = vst [vmem:[#allocation117_spill] sm:$0xff] %v15397_v24  ;;  %4284 = vmatpush.msrb.mxu3 %v4237_v35  ;;  %v2120_v57 = vadd.f32 %v20676_v0, %v1947_v34  ;;  %v4416_v18 = vsel %vm4406_vm2, %v11482_v9, %v20481_v47  ;;  %v11457_v9 = vunpack.i.l.bf16 %v15319_v42  ;;  %v20681_v35 = vld [vmem:[#allocation48_spill] sm:$0xff]  ;;  %v20689_v24 = vunpack.i.h.bf16 %v15319_v42 }
 0x4e6   : > { %v1777_v34 = vadd.f32 %v20681_v35, %v1605_v60  ;;  %v20688_v0 = vld [vmem:[#allocation88_spill] sm:$0xff] }
 0x4e7   : > { %4285 = vmatpush.msrb.mxu3 %v4234_v20  ;;  %v2293_v36 = vadd.f32 %v20680_v13, %v2120_v57  ;;  %v11447_v57 = vunpack.i.l.bf16 %v15272_v26  ;;  %v20685_v13 = vld [vmem:[#allocation15_spill] sm:$0xff]  ;;  %v4410_v41 = vsel %vm4406_vm2, %v11457_v9, %v20689_v24  ;;  %v15480_v9 = vld [vmem:[%s20464_s2 + $0x240] sm:$0xff] }
 0x4e8   : > { %v15418_v21 = vpop.f32.mrf.mxu3  ;;  %9997 = vmatmul.msk.f32.gmra.mxu3 %vm1008_vm9, %v15249_v44  ;;  %10010 = vmatmul.msk.f32.gmra.mxu1 %vm1008_vm9, %v15410_v32 }
 0x4e9   : > { %20677 = vst [vmem:[#allocation27_spill] sm:$0xff] %v15418_v21  ;;  %10003 = vmatmul.msk.f32.gmra.mxu0 %vm1008_vm9, %v15349_v7  ;;  %v15425_v5 = vpop.f32.mrf.mxu2  ;;  %10012 = vmatmul.msk.f32.vlgmr.msra.gmra.mxu2 %vm1008_vm9, %v15290_v61  ;;  %v2466_v20 = vadd.f32 %v20682_v56, %v2293_v36  ;;  %v20686_v36 = vld [vmem:[#allocation18_spill] sm:$0xff]  ;;  %v20687_v56 = vld [vmem:[#allocation51_spill] sm:$0xff] }
 0x4ea   : > { %20679 = vst [vmem:[#allocation59_spill] sm:$0xff] %v15425_v5  ;;  %v15427_v43 = vpop.permute.xlu0 %11475  ;;  %v15436_v44 = vpop.permute.xlu1 %11485  ;;  %4455 = vmatpush.msra.mxu2 %v4416_v18  ;;  %11695 = vrot.lane.b32.xlu0 %v14300_v33, %s12785_s8  ;;  %v4413_v18 = vsel %vm4406_vm2, %v11467_v50, %v20482_v58  ;;  %v1425_v35 = vadd.f32 %v20686_v36, %v20685_v13  ;;  %v11493_v5 = vunpack.i.h.bf16 %v15230_v59  ;;  %v20483_v50 = vunpack.i.l.bf16 %v15230_v59  ;;  %v20690_v58 = vld [vmem:[#allocation30_spill] sm:$0xff]  ;;  %v20691_v36 = vld [vmem:[#allocation63_spill] sm:$0xff] }
 0x4eb   : > { %11700 = vrot.lane.b32.xlu1 %v14308_v16, %s12785_s8  ;;  %11705 = vrot.lane.b32.xlu2 %v14286_v38, %s12785_s8  ;;  %v1950_v47 = vadd.f32 %v20687_v56, %v1777_v34  ;;  %v2638_v54 = vadd.f32 %v20688_v0, %v2466_v20  ;;  %v20692_v0 = vunpack.i.h.bf16 %v15272_v26 }
 0x4ec   : > { %v15441_v48 = vpop.permute.xlu2 %11540  ;;  %v15453_v10 = vpop.f32.mrf.mxu1  ;;  %4456 = vmatpush.msra.mxu2 %v4413_v18  ;;  %v15469_v18 = vld [vmem:[%s20464_s2 + $0x238] sm:$0xff]  ;;  %v1597_v13 = vadd.f32 %v20690_v58, %v1425_v35  ;;  %v20695_v35 = vld [vmem:[#allocation82_spill] sm:$0xff] }
 0x4ed   : > { %20683 = vst [vmem:[#allocation44_spill] sm:$0xff] %v15453_v10  ;;  %v15455_v60 = vpop.f32.mrf.mxu0  ;;  %v2123_v34 = vadd.f32 %v20691_v36, %v1950_v47  ;;  %v2810_v20 = vadd.f32 %v15112_v8, %v2638_v54  ;;  %v4407_v24 = vsel %vm4406_vm2, %v11447_v57, %v20692_v0  ;;  %v20694_v8 = vld [vmem:[#allocation47_spill] sm:$0xff] }
 0x4ee   : > { %20684 = vst [vmem:[#allocation79_spill] sm:$0xff] %v15455_v60  ;;  %4457 = vmatpush.msra.mxu2 %v4410_v41  ;;  %v11473_v41 = vunpack.i.h.bf16 %v15373_v62  ;;  %v1769_v54 = vadd.f32 %v20694_v8, %v1597_v13  ;;  %v4418_v13 = vsel %vm4406_vm2, %v20483_v50, %v11493_v5  ;;  %v20698_v8 = vld [vmem:[#allocation86_spill] sm:$0xff]  ;;  %v20701_v50 = vunpack.i.l.bf16 %v15373_v62 }
 0x4ef   : > { %v2296_v57 = vadd.f32 %v20695_v35, %v2123_v34 }
 0x4f0   : > { %4458 = vmatpush.msra.mxu2 %v4407_v24  ;;  %9998 = vmatmul.msk.f32.gmra.mxu3 %vm1008_vm9, %v15295_v52  ;;  %v11463_v52 = vunpack.i.h.bf16 %v15323_v3  ;;  %v4415_v60 = vsel %vm4406_vm2, %v20701_v50, %v11473_v41  ;;  %v15536_v50 = vld [vmem:[%s20464_s2 + $0x248] sm:$0xff]  ;;  %v20706_v41 = vunpack.i.l.bf16 %v15110_v11 }
 0x4f1   : > { %v2912_v47 = vpop.f32.mrf.mxu3  ;;  %10011 = vmatmul.msk.f32.gmra.mxu1 %vm1008_vm9, %v15469_v18  ;;  %10013 = vmatmul.msk.f32.gmra.mxu2 %vm1008_vm9, %v15356_v1  ;;  %v2469_v35 = vadd.f32 %v20698_v8, %v2296_v57  ;;  %v20704_v8 = vunpack.i.l.bf16 %v15323_v3 }
 0x4f2   : > { %v15486_v58 = vpop.f32.mrf.mxu2  ;;  %v15494_v36 = vadd.f32 %v2912_v47, %v2810_v20  ;;  %v15496_v0 = vpop.permute.xlu0 %11500  ;;  %10024 = vmatmul.msk.f32.vlgmr.msra.gmra.mxu0 %vm1008_vm9, %v15480_v9  ;;  %11710 = vrot.lane.b32.xlu0 %v14350_v22, %s12785_s8  ;;  %v20697_v20 = vld [vmem:[#allocation50_spill] sm:$0xff] }
 0x4f3   : > { %20693 = vst [vmem:[#allocation48_spill] sm:$0xff] %v15486_v58  ;;  %v15498_v24 = vpop.permute.xlu1 %11505  ;;  %v1942_v47 = vadd.f32 %v20697_v20, %v1769_v54  ;;  %4513 = vmatpush.msra.mxu0 %v4418_v13  ;;  %11715 = vrot.lane.b32.xlu1 %v14395_v19, %s12785_s8  ;;  %v11453_v58 = vunpack.i.h.bf16 %v15110_v11  ;;  %v20702_v54 = vld [vmem:[#allocation56_spill] sm:$0xff]  ;;  %v20703_v13 = vld [vmem:[#allocation91_spill] sm:$0xff] }
 0x4f4   : > { %20696 = vst [vmem:[#allocation83_spill] sm:$0xff] %v15494_v36  ;;  %v15509_v34 = vpop.permute.xlu2 %11555  ;;  %v15517_v36 = vpop.f32.mrf.mxu1  ;;  %11720 = vrot.lane.b32.xlu2 %v14385_v4, %s12785_s8  ;;  %v2641_v20 = vadd.f32 %v20703_v13, %v2469_v35  ;;  %v20710_v13 = vld [vmem:[#allocation90_spill] sm:$0xff]  ;;  %s12787_s8 = smov 11  }
 0x4f5   : > { %v15515_v56 = vpop.f32.mrf.mxu0  ;;  %20700 = vst [vmem:[#allocation18_spill] sm:$0xff] %v15517_v36  ;;  %v2115_v57 = vadd.f32 %v20702_v54, %v1942_v47  ;;  %4514 = vmatpush.msra.mxu0 %v4415_v60  ;;  %v4412_v36 = vsel %vm4406_vm2, %v20704_v8, %v11463_v52  ;;  %v4409_v47 = vsel %vm4406_vm2, %v20706_v41, %v11453_v58  ;;  %v20708_v52 = vld [vmem:[#allocation87_spill] sm:$0xff]  ;;  %v20484_v58 = vunpack.i.h.bf16 %v15498_v24 }
 0x4f6   : > { %20699 = vst [vmem:[#allocation15_spill] sm:$0xff] %v15515_v56  ;;  %v20705_v56 = vld [vmem:[#allocation66_spill] sm:$0xff]  ;;  %v2813_v5 = vadd.f32 %v15165_v17, %v2641_v20 }
 0x4f7   : > { %v2288_v10 = vadd.f32 %v20705_v56, %v2115_v57  ;;  %4515 = vmatpush.msra.mxu0 %v4412_v36  ;;  %v11507_v57 = vunpack.i.l.bf16 %v15498_v24 }
 0x4f8   : > { %9999 = vmatmul.msk.f32.gmra.mxu3 %vm1008_vm9, %v15349_v7 }
 0x4f9   : > { %v2915_v60 = vpop.f32.mrf.mxu3  ;;  %v2461_v56 = vadd.f32 %v20708_v52, %v2288_v10  ;;  %4516 = vmatpush.msra.mxu0 %v4409_v47  ;;  %10014 = vmatmul.msk.f32.gmra.mxu2 %vm1008_vm9, %v15410_v32 }
 0x4fa   : > { %v15543_v35 = vpop.f32.mrf.mxu2  ;;  %v15548_v17 = vadd.f32 %v2915_v60, %v2813_v5  ;;  %10025 = vmatmul.msk.f32.gmra.mxu0 %vm1008_vm9, %v15536_v50  ;;  %10028 = vmatmul.msk.f32.vlgmr.msrb.gmra.mxu1 %vm1008_vm9, %v15480_v9  ;;  %v20713_v60 = vld [vmem:[#allocation96_spill] sm:$0xff] }
 0x4fb   : > { %20707 = vst [vmem:[#allocation51_spill] sm:$0xff] %v15543_v35  ;;  %v15550_v36 = vpop.permute.xlu0 %11515  ;;  %v15552_v54 = vpop.permute.xlu1 %11520  ;;  %v2633_v20 = vadd.f32 %v20710_v13, %v2461_v56  ;;  %11725 = vrot.lane.b32.xlu0 %v14240_v29, %s12786_s26  ;;  %11730 = vrot.lane.b32.xlu1 %v14229_v39, %s12786_s26  ;;  %v4586_v56 = vsel %vm4579_vm3, %v11507_v57, %v20484_v58  ;;  %v15584_v39 = vld [vmem:[%s20464_s2 + $0x250] sm:$0xff]  ;;  %v11498_v13 = vunpack.i.h.bf16 %v15274_v40 }
 0x4fc   : > { %20709 = vst [vmem:[#allocation88_spill] sm:$0xff] %v15548_v17  ;;  %v11518_v7 = vunpack.i.h.bf16 %v15550_v36  ;;  %v11517_v10 = vunpack.i.l.bf16 %v15550_v36  ;;  %v15562_v5 = vpop.permute.xlu2 %11570  ;;  %v15571_v41 = vpop.f32.mrf.mxu1  ;;  %11735 = vrot.lane.b32.xlu2 %v14300_v33, %s12786_s26  ;;  %v11497_v17 = vunpack.i.l.bf16 %v15274_v40 }
 0x4fd   : > { %v15569_v8 = vpop.f32.mrf.mxu0  ;;  %20712 = vst [vmem:[#allocation63_spill] sm:$0xff] %v15571_v41  ;;  %v2805_v52 = vadd.f32 %v20713_v60, %v2633_v20  ;;  %v20715_v20 = vunpack.i.h.bf16 %v15378_v55  ;;  %v20718_v55 = vunpack.i.l.bf16 %v15373_v62  ;;  %v20723_v62 = vunpack.i.h.bf16 %v15319_v42  ;;  %v15644_v42 = vld [vmem:[%s20464_s2 + $0x258] sm:$0xff] }
 0x4fe   : > { %20711 = vst [vmem:[#allocation30_spill] sm:$0xff] %v15569_v8  ;;  %v4589_v47 = vsel %vm4579_vm3, %v11517_v10, %v11518_v7  ;;  %v20714_v10 = vunpack.i.l.bf16 %v15230_v59  ;;  %v11477_v59 = vunpack.i.l.bf16 %v15427_v43 }
 0x4ff   : > { %4628 = vmatpush.msrb.mxu1 %v4589_v47  ;;  %v2977_v36 = vadd.f32 %v15232_v25, %v2805_v52 }
 0x500   : > { %10016 = vmatmul.msk.f32.vlgmr.msra.gmra.mxu3 %vm1008_vm9, %v15290_v61  ;;  %v4417_v57 = vsel %vm4406_vm2, %v20715_v20, %v20714_v10  ;;  %v11478_v61 = vunpack.i.h.bf16 %v15427_v43 }
 0x501   : > { %4629 = vmatpush.msrb.mxu1 %v4586_v56  ;;  %v3108_v47 = vpop.f32.mrf.mxu3  ;;  %10015 = vmatmul.msk.f32.gmra.mxu2 %vm1008_vm9, %v15469_v18  ;;  %v20719_v56 = vunpack.i.h.bf16 %v15163_v37  ;;  %v20722_v37 = vunpack.i.l.bf16 %v15323_v3 }
 0x502   : > { %v15595_v25 = vpop.f32.mrf.mxu2  ;;  %4484 = vmatpush.msra.mxu3 %v4417_v57  ;;  %v15599_v60 = vadd.f32 %v3108_v47, %v2977_v36  ;;  %10026 = vmatmul.msk.f32.gmra.mxu0 %vm1008_vm9, %v15584_v39  ;;  %v4583_v47 = vsel %vm4579_vm3, %v11497_v17, %v11498_v13  ;;  %v4580_v58 = vsel %vm4579_vm3, %v11477_v59, %v11478_v61  ;;  %v20485_v59 = vunpack.i.l.bf16 %v15496_v0 }
 0x503   : > { %20716 = vst [vmem:[#allocation47_spill] sm:$0xff] %v15595_v25  ;;  %v15601_v52 = vpop.permute.xlu0 %11530  ;;  %v15603_v40 = vpop.permute.xlu1 %11535  ;;  %10029 = vmatmul.msk.f32.gmra.mxu1 %vm1008_vm9, %v15536_v50  ;;  %v4414_v36 = vsel %vm4406_vm2, %v20719_v56, %v20718_v55  ;;  %11740 = vrot.lane.b32.xlu0 %v14308_v16, %s12786_s26  ;;  %v4411_v57 = vsel %vm4406_vm2, %v20723_v62, %v20722_v37  ;;  %v20488_v55 = vunpack.i.l.bf16 %v15552_v54  ;;  %v20724_v56 = vunpack.i.l.bf16 %v15110_v11 }
 0x504   : > { %20717 = vst [vmem:[#allocation82_spill] sm:$0xff] %v15599_v60  ;;  %v15616_v10 = vpop.permute.xlu2 %11585  ;;  %4485 = vmatpush.msra.mxu3 %v4414_v36  ;;  %v15622_v43 = vpop.f32.mrf.mxu1  ;;  %11745 = vrot.lane.b32.xlu1 %v14286_v38, %s12786_s26  ;;  %v20725_v36 = vunpack.i.h.bf16 %v15272_v26 }
 0x505   : > { %v15620_v20 = vpop.f32.mrf.mxu0  ;;  %20721 = vst [vmem:[#allocation86_spill] sm:$0xff] %v15622_v43  ;;  %11750 = vrot.lane.b32.xlu2 %v14350_v22, %s12786_s26  ;;  %4630 = vmatpush.msrb.mxu1 %v4583_v47  ;;  %v20730_v47 = vunpack.i.h.bf16 %v15498_v24 }
 0x506   : > { %20720 = vst [vmem:[#allocation50_spill] sm:$0xff] %v15620_v20  ;;  %4486 = vmatpush.msra.mxu3 %v4411_v57  ;;  %v4408_v38 = vsel %vm4406_vm2, %v20725_v36, %v20724_v56  ;;  %v20486_v57 = vunpack.i.l.bf16 %v15436_v44  ;;  %v11558_v36 = vunpack.i.h.bf16 %v15509_v34  ;;  %vm7032_vm2 = vcmask 941056  }
 0x507   : > { %4631 = vmatpush.msrb.mxu1 %v4580_v58  ;;  %v20487_v58 = vunpack.i.l.bf16 %v15332_v28 }
 0x508   : > { %4487 = vmatpush.msra.mxu3 %v4408_v38  ;;  %v11557_v38 = vunpack.i.l.bf16 %v15509_v34  ;;  %v12623_v34 = vld [vmem:[#allocation4 + $0x18] sm:$0xff] }
 0x509   : > { %10017 = vmatmul.msk.f32.gmra.mxu3 %vm1008_vm9, %v15356_v1  ;;  %10032 = vmatmul.msk.f32.vlgmr.msrb.gmra.mxu2 %vm1008_vm9, %v15480_v9  ;;  %v4590_v1 = vsel %vm4579_vm3, %v11518_v7, %v20488_v55  ;;  %v4587_v56 = vsel %vm4579_vm3, %v20730_v47, %v20487_v58  ;;  %v4584_v7 = vsel %vm4579_vm3, %v11498_v13, %v20485_v59 }
 0x50a   : > { %v15648_v3 = vpop.f32.mrf.mxu3  ;;  %v15650_v17 = vpop.f32.mrf.mxu2  ;;  %10027 = vmatmul.msk.f32.gmra.mxu0 %vm1008_vm9, %v15644_v42  ;;  %4657 = vmatpush.msrb.mxu2 %v4590_v1 }
 0x50b   : > { %20726 = vst [vmem:[#allocation56_spill] sm:$0xff] %v15648_v3  ;;  %v15654_v11 = vpop.permute.xlu0 %11545  ;;  %v15656_v26 = vpop.permute.xlu1 %11550  ;;  %10030 = vmatmul.msk.f32.gmra.mxu1 %vm1008_vm9, %v15584_v39  ;;  %11755 = vrot.lane.b32.xlu0 %v14395_v19, %s12786_s26 }
 0x50c   : > { %20727 = vst [vmem:[#allocation91_spill] sm:$0xff] %v15650_v17  ;;  %v15667_v37 = vpop.permute.xlu2 %11600  ;;  %v15671_v9 = vpop.f32.mrf.mxu1  ;;  %11760 = vrot.lane.b32.xlu1 %v14385_v4, %s12786_s26  ;;  %4658 = vmatpush.msrb.mxu2 %v4587_v56  ;;  %v11548_v24 = vunpack.i.h.bf16 %v15654_v11  ;;  %v11547_v1 = vunpack.i.l.bf16 %v15654_v11  ;;  %v4581_v4 = vsel %vm4579_vm3, %v11478_v61, %v20486_v57  ;;  %v12624_v56 = vld [vmem:[#allocation4 + $0x10] sm:$0xff]  ;;  %v11538_v61 = vunpack.i.h.bf16 %v15603_v40  ;;  %s12800_s26 = smov 109  }
 0x50d   : > { %20728 = vst [vmem:[#allocation66_spill] sm:$0xff] %v15671_v9  ;;  %v15673_v62 = vpop.f32.mrf.mxu0  ;;  %11765 = vrot.lane.b32.xlu2 %v14240_v29, %s12787_s8  ;;  %v10036_v29 = vld [vmem:[%s20464_s2 + $0x260] sm:$0xff]  ;;  %v11603_v20 = vunpack.i.h.bf16 %v15667_v37  ;;  %v15974_v9 = vld [vmem:[%s20464_s2 + $0x290] sm:$0xff] }
 0x50e   : > { %20729 = vst [vmem:[#allocation87_spill] sm:$0xff] %v15673_v62  ;;  %4659 = vmatpush.msrb.mxu2 %v4584_v7  ;;  %v15704_v7 = vpack.i.bf16 %v12623_v34, %v12624_v56  ;;  %v4762_v34 = vsel %vm4752_vm5, %v11557_v38, %v11558_v36  ;;  %v4759_v56 = vsel %vm4752_vm5, %v11547_v1, %v11548_v24 }
 0x510   : > { %4660 = vmatpush.msrb.mxu2 %v4581_v4  ;;  %v11537_v4 = vunpack.i.l.bf16 %v15603_v40  ;;  %v11527_v40 = vunpack.i.l.bf16 %v15388_v15 }
 0x511   : > { %10018 = vmatmul.msk.f32.gmra.mxu3 %vm1008_vm9, %v15410_v32  ;;  %10033 = vmatmul.msk.f32.gmra.mxu2 %vm1008_vm9, %v15536_v50  ;;  %v11528_v50 = vunpack.i.h.bf16 %v15388_v15 }
 0x512   : > { %v15700_v13 = vpop.f32.mrf.mxu3  ;;  %v15702_v47 = vpop.f32.mrf.mxu2  ;;  %10044 = vmatmul.msk.f32.vlgmr.msrb.gmra.mxu0 %vm1008_vm9, %v10036_v29  ;;  %v4756_v1 = vsel %vm4752_vm5, %v11537_v4, %v11538_v61 }
 0x513   : > { %20731 = vst [vmem:[#allocation90_spill] sm:$0xff] %v15700_v13  ;;  %v15706_v11 = vpop.permute.xlu0 %11560  ;;  %v15708_v59 = vpop.permute.xlu1 %11565  ;;  %10031 = vmatmul.msk.f32.gmra.mxu1 %vm1008_vm9, %v15644_v42  ;;  %11770 = vrot.lane.b32.xlu0 %v15704_v7, %s12787_s8  ;;  %v4753_v55 = vsel %vm4752_vm5, %v11527_v40, %v11528_v50 }
 0x514   : > { %20732 = vst [vmem:[#allocation96_spill] sm:$0xff] %v15702_v47  ;;  %v15714_v32 = vpop.permute.xlu2 %11615  ;;  %v15725_v58 = vpop.f32.mrf.mxu1  ;;  %4801 = vmatpush.msrb.mxu0 %v4762_v34  ;;  %11775 = vrot.lane.b32.xlu1 %v14300_v33, %s12787_s8  ;;  %v20489_v38 = vunpack.i.l.bf16 %v15706_v11  ;;  %v15740_v33 = vld [vmem:[%s20464_s2 + $0x268] sm:$0xff] }
 0x515   : > { %v15723_v57 = vpop.f32.mrf.mxu0  ;;  %20734 = vst [vmem:[#allocation119_spill] sm:$0xff] %v15725_v58  ;;  %11780 = vrot.lane.b32.xlu2 %v14308_v16, %s12787_s8  ;;  %v20490_v16 = vunpack.i.l.bf16 %v15656_v26 }
 0x516   : > { %20733 = vst [vmem:[#allocation118_spill] sm:$0xff] %v15723_v57  ;;  %4802 = vmatpush.msrb.mxu0 %v4759_v56  ;;  %v4763_v4 = vsel %vm4752_vm5, %v11558_v36, %v20489_v38  ;;  %v11523_v38 = vunpack.i.h.bf16 %v15552_v54 }
 0x518   : > { %4803 = vmatpush.msrb.mxu0 %v4756_v1  ;;  %v12625_v1 = vld [vmem:[#allocation4 + $0x50] sm:$0xff] }
 0x519   : > { %10019 = vmatmul.msk.f32.gmra.mxu3 %vm1008_vm9, %v15469_v18  ;;  %10034 = vmatmul.msk.f32.gmra.mxu2 %vm1008_vm9, %v15584_v39 }
 0x51a   : > { %v15742_v34 = vpop.f32.mrf.mxu3  ;;  %v15744_v15 = vpop.f32.mrf.mxu2  ;;  %4804 = vmatpush.msrb.mxu0 %v4753_v55  ;;  %v20491_v55 = vunpack.i.l.bf16 %v15441_v48 }
 0x51b   : > { %20735 = vst [vmem:[#allocation120_spill] sm:$0xff] %v15742_v34  ;;  %v15751_v56 = vpop.permute.xlu0 %11575  ;;  %v15753_v18 = vpop.permute.xlu1 %11580  ;;  %v12626_v34 = vld [vmem:[#allocation4 + $0x58] sm:$0xff]  ;;  %10045 = vmatmul.msk.f32.gmra.mxu0 %vm1008_vm9, %v15740_v33  ;;  %10048 = vmatmul.msk.f32.vlgmr.msra.gmra.mxu1 %vm1008_vm9, %v10036_v29 }
 0x51c   : > { %20736 = vst [vmem:[#allocation121_spill] sm:$0xff] %v15744_v15  ;;  %v15757_v58 = vpack.i.bf16 %v12626_v34, %v12625_v1  ;;  %v15762_v40 = vpop.permute.xlu2 %11630  ;;  %4830 = vmatpush.msra.mxu1 %v4763_v4  ;;  %v15769_v39 = vpop.f32.mrf.mxu1  ;;  %11790 = vrot.lane.b32.xlu1 %v14350_v22, %s12787_s8  ;;  %v4760_v1 = vsel %vm4752_vm5, %v11548_v24, %v20490_v16  ;;  %v11513_v4 = vunpack.i.h.bf16 %v15332_v28  ;;  %v15788_v22 = vld [vmem:[%s20464_s2 + $0x270] sm:$0xff]  ;;  %v11503_v16 = vunpack.i.h.bf16 %v15496_v0  ;;  %v15879_v15 = vld [vmem:[#allocation4 + $0x38] sm:$0xff] }
 0x51d   : > { %v15764_v36 = vpop.f32.mrf.mxu0  ;;  %20738 = vst [vmem:[#allocation123_spill] sm:$0xff] %v15769_v39  ;;  %11795 = vrot.lane.b32.xlu2 %v14395_v19, %s12787_s8  ;;  %v4757_v39 = vsel %vm4752_vm5, %v11538_v61, %v20491_v55  ;;  %v20739_v19 = vunpack.i.l.bf16 %v15552_v54  ;;  %v20742_v61 = vunpack.i.l.bf16 %v15601_v52  ;;  %v12627_v54 = vld [vmem:[#allocation4 + $0x90] sm:$0xff]  ;;  %v11582_v17 = vunpack.i.l.bf16 %v15753_v18 }
 0x51e   : > { %20737 = vst [vmem:[#allocation122_spill] sm:$0xff] %v15764_v36  ;;  %11785 = vrot.lane.b32.xlu0 %v15757_v58, %s12787_s8  ;;  %4831 = vmatpush.msra.mxu1 %v4760_v1  ;;  %v15877_v36 = vld [vmem:[#allocation4 + $0x40] sm:$0xff]  ;;  %v20787_v53 = vunpack.i.l.bf16 %v15762_v40 }
 0x51f   : > { %v4591_v34 = vsel %vm4579_vm3, %v20739_v19, %v11523_v38  ;;  %v12628_v38 = vld [vmem:[#allocation4 + $0x88] sm:$0xff] }
 0x520   : > { %4832 = vmatpush.msra.mxu1 %v4757_v39  ;;  %v4754_v39 = vsel %vm4752_vm5, %v11528_v50, %v20742_v61  ;;  %v15807_v19 = vpack.i.bf16 %v12627_v54, %v12628_v38  ;;  %v20743_v50 = vunpack.i.l.bf16 %v15332_v28  ;;  %v12629_v61 = vld [vmem:[#allocation4] sm:$0xff]  ;;  %v20746_v28 = vunpack.i.l.bf16 %v15496_v0 }
 0x521   : > { %10040 = vmatmul.msk.f32.vlgmr.msrb.gmra.mxu3 %vm1008_vm9, %v10036_v29  ;;  %10035 = vmatmul.msk.f32.gmra.mxu2 %vm1008_vm9, %v15644_v42 }
 0x522   : > { %v15793_v24 = vpop.f32.mrf.mxu2  ;;  %v15795_v1 = vpop.f32.mrf.mxu3  ;;  %4686 = vmatpush.msrb.mxu3 %v4591_v34  ;;  %4833 = vmatpush.msra.mxu1 %v4754_v39  ;;  %v4588_v34 = vsel %vm4579_vm3, %v20743_v50, %v11513_v4  ;;  %v15817_v39 = vld [vmem:[#allocation4 + $0x8] sm:$0xff]  ;;  %v4585_v4 = vsel %vm4579_vm3, %v20746_v28, %v11503_v16  ;;  %v11563_v50 = vunpack.i.h.bf16 %v15706_v11  ;;  %v11553_v28 = vunpack.i.h.bf16 %v15656_v26 }
 0x523   : > { %20740 = vst [vmem:[#allocation124_spill] sm:$0xff] %v15793_v24  ;;  %v15801_v29 = vpop.permute.xlu0 %11590  ;;  %v15803_v55 = vpop.permute.xlu1 %11595  ;;  %10046 = vmatmul.msk.f32.gmra.mxu0 %vm1008_vm9, %v15788_v22  ;;  %10049 = vmatmul.msk.f32.gmra.mxu1 %vm1008_vm9, %v15740_v33  ;;  %v15820_v42 = vpack.i.bf16 %v15817_v39, %v12629_v61 }
 0x524   : > { %20741 = vst [vmem:[#allocation125_spill] sm:$0xff] %v15795_v1  ;;  %v11488_v1 = vunpack.i.h.bf16 %v15436_v44  ;;  %v15822_v54 = vpop.permute.xlu2 %11645  ;;  %4687 = vmatpush.msrb.mxu3 %v4588_v34  ;;  %v15828_v24 = vpop.f32.mrf.mxu1  ;;  %v20747_v34 = vunpack.i.l.bf16 %v15436_v44  ;;  %v20759_v60 = vunpack.i.h.bf16 %v15803_v55 }
 0x525   : > { %v15824_v38 = vpop.f32.mrf.mxu0  ;;  %20745 = vst [vmem:[#allocation127_spill] sm:$0xff] %v15828_v24  ;;  %11805 = vrot.lane.b32.xlu1 %v15820_v42, %s12788_s12  ;;  %11810 = vrot.lane.b32.xlu2 %v15704_v7, %s12788_s12  ;;  %v15844_v24 = vld [vmem:[%s20464_s2 + $0x280] sm:$0xff] }
 0x526   : > { %20744 = vst [vmem:[#allocation126_spill] sm:$0xff] %v15824_v38  ;;  %11800 = vrot.lane.b32.xlu0 %v15807_v19, %s12787_s8  ;;  %4688 = vmatpush.msrb.mxu3 %v4585_v4  ;;  %v4582_v61 = vsel %vm4579_vm3, %v20747_v34, %v11488_v1  ;;  %v15849_v38 = vld [vmem:[%s20464_s2 + $0x278] sm:$0xff]  ;;  %v15862_v4 = vld [vmem:[#allocation4 + $0x30] sm:$0xff]  ;;  %s12799_s8 = smov 110   ;;  %vm7205_vm3 = vcmask 932864  }
 0x527   : > { %v12631_v1 = vld [vmem:[#allocation4 + $0x28] sm:$0xff] }
 0x528   : > { %4689 = vmatpush.msrb.mxu3 %v4582_v61  ;;  %v15865_v34 = vpack.i.bf16 %v15862_v4, %v12631_v1  ;;  %v15883_v1 = vpack.i.bf16 %v15877_v36, %v15879_v15 }
 0x529   : > { %10041 = vmatmul.msk.f32.gmra.mxu3 %vm1008_vm9, %v15740_v33  ;;  %10056 = vmatmul.msk.f32.vlgmr.msra.gmra.mxu2 %vm1008_vm9, %v15844_v24  ;;  %v20750_v33 = vunpack.i.l.bf16 %v15706_v11  ;;  %v11533_v11 = vunpack.i.h.bf16 %v15601_v52 }
 0x52a   : > { %v15851_v0 = vpop.f32.mrf.mxu3  ;;  %v15853_v16 = vpop.f32.mrf.mxu2 }
 0x52b   : > { %20748 = vst [vmem:[#allocation128_spill] sm:$0xff] %v15851_v0  ;;  %v15858_v44 = vpop.permute.xlu0 %11605  ;;  %v15867_v61 = vpop.permute.xlu1 %11610  ;;  %10047 = vmatmul.msk.f32.gmra.mxu0 %vm1008_vm9, %v15849_v38  ;;  %10050 = vmatmul.msk.f32.gmra.mxu1 %vm1008_vm9, %v15788_v22  ;;  %v4764_v0 = vsel %vm4752_vm5, %v20750_v33, %v11563_v50  ;;  %v20753_v50 = vunpack.i.l.bf16 %v15656_v26  ;;  %v15908_v26 = vld [vmem:[%s20464_s2 + $0x288] sm:$0xff] }
 0x52c   : > { %20749 = vst [vmem:[#allocation129_spill] sm:$0xff] %v15853_v16  ;;  %v11543_v16 = vunpack.i.h.bf16 %v15441_v48  ;;  %4859 = vmatpush.msra.mxu2 %v4764_v0  ;;  %v15889_v47 = vpop.permute.xlu2 %11660  ;;  %v15891_v13 = vpop.f32.mrf.mxu1  ;;  %v20754_v0 = vunpack.i.l.bf16 %v15441_v48  ;;  %v11602_v48 = vunpack.i.l.bf16 %v15667_v37  ;;  %v20494_v21 = vunpack.i.l.bf16 %v15867_v61 }
 0x52d   : > { %v15885_v57 = vpop.f32.mrf.mxu0  ;;  %20752 = vst [vmem:[#allocation131_spill] sm:$0xff] %v15891_v13  ;;  %v4761_v33 = vsel %vm4752_vm5, %v20753_v50, %v11553_v28  ;;  %11820 = vrot.lane.b32.xlu1 %v15883_v1, %s12788_s12  ;;  %11825 = vrot.lane.b32.xlu2 %v15757_v58, %s12788_s12  ;;  %v20757_v13 = vunpack.i.l.bf16 %v15601_v52 }
 0x52e   : > { %20751 = vst [vmem:[#allocation130_spill] sm:$0xff] %v15885_v57  ;;  %11815 = vrot.lane.b32.xlu0 %v15865_v34, %s12788_s12  ;;  %4860 = vmatpush.msra.mxu2 %v4761_v33  ;;  %v4758_v57 = vsel %vm4752_vm5, %v20754_v0, %v11543_v16  ;;  %v15921_v16 = vld [vmem:[#allocation4 + $0x68] sm:$0xff]  ;;  %v15923_v0 = vld [vmem:[#allocation4 + $0x60] sm:$0xff]  ;;  %v4936_v3 = vsel %vm4925_vm7, %v20759_v60, %v11602_v48  ;;  %v11572_v60 = vunpack.i.l.bf16 %v15562_v5 }
 0x52f   : > { %v4755_v33 = vsel %vm4752_vm5, %v20757_v13, %v11533_v11  ;;  %v15927_v62 = vpack.i.bf16 %v15921_v16, %v15923_v0  ;;  %v12637_v13 = vld [vmem:[#allocation4 + $0x78] sm:$0xff]  ;;  %vm7378_vm5 = vcmask 924672  }
 0x530   : > { %4861 = vmatpush.msra.mxu2 %v4758_v57  ;;  %v11592_v57 = vunpack.i.l.bf16 %v15801_v29 }
 0x531   : > { %10042 = vmatmul.msk.f32.gmra.mxu3 %vm1008_vm9, %v15788_v22  ;;  %10057 = vmatmul.msk.f32.gmra.mxu2 %vm1008_vm9, %v15908_v26  ;;  %v15937_v22 = vld [vmem:[#allocation4 + $0x80] sm:$0xff] }
 0x532   : > { %v15910_v28 = vpop.f32.mrf.mxu3  ;;  %v15912_v50 = vpop.f32.mrf.mxu2  ;;  %4862 = vmatpush.msra.mxu2 %v4755_v33  ;;  %v15940_v11 = vpack.i.bf16 %v15937_v22, %v12637_v13 }
 0x533   : > { %20755 = vst [vmem:[#allocation132_spill] sm:$0xff] %v15910_v28  ;;  %v15931_v52 = vpop.permute.xlu1 %11625  ;;  %10051 = vmatmul.msk.f32.gmra.mxu1 %vm1008_vm9, %v15849_v38  ;;  %v20492_v28 = vunpack.i.h.bf16 %v15616_v10  ;;  %10064 = vmatmul.msk.f32.vlgmr.msra.gmra.mxu0 %vm1008_vm9, %v15844_v24 }
 0x534   : > { %20756 = vst [vmem:[#allocation133_spill] sm:$0xff] %v15912_v50  ;;  %v15929_v50 = vpop.permute.xlu0 %11620  ;;  %v15956_v43 = vpop.f32.mrf.mxu1  ;;  %5003 = vmatpush.msra.mxu0 %v4936_v3 }
 0x535   : > { %v15942_v33 = vpop.f32.mrf.mxu0  ;;  %v15954_v13 = vpop.permute.xlu2 %11675  ;;  %20760 = vst [vmem:[#allocation135_spill] sm:$0xff] %v15956_v43  ;;  %11835 = vrot.lane.b32.xlu1 %v15940_v11, %s12788_s12  ;;  %11840 = vrot.lane.b32.xlu2 %v15807_v19, %s12788_s12  ;;  %v20761_v43 = vunpack.i.h.bf16 %v15751_v56 }
 0x536   : > { %20758 = vst [vmem:[#allocation134_spill] sm:$0xff] %v15942_v33  ;;  %11830 = vrot.lane.b32.xlu0 %v15927_v62, %s12788_s12  ;;  %v4933_v33 = vsel %vm4925_vm7, %v20492_v28, %v11592_v57  ;;  %v20764_v28 = vunpack.i.h.bf16 %v15708_v59  ;;  %s12798_s12 = smov 111  }
 0x537   : > { %5004 = vmatpush.msra.mxu0 %v4933_v33  ;;  %v4930_v3 = vsel %vm4925_vm7, %v20761_v43, %v11582_v17  ;;  %v15983_v33 = vld [vmem:[%s20464_s2 + $0x2a0] sm:$0xff]  ;;  %v11593_v43 = vunpack.i.h.bf16 %v15801_v29  ;;  %v4937_v29 = vsel %vm4925_vm7, %v11602_v48, %v11603_v20  ;;  %v11587_v20 = vunpack.i.l.bf16 %v15616_v10 }
 0x538   : > { %v4927_v41 = vsel %vm4925_vm7, %v20764_v28, %v11572_v60 }
 0x539   : > { %5005 = vmatpush.msra.mxu0 %v4930_v3  ;;  %10043 = vmatmul.msk.f32.gmra.mxu3 %vm1008_vm9, %v15849_v38 }
 0x53a   : > { %v15976_v25 = vpop.f32.mrf.mxu3  ;;  %v15985_v37 = vpop.f32.mrf.mxu2  ;;  %10058 = vmatmul.msk.f32.gmra.mxu2 %vm1008_vm9, %v15974_v9 }
 0x53b   : > { %20762 = vst [vmem:[#allocation136_spill] sm:$0xff] %v15976_v25  ;;  %5006 = vmatpush.msra.mxu0 %v4927_v41  ;;  %v15995_v38 = vpop.permute.xlu1 %11640  ;;  %v11583_v25 = vunpack.i.h.bf16 %v15753_v18  ;;  %10072 = vmatmul.msk.f32.vlgmr.msrb.gmra.mxu1 %vm1008_vm9, %v15983_v33  ;;  %v11597_v41 = vunpack.i.l.bf16 %v15803_v55  ;;  %v11573_v18 = vunpack.i.h.bf16 %v15562_v5  ;;  %v16032_v5 = vld [vmem:[%s20464_s2 + $0x2a8] sm:$0xff] }
 0x53c   : > { %20763 = vst [vmem:[#allocation137_spill] sm:$0xff] %v15985_v37  ;;  %v15991_v8 = vpop.permute.xlu0 %11635  ;;  %10065 = vmatmul.msk.f32.gmra.mxu0 %vm1008_vm9, %v15908_v26  ;;  %v16005_v28 = vpop.f32.mrf.mxu1  ;;  %5032 = vmatpush.msrb.mxu1 %v4937_v29  ;;  %v4934_v37 = vsel %vm4925_vm7, %v11592_v57, %v11593_v43  ;;  %v16023_v29 = vld [vmem:[%s20464_s2 + $0x298] sm:$0xff]  ;;  %v20768_v57 = vunpack.i.h.bf16 %v15803_v55  ;;  %v20770_v55 = vunpack.i.h.bf16 %v15616_v10  ;;  %v20773_v10 = vunpack.i.h.bf16 %v15751_v56 }
 0x53d   : > { %v15997_v3 = vpop.f32.mrf.mxu0  ;;  %20766 = vst [vmem:[#allocation139_spill] sm:$0xff] %v16005_v28  ;;  %11850 = vrot.lane.b32.xlu1 %v15704_v7, %s12789_s6  ;;  %11855 = vrot.lane.b32.xlu2 %v15865_v34, %s12789_s6  ;;  %v4931_v48 = vsel %vm4925_vm7, %v11582_v17, %v11583_v25  ;;  %v4928_v43 = vsel %vm4925_vm7, %v11572_v60, %v11573_v18 }
 0x53e   : > { %20765 = vst [vmem:[#allocation138_spill] sm:$0xff] %v15997_v3  ;;  %11845 = vrot.lane.b32.xlu0 %v15820_v42, %s12789_s6  ;;  %v16010_v3 = vpop.permute.xlu2 %11690  ;;  %5033 = vmatpush.msrb.mxu1 %v4934_v37  ;;  %v4935_v25 = vsel %vm4925_vm7, %v11597_v41, %v20768_v57  ;;  %v11577_v37 = vunpack.i.l.bf16 %v15751_v56  ;;  %v4932_v60 = vsel %vm4925_vm7, %v11587_v20, %v20770_v55  ;;  %v20774_v55 = vunpack.i.h.bf16 %v15708_v59 }
 0x53f   : > { %v11643_v56 = vunpack.i.h.bf16 %v15995_v38 }
 0x540   : > { %5034 = vmatpush.msrb.mxu1 %v4931_v48  ;;  %v4929_v20 = vsel %vm4925_vm7, %v11577_v37, %v20773_v10  ;;  %v11627_v37 = vunpack.i.l.bf16 %v15931_v52 }
 0x541   : > { %10060 = vmatmul.msk.f32.vlgmr.msra.gmra.mxu3 %vm1008_vm9, %v15844_v24 }
 0x542   : > { %v16025_v28 = vpop.f32.mrf.mxu3  ;;  %v16037_v17 = vpop.f32.mrf.mxu2  ;;  %4974 = vmatpush.msra.mxu3 %v4935_v25  ;;  %5035 = vmatpush.msrb.mxu1 %v4928_v43  ;;  %v20493_v25 = vunpack.i.h.bf16 %v15991_v8  ;;  %v11637_v43 = vunpack.i.l.bf16 %v15991_v8 }
 0x543   : > { %20767 = vst [vmem:[#allocation140_spill] sm:$0xff] %v16025_v28  ;;  %10059 = vmatmul.msk.f32.gmra.mxu2 %vm1008_vm9, %v16023_v29  ;;  %v11567_v28 = vunpack.i.l.bf16 %v15708_v59  ;;  %10073 = vmatmul.msk.f32.gmra.mxu1 %vm1008_vm9, %v16032_v5 }
 0x544   : > { %20769 = vst [vmem:[#allocation141_spill] sm:$0xff] %v16037_v17  ;;  %v16043_v24 = vpop.permute.xlu0 %11650  ;;  %v16045_v48 = vpop.permute.xlu1 %11655  ;;  %10066 = vmatmul.msk.f32.gmra.mxu0 %vm1008_vm9, %v15974_v9  ;;  %4975 = vmatpush.msra.mxu3 %v4932_v60 }
 0x545   : > { %v16055_v41 = vpop.f32.mrf.mxu0  ;;  %v16057_v18 = vpop.f32.mrf.mxu1  ;;  %11865 = vrot.lane.b32.xlu1 %v15757_v58, %s12789_s6  ;;  %11870 = vrot.lane.b32.xlu2 %v15927_v62, %s12789_s6  ;;  %v4926_v60 = vsel %vm4925_vm7, %v11567_v28, %v20774_v55  ;;  %vm7551_vm7 = vcmask 916480  }
 0x546   : > { %20771 = vst [vmem:[#allocation142_spill] sm:$0xff] %v16055_v41  ;;  %11860 = vrot.lane.b32.xlu0 %v15883_v1, %s12789_s6  ;;  %v16061_v57 = vpop.permute.xlu2 %11705  ;;  %4976 = vmatpush.msra.mxu3 %v4929_v20  ;;  %v11617_v20 = vunpack.i.l.bf16 %v15714_v32 }
 0x547   : > { %20772 = vst [vmem:[#allocation143_spill] sm:$0xff] %v16057_v18  ;;  %v16078_v18 = vld [vmem:[%s20464_s2 + $0x2b0] sm:$0xff] }
 0x548   : > { %4977 = vmatpush.msra.mxu3 %v4926_v60 }
 0x549   : > { %10061 = vmatmul.msk.f32.gmra.mxu3 %vm1008_vm9, %v15908_v26  ;;  %v5107_v26 = vsel %vm1008_vm9, %v11637_v43, %v20493_v25 }
 0x54a   : > { %v16080_v41 = vpop.f32.mrf.mxu3  ;;  %v16086_v10 = vpop.f32.mrf.mxu2 }
 0x54b   : > { %20775 = vst [vmem:[#allocation144_spill] sm:$0xff] %v16080_v41  ;;  %10076 = vmatmul.msk.f32.vlgmr.msrb.gmra.mxu2 %vm1008_vm9, %v15983_v33  ;;  %10074 = vmatmul.msk.f32.gmra.mxu1 %vm1008_vm9, %v16078_v18  ;;  %v20779_v41 = vunpack.i.h.bf16 %v15931_v52 }
 0x54c   : > { %20776 = vst [vmem:[#allocation145_spill] sm:$0xff] %v16086_v10  ;;  %v16090_v59 = vpop.permute.xlu0 %11665  ;;  %10067 = vmatmul.msk.f32.gmra.mxu0 %vm1008_vm9, %v16023_v29  ;;  %v16101_v55 = vpop.permute.xlu1 %11670  ;;  %5146 = vmatpush.msrb.mxu2 %v5107_v26  ;;  %v11607_v10 = vunpack.i.l.bf16 %v15858_v44  ;;  %v20780_v26 = vunpack.i.h.bf16 %v15714_v32 }
 0x54d   : > { %v16103_v60 = vpop.f32.mrf.mxu1  ;;  %v5104_v17 = vsel %vm1008_vm9, %v11627_v37, %v20779_v41  ;;  %11880 = vrot.lane.b32.xlu1 %v15807_v19, %s12789_s6  ;;  %11885 = vrot.lane.b32.xlu2 %v15820_v42, %s12790_s11  ;;  %v16128_v41 = vld [vmem:[%s20464_s2 + $0x2b8] sm:$0xff]  ;;  %v20781_v37 = vunpack.i.h.bf16 %v15858_v44  ;;  %v20794_v30 = vunpack.i.h.bf16 %v16090_v59 }
 0x54e   : > { %20777 = vst [vmem:[#allocation146_spill] sm:$0xff] %v16103_v60  ;;  %11875 = vrot.lane.b32.xlu0 %v15940_v11, %s12789_s6  ;;  %v16107_v28 = vpop.f32.mrf.mxu0  ;;  %v16118_v43 = vpop.permute.xlu2 %11720  ;;  %5147 = vmatpush.msrb.mxu2 %v5104_v17  ;;  %v5101_v25 = vsel %vm1008_vm9, %v11617_v20, %v20780_v26  ;;  %v16138_v17 = vld [vmem:[%s20464_s2 + $0x2c0] sm:$0xff] }
 0x54f   : > { %20778 = vst [vmem:[#allocation147_spill] sm:$0xff] %v16107_v28  ;;  %v5098_v60 = vsel %vm1008_vm9, %v11607_v10, %v20781_v37  ;;  %v11623_v37 = vunpack.i.h.bf16 %v15929_v50 }
 0x550   : > { %5148 = vmatpush.msrb.mxu2 %v5101_v25  ;;  %v11633_v25 = vunpack.i.h.bf16 %v15762_v40 }
 0x551   : > { %10062 = vmatmul.msk.f32.gmra.mxu3 %vm1008_vm9, %v15974_v9 }
 0x552   : > { %v16140_v20 = vpop.f32.mrf.mxu3  ;;  %5149 = vmatpush.msrb.mxu2 %v5098_v60  ;;  %v20784_v60 = vunpack.i.l.bf16 %v15995_v38  ;;  %v5106_v6 = vsel %vm1008_vm9, %v20787_v53, %v11633_v25  ;;  %v16188_v53 = vld [vmem:[%s20464_s2 + $0x2c8] sm:$0xff] }
 0x553   : > { %20782 = vst [vmem:[#allocation148_spill] sm:$0xff] %v16140_v20  ;;  %v16144_v28 = vpop.f32.mrf.mxu2  ;;  %10075 = vmatmul.msk.f32.gmra.mxu1 %vm1008_vm9, %v16128_v41  ;;  %10077 = vmatmul.msk.f32.gmra.mxu2 %vm1008_vm9, %v16032_v5  ;;  %v11613_v20 = vunpack.i.h.bf16 %v15867_v61 }
 0x554   : > { %20783 = vst [vmem:[#allocation149_spill] sm:$0xff] %v16144_v28  ;;  %v16150_v9 = vpop.permute.xlu0 %11680  ;;  %v16152_v10 = vpop.permute.xlu1 %11685  ;;  %10088 = vmatmul.msk.f32.vlgmr.msrb.gmra.mxu0 %vm1008_vm9, %v16138_v17  ;;  %v5109_v26 = vsel %vm1008_vm9, %v20784_v60, %v11643_v56  ;;  %v11667_v60 = vunpack.i.l.bf16 %v16090_v59 }
 0x555   : > { %v16165_v35 = vpop.f32.mrf.mxu1  ;;  %5204 = vmatpush.msrb.mxu0 %v5109_v26  ;;  %11895 = vrot.lane.b32.xlu1 %v15865_v34, %s12790_s11  ;;  %v11677_v26 = vunpack.i.l.bf16 %v15954_v13  ;;  %v5100_v63 = vsel %vm1008_vm9, %v20494_v21, %v11613_v20  ;;  %v20791_v20 = vunpack.i.h.bf16 %v15954_v13 }
 0x556   : > { %11890 = vrot.lane.b32.xlu0 %v15704_v7, %s12790_s11  ;;  %v16163_v28 = vpop.f32.mrf.mxu0  ;;  %20786 = vst [vmem:[#allocation151_spill] sm:$0xff] %v16165_v35  ;;  %11900 = vrot.lane.b32.xlu2 %v15883_v1, %s12790_s11  ;;  %v16176_v56 = vpop.permute.xlu2 %11735  ;;  %v20788_v35 = vunpack.i.l.bf16 %v15929_v50  ;;  %v5277_v12 = vsel %vm5270_vm8, %v11667_v60, %v20794_v30  ;;  %v16239_v30 = vld [vmem:[%s20464_s2 + $0x2d0] sm:$0xff]  ;;  %v20797_v60 = vunpack.i.h.bf16 %v15991_v8  ;;  %v20800_v8 = vunpack.i.l.bf16 %v15762_v40 }
 0x557   : > { %20785 = vst [vmem:[#allocation150_spill] sm:$0xff] %v16163_v28  ;;  %5205 = vmatpush.msrb.mxu0 %v5106_v6  ;;  %v20804_v40 = vunpack.i.l.bf16 %v15929_v50  ;;  %v20496_v50 = vunpack.i.l.bf16 %v16101_v55 }
 0x558   : > { %v5103_v28 = vsel %vm1008_vm9, %v20788_v35, %v11623_v37  ;;  %v11657_v37 = vunpack.i.l.bf16 %v16045_v48 }
 0x559   : > { %5206 = vmatpush.msrb.mxu0 %v5103_v28  ;;  %10063 = vmatmul.msk.f32.gmra.mxu3 %vm1008_vm9, %v16023_v29 }
 0x55a   : > { %v16190_v25 = vpop.f32.mrf.mxu3 }
 0x55b   : > { %20789 = vst [vmem:[#allocation152_spill] sm:$0xff] %v16190_v25  ;;  %v16197_v35 = vpop.f32.mrf.mxu2  ;;  %5207 = vmatpush.msrb.mxu0 %v5100_v63  ;;  %10078 = vmatmul.msk.f32.gmra.mxu2 %vm1008_vm9, %v16078_v18  ;;  %v5280_v63 = vsel %vm5270_vm8, %v11677_v26, %v20791_v20  ;;  %v11647_v25 = vunpack.i.l.bf16 %v15822_v54  ;;  %v20795_v26 = vunpack.i.h.bf16 %v16045_v48 }
 0x55c   : > { %20790 = vst [vmem:[#allocation153_spill] sm:$0xff] %v16197_v35  ;;  %v16201_v29 = vpop.permute.xlu0 %11695  ;;  %10089 = vmatmul.msk.f32.gmra.mxu0 %vm1008_vm9, %v16188_v53  ;;  %10092 = vmatmul.msk.f32.vlgmr.msra.gmra.mxu1 %vm1008_vm9, %v16138_v17  ;;  %v11648_v35 = vunpack.i.h.bf16 %v15822_v54  ;;  %v20796_v54 = vunpack.i.l.bf16 %v15995_v38  ;;  %v20801_v38 = vunpack.i.h.bf16 %v15931_v52  ;;  %v20805_v52 = vunpack.i.h.bf16 %v15714_v32 }
 0x55d   : > { %v16212_v21 = vpop.permute.xlu1 %11700  ;;  %5319 = vmatpush.msra.mxu1 %v5280_v63  ;;  %v16218_v28 = vpop.f32.mrf.mxu1  ;;  %11910 = vrot.lane.b32.xlu1 %v15927_v62, %s12790_s11  ;;  %v5274_v20 = vsel %vm5270_vm8, %v11657_v37, %v20795_v26 }
 0x55e   : > { %v16214_v6 = vpop.f32.mrf.mxu0  ;;  %11905 = vrot.lane.b32.xlu0 %v15757_v58, %s12790_s11  ;;  %20793 = vst [vmem:[#allocation155_spill] sm:$0xff] %v16218_v28  ;;  %11915 = vrot.lane.b32.xlu2 %v15940_v11, %s12790_s11  ;;  %v5271_v37 = vsel %vm5270_vm8, %v11647_v25, %v11648_v35  ;;  %v5105_v25 = vsel %vm1008_vm9, %v20801_v38, %v20800_v8  ;;  %v20806_v8 = vunpack.i.l.bf16 %v15867_v61  ;;  %v20807_v38 = vunpack.i.h.bf16 %v15858_v44 }
 0x55f   : > { %20792 = vst [vmem:[#allocation154_spill] sm:$0xff] %v16214_v6  ;;  %5320 = vmatpush.msra.mxu1 %v5277_v12  ;;  %v16232_v63 = vpop.permute.xlu2 %11750  ;;  %v5108_v12 = vsel %vm1008_vm9, %v20797_v60, %v20796_v54  ;;  %v20810_v61 = vunpack.i.h.bf16 %v15954_v13  ;;  %v20812_v13 = vunpack.i.h.bf16 %v16090_v59 }
 0x561   : > { %5321 = vmatpush.msra.mxu1 %v5274_v20  ;;  %10080 = vmatmul.msk.f32.vlgmr.msrb.gmra.mxu3 %vm1008_vm9, %v15983_v33 }
 0x562   : > { %v16246_v28 = vpop.f32.mrf.mxu3  ;;  %5175 = vmatpush.msrb.mxu3 %v5108_v12  ;;  %v5102_v12 = vsel %vm1008_vm9, %v20805_v52, %v20804_v40 }
 0x563   : > { %20798 = vst [vmem:[#allocation156_spill] sm:$0xff] %v16246_v28  ;;  %v16249_v26 = vpop.f32.mrf.mxu2  ;;  %5322 = vmatpush.msra.mxu1 %v5271_v37  ;;  %10079 = vmatmul.msk.f32.gmra.mxu2 %vm1008_vm9, %v16128_v41  ;;  %v20495_v37 = vunpack.i.l.bf16 %v16150_v9 }
 0x564   : > { %20799 = vst [vmem:[#allocation157_spill] sm:$0xff] %v16249_v26  ;;  %v16253_v33 = vpop.permute.xlu0 %11710  ;;  %10090 = vmatmul.msk.f32.gmra.mxu0 %vm1008_vm9, %v16239_v30  ;;  %10093 = vmatmul.msk.f32.gmra.mxu1 %vm1008_vm9, %v16188_v53 }
 0x565   : > { %v16264_v20 = vpop.permute.xlu1 %11715  ;;  %5176 = vmatpush.msrb.mxu3 %v5105_v25  ;;  %v16270_v60 = vpop.f32.mrf.mxu1  ;;  %11925 = vrot.lane.b32.xlu1 %v15820_v42, %s12791_s14  ;;  %v5099_v25 = vsel %vm1008_vm9, %v20807_v38, %v20806_v8  ;;  %v5281_v52 = vsel %vm5270_vm8, %v20810_v61, %v20495_v37  ;;  %v20497_v8 = vunpack.i.l.bf16 %v15889_v47 }
 0x566   : > { %v16266_v54 = vpop.f32.mrf.mxu0  ;;  %11920 = vrot.lane.b32.xlu0 %v15807_v19, %s12790_s11  ;;  %20803 = vst [vmem:[#allocation159_spill] sm:$0xff] %v16270_v60  ;;  %11930 = vrot.lane.b32.xlu2 %v15704_v7, %s12791_s14  ;;  %v16290_v60 = vld [vmem:[%s20464_s2 + $0x2d8] sm:$0xff]  ;;  %v11718_v38 = vunpack.i.h.bf16 %v16264_v20  ;;  %v11717_v59 = vunpack.i.l.bf16 %v16264_v20 }
 0x567   : > { %20802 = vst [vmem:[#allocation158_spill] sm:$0xff] %v16266_v54  ;;  %5177 = vmatpush.msrb.mxu3 %v5102_v12  ;;  %v16293_v32 = vpop.permute.xlu2 %11765 }
 0x569   : > { %5178 = vmatpush.msrb.mxu3 %v5099_v25  ;;  %v5278_v25 = vsel %vm5270_vm8, %v20812_v13, %v20496_v50  ;;  %v20815_v13 = vunpack.i.l.bf16 %v16043_v24 }
 0x56a   : > { %10081 = vmatmul.msk.f32.gmra.mxu3 %vm1008_vm9, %v16032_v5 }
 0x56b   : > { %v16297_v40 = vpop.f32.mrf.mxu3  ;;  %10096 = vmatmul.msk.f32.vlgmr.msra.gmra.mxu2 %vm1008_vm9, %v16138_v17  ;;  %v5272_v50 = vsel %vm5270_vm8, %v11648_v35, %v20815_v13  ;;  %v11698_v35 = vunpack.i.h.bf16 %v16201_v29  ;;  %v11697_v13 = vunpack.i.l.bf16 %v16201_v29 }
 0x56c   : > { %20808 = vst [vmem:[#allocation160_spill] sm:$0xff] %v16297_v40  ;;  %v16301_v44 = vpop.f32.mrf.mxu2  ;;  %10091 = vmatmul.msk.f32.gmra.mxu0 %vm1008_vm9, %v16290_v60  ;;  %10094 = vmatmul.msk.f32.gmra.mxu1 %vm1008_vm9, %v16239_v30 }
 0x56d   : > { %20809 = vst [vmem:[#allocation161_spill] sm:$0xff] %v16301_v44  ;;  %v16312_v5 = vpop.permute.xlu0 %11725  ;;  %v16314_v12 = vpop.permute.xlu1 %11730  ;;  %5348 = vmatpush.msra.mxu2 %v5281_v52  ;;  %11940 = vrot.lane.b32.xlu1 %v15883_v1, %s12791_s14  ;;  %v20814_v52 = vunpack.i.h.bf16 %v16045_v48  ;;  %v11708_v48 = vunpack.i.h.bf16 %v16061_v57 }
 0x56e   : > { %11935 = vrot.lane.b32.xlu0 %v15865_v34, %s12791_s14  ;;  %v16318_v17 = vpop.f32.mrf.mxu1  ;;  %11945 = vrot.lane.b32.xlu2 %v15757_v58, %s12791_s14 }
 0x56f   : > { %20811 = vst [vmem:[#allocation162_spill] sm:$0xff] %v16318_v17  ;;  %v16331_v61 = vpop.f32.mrf.mxu0  ;;  %5349 = vmatpush.msra.mxu2 %v5278_v25  ;;  %v5275_v37 = vsel %vm5270_vm8, %v20814_v52, %v20497_v8  ;;  %v10100_v25 = vld [vmem:[%s20464_s2 + $0x2e0] sm:$0xff]  ;;  %v11707_v52 = vunpack.i.l.bf16 %v16061_v57  ;;  %v5453_v57 = vsel %vm5443_vm10, %v11717_v59, %v11718_v38  ;;  %v11688_v8 = vunpack.i.h.bf16 %v16152_v10 }
 0x570   : > { %20813 = vst [vmem:[#allocation163_spill] sm:$0xff] %v16331_v61 }
 0x571   : > { %5350 = vmatpush.msra.mxu2 %v5275_v37  ;;  %v16354_v37 = vpop.permute.xlu2 %11780  ;;  %v5450_v29 = vsel %vm5443_vm10, %v11707_v52, %v11708_v48  ;;  %v20499_v52 = vunpack.i.l.bf16 %v16253_v33 }
 0x572   : > { %10082 = vmatmul.msk.f32.gmra.mxu3 %vm1008_vm9, %v16078_v18  ;;  %v20874_v54 = vunpack.i.l.bf16 %v16354_v37 }
 0x573   : > { %v16348_v61 = vpop.f32.mrf.mxu3  ;;  %5351 = vmatpush.msra.mxu2 %v5272_v50 }
 0x574   : > { %20816 = vst [vmem:[#allocation164_spill] sm:$0xff] %v16348_v61  ;;  %v16352_v20 = vpop.f32.mrf.mxu2  ;;  %10095 = vmatmul.msk.f32.gmra.mxu1 %vm1008_vm9, %v16290_v60  ;;  %10097 = vmatmul.msk.f32.gmra.mxu2 %vm1008_vm9, %v16188_v53  ;;  %v5447_v61 = vsel %vm5443_vm10, %v11697_v13, %v11698_v35 }
 0x575   : > { %20817 = vst [vmem:[#allocation165_spill] sm:$0xff] %v16352_v20  ;;  %v16360_v18 = vpop.permute.xlu0 %11740  ;;  %10108 = vmatmul.msk.f32.vlgmr.msra.gmra.mxu0 %vm1008_vm9, %v10100_v25  ;;  %11955 = vrot.lane.b32.xlu1 %v15940_v11, %s12791_s14  ;;  %v11687_v20 = vunpack.i.l.bf16 %v16152_v10  ;;  %v20498_v10 = vunpack.i.l.bf16 %v16118_v43 }
 0x576   : > { %11950 = vrot.lane.b32.xlu0 %v15927_v62, %s12791_s14  ;;  %v16368_v50 = vpop.permute.xlu1 %11745  ;;  %5492 = vmatpush.msra.mxu0 %v5453_v57  ;;  %v10101_v57 = vld [vmem:[%s20464_s2 + $0x2e8] sm:$0xff] }
 0x577   : > { %v16372_v53 = vpop.f32.mrf.mxu0  ;;  %11960 = vrot.lane.b32.xlu2 %v15807_v19, %s12791_s14  ;;  %v16379_v59 = vpop.f32.mrf.mxu1  ;;  %v5444_v17 = vsel %vm5443_vm10, %v11687_v20, %v11688_v8  ;;  %v5454_v13 = vsel %vm5443_vm10, %v11718_v38, %v20498_v10  ;;  %v11683_v20 = vunpack.i.h.bf16 %v16150_v9  ;;  %v11673_v10 = vunpack.i.h.bf16 %v16101_v55  ;;  %s12793_s14 = smov 5  }
 0x578   : > { %20818 = vst [vmem:[#allocation166_spill] sm:$0xff] %v16372_v53  ;;  %5493 = vmatpush.msra.mxu0 %v5450_v29 }
 0x579   : > { %20819 = vst [vmem:[#allocation167_spill] sm:$0xff] %v16379_v59 }
 0x57a   : > { %5494 = vmatpush.msra.mxu0 %v5447_v61  ;;  %10083 = vmatmul.msk.f32.gmra.mxu3 %vm1008_vm9, %v16128_v41  ;;  %v5451_v41 = vsel %vm5443_vm10, %v11708_v48, %v20499_v52  ;;  %v10102_v48 = vld [vmem:[%s20464_s2 + $0x2f0] sm:$0xff]  ;;  %v20825_v52 = vunpack.i.l.bf16 %v16150_v9  ;;  %v11653_v9 = vunpack.i.h.bf16 %v16043_v24 }
 0x57b   : > { %v16387_v53 = vpop.f32.mrf.mxu3 }
 0x57c   : > { %20820 = vst [vmem:[#allocation168_spill] sm:$0xff] %v16387_v53  ;;  %v16392_v59 = vpop.f32.mrf.mxu2  ;;  %5495 = vmatpush.msra.mxu0 %v5444_v17  ;;  %10098 = vmatmul.msk.f32.gmra.mxu2 %vm1008_vm9, %v16239_v30  ;;  %v16407_v17 = vpop.permute.xlu2 %11795  ;;  %v20827_v53 = vunpack.i.l.bf16 %v16010_v3 }
 0x57d   : > { %20821 = vst [vmem:[#allocation169_spill] sm:$0xff] %v16392_v59  ;;  %v16396_v61 = vpop.permute.xlu0 %11755  ;;  %10109 = vmatmul.msk.f32.gmra.mxu0 %vm1008_vm9, %v10101_v57  ;;  %10112 = vmatmul.msk.f32.vlgmr.msrb.gmra.mxu1 %vm1008_vm9, %v10100_v25  ;;  %v20824_v59 = vunpack.i.l.bf16 %v16212_v21 }
 0x57e   : > { %v16404_v29 = vpop.permute.xlu1 %11760  ;;  %5521 = vmatpush.msrb.mxu1 %v5454_v13  ;;  %11965 = vrot.lane.b32.xlu0 %v15820_v42, %s12792_s30  ;;  %v11663_v13 = vunpack.i.h.bf16 %v15889_v47  ;;  %v5445_v44 = vsel %vm5443_vm10, %v11688_v8, %v20827_v53 }
 0x57f   : > { %v16411_v30 = vpop.f32.mrf.mxu0  ;;  %11970 = vrot.lane.b32.xlu1 %v15704_v7, %s12792_s30  ;;  %11975 = vrot.lane.b32.xlu2 %v15865_v34, %s12792_s30 }
 0x580   : > { %20822 = vst [vmem:[#allocation170_spill] sm:$0xff] %v16411_v30  ;;  %v16420_v38 = vpop.f32.mrf.mxu1  ;;  %5522 = vmatpush.msrb.mxu1 %v5451_v41  ;;  %v5448_v30 = vsel %vm5443_vm10, %v11698_v35, %v20824_v59  ;;  %v20829_v59 = vunpack.i.l.bf16 %v16101_v55 }
 0x581   : > { %20823 = vst [vmem:[#allocation171_spill] sm:$0xff] %v16420_v38  ;;  %v5282_v38 = vsel %vm5270_vm8, %v20825_v52, %v11683_v20  ;;  %v11723_v20 = vunpack.i.h.bf16 %v16118_v43 }
 0x582   : > { %5523 = vmatpush.msrb.mxu1 %v5448_v30  ;;  %10104 = vmatmul.msk.f32.vlgmr.msra.gmra.mxu3 %vm1008_vm9, %v10100_v25  ;;  %v5279_v52 = vsel %vm5270_vm8, %v20829_v59, %v11673_v10  ;;  %v20833_v30 = vunpack.i.l.bf16 %v16043_v24  ;;  %v16476_v59 = vld [vmem:[%s20464_s2 + $0x300] sm:$0xff]  ;;  %v11703_v24 = vunpack.i.h.bf16 %v16212_v21 }
 0x583   : > { %v16434_v41 = vpop.f32.mrf.mxu3  ;;  %5377 = vmatpush.msra.mxu3 %v5282_v38 }
 0x584   : > { %20826 = vst [vmem:[#allocation172_spill] sm:$0xff] %v16434_v41  ;;  %v16440_v35 = vpop.f32.mrf.mxu2  ;;  %5524 = vmatpush.msrb.mxu1 %v5445_v44  ;;  %10099 = vmatmul.msk.f32.gmra.mxu2 %vm1008_vm9, %v16290_v60  ;;  %v20831_v60 = vunpack.i.l.bf16 %v15889_v47  ;;  %v16467_v10 = vpop.permute.xlu2 %11810  ;;  %v5273_v38 = vsel %vm5270_vm8, %v20833_v30, %v11653_v9  ;;  %v10103_v47 = vld [vmem:[%s20464_s2 + $0x2f8] sm:$0xff]  ;;  %v20836_v9 = vunpack.i.l.bf16 %v16118_v43 }
 0x585   : > { %20828 = vst [vmem:[#allocation173_spill] sm:$0xff] %v16440_v35  ;;  %v16444_v25 = vpop.permute.xlu0 %11770  ;;  %10110 = vmatmul.msk.f32.gmra.mxu0 %vm1008_vm9, %v10102_v48  ;;  %10113 = vmatmul.msk.f32.gmra.mxu1 %vm1008_vm9, %v10101_v57 }
 0x586   : > { %v16452_v8 = vpop.permute.xlu1 %11775  ;;  %5378 = vmatpush.msra.mxu3 %v5279_v52  ;;  %11980 = vrot.lane.b32.xlu0 %v15883_v1, %s12792_s30  ;;  %v5276_v55 = vsel %vm5270_vm8, %v20831_v60, %v11663_v13  ;;  %v11713_v52 = vunpack.i.h.bf16 %v16253_v33  ;;  %v11773_v41 = vunpack.i.h.bf16 %v16444_v25  ;;  %vm7724_vm8 = vcmask 908288  }
 0x587   : > { %v16456_v44 = vpop.f32.mrf.mxu0  ;;  %11985 = vrot.lane.b32.xlu1 %v15757_v58, %s12792_s30  ;;  %11990 = vrot.lane.b32.xlu2 %v15927_v62, %s12792_s30 }
 0x588   : > { %20830 = vst [vmem:[#allocation174_spill] sm:$0xff] %v16456_v44  ;;  %v16465_v53 = vpop.f32.mrf.mxu1  ;;  %5379 = vmatpush.msra.mxu3 %v5276_v55  ;;  %v5455_v55 = vsel %vm5443_vm10, %v20836_v9, %v11723_v20  ;;  %v20840_v9 = vunpack.i.l.bf16 %v16212_v21 }
 0x589   : > { %20832 = vst [vmem:[#allocation175_spill] sm:$0xff] %v16465_v53 }
 0x58a   : > { %5380 = vmatpush.msra.mxu3 %v5273_v38  ;;  %v11693_v38 = vunpack.i.h.bf16 %v16010_v3 }
 0x58b   : > { %10105 = vmatmul.msk.f32.gmra.mxu3 %vm1008_vm9, %v10101_v57 }
 0x58c   : > { %v16481_v13 = vpop.f32.mrf.mxu3  ;;  %v16485_v60 = vpop.f32.mrf.mxu2  ;;  %10120 = vmatmul.msk.f32.vlgmr.msrb.gmra.mxu2 %vm1008_vm9, %v16476_v59 }
 0x58d   : > { %20834 = vst [vmem:[#allocation176_spill] sm:$0xff] %v16481_v13  ;;  %10111 = vmatmul.msk.f32.gmra.mxu0 %vm1008_vm9, %v10103_v47  ;;  %10114 = vmatmul.msk.f32.gmra.mxu1 %vm1008_vm9, %v10102_v48  ;;  %v12643_v13 = vld [vmem:[#allocation4 + $0x90] sm:$0xff] }
 0x58e   : > { %20835 = vst [vmem:[#allocation177_spill] sm:$0xff] %v16485_v60  ;;  %5550 = vmatpush.msrb.mxu2 %v5455_v55  ;;  %11995 = vrot.lane.b32.xlu0 %v15940_v11, %s12792_s30  ;;  %v16499_v57 = vpop.permute.xlu1 %11790  ;;  %v20837_v60 = vunpack.i.l.bf16 %v16253_v33  ;;  %v5449_v55 = vsel %vm5443_vm10, %v20840_v9, %v11703_v24  ;;  %v11752_v33 = vunpack.i.l.bf16 %v16232_v63  ;;  %v20500_v24 = vunpack.i.h.bf16 %v16176_v56 }
 0x58f   : > { %12000 = vrot.lane.b32.xlu1 %v15807_v19, %s12792_s30  ;;  %12005 = vrot.lane.b32.xlu2 %v15820_v42, %s12793_s14  ;;  %v16511_v20 = vpop.f32.mrf.mxu0  ;;  %v16523_v42 = vld [vmem:[%s20464_s2 + $0x308] sm:$0xff] }
 0x590   : > { %v16495_v30 = vpop.permute.xlu0 %11785  ;;  %v5452_v53 = vsel %vm5443_vm10, %v20837_v60, %v11713_v52  ;;  %v16509_v43 = vpop.f32.mrf.mxu1  ;;  %20839 = vst [vmem:[#allocation179_spill] sm:$0xff] %v16511_v20  ;;  %v11762_v52 = vunpack.i.l.bf16 %v16404_v29  ;;  %v20846_v20 = vunpack.i.h.bf16 %v16368_v50 }
 0x591   : > { %20838 = vst [vmem:[#allocation178_spill] sm:$0xff] %v16509_v43  ;;  %5551 = vmatpush.msrb.mxu2 %v5452_v53  ;;  %v16518_v60 = vpop.permute.xlu2 %11825  ;;  %v20842_v53 = vunpack.i.l.bf16 %v16010_v3  ;;  %v11742_v3 = vunpack.i.l.bf16 %v16360_v18 }
 0x593   : > { %5552 = vmatpush.msrb.mxu2 %v5449_v55  ;;  %v5446_v21 = vsel %vm5443_vm10, %v20842_v53, %v11693_v38  ;;  %10106 = vmatmul.msk.f32.gmra.mxu3 %vm1008_vm9, %v10102_v48  ;;  %v20844_v48 = vunpack.i.h.bf16 %v16396_v61  ;;  %vm7897_vm10 = vcmask 900096  }
 0x594   : > { %v16525_v43 = vpop.f32.mrf.mxu3  ;;  %v16532_v9 = vpop.f32.mrf.mxu2  ;;  %10121 = vmatmul.msk.f32.gmra.mxu2 %vm1008_vm9, %v16523_v42 }
 0x595   : > { %20841 = vst [vmem:[#allocation180_spill] sm:$0xff] %v16525_v43  ;;  %5553 = vmatpush.msrb.mxu2 %v5446_v21  ;;  %10115 = vmatmul.msk.f32.gmra.mxu1 %vm1008_vm9, %v10103_v47  ;;  %v5627_v38 = vsel %vm5616_vm11, %v20844_v48, %v11762_v52  ;;  %v5624_v48 = vsel %vm5616_vm11, %v20846_v20, %v11752_v33  ;;  %v16571_v43 = vld [vmem:[%s20464_s2 + $0x310] sm:$0xff] }
 0x596   : > { %20843 = vst [vmem:[#allocation181_spill] sm:$0xff] %v16532_v9  ;;  %10128 = vmatmul.msk.f32.vlgmr.msrb.gmra.mxu0 %vm1008_vm9, %v16476_v59  ;;  %12010 = vrot.lane.b32.xlu0 %v15704_v7, %s12793_s14  ;;  %v11732_v9 = vunpack.i.l.bf16 %v16314_v12 }
 0x597   : > { %v16548_v53 = vpop.permute.xlu1 %11805  ;;  %5694 = vmatpush.msrb.mxu0 %v5627_v38  ;;  %12015 = vrot.lane.b32.xlu1 %v15865_v34, %s12793_s14  ;;  %v11763_v34 = vunpack.i.h.bf16 %v16404_v29  ;;  %v5621_v38 = vsel %vm5616_vm11, %v20500_v24, %v11742_v3  ;;  %v11753_v29 = vunpack.i.h.bf16 %v16232_v63 }
 0x598   : > { %v16537_v55 = vpop.permute.xlu0 %11800  ;;  %v16552_v21 = vpop.f32.mrf.mxu1  ;;  %12020 = vrot.lane.b32.xlu2 %v15883_v1, %s12793_s14  ;;  %v16579_v1 = vld [vmem:[%s20464_s2 + $0x320] sm:$0xff] }
 0x599   : > { %20845 = vst [vmem:[#allocation182_spill] sm:$0xff] %v16552_v21  ;;  %v16562_v7 = vpop.f32.mrf.mxu0  ;;  %5695 = vmatpush.msrb.mxu0 %v5624_v48  ;;  %v16582_v20 = vpop.permute.xlu2 %11840  ;;  %v20849_v48 = vunpack.i.h.bf16 %v16312_v5  ;;  %v5628_v63 = vsel %vm5616_vm11, %v11762_v52, %v11763_v34  ;;  %v11747_v34 = vunpack.i.l.bf16 %v16368_v50 }
 0x59a   : > { %20847 = vst [vmem:[#allocation183_spill] sm:$0xff] %v16562_v7 }
 0x59b   : > { %5696 = vmatpush.msrb.mxu0 %v5621_v38  ;;  %10107 = vmatmul.msk.f32.gmra.mxu3 %vm1008_vm9, %v10103_v47  ;;  %v5618_v24 = vsel %vm5616_vm11, %v20849_v48, %v11732_v9  ;;  %v11743_v38 = vunpack.i.h.bf16 %v16360_v18  ;;  %v11757_v48 = vunpack.i.l.bf16 %v16396_v61  ;;  %v11733_v18 = vunpack.i.h.bf16 %v16314_v12 }
 0x59c   : > { %v16573_v21 = vpop.f32.mrf.mxu3  ;;  %v16587_v7 = vpop.f32.mrf.mxu2  ;;  %10122 = vmatmul.msk.f32.gmra.mxu2 %vm1008_vm9, %v16571_v43 }
 0x59d   : > { %20848 = vst [vmem:[#allocation184_spill] sm:$0xff] %v16573_v21  ;;  %5697 = vmatpush.msrb.mxu0 %v5618_v24  ;;  %10136 = vmatmul.msk.f32.vlgmr.msra.gmra.mxu1 %vm1008_vm9, %v16579_v1 }
 0x59e   : > { %20850 = vst [vmem:[#allocation185_spill] sm:$0xff] %v16587_v7  ;;  %10129 = vmatmul.msk.f32.gmra.mxu0 %vm1008_vm9, %v16523_v42  ;;  %5723 = vmatpush.msra.mxu1 %v5628_v63  ;;  %v5625_v7 = vsel %vm5616_vm11, %v11752_v33, %v11753_v29  ;;  %v5622_v63 = vsel %vm5616_vm11, %v11742_v3, %v11743_v38  ;;  %v6971_v3 = vld [vmem:[#allocation4 + $0x20] sm:$0xff] }
 0x59f   : > { %v16599_v21 = vpop.permute.xlu1 %11820  ;;  %12025 = vrot.lane.b32.xlu0 %v15757_v58, %s12793_s14  ;;  %12030 = vrot.lane.b32.xlu1 %v15927_v62, %s12793_s14  ;;  %v16619_v58 = vld [vmem:[%s20464_s2 + $0x318] sm:$0xff]  ;;  %v16628_v62 = vld [vmem:[%s20464_s2 + $0x328] sm:$0xff]  ;;  %v5619_v29 = vsel %vm5616_vm11, %v11732_v9, %v11733_v18 }
 0x5a0   : > { %v16591_v47 = vpop.permute.xlu0 %11815  ;;  %v16604_v24 = vpop.f32.mrf.mxu1  ;;  %12035 = vrot.lane.b32.xlu2 %v15940_v11, %s12793_s14  ;;  %5724 = vmatpush.msra.mxu1 %v5625_v7  ;;  %v20854_v11 = vunpack.i.h.bf16 %v16396_v61  ;;  %v11737_v7 = vunpack.i.l.bf16 %v16176_v56  ;;  %v20856_v61 = vunpack.i.h.bf16 %v16368_v50 }
 0x5a1   : > { %20851 = vst [vmem:[#allocation186_spill] sm:$0xff] %v16604_v24  ;;  %v16612_v52 = vpop.f32.mrf.mxu0  ;;  %v16642_v24 = vpop.permute.xlu2 %11855 }
 0x5a2   : > { %20852 = vst [vmem:[#allocation187_spill] sm:$0xff] %v16612_v52  ;;  %5725 = vmatpush.msra.mxu1 %v5622_v63  ;;  %v5626_v33 = vsel %vm5616_vm11, %v11757_v48, %v20854_v11  ;;  %v11727_v63 = vunpack.i.l.bf16 %v16312_v5  ;;  %v5623_v9 = vsel %vm5616_vm11, %v11747_v34, %v20856_v61  ;;  %v16651_v48 = vld [vmem:[#allocation4 + $0x10] sm:$0xff]  ;;  %v12640_v11 = vld [vmem:[#allocation4 + $0x18] sm:$0xff]  ;;  %v20860_v61 = vunpack.i.h.bf16 %v16312_v5 }
 0x5a3   : > { %10124 = vmatmul.msk.f32.vlgmr.msrb.gmra.mxu3 %vm1008_vm9, %v16476_v59  ;;  %v16655_v18 = vpack.i.bf16 %v16651_v48, %v15817_v39  ;;  %v20858_v39 = vunpack.i.h.bf16 %v16176_v56  ;;  %v16684_v56 = vld [vmem:[%s20464_s2 + $0x330] sm:$0xff]  ;;  %v16743_v52 = vld [vmem:[#allocation4 + $0x70] sm:$0xff] }
 0x5a4   : > { %v16621_v12 = vpop.f32.mrf.mxu3  ;;  %5665 = vmatpush.msrb.mxu3 %v5626_v33  ;;  %v16635_v38 = vpop.f32.mrf.mxu2  ;;  %5726 = vmatpush.msra.mxu1 %v5619_v29  ;;  %v16657_v33 = vpack.i.bf16 %v6971_v3, %v12640_v11  ;;  %v20501_v3 = vunpack.i.h.bf16 %v16407_v17  ;;  %v16679_v11 = vld [vmem:[#allocation4 + $0x48] sm:$0xff] }
 0x5a5   : > { %20853 = vst [vmem:[#allocation188_spill] sm:$0xff] %v16621_v12  ;;  %10123 = vmatmul.msk.f32.gmra.mxu2 %vm1008_vm9, %v16619_v58  ;;  %10137 = vmatmul.msk.f32.gmra.mxu1 %vm1008_vm9, %v16628_v62  ;;  %v5620_v50 = vsel %vm5616_vm11, %v11737_v7, %v20858_v39  ;;  %v11777_v39 = vunpack.i.l.bf16 %v16452_v8  ;;  %v11803_v12 = vunpack.i.h.bf16 %v16537_v55 }
 0x5a6   : > { %20855 = vst [vmem:[#allocation189_spill] sm:$0xff] %v16635_v38  ;;  %10130 = vmatmul.msk.f32.gmra.mxu0 %vm1008_vm9, %v16571_v43  ;;  %5666 = vmatpush.msrb.mxu3 %v5623_v9  ;;  %v5617_v9 = vsel %vm5616_vm11, %v11727_v63, %v20860_v61  ;;  %v16698_v63 = vpack.i.bf16 %v15879_v15, %v15862_v4  ;;  %v16713_v15 = vld [vmem:[#allocation4 + $0x58] sm:$0xff]  ;;  %vm8070_vm11 = vcmask 891904  }
 0x5a7   : > { %v16659_v29 = vpop.permute.xlu1 %11835  ;;  %12040 = vrot.lane.b32.xlu0 %v15807_v19, %s12793_s14  ;;  %12045 = vrot.lane.b32.xlu1 %v16655_v18, %s12794_s9  ;;  %v11797_v19 = vunpack.i.l.bf16 %v16407_v17  ;;  %v16702_v61 = vpack.i.bf16 %v16679_v11, %v15877_v36  ;;  %v16717_v36 = vpack.i.bf16 %v15923_v0, %v16713_v15 }
 0x5a8   : > { %v16639_v59 = vpop.permute.xlu0 %11830  ;;  %v16663_v38 = vpop.f32.mrf.mxu1  ;;  %12050 = vrot.lane.b32.xlu2 %v16657_v33, %s12794_s9  ;;  %5667 = vmatpush.msrb.mxu3 %v5620_v50  ;;  %v11787_v50 = vunpack.i.l.bf16 %v16495_v30 }
 0x5a9   : > { %20857 = vst [vmem:[#allocation190_spill] sm:$0xff] %v16663_v38  ;;  %v16672_v34 = vpop.f32.mrf.mxu0 }
 0x5aa   : > { %20859 = vst [vmem:[#allocation191_spill] sm:$0xff] %v16672_v34  ;;  %5668 = vmatpush.msrb.mxu3 %v5617_v9 }
 0x5ab   : > { %10125 = vmatmul.msk.f32.gmra.mxu3 %vm1008_vm9, %v16523_v42  ;;  %v5799_v42 = vsel %vm5789_vm12, %v11797_v19, %v20501_v3  ;;  %v11767_v19 = vunpack.i.l.bf16 %v16293_v32  ;;  %v16729_v3 = vpop.permute.xlu2 %11870 }
 0x5ac   : > { %v16686_v7 = vpop.f32.mrf.mxu3  ;;  %v16692_v5 = vpop.f32.mrf.mxu2 }
 0x5ad   : > { %20861 = vst [vmem:[#allocation192_spill] sm:$0xff] %v16686_v7  ;;  %10140 = vmatmul.msk.f32.vlgmr.msra.gmra.mxu2 %vm1008_vm9, %v16579_v1  ;;  %10138 = vmatmul.msk.f32.gmra.mxu1 %vm1008_vm9, %v16684_v56  ;;  %v20870_v7 = vunpack.i.l.bf16 %v16537_v55 }
 0x5ae   : > { %20862 = vst [vmem:[#allocation193_spill] sm:$0xff] %v16692_v5  ;;  %10131 = vmatmul.msk.f32.gmra.mxu0 %vm1008_vm9, %v16619_v58  ;;  %5838 = vmatpush.msra.mxu2 %v5799_v42  ;;  %v20864_v5 = vunpack.i.h.bf16 %v16495_v30 }
 0x5af   : > { %12055 = vrot.lane.b32.xlu0 %v16698_v63, %s12794_s9  ;;  %v16723_v9 = vpop.permute.xlu1 %11850  ;;  %12060 = vrot.lane.b32.xlu1 %v16702_v61, %s12794_s9 }
 0x5b0   : > { %v16719_v4 = vpop.permute.xlu0 %11845  ;;  %v16725_v38 = vpop.f32.mrf.mxu1  ;;  %v5796_v0 = vsel %vm5789_vm12, %v11787_v50, %v20864_v5  ;;  %12065 = vrot.lane.b32.xlu2 %v16717_v36, %s12794_s9  ;;  %v16750_v50 = vld [vmem:[%s20464_s2 + $0x338] sm:$0xff] }
 0x5b1   : > { %20863 = vst [vmem:[#allocation194_spill] sm:$0xff] %v16725_v38  ;;  %v16738_v42 = vpop.f32.mrf.mxu0  ;;  %5839 = vmatpush.msra.mxu2 %v5796_v0  ;;  %v20866_v38 = vunpack.i.h.bf16 %v16452_v8  ;;  %v20868_v0 = vunpack.i.h.bf16 %v16293_v32 }
 0x5b2   : > { %20865 = vst [vmem:[#allocation195_spill] sm:$0xff] %v16738_v42 }
 0x5b3   : > { %v5793_v34 = vsel %vm5789_vm12, %v11777_v39, %v20866_v38  ;;  %v5790_v42 = vsel %vm5789_vm12, %v11767_v19, %v20868_v0  ;;  %10126 = vmatmul.msk.f32.gmra.mxu3 %vm1008_vm9, %v16571_v43  ;;  %v16762_v38 = vld [vmem:[%s20464_s2 + $0x340] sm:$0xff]  ;;  %v11793_v39 = vunpack.i.h.bf16 %v16499_v57  ;;  %v16776_v43 = vld [vmem:[#allocation4 + $0x88] sm:$0xff] }
 0x5b4   : > { %5840 = vmatpush.msra.mxu2 %v5793_v34  ;;  %v16752_v5 = vpop.f32.mrf.mxu3  ;;  %v6983_v34 = vld [vmem:[#allocation4 + $0x98] sm:$0xff]  ;;  %v16770_v44 = vpop.f32.mrf.mxu2  ;;  %v16780_v19 = vpack.i.bf16 %v16776_v43, %v15937_v22 }
 0x5b5   : > { %20867 = vst [vmem:[#allocation196_spill] sm:$0xff] %v16752_v5  ;;  %v16768_v5 = vpack.i.bf16 %v16743_v52, %v15921_v16  ;;  %10139 = vmatmul.msk.f32.gmra.mxu1 %vm1008_vm9, %v16750_v50  ;;  %10141 = vmatmul.msk.f32.gmra.mxu2 %vm1008_vm9, %v16628_v62  ;;  %v16793_v35 = vpack.i.bf16 %v6983_v34, %v12643_v13  ;;  %v16810_v34 = vpop.permute.xlu2 %11885 }
 0x5b6   : > { %5841 = vmatpush.msra.mxu2 %v5790_v42  ;;  %20869 = vst [vmem:[#allocation197_spill] sm:$0xff] %v16770_v44  ;;  %v11783_v42 = vunpack.i.h.bf16 %v16354_v37  ;;  %10152 = vmatmul.msk.f32.vlgmr.msra.gmra.mxu0 %vm1008_vm9, %v16762_v38  ;;  %v5801_v44 = vsel %vm5789_vm12, %v20870_v7, %v11803_v12  ;;  %v20872_v12 = vunpack.i.l.bf16 %v16499_v57 }
 0x5b7   : > { %12070 = vrot.lane.b32.xlu0 %v16768_v5, %s12794_s9  ;;  %v16795_v22 = vpop.permute.xlu1 %11865  ;;  %5896 = vmatpush.msra.mxu0 %v5801_v44  ;;  %v20876_v44 = vunpack.i.l.bf16 %v16444_v25 }
 0x5b8   : > { %v16782_v0 = vpop.permute.xlu0 %11860  ;;  %12075 = vrot.lane.b32.xlu1 %v16780_v19, %s12794_s9  ;;  %v5798_v7 = vsel %vm5789_vm12, %v20872_v12, %v11793_v39  ;;  %12080 = vrot.lane.b32.xlu2 %v16793_v35, %s12794_s9  ;;  %v16808_v13 = vpop.f32.mrf.mxu1  ;;  %v5795_v40 = vsel %vm5789_vm12, %v20874_v54, %v11783_v42  ;;  %v16824_v39 = vld [vmem:[%s20464_s2 + $0x348] sm:$0xff]  ;;  %v11817_v42 = vunpack.i.l.bf16 %v16591_v47  ;;  %s12796_s9 = smov 113  }
 0x5b9   : > { %v16799_v16 = vpop.f32.mrf.mxu0  ;;  %20873 = vst [vmem:[#allocation199_spill] sm:$0xff] %v16808_v13  ;;  %5897 = vmatpush.msra.mxu0 %v5798_v7  ;;  %v11827_v7 = vunpack.i.l.bf16 %v16518_v60  ;;  %v5792_v13 = vsel %vm5789_vm12, %v20876_v44, %v11773_v41  ;;  %v20878_v41 = vunpack.i.h.bf16 %v16659_v29 }
 0x5ba   : > { %20871 = vst [vmem:[#allocation198_spill] sm:$0xff] %v16799_v16  ;;  %v11837_v16 = vunpack.i.l.bf16 %v16659_v29 }
 0x5bb   : > { %5898 = vmatpush.msra.mxu0 %v5795_v40  ;;  %10127 = vmatmul.msk.f32.gmra.mxu3 %vm1008_vm9, %v16619_v58 }
 0x5bc   : > { %v16817_v26 = vpop.f32.mrf.mxu3 }
 0x5bd   : > { %20875 = vst [vmem:[#allocation200_spill] sm:$0xff] %v16817_v26  ;;  %v16831_v54 = vpop.f32.mrf.mxu2  ;;  %5899 = vmatpush.msra.mxu0 %v5792_v13  ;;  %10142 = vmatmul.msk.f32.gmra.mxu2 %vm1008_vm9, %v16684_v56  ;;  %v5972_v13 = vsel %vm5962_vm4, %v11837_v16, %v20878_v41  ;;  %v20880_v26 = vunpack.i.h.bf16 %v16518_v60  ;;  %v20882_v41 = vunpack.i.h.bf16 %v16591_v47 }
 0x5be   : > { %20877 = vst [vmem:[#allocation201_spill] sm:$0xff] %v16831_v54  ;;  %10153 = vmatmul.msk.f32.gmra.mxu0 %vm1008_vm9, %v16824_v39  ;;  %10156 = vmatmul.msk.f32.vlgmr.msrb.gmra.mxu1 %vm1008_vm9, %v16762_v38  ;;  %v11807_v54 = vunpack.i.l.bf16 %v16548_v53 }
 0x5bf   : > { %v16846_v44 = vpop.permute.xlu1 %11880  ;;  %6011 = vmatpush.msrb.mxu1 %v5972_v13  ;;  %12085 = vrot.lane.b32.xlu0 %v16655_v18, %s12795_s13  ;;  %v5969_v28 = vsel %vm5962_vm4, %v11827_v7, %v20880_v26  ;;  %v5966_v13 = vsel %vm5962_vm4, %v11817_v42, %v20882_v41  ;;  %v16875_v26 = vld [vmem:[%s20464_s2 + $0x350] sm:$0xff]  ;;  %v20884_v7 = vunpack.i.l.bf16 %v16537_v55  ;;  %v20886_v42 = vunpack.i.h.bf16 %v16548_v53 }
 0x5c0   : > { %v16835_v40 = vpop.permute.xlu0 %11875  ;;  %12090 = vrot.lane.b32.xlu1 %v16657_v33, %s12795_s13  ;;  %12095 = vrot.lane.b32.xlu2 %v16698_v63, %s12795_s13  ;;  %v16861_v16 = vpop.f32.mrf.mxu1  ;;  %v20889_v55 = vunpack.i.h.bf16 %v16495_v30  ;;  %v20892_v30 = vunpack.i.h.bf16 %v16452_v8  ;;  %v20503_v8 = vunpack.i.l.bf16 %v16582_v20 }
 0x5c1   : > { %v16850_v58 = vpop.f32.mrf.mxu0  ;;  %20881 = vst [vmem:[#allocation203_spill] sm:$0xff] %v16861_v16  ;;  %6012 = vmatpush.msrb.mxu1 %v5969_v28  ;;  %v20885_v28 = vunpack.i.h.bf16 %v16407_v17  ;;  %v5963_v41 = vsel %vm5962_vm4, %v11807_v54, %v20886_v42  ;;  %v20888_v17 = vunpack.i.l.bf16 %v16499_v57  ;;  %v20891_v57 = vunpack.i.l.bf16 %v16354_v37 }
 0x5c2   : > { %20879 = vst [vmem:[#allocation202_spill] sm:$0xff] %v16850_v58  ;;  %v16868_v58 = vpop.permute.xlu2 %11900 }
 0x5c3   : > { %6013 = vmatpush.msrb.mxu1 %v5966_v13  ;;  %10144 = vmatmul.msk.f32.vlgmr.msra.gmra.mxu3 %vm1008_vm9, %v16579_v1  ;;  %v5800_v16 = vsel %vm5789_vm12, %v20885_v28, %v20884_v7  ;;  %v5797_v54 = vsel %vm5789_vm12, %v20889_v55, %v20888_v17  ;;  %v5794_v28 = vsel %vm5789_vm12, %v20892_v30, %v20891_v57  ;;  %v20895_v17 = vunpack.i.h.bf16 %v16293_v32 }
 0x5c4   : > { %v16866_v12 = vpop.f32.mrf.mxu3  ;;  %5867 = vmatpush.msra.mxu3 %v5800_v16  ;;  %v20502_v57 = vunpack.i.l.bf16 %v16639_v59  ;;  %v20505_v30 = vunpack.i.l.bf16 %v16599_v21 }
 0x5c5   : > { %20883 = vst [vmem:[#allocation204_spill] sm:$0xff] %v16866_v12  ;;  %6014 = vmatpush.msrb.mxu1 %v5963_v41  ;;  %10143 = vmatmul.msk.f32.gmra.mxu2 %vm1008_vm9, %v16750_v50  ;;  %v20894_v41 = vunpack.i.l.bf16 %v16444_v25 }
 0x5c6   : > { %v16885_v13 = vpop.f32.mrf.mxu2  ;;  %10154 = vmatmul.msk.f32.gmra.mxu0 %vm1008_vm9, %v16875_v26  ;;  %10157 = vmatmul.msk.f32.gmra.mxu1 %vm1008_vm9, %v16824_v39 }
 0x5c7   : > { %20887 = vst [vmem:[#allocation205_spill] sm:$0xff] %v16885_v13  ;;  %v16900_v16 = vpop.permute.xlu1 %11895  ;;  %5868 = vmatpush.msra.mxu3 %v5797_v54  ;;  %12100 = vrot.lane.b32.xlu0 %v16702_v61, %s12795_s13  ;;  %v5791_v55 = vsel %vm5789_vm12, %v20895_v17, %v20894_v41  ;;  %v16925_v54 = vld [vmem:[%s20464_s2 + $0x358] sm:$0xff]  ;;  %v20899_v17 = vunpack.i.h.bf16 %v16518_v60  ;;  %v20902_v60 = vunpack.i.h.bf16 %v16591_v47  ;;  %v10164_v47 = vld [vmem:[%s20464_s2 + $0x360] sm:$0xff]  ;;  %vm8243_vm12 = vcmask 744448  }
 0x5c8   : > { %v16889_v1 = vpop.permute.xlu0 %11890  ;;  %12105 = vrot.lane.b32.xlu1 %v16717_v36, %s12795_s13  ;;  %12110 = vrot.lane.b32.xlu2 %v16768_v5, %s12795_s13  ;;  %v16915_v42 = vpop.f32.mrf.mxu1 }
 0x5c9   : > { %v16904_v7 = vpop.f32.mrf.mxu0  ;;  %20893 = vst [vmem:[#allocation207_spill] sm:$0xff] %v16915_v42  ;;  %5869 = vmatpush.msra.mxu3 %v5794_v28  ;;  %v20898_v28 = vunpack.i.h.bf16 %v16659_v29 }
 0x5ca   : > { %20890 = vst [vmem:[#allocation206_spill] sm:$0xff] %v16904_v7  ;;  %v16935_v32 = vpop.permute.xlu2 %11915 }
 0x5cb   : > { %5870 = vmatpush.msra.mxu3 %v5791_v55  ;;  %v5970_v55 = vsel %vm5962_vm4, %v20899_v17, %v20502_v57  ;;  %v5967_v17 = vsel %vm5962_vm4, %v20902_v60, %v20505_v30  ;;  %v11878_v57 = vunpack.i.h.bf16 %v16835_v40  ;;  %v11868_v60 = vunpack.i.h.bf16 %v16795_v22 }
 0x5cc   : > { %v16927_v37 = vpop.f32.mrf.mxu3  ;;  %10145 = vmatmul.msk.f32.gmra.mxu3 %vm1008_vm9, %v16628_v62  ;;  %v5973_v62 = vsel %vm5962_vm4, %v20898_v28, %v20503_v8  ;;  %v11877_v8 = vunpack.i.l.bf16 %v16835_v40  ;;  %v11867_v40 = vunpack.i.l.bf16 %v16795_v22  ;;  %v11848_v30 = vunpack.i.h.bf16 %v16719_v4 }
 0x5cd   : > { %20896 = vst [vmem:[#allocation208_spill] sm:$0xff] %v16927_v37  ;;  %10160 = vmatmul.msk.f32.vlgmr.msrb.gmra.mxu2 %vm1008_vm9, %v16762_v38 }
 0x5ce   : > { %v16933_v25 = vpop.f32.mrf.mxu2  ;;  %10155 = vmatmul.msk.f32.gmra.mxu0 %vm1008_vm9, %v16925_v54  ;;  %10158 = vmatmul.msk.f32.gmra.mxu1 %vm1008_vm9, %v16875_v26  ;;  %v6145_v22 = vsel %vm6135_vm13, %v11877_v8, %v11878_v57 }
 0x5cf   : > { %20897 = vst [vmem:[#allocation209_spill] sm:$0xff] %v16933_v25  ;;  %6040 = vmatpush.msrb.mxu2 %v5973_v62  ;;  %12115 = vrot.lane.b32.xlu0 %v16780_v19, %s12795_s13  ;;  %v16953_v38 = vpop.permute.xlu1 %11910  ;;  %v20504_v62 = vunpack.i.l.bf16 %v16467_v10  ;;  %v20916_v25 = vunpack.i.l.bf16 %v16723_v9 }
 0x5d0   : > { %v16949_v41 = vpop.permute.xlu0 %11905  ;;  %12120 = vrot.lane.b32.xlu1 %v16793_v35, %s12795_s13  ;;  %12125 = vrot.lane.b32.xlu2 %v16655_v18, %s12796_s9  ;;  %v16964_v29 = vpop.f32.mrf.mxu1  ;;  %s12806_s13 = smov 86  }
 0x5d1   : > { %20900 = vst [vmem:[#allocation210_spill] sm:$0xff] %v16964_v29  ;;  %6041 = vmatpush.msrb.mxu2 %v5970_v55  ;;  %v16966_v28 = vpop.f32.mrf.mxu0  ;;  %v20904_v55 = vunpack.i.h.bf16 %v16548_v53 }
 0x5d2   : > { %20901 = vst [vmem:[#allocation211_spill] sm:$0xff] %v16966_v28 }
 0x5d3   : > { %6042 = vmatpush.msrb.mxu2 %v5967_v17  ;;  %v5964_v28 = vsel %vm5962_vm4, %v20904_v55, %v20504_v62  ;;  %v11857_v55 = vunpack.i.l.bf16 %v16642_v24  ;;  %v17000_v62 = vpop.permute.xlu2 %11930 }
 0x5d4   : > { %v16976_v7 = vpop.f32.mrf.mxu3  ;;  %10146 = vmatmul.msk.f32.gmra.mxu3 %vm1008_vm9, %v16684_v56  ;;  %v11858_v56 = vunpack.i.h.bf16 %v16642_v24  ;;  %v11847_v24 = vunpack.i.l.bf16 %v16719_v4  ;;  %v10165_v4 = vld [vmem:[%s20464_s2 + $0x368] sm:$0xff] }
 0x5d5   : > { %20903 = vst [vmem:[#allocation212_spill] sm:$0xff] %v16976_v7  ;;  %6043 = vmatpush.msrb.mxu2 %v5964_v28  ;;  %v20506_v7 = vunpack.i.l.bf16 %v16846_v44 }
 0x5d6   : > { %v16990_v17 = vpop.f32.mrf.mxu2  ;;  %10159 = vmatmul.msk.f32.gmra.mxu1 %vm1008_vm9, %v16925_v54  ;;  %10161 = vmatmul.msk.f32.gmra.mxu2 %vm1008_vm9, %v16824_v39 }
 0x5d7   : > { %20905 = vst [vmem:[#allocation213_spill] sm:$0xff] %v16990_v17  ;;  %10172 = vmatmul.msk.f32.vlgmr.msrb.gmra.mxu0 %vm1008_vm9, %v10164_v47  ;;  %12130 = vrot.lane.b32.xlu0 %v16657_v33, %s12796_s9  ;;  %v17006_v28 = vpop.permute.xlu1 %11925  ;;  %v6142_v17 = vsel %vm6135_vm13, %v11867_v40, %v11868_v60  ;;  %v6136_v40 = vsel %vm6135_vm13, %v11847_v24, %v11848_v30 }
 0x5d8   : > { %v16996_v53 = vpop.permute.xlu0 %11920  ;;  %6184 = vmatpush.msrb.mxu0 %v6145_v22  ;;  %12135 = vrot.lane.b32.xlu1 %v16698_v63, %s12796_s9  ;;  %v6139_v22 = vsel %vm6135_vm13, %v11857_v55, %v11858_v56 }
 0x5d9   : > { %v17010_v39 = vpop.f32.mrf.mxu1  ;;  %12140 = vrot.lane.b32.xlu2 %v16702_v61, %s12796_s9  ;;  %v17017_v8 = vpop.f32.mrf.mxu0 }
 0x5da   : > { %20906 = vst [vmem:[#allocation214_spill] sm:$0xff] %v17010_v39  ;;  %6185 = vmatpush.msrb.mxu0 %v6142_v17 }
 0x5db   : > { %20907 = vst [vmem:[#allocation215_spill] sm:$0xff] %v17017_v8  ;;  %v17050_v55 = vpop.permute.xlu2 %11945  ;;  %v6137_v8 = vsel %vm6135_vm13, %v11848_v30, %v20916_v25 }
 0x5dc   : > { %v17021_v29 = vpop.f32.mrf.mxu3  ;;  %6186 = vmatpush.msrb.mxu0 %v6139_v22  ;;  %10147 = vmatmul.msk.f32.gmra.mxu3 %vm1008_vm9, %v16750_v50  ;;  %v6146_v50 = vsel %vm6135_vm13, %v11878_v57, %v20506_v7  ;;  %v20913_v7 = vunpack.i.l.bf16 %v16782_v0 }
 0x5dd   : > { %20908 = vst [vmem:[#allocation216_spill] sm:$0xff] %v17021_v29 }
 0x5de   : > { %v17029_v39 = vpop.f32.mrf.mxu2  ;;  %6187 = vmatpush.msrb.mxu0 %v6136_v40  ;;  %10162 = vmatmul.msk.f32.gmra.mxu2 %vm1008_vm9, %v16875_v26  ;;  %v11843_v40 = vunpack.i.h.bf16 %v16582_v20  ;;  %v6140_v22 = vsel %vm6135_vm13, %v11858_v56, %v20913_v7  ;;  %v11813_v56 = vunpack.i.h.bf16 %v16467_v10 }
 0x5df   : > { %20909 = vst [vmem:[#allocation217_spill] sm:$0xff] %v17029_v39  ;;  %10173 = vmatmul.msk.f32.gmra.mxu0 %vm1008_vm9, %v10165_v4  ;;  %10176 = vmatmul.msk.f32.vlgmr.msra.gmra.mxu1 %vm1008_vm9, %v10164_v47  ;;  %v17042_v24 = vpop.permute.xlu1 %11940  ;;  %v20911_v39 = vunpack.i.l.bf16 %v16729_v3 }
 0x5e0   : > { %v17033_v17 = vpop.permute.xlu0 %11935  ;;  %6213 = vmatpush.msra.mxu1 %v6146_v50  ;;  %12145 = vrot.lane.b32.xlu0 %v16717_v36, %s12796_s9  ;;  %v11833_v50 = vunpack.i.h.bf16 %v16639_v59 }
 0x5e1   : > { %v17047_v26 = vpop.f32.mrf.mxu1  ;;  %v6143_v29 = vsel %vm6135_vm13, %v11868_v60, %v20911_v39  ;;  %12150 = vrot.lane.b32.xlu1 %v16768_v5, %s12796_s9  ;;  %12155 = vrot.lane.b32.xlu2 %v16780_v19, %s12796_s9  ;;  %v17059_v57 = vpop.f32.mrf.mxu0  ;;  %v10166_v60 = vld [vmem:[%s20464_s2 + $0x370] sm:$0xff]  ;;  %v20915_v39 = vunpack.i.l.bf16 %v16582_v20  ;;  %v20918_v20 = vunpack.i.l.bf16 %v16639_v59 }
 0x5e2   : > { %20910 = vst [vmem:[#allocation218_spill] sm:$0xff] %v17047_v26  ;;  %6214 = vmatpush.msra.mxu1 %v6143_v29  ;;  %v11823_v29 = vunpack.i.h.bf16 %v16599_v21 }
 0x5e3   : > { %20912 = vst [vmem:[#allocation219_spill] sm:$0xff] %v17059_v57  ;;  %v5974_v57 = vsel %vm5962_vm4, %v20915_v39, %v11843_v40  ;;  %v11883_v40 = vunpack.i.h.bf16 %v16846_v44 }
 0x5e4   : > { %v17065_v26 = vpop.f32.mrf.mxu3  ;;  %6215 = vmatpush.msra.mxu1 %v6140_v22  ;;  %10168 = vmatmul.msk.f32.vlgmr.msrb.gmra.mxu3 %vm1008_vm9, %v10164_v47  ;;  %v5971_v22 = vsel %vm5962_vm4, %v20918_v20, %v11833_v50  ;;  %v20922_v50 = vunpack.i.l.bf16 %v16467_v10  ;;  %v17114_v20 = vld [vmem:[%s20464_s2 + $0x380] sm:$0xff]  ;;  %v11863_v10 = vunpack.i.h.bf16 %v16782_v0 }
 0x5e5   : > { %20914 = vst [vmem:[#allocation220_spill] sm:$0xff] %v17065_v26  ;;  %6069 = vmatpush.msrb.mxu3 %v5974_v57  ;;  %v17106_v57 = vpop.permute.xlu2 %11960 }
 0x5e6   : > { %v17078_v7 = vpop.f32.mrf.mxu2  ;;  %6216 = vmatpush.msra.mxu1 %v6137_v8  ;;  %10163 = vmatmul.msk.f32.gmra.mxu2 %vm1008_vm9, %v16925_v54  ;;  %v20920_v54 = vunpack.i.l.bf16 %v16599_v21  ;;  %v5965_v39 = vsel %vm5962_vm4, %v20922_v50, %v11813_v56  ;;  %v10167_v21 = vld [vmem:[%s20464_s2 + $0x378] sm:$0xff]  ;;  %v20925_v56 = vunpack.i.l.bf16 %v16846_v44 }
 0x5e7   : > { %20917 = vst [vmem:[#allocation221_spill] sm:$0xff] %v17078_v7  ;;  %10174 = vmatmul.msk.f32.gmra.mxu0 %vm1008_vm9, %v10166_v60  ;;  %10177 = vmatmul.msk.f32.gmra.mxu1 %vm1008_vm9, %v10165_v4  ;;  %v17090_v25 = vpop.permute.xlu1 %11955 }
 0x5e8   : > { %v17082_v47 = vpop.permute.xlu0 %11950  ;;  %6070 = vmatpush.msrb.mxu3 %v5971_v22  ;;  %12160 = vrot.lane.b32.xlu0 %v16793_v35, %s12796_s9  ;;  %v5968_v59 = vsel %vm5962_vm4, %v20920_v54, %v11823_v29  ;;  %v11873_v22 = vunpack.i.h.bf16 %v16729_v3  ;;  %vm8416_vm4 = vcmask 736256  }
 0x5e9   : > { %v17094_v30 = vpop.f32.mrf.mxu1  ;;  %12165 = vrot.lane.b32.xlu1 %v16655_v18, %s12797_s15  ;;  %12170 = vrot.lane.b32.xlu2 %v16657_v33, %s12797_s15  ;;  %v17103_v8 = vpop.f32.mrf.mxu0 }
 0x5ea   : > { %20919 = vst [vmem:[#allocation222_spill] sm:$0xff] %v17094_v30  ;;  %6071 = vmatpush.msrb.mxu3 %v5968_v59  ;;  %v6147_v59 = vsel %vm6135_vm13, %v20925_v56, %v11883_v40  ;;  %v20929_v40 = vunpack.i.l.bf16 %v16782_v0  ;;  %v11918_v0 = vunpack.i.h.bf16 %v16935_v32  ;;  %v20936_v30 = vunpack.i.h.bf16 %v16900_v16 }
 0x5eb   : > { %20921 = vst [vmem:[#allocation223_spill] sm:$0xff] %v17103_v8 }
 0x5ec   : > { %6072 = vmatpush.msrb.mxu3 %v5965_v39  ;;  %v6141_v56 = vsel %vm6135_vm13, %v20929_v40, %v11863_v10  ;;  %v11912_v40 = vunpack.i.l.bf16 %v16953_v38  ;;  %v11892_v10 = vunpack.i.l.bf16 %v16889_v1 }
 0x5ed   : > { %v17119_v29 = vpop.f32.mrf.mxu3  ;;  %10169 = vmatmul.msk.f32.gmra.mxu3 %vm1008_vm9, %v10165_v4 }
 0x5ee   : > { %20923 = vst [vmem:[#allocation224_spill] sm:$0xff] %v17119_v29  ;;  %v17123_v54 = vpop.f32.mrf.mxu2  ;;  %10184 = vmatmul.msk.f32.vlgmr.msra.gmra.mxu2 %vm1008_vm9, %v17114_v20  ;;  %v11853_v29 = vunpack.i.h.bf16 %v16723_v9 }
 0x5ef   : > { %20924 = vst [vmem:[#allocation225_spill] sm:$0xff] %v17123_v54  ;;  %10175 = vmatmul.msk.f32.gmra.mxu0 %vm1008_vm9, %v10167_v21  ;;  %10178 = vmatmul.msk.f32.gmra.mxu1 %vm1008_vm9, %v10166_v60  ;;  %v20927_v54 = vunpack.i.l.bf16 %v16729_v3  ;;  %v17158_v3 = vld [vmem:[%s20464_s2 + $0x388] sm:$0xff] }
 0x5f0   : > { %v17133_v50 = vpop.permute.xlu0 %11965  ;;  %6242 = vmatpush.msra.mxu2 %v6147_v59  ;;  %12175 = vrot.lane.b32.xlu0 %v16698_v63, %s12797_s15  ;;  %v11922_v59 = vunpack.i.l.bf16 %v16996_v53 }
 0x5f1   : > { %v17137_v4 = vpop.permute.xlu1 %11970  ;;  %v17139_v39 = vpop.f32.mrf.mxu1  ;;  %v6144_v8 = vsel %vm6135_vm13, %v20927_v54, %v11873_v22  ;;  %12180 = vrot.lane.b32.xlu1 %v16702_v61, %s12797_s15  ;;  %12185 = vrot.lane.b32.xlu2 %v16717_v36, %s12797_s15 }
 0x5f2   : > { %20926 = vst [vmem:[#allocation226_spill] sm:$0xff] %v17139_v39  ;;  %v17149_v44 = vpop.f32.mrf.mxu0  ;;  %6243 = vmatpush.msra.mxu2 %v6144_v8  ;;  %v17162_v54 = vpop.permute.xlu2 %11975  ;;  %v20931_v39 = vunpack.i.l.bf16 %v16723_v9 }
 0x5f3   : > { %20928 = vst [vmem:[#allocation227_spill] sm:$0xff] %v17149_v44 }
 0x5f4   : > { %6244 = vmatpush.msra.mxu2 %v6141_v56  ;;  %v6138_v8 = vsel %vm6135_vm13, %v20931_v39, %v11853_v29  ;;  %v20934_v29 = vunpack.i.h.bf16 %v16949_v41  ;;  %vm8589_vm13 = vcmask 728064  }
 0x5f5   : > { %v17160_v22 = vpop.f32.mrf.mxu3  ;;  %10170 = vmatmul.msk.f32.gmra.mxu3 %vm1008_vm9, %v10166_v60  ;;  %v6319_v60 = vsel %vm6308_vm14, %v11918_v0, %v11922_v59 }
 0x5f6   : > { %20930 = vst [vmem:[#allocation228_spill] sm:$0xff] %v17160_v22  ;;  %6245 = vmatpush.msra.mxu2 %v6138_v8  ;;  %v11902_v8 = vunpack.i.l.bf16 %v16868_v58  ;;  %v6316_v22 = vsel %vm6308_vm14, %v20934_v29, %v11912_v40  ;;  %v17207_v29 = vld [vmem:[%s20464_s2 + $0x390] sm:$0xff] }
 0x5f7   : > { %v17171_v56 = vpop.f32.mrf.mxu2  ;;  %10179 = vmatmul.msk.f32.gmra.mxu1 %vm1008_vm9, %v10167_v21  ;;  %10185 = vmatmul.msk.f32.gmra.mxu2 %vm1008_vm9, %v17158_v3 }
 0x5f8   : > { %20932 = vst [vmem:[#allocation229_spill] sm:$0xff] %v17171_v56  ;;  %v17176_v9 = vpop.permute.xlu0 %11980  ;;  %10192 = vmatmul.msk.f32.vlgmr.msra.gmra.mxu0 %vm1008_vm9, %v17114_v20  ;;  %12190 = vrot.lane.b32.xlu0 %v16768_v5, %s12797_s15  ;;  %v6313_v26 = vsel %vm6308_vm14, %v20936_v30, %v11902_v8 }
 0x5f9   : > { %6386 = vmatpush.msra.mxu0 %v6319_v60  ;;  %12195 = vrot.lane.b32.xlu1 %v16780_v19, %s12797_s15  ;;  %v17195_v56 = vpop.permute.xlu1 %11985  ;;  %v11888_v60 = vunpack.i.h.bf16 %v16810_v34 }
 0x5fa   : > { %v17186_v39 = vpop.f32.mrf.mxu0  ;;  %12200 = vrot.lane.b32.xlu2 %v16793_v35, %s12797_s15  ;;  %v17197_v44 = vpop.f32.mrf.mxu1 }
 0x5fb   : > { %20933 = vst [vmem:[#allocation230_spill] sm:$0xff] %v17186_v39  ;;  %6387 = vmatpush.msra.mxu0 %v6316_v22  ;;  %v11923_v39 = vunpack.i.h.bf16 %v16996_v53  ;;  %v17215_v22 = vld [vmem:[%s20464_s2 + $0x3a0] sm:$0xff]  ;;  %v11913_v53 = vunpack.i.h.bf16 %v16953_v38  ;;  %v17221_v37 = vpop.permute.xlu2 %11990 }
 0x5fc   : > { %20935 = vst [vmem:[#allocation231_spill] sm:$0xff] %v17197_v44  ;;  %v6310_v44 = vsel %vm6308_vm14, %v11888_v60, %v11892_v10 }
 0x5fd   : > { %v17209_v7 = vpop.f32.mrf.mxu3  ;;  %6388 = vmatpush.msra.mxu0 %v6313_v26  ;;  %10171 = vmatmul.msk.f32.gmra.mxu3 %vm1008_vm9, %v10167_v21  ;;  %v11903_v21 = vunpack.i.h.bf16 %v16868_v58  ;;  %v6320_v38 = vsel %vm6308_vm14, %v11922_v59, %v11923_v39  ;;  %v6317_v58 = vsel %vm6308_vm14, %v11912_v40, %v11913_v53  ;;  %v17262_v53 = vld [vmem:[%s20464_s2 + $0x3a8] sm:$0xff] }
 0x5fe   : > { %20937 = vst [vmem:[#allocation232_spill] sm:$0xff] %v17209_v7  ;;  %v11917_v7 = vunpack.i.l.bf16 %v16935_v32  ;;  %v11907_v32 = vunpack.i.l.bf16 %v16949_v41 }
 0x5ff   : > { %v17219_v30 = vpop.f32.mrf.mxu2  ;;  %6389 = vmatpush.msra.mxu0 %v6310_v44  ;;  %10186 = vmatmul.msk.f32.gmra.mxu2 %vm1008_vm9, %v17207_v29  ;;  %v6314_v39 = vsel %vm6308_vm14, %v11902_v8, %v11903_v21  ;;  %v11897_v21 = vunpack.i.l.bf16 %v16900_v16 }
 0x600   : > { %20938 = vst [vmem:[#allocation233_spill] sm:$0xff] %v17219_v30  ;;  %v17225_v26 = vpop.permute.xlu0 %11995  ;;  %10193 = vmatmul.msk.f32.gmra.mxu0 %vm1008_vm9, %v17158_v3  ;;  %10200 = vmatmul.msk.f32.vlgmr.msrb.gmra.mxu1 %vm1008_vm9, %v17215_v22  ;;  %v11893_v30 = vunpack.i.h.bf16 %v16889_v1  ;;  %v17253_v1 = vld [vmem:[%s20464_s2 + $0x398] sm:$0xff]  ;;  %v6318_v8 = vsel %vm6308_vm14, %v11917_v7, %v11918_v0  ;;  %v20943_v7 = vunpack.i.h.bf16 %v16949_v41 }
 0x601   : > { %6415 = vmatpush.msrb.mxu1 %v6320_v38  ;;  %12205 = vrot.lane.b32.xlu0 %v16655_v18, %s12798_s12  ;;  %v17248_v38 = vpop.permute.xlu1 %12000 }
 0x602   : > { %v17236_v44 = vpop.f32.mrf.mxu0  ;;  %12210 = vrot.lane.b32.xlu1 %v16657_v33, %s12798_s12  ;;  %12215 = vrot.lane.b32.xlu2 %v16698_v63, %s12798_s12  ;;  %v17244_v59 = vpop.f32.mrf.mxu1  ;;  %v6315_v0 = vsel %vm6308_vm14, %v11907_v32, %v20943_v7  ;;  %v20507_v32 = vunpack.i.h.bf16 %v17090_v25 }
 0x603   : > { %20939 = vst [vmem:[#allocation234_spill] sm:$0xff] %v17236_v44  ;;  %6416 = vmatpush.msrb.mxu1 %v6317_v58  ;;  %v6311_v58 = vsel %vm6308_vm14, %v11892_v10, %v11893_v30  ;;  %v17281_v10 = vpop.permute.xlu2 %12005 }
 0x604   : > { %20940 = vst [vmem:[#allocation235_spill] sm:$0xff] %v17244_v59 }
 0x605   : > { %v17255_v40 = vpop.f32.mrf.mxu3  ;;  %6417 = vmatpush.msrb.mxu1 %v6314_v39  ;;  %10188 = vmatmul.msk.f32.vlgmr.msra.gmra.mxu3 %vm1008_vm9, %v17114_v20  ;;  %v11887_v20 = vunpack.i.l.bf16 %v16810_v34  ;;  %v20945_v34 = vunpack.i.h.bf16 %v16900_v16  ;;  %v11927_v16 = vunpack.i.l.bf16 %v17006_v28 }
 0x606   : > { %20941 = vst [vmem:[#allocation236_spill] sm:$0xff] %v17255_v40  ;;  %6357 = vmatpush.msra.mxu3 %v6318_v8 }
 0x607   : > { %v17267_v59 = vpop.f32.mrf.mxu2  ;;  %6418 = vmatpush.msrb.mxu1 %v6311_v58  ;;  %10187 = vmatmul.msk.f32.gmra.mxu2 %vm1008_vm9, %v17253_v1  ;;  %v6312_v41 = vsel %vm6308_vm14, %v11897_v21, %v20945_v34  ;;  %v11957_v58 = vunpack.i.l.bf16 %v17090_v25  ;;  %v6309_v7 = vsel %vm6308_vm14, %v11887_v20, %v11888_v60  ;;  %v11947_v21 = vunpack.i.l.bf16 %v17050_v55 }
 0x608   : > { %20942 = vst [vmem:[#allocation237_spill] sm:$0xff] %v17267_v59  ;;  %v17271_v39 = vpop.permute.xlu0 %12010  ;;  %10194 = vmatmul.msk.f32.gmra.mxu0 %vm1008_vm9, %v17207_v29  ;;  %10201 = vmatmul.msk.f32.gmra.mxu1 %vm1008_vm9, %v17262_v53  ;;  %v11937_v20 = vunpack.i.l.bf16 %v17033_v17  ;;  %v20949_v59 = vunpack.i.h.bf16 %v17050_v55  ;;  %v20952_v60 = vunpack.i.h.bf16 %v17033_v17  ;;  %vm8762_vm14 = vcmask 719872  }
 0x609   : > { %6358 = vmatpush.msra.mxu3 %v6315_v0  ;;  %12220 = vrot.lane.b32.xlu0 %v16702_v61, %s12798_s12  ;;  %v17308_v34 = vpop.permute.xlu1 %12015 }
 0x60a   : > { %v17285_v30 = vpop.f32.mrf.mxu0  ;;  %12225 = vrot.lane.b32.xlu1 %v16717_v36, %s12798_s12  ;;  %12230 = vrot.lane.b32.xlu2 %v16768_v5, %s12798_s12  ;;  %v17294_v8 = vpop.f32.mrf.mxu1  ;;  %v17302_v36 = vld [vmem:[%s20464_s2 + $0x3b0] sm:$0xff] }
 0x60b   : > { %20944 = vst [vmem:[#allocation238_spill] sm:$0xff] %v17285_v30  ;;  %6359 = vmatpush.msra.mxu3 %v6312_v41  ;;  %v6485_v30 = vsel %vm6481_vm15, %v11937_v20, %v20952_v60  ;;  %v17364_v60 = vld [vmem:[%s20464_s2 + $0x3c0] sm:$0xff] }
 0x60c   : > { %20946 = vst [vmem:[#allocation239_spill] sm:$0xff] %v17294_v8  ;;  %v6488_v8 = vsel %vm6481_vm15, %v11947_v21, %v20949_v59  ;;  %v11963_v59 = vunpack.i.h.bf16 %v17106_v57 }
 0x60d   : > { %6360 = vmatpush.msra.mxu3 %v6309_v7 }
 0x60e   : > { %v17304_v0 = vpop.f32.mrf.mxu3  ;;  %10189 = vmatmul.msk.f32.gmra.mxu3 %vm1008_vm9, %v17158_v3  ;;  %v6491_v3 = vsel %vm6481_vm15, %v11957_v58, %v20507_v32 }
 0x60f   : > { %20947 = vst [vmem:[#allocation240_spill] sm:$0xff] %v17304_v0  ;;  %v17312_v41 = vpop.f32.mrf.mxu2  ;;  %10204 = vmatmul.msk.f32.vlgmr.msrb.gmra.mxu2 %vm1008_vm9, %v17215_v22 }
 0x610   : > { %20948 = vst [vmem:[#allocation241_spill] sm:$0xff] %v17312_v41  ;;  %10195 = vmatmul.msk.f32.gmra.mxu0 %vm1008_vm9, %v17253_v1  ;;  %10202 = vmatmul.msk.f32.gmra.mxu1 %vm1008_vm9, %v17302_v36  ;;  %v11933_v41 = vunpack.i.h.bf16 %v17000_v62 }
 0x611   : > { %v17325_v7 = vpop.permute.xlu0 %12025  ;;  %6530 = vmatpush.msrb.mxu2 %v6491_v3  ;;  %12235 = vrot.lane.b32.xlu0 %v16780_v19, %s12798_s12  ;;  %v17340_v3 = vpop.permute.xlu2 %12020 }
 0x612   : > { %12240 = vrot.lane.b32.xlu1 %v16793_v35, %s12798_s12  ;;  %12245 = vrot.lane.b32.xlu2 %v16655_v18, %s12799_s8  ;;  %v17338_v58 = vpop.f32.mrf.mxu1  ;;  %v17352_v18 = vld [vmem:[%s20464_s2 + $0x3b8] sm:$0xff]  ;;  %v17370_v44 = vpop.permute.xlu1 %12030  ;;  %s12805_s12 = smov 87  }
 0x613   : > { %20950 = vst [vmem:[#allocation242_spill] sm:$0xff] %v17338_v58  ;;  %6531 = vmatpush.msrb.mxu2 %v6488_v8  ;;  %v17342_v32 = vpop.f32.mrf.mxu0  ;;  %v20954_v8 = vunpack.i.h.bf16 %v17006_v28 }
 0x614   : > { %20951 = vst [vmem:[#allocation243_spill] sm:$0xff] %v17342_v32 }
 0x615   : > { %6532 = vmatpush.msrb.mxu2 %v6485_v30  ;;  %v6482_v32 = vsel %vm6481_vm15, %v11927_v16, %v20954_v8  ;;  %v11953_v30 = vunpack.i.h.bf16 %v17082_v47  ;;  %v11943_v16 = vunpack.i.h.bf16 %v17042_v24 }
 0x616   : > { %v17354_v58 = vpop.f32.mrf.mxu3  ;;  %10190 = vmatmul.msk.f32.gmra.mxu3 %vm1008_vm9, %v17207_v29 }
 0x617   : > { %20953 = vst [vmem:[#allocation244_spill] sm:$0xff] %v17354_v58  ;;  %6533 = vmatpush.msrb.mxu2 %v6482_v32  ;;  %v17368_v21 = vpop.f32.mrf.mxu2  ;;  %v20956_v32 = vunpack.i.l.bf16 %v17106_v57 }
 0x618   : > { %20955 = vst [vmem:[#allocation245_spill] sm:$0xff] %v17368_v21  ;;  %10203 = vmatmul.msk.f32.gmra.mxu1 %vm1008_vm9, %v17352_v18  ;;  %10205 = vmatmul.msk.f32.gmra.mxu2 %vm1008_vm9, %v17262_v53  ;;  %v20958_v21 = vunpack.i.l.bf16 %v17082_v47 }
 0x619   : > { %v17376_v29 = vpop.permute.xlu0 %12040  ;;  %10216 = vmatmul.msk.f32.vlgmr.msrb.gmra.mxu0 %vm1008_vm9, %v17364_v60  ;;  %v6493_v20 = vsel %vm6481_vm15, %v20956_v32, %v11963_v59  ;;  %12250 = vrot.lane.b32.xlu0 %v16657_v33, %s12799_s8  ;;  %v11997_v32 = vunpack.i.l.bf16 %v17225_v26 }
 0x61a   : > { %6588 = vmatpush.msrb.mxu0 %v6493_v20  ;;  %12255 = vrot.lane.b32.xlu1 %v16698_v63, %s12799_s8  ;;  %v17389_v58 = vpop.f32.mrf.mxu1  ;;  %v6490_v40 = vsel %vm6481_vm15, %v20958_v21, %v11953_v30  ;;  %v17400_v20 = vpop.permute.xlu2 %12035  ;;  %v11987_v21 = vunpack.i.l.bf16 %v17195_v56  ;;  %v20962_v30 = vunpack.i.l.bf16 %v17000_v62 }
 0x61b   : > { %20957 = vst [vmem:[#allocation246_spill] sm:$0xff] %v17389_v58  ;;  %12260 = vrot.lane.b32.xlu2 %v16702_v61, %s12799_s8  ;;  %v17398_v59 = vpop.f32.mrf.mxu0  ;;  %v20960_v58 = vunpack.i.l.bf16 %v17042_v24  ;;  %v17414_v61 = vld [vmem:[%s20464_s2 + $0x3c8] sm:$0xff] }
 0x61c   : > { %20959 = vst [vmem:[#allocation247_spill] sm:$0xff] %v17398_v59  ;;  %6589 = vmatpush.msrb.mxu0 %v6490_v40  ;;  %v6484_v63 = vsel %vm6481_vm15, %v20962_v30, %v11933_v41  ;;  %v11977_v59 = vunpack.i.l.bf16 %v17162_v54  ;;  %v20964_v41 = vunpack.i.h.bf16 %v17225_v26  ;;  %v17442_v30 = vpop.permute.xlu1 %12045 }
 0x61d   : > { %v6487_v8 = vsel %vm6481_vm15, %v20960_v58, %v11943_v16 }
 0x61e   : > { %v17407_v0 = vpop.f32.mrf.mxu3  ;;  %6590 = vmatpush.msrb.mxu0 %v6487_v8  ;;  %10191 = vmatmul.msk.f32.gmra.mxu3 %vm1008_vm9, %v17253_v1  ;;  %v17425_v1 = vld [vmem:[#allocation4 + $0x60] sm:$0xff] }
 0x61f   : > { %20961 = vst [vmem:[#allocation248_spill] sm:$0xff] %v17407_v0  ;;  %v17421_v58 = vpop.f32.mrf.mxu2  ;;  %v17429_v16 = vpack.i.bf16 %v17425_v1, %v16713_v15  ;;  %v11967_v0 = vunpack.i.l.bf16 %v17133_v50 }
 0x620   : > { %20963 = vst [vmem:[#allocation249_spill] sm:$0xff] %v17421_v58  ;;  %6591 = vmatpush.msrb.mxu0 %v6484_v63  ;;  %10206 = vmatmul.msk.f32.gmra.mxu2 %vm1008_vm9, %v17302_v36  ;;  %v6664_v63 = vsel %vm6654_vm0, %v11997_v32, %v20964_v41  ;;  %v20966_v58 = vunpack.i.h.bf16 %v17195_v56  ;;  %v20968_v41 = vunpack.i.h.bf16 %v17162_v54 }
 0x621   : > { %v17431_v8 = vpop.permute.xlu0 %12055  ;;  %10217 = vmatmul.msk.f32.gmra.mxu0 %vm1008_vm9, %v17414_v61  ;;  %10220 = vmatmul.msk.f32.vlgmr.msra.gmra.mxu1 %vm1008_vm9, %v17364_v60 }
 0x622   : > { %6703 = vmatpush.msra.mxu1 %v6664_v63  ;;  %12265 = vrot.lane.b32.xlu0 %v17429_v16, %s12799_s8  ;;  %v17446_v15 = vpop.f32.mrf.mxu1  ;;  %v6661_v42 = vsel %vm6654_vm0, %v11987_v21, %v20966_v58  ;;  %v6658_v63 = vsel %vm6654_vm0, %v11977_v59, %v20968_v41  ;;  %v20971_v21 = vunpack.i.h.bf16 %v17090_v25  ;;  %v17476_v58 = vpop.permute.xlu2 %12050  ;;  %v20972_v59 = vunpack.i.h.bf16 %v17133_v50 }
 0x623   : > { %20965 = vst [vmem:[#allocation250_spill] sm:$0xff] %v17446_v15  ;;  %12270 = vrot.lane.b32.xlu1 %v16768_v5, %s12799_s8  ;;  %12275 = vrot.lane.b32.xlu2 %v16780_v19, %s12799_s8  ;;  %v17457_v32 = vpop.f32.mrf.mxu0  ;;  %v17469_v5 = vld [vmem:[%s20464_s2 + $0x3d0] sm:$0xff]  ;;  %v20970_v19 = vunpack.i.l.bf16 %v17106_v57  ;;  %v20974_v25 = vunpack.i.l.bf16 %v17082_v47  ;;  %v20975_v57 = vunpack.i.h.bf16 %v17050_v55  ;;  %v20977_v55 = vunpack.i.l.bf16 %v17042_v24 }
 0x624   : > { %20967 = vst [vmem:[#allocation251_spill] sm:$0xff] %v17457_v32  ;;  %6704 = vmatpush.msra.mxu1 %v6661_v42  ;;  %v6655_v41 = vsel %vm6654_vm0, %v11967_v0, %v20972_v59  ;;  %v17494_v0 = vld [vmem:[#allocation4 + $0x8] sm:$0xff] }
 0x625   : > { %v6492_v42 = vsel %vm6481_vm15, %v20971_v21, %v20970_v19  ;;  %v17498_v19 = vpack.i.bf16 %v16651_v48, %v17494_v0  ;;  %v20978_v48 = vunpack.i.h.bf16 %v17033_v17  ;;  %v17528_v17 = vld [vmem:[%s20464_s2 + $0x3d8] sm:$0xff] }
 0x626   : > { %v17462_v40 = vpop.f32.mrf.mxu3  ;;  %6705 = vmatpush.msra.mxu1 %v6658_v63  ;;  %10208 = vmatmul.msk.f32.vlgmr.msrb.gmra.mxu3 %vm1008_vm9, %v17215_v22  ;;  %v6489_v22 = vsel %vm6481_vm15, %v20975_v57, %v20974_v25  ;;  %v20508_v25 = vunpack.i.l.bf16 %v17248_v38  ;;  %v20980_v57 = vunpack.i.l.bf16 %v17000_v62  ;;  %v17538_v62 = vld [vmem:[#allocation4 + $0x30] sm:$0xff] }
 0x627   : > { %20969 = vst [vmem:[#allocation252_spill] sm:$0xff] %v17462_v40  ;;  %6559 = vmatpush.msrb.mxu3 %v6492_v42  ;;  %v6486_v47 = vsel %vm6481_vm15, %v20978_v48, %v20977_v55  ;;  %v20992_v40 = vunpack.i.l.bf16 %v17137_v4 }
 0x628   : > { %v17481_v63 = vpop.f32.mrf.mxu2  ;;  %6706 = vmatpush.msra.mxu1 %v6655_v41  ;;  %10207 = vmatmul.msk.f32.gmra.mxu2 %vm1008_vm9, %v17352_v18  ;;  %v17517_v41 = vpop.permute.xlu1 %12060 }
 0x629   : > { %20973 = vst [vmem:[#allocation253_spill] sm:$0xff] %v17481_v63  ;;  %10218 = vmatmul.msk.f32.gmra.mxu0 %vm1008_vm9, %v17469_v5  ;;  %10221 = vmatmul.msk.f32.gmra.mxu1 %vm1008_vm9, %v17414_v61  ;;  %v17502_v21 = vpop.permute.xlu0 %12070 }
 0x62a   : > { %6560 = vmatpush.msrb.mxu3 %v6489_v22  ;;  %12280 = vrot.lane.b32.xlu0 %v16793_v35, %s12799_s8  ;;  %v17504_v42 = vpop.f32.mrf.mxu1  ;;  %v20981_v22 = vunpack.i.h.bf16 %v17006_v28  ;;  %v17540_v28 = vld [vmem:[#allocation4 + $0x38] sm:$0xff] }
 0x62b   : > { %20976 = vst [vmem:[#allocation254_spill] sm:$0xff] %v17504_v42  ;;  %12285 = vrot.lane.b32.xlu1 %v17498_v19, %s12800_s26  ;;  %12290 = vrot.lane.b32.xlu2 %v16657_v33, %s12800_s26  ;;  %v17515_v59 = vpop.f32.mrf.mxu0 }
 0x62c   : > { %20979 = vst [vmem:[#allocation255_spill] sm:$0xff] %v17515_v59  ;;  %6561 = vmatpush.msrb.mxu3 %v6486_v47  ;;  %v6483_v32 = vsel %vm6481_vm15, %v20981_v22, %v20980_v57  ;;  %v17548_v57 = vpop.permute.xlu2 %12065  ;;  %v17559_v22 = vld [vmem:[#allocation4 + $0x40] sm:$0xff]  ;;  %v20990_v59 = vunpack.i.h.bf16 %v17162_v54  ;;  %v10228_v54 = vld [vmem:[%s20464_s2 + $0x3e0] sm:$0xff]  ;;  %vm8935_vm15 = vcmask 711680  }
 0x62d   : > { %v17563_v48 = vpack.i.bf16 %v16679_v11, %v17559_v22 }
 0x62e   : > { %6562 = vmatpush.msrb.mxu3 %v6483_v32  ;;  %v17530_v24 = vpop.f32.mrf.mxu3  ;;  %v17544_v32 = vpack.i.bf16 %v17540_v28, %v17538_v62 }
 0x62f   : > { %20982 = vst [vmem:[#allocation256_spill] sm:$0xff] %v17530_v24  ;;  %10209 = vmatmul.msk.f32.gmra.mxu3 %vm1008_vm9, %v17262_v53  ;;  %v20984_v53 = vunpack.i.h.bf16 %v17225_v26  ;;  %v20987_v26 = vunpack.i.h.bf16 %v17195_v56  ;;  %v12038_v56 = vunpack.i.h.bf16 %v17400_v20 }
 0x630   : > { %v17534_v55 = vpop.f32.mrf.mxu2  ;;  %10224 = vmatmul.msk.f32.vlgmr.msra.gmra.mxu2 %vm1008_vm9, %v17364_v60 }
 0x631   : > { %20983 = vst [vmem:[#allocation257_spill] sm:$0xff] %v17534_v55  ;;  %10219 = vmatmul.msk.f32.gmra.mxu0 %vm1008_vm9, %v17528_v17  ;;  %10222 = vmatmul.msk.f32.gmra.mxu1 %vm1008_vm9, %v17469_v5  ;;  %v6665_v60 = vsel %vm6654_vm0, %v20984_v53, %v20508_v25  ;;  %v20986_v55 = vunpack.i.l.bf16 %v17221_v37  ;;  %v20989_v25 = vunpack.i.l.bf16 %v17176_v9 }
 0x632   : > { %6732 = vmatpush.msra.mxu2 %v6665_v60  ;;  %12295 = vrot.lane.b32.xlu0 %v17544_v32, %s12800_s26  ;;  %v17567_v47 = vpop.f32.mrf.mxu1  ;;  %v17581_v60 = vpop.permute.xlu0 %12085 }
 0x633   : > { %20985 = vst [vmem:[#allocation258_spill] sm:$0xff] %v17567_v47  ;;  %v6662_v53 = vsel %vm6654_vm0, %v20987_v26, %v20986_v55  ;;  %12300 = vrot.lane.b32.xlu1 %v17563_v48, %s12800_s26  ;;  %12305 = vrot.lane.b32.xlu2 %v17429_v16, %s12800_s26  ;;  %v17579_v11 = vpop.f32.mrf.mxu0  ;;  %v6659_v24 = vsel %vm6654_vm0, %v20990_v59, %v20989_v25  ;;  %v12037_v55 = vunpack.i.l.bf16 %v17400_v20  ;;  %v17590_v26 = vpop.permute.xlu1 %12075  ;;  %v12028_v20 = vunpack.i.h.bf16 %v17325_v7  ;;  %v17606_v25 = vld [vmem:[#allocation4 + $0x68] sm:$0xff] }
 0x634   : > { %20988 = vst [vmem:[#allocation259_spill] sm:$0xff] %v17579_v11  ;;  %6733 = vmatpush.msra.mxu2 %v6662_v53  ;;  %v20993_v53 = vunpack.i.h.bf16 %v17133_v50  ;;  %v12027_v59 = vunpack.i.l.bf16 %v17325_v7  ;;  %v12087_v15 = vunpack.i.l.bf16 %v17581_v60 }
 0x636   : > { %6734 = vmatpush.msra.mxu2 %v6659_v24  ;;  %v17592_v47 = vpop.f32.mrf.mxu3  ;;  %v6656_v63 = vsel %vm6654_vm0, %v20993_v53, %v20992_v40  ;;  %v17610_v24 = vpack.i.bf16 %v16743_v52, %v17606_v25  ;;  %v12018_v40 = vunpack.i.h.bf16 %v17308_v34  ;;  %v12017_v52 = vunpack.i.l.bf16 %v17308_v34  ;;  %v17630_v53 = vpop.permute.xlu2 %12080 }
 0x637   : > { %20991 = vst [vmem:[#allocation260_spill] sm:$0xff] %v17592_v47  ;;  %10210 = vmatmul.msk.f32.gmra.mxu3 %vm1008_vm9, %v17302_v36  ;;  %v17618_v36 = vld [vmem:[#allocation4 + $0x80] sm:$0xff]  ;;  %v12007_v47 = vunpack.i.l.bf16 %v17281_v10  ;;  %v6834_v34 = vsel %vm6827_vm1, %v12027_v59, %v12028_v20  ;;  %v20509_v59 = vunpack.i.l.bf16 %v17370_v44 }
 0x638   : > { %6735 = vmatpush.msra.mxu2 %v6656_v63  ;;  %v17612_v50 = vpop.f32.mrf.mxu2  ;;  %v17622_v7 = vpack.i.bf16 %v16776_v43, %v17618_v36  ;;  %v6837_v63 = vsel %vm6827_vm1, %v12037_v55, %v12038_v56  ;;  %v12008_v43 = vunpack.i.h.bf16 %v17281_v10  ;;  %v10229_v10 = vld [vmem:[%s20464_s2 + $0x3e8] sm:$0xff] }
 0x639   : > { %20994 = vst [vmem:[#allocation261_spill] sm:$0xff] %v17612_v50  ;;  %10223 = vmatmul.msk.f32.gmra.mxu1 %vm1008_vm9, %v17528_v17  ;;  %10225 = vmatmul.msk.f32.gmra.mxu2 %vm1008_vm9, %v17414_v61 }
 0x63a   : > { %10236 = vmatmul.msk.f32.vlgmr.msra.gmra.mxu0 %vm1008_vm9, %v10228_v54  ;;  %12310 = vrot.lane.b32.xlu0 %v17610_v24, %s12800_s26  ;;  %v17645_v42 = vpop.permute.xlu0 %12100 }
 0x63b   : > { %6876 = vmatpush.msra.mxu0 %v6837_v63  ;;  %12315 = vrot.lane.b32.xlu1 %v17622_v7, %s12800_s26  ;;  %v17634_v61 = vpop.f32.mrf.mxu0  ;;  %v17641_v55 = vpop.f32.mrf.mxu1  ;;  %v6831_v63 = vsel %vm6827_vm1, %v12017_v52, %v12018_v40  ;;  %v12103_v46 = vunpack.i.h.bf16 %v17645_v42 }
 0x63c   : > { %20995 = vst [vmem:[#allocation262_spill] sm:$0xff] %v17634_v61  ;;  %12320 = vrot.lane.b32.xlu2 %v16793_v35, %s12800_s26  ;;  %v21004_v61 = vunpack.i.l.bf16 %v17271_v39 }
 0x63d   : > { %20996 = vst [vmem:[#allocation263_spill] sm:$0xff] %v17641_v55  ;;  %6877 = vmatpush.msra.mxu0 %v6834_v34  ;;  %v17655_v55 = vpop.permute.xlu1 %12090  ;;  %v6828_v34 = vsel %vm6827_vm1, %v12007_v47, %v12008_v43 }
 0x63e   : > { %v17647_v11 = vpop.f32.mrf.mxu3  ;;  %v12093_v31 = vunpack.i.h.bf16 %v17655_v55 }
 0x63f   : > { %20997 = vst [vmem:[#allocation264_spill] sm:$0xff] %v17647_v11  ;;  %6878 = vmatpush.msra.mxu0 %v6831_v63  ;;  %10211 = vmatmul.msk.f32.gmra.mxu3 %vm1008_vm9, %v17352_v18  ;;  %v20999_v18 = vunpack.i.l.bf16 %v17376_v29  ;;  %v12003_v63 = vunpack.i.h.bf16 %v17248_v38  ;;  %v6835_v11 = vsel %vm6827_vm1, %v12028_v20, %v20509_v59  ;;  %v10230_v20 = vld [vmem:[%s20464_s2 + $0x3f0] sm:$0xff]  ;;  %v21003_v59 = vunpack.i.l.bf16 %v17248_v38 }
 0x640   : > { %v17658_v50 = vpop.f32.mrf.mxu2 }
 0x641   : > { %20998 = vst [vmem:[#allocation265_spill] sm:$0xff] %v17658_v50  ;;  %6879 = vmatpush.msra.mxu0 %v6828_v34  ;;  %10226 = vmatmul.msk.f32.gmra.mxu2 %vm1008_vm9, %v17469_v5  ;;  %v6838_v52 = vsel %vm6827_vm1, %v12038_v56, %v20999_v18  ;;  %v20510_v34 = vunpack.i.l.bf16 %v17340_v3  ;;  %v17683_v18 = vpop.permute.xlu2 %12095 }
 0x642   : > { %10237 = vmatmul.msk.f32.gmra.mxu0 %vm1008_vm9, %v10229_v10  ;;  %10240 = vmatmul.msk.f32.vlgmr.msrb.gmra.mxu1 %vm1008_vm9, %v10228_v54 }
 0x643   : > { %6905 = vmatpush.msrb.mxu1 %v6838_v52  ;;  %12325 = vrot.lane.b32.xlu0 %v17622_v7, %s12801_s16  ;;  %v17670_v47 = vpop.f32.mrf.mxu0  ;;  %v17681_v56 = vpop.f32.mrf.mxu1  ;;  %v11993_v52 = vunpack.i.h.bf16 %v17221_v37  ;;  %v6832_v5 = vsel %vm6827_vm1, %v12018_v40, %v20510_v34  ;;  %v6829_v40 = vsel %vm6827_vm1, %v12008_v43, %v21004_v61  ;;  %v21014_v34 = vunpack.i.l.bf16 %v17370_v44 }
 0x644   : > { %21000 = vst [vmem:[#allocation266_spill] sm:$0xff] %v17670_v47  ;;  %12330 = vrot.lane.b32.xlu1 %v17429_v16, %s12801_s16  ;;  %12335 = vrot.lane.b32.xlu2 %v17544_v32, %s12801_s16  ;;  %v17699_v47 = vpop.permute.xlu0 %12115 }
 0x645   : > { %21001 = vst [vmem:[#allocation267_spill] sm:$0xff] %v17681_v56  ;;  %6906 = vmatpush.msrb.mxu1 %v6835_v11  ;;  %v6666_v56 = vsel %vm6654_vm0, %v21003_v59, %v12003_v63  ;;  %v11983_v11 = vunpack.i.h.bf16 %v17176_v9  ;;  %v17709_v38 = vpop.permute.xlu1 %12105  ;;  %v21006_v59 = vunpack.i.l.bf16 %v17221_v37 }
 0x646   : > { %v17689_v50 = vpop.f32.mrf.mxu3  ;;  %v21042_v12 = vunpack.i.h.bf16 %v17709_v38 }
 0x647   : > { %21002 = vst [vmem:[#allocation268_spill] sm:$0xff] %v17689_v50  ;;  %6907 = vmatpush.msrb.mxu1 %v6832_v5  ;;  %10232 = vmatmul.msk.f32.vlgmr.msra.gmra.mxu3 %vm1008_vm9, %v10228_v54  ;;  %v11973_v54 = vunpack.i.h.bf16 %v17137_v4  ;;  %v6663_v63 = vsel %vm6654_vm0, %v21006_v59, %v11993_v52  ;;  %v21010_v52 = vunpack.i.l.bf16 %v17137_v4 }
 0x648   : > { %6761 = vmatpush.msra.mxu3 %v6666_v56  ;;  %v17704_v5 = vpop.f32.mrf.mxu2  ;;  %v12043_v56 = vunpack.i.h.bf16 %v17376_v29 }
 0x649   : > { %21005 = vst [vmem:[#allocation269_spill] sm:$0xff] %v17704_v5  ;;  %6908 = vmatpush.msrb.mxu1 %v6829_v40  ;;  %10227 = vmatmul.msk.f32.gmra.mxu2 %vm1008_vm9, %v17528_v17  ;;  %v21008_v17 = vunpack.i.l.bf16 %v17176_v9  ;;  %v6657_v40 = vsel %vm6654_vm0, %v21010_v52, %v11973_v54  ;;  %v17738_v59 = vpop.permute.xlu2 %12110  ;;  %v10231_v9 = vld [vmem:[%s20464_s2 + $0x3f8] sm:$0xff]  ;;  %v12023_v54 = vunpack.i.h.bf16 %v17340_v3  ;;  %v12053_v5 = vunpack.i.h.bf16 %v17476_v58 }
 0x64a   : > { %10238 = vmatmul.msk.f32.gmra.mxu0 %vm1008_vm9, %v10230_v20  ;;  %10241 = vmatmul.msk.f32.gmra.mxu1 %vm1008_vm9, %v10229_v10  ;;  %v21051_v51 = vunpack.i.l.bf16 %v17738_v59 }
 0x64b   : > { %6762 = vmatpush.msra.mxu3 %v6663_v63  ;;  %12340 = vrot.lane.b32.xlu0 %v17498_v19, %s12801_s16  ;;  %v17718_v61 = vpop.f32.mrf.mxu0  ;;  %v6660_v43 = vsel %vm6654_vm0, %v21008_v17, %v11983_v11  ;;  %v17727_v37 = vpop.f32.mrf.mxu1  ;;  %v12033_v63 = vunpack.i.h.bf16 %v17370_v44  ;;  %v17782_v44 = vld [vmem:[%s20464_s2 + $0x408] sm:$0xff]  ;;  %vm9108_vm0 = vcmask 703488  }
 0x64c   : > { %21007 = vst [vmem:[#allocation270_spill] sm:$0xff] %v17718_v61  ;;  %12345 = vrot.lane.b32.xlu1 %v16793_v35, %s12801_s16  ;;  %12350 = vrot.lane.b32.xlu2 %v17622_v7, %s12802_s23  ;;  %v17736_v35 = vld [vmem:[%s20464_s2 + $0x400] sm:$0xff]  ;;  %v17752_v17 = vpop.permute.xlu0 %12130  ;;  %v17909_v61 = vld [vmem:[#allocation4 + $0x98] sm:$0xff] }
 0x64d   : > { %21009 = vst [vmem:[#allocation271_spill] sm:$0xff] %v17727_v37  ;;  %6763 = vmatpush.msra.mxu3 %v6660_v43  ;;  %v21013_v43 = vunpack.i.l.bf16 %v17376_v29 }
 0x64f   : > { %6764 = vmatpush.msra.mxu3 %v6657_v40  ;;  %v17743_v11 = vpop.f32.mrf.mxu3  ;;  %v6839_v52 = vsel %vm6827_vm1, %v21013_v43, %v12043_v56  ;;  %v17762_v40 = vpop.permute.xlu1 %12120  ;;  %v21017_v43 = vunpack.i.l.bf16 %v17340_v3  ;;  %v12082_v3 = vunpack.i.l.bf16 %v17630_v53 }
 0x650   : > { %21011 = vst [vmem:[#allocation272_spill] sm:$0xff] %v17743_v11  ;;  %10233 = vmatmul.msk.f32.gmra.mxu3 %vm1008_vm9, %v10229_v10  ;;  %v17747_v4 = vpop.f32.mrf.mxu2  ;;  %v12013_v10 = vunpack.i.h.bf16 %v17271_v39  ;;  %v6836_v11 = vsel %vm6827_vm1, %v21014_v34, %v12033_v63  ;;  %v12123_v13 = vunpack.i.h.bf16 %v17762_v40 }
 0x651   : > { %21012 = vst [vmem:[#allocation273_spill] sm:$0xff] %v17747_v4  ;;  %10248 = vmatmul.msk.f32.vlgmr.msrb.gmra.mxu2 %vm1008_vm9, %v17736_v35  ;;  %v20511_v4 = vunpack.i.h.bf16 %v17590_v26  ;;  %v17792_v63 = vpop.permute.xlu2 %12125 }
 0x652   : > { %10239 = vmatmul.msk.f32.gmra.mxu0 %vm1008_vm9, %v10231_v9  ;;  %10242 = vmatmul.msk.f32.gmra.mxu1 %vm1008_vm9, %v10230_v20  ;;  %v12127_v49 = vunpack.i.l.bf16 %v17792_v63 }
 0x653   : > { %6934 = vmatpush.msrb.mxu2 %v6839_v52  ;;  %12355 = vrot.lane.b32.xlu0 %v17610_v24, %s12801_s16  ;;  %v17771_v29 = vpop.f32.mrf.mxu1  ;;  %v6833_v52 = vsel %vm6827_vm1, %v21017_v43, %v12023_v54  ;;  %v7043_v43 = vsel %vm7032_vm2, %v20511_v4, %v12082_v3 }
 0x654   : > { %12360 = vrot.lane.b32.xlu1 %v17429_v16, %s12802_s23  ;;  %12365 = vrot.lane.b32.xlu2 %v17563_v48, %s12801_s16  ;;  %21015 = vst [vmem:[#allocation274_spill] sm:$0xff] %v17771_v29  ;;  %v17773_v56 = vpop.f32.mrf.mxu0  ;;  %v21019_v48 = vunpack.i.l.bf16 %v17271_v39  ;;  %v20512_v39 = vunpack.i.h.bf16 %v17548_v57 }
 0x655   : > { %6935 = vmatpush.msrb.mxu2 %v6836_v11  ;;  %21016 = vst [vmem:[#allocation275_spill] sm:$0xff] %v17773_v56  ;;  %v12072_v11 = vunpack.i.l.bf16 %v17502_v21  ;;  %v12653_v56 = vld [vmem:[#allocation4 + $0x70] sm:$0xff] }
 0x656   : > { %v6830_v34 = vsel %vm6827_vm1, %v21019_v48, %v12013_v10  ;;  %vm9281_vm1 = vcmask 695296  }
 0x657   : > { %6936 = vmatpush.msrb.mxu2 %v6833_v52  ;;  %v17784_v16 = vpop.f32.mrf.mxu3  ;;  %v17809_v52 = vpop.permute.xlu0 %12145  ;;  %v7040_v10 = vsel %vm7032_vm2, %v20512_v39, %v12072_v11  ;;  %v17833_v39 = vld [vmem:[%s20464_s2 + $0x410] sm:$0xff] }
 0x658   : > { %21018 = vst [vmem:[#allocation276_spill] sm:$0xff] %v17784_v16  ;;  %10234 = vmatmul.msk.f32.gmra.mxu3 %vm1008_vm9, %v10230_v20  ;;  %v12062_v20 = vunpack.i.l.bf16 %v17517_v41  ;;  %v17823_v16 = vpop.permute.xlu1 %12135 }
 0x659   : > { %6937 = vmatpush.msrb.mxu2 %v6830_v34  ;;  %v17794_v54 = vpop.f32.mrf.mxu2  ;;  %v17858_v29 = vpop.permute.xlu2 %12140 }
 0x65a   : > { %21020 = vst [vmem:[#allocation277_spill] sm:$0xff] %v17794_v54  ;;  %10243 = vmatmul.msk.f32.gmra.mxu1 %vm1008_vm9, %v10231_v9  ;;  %10249 = vmatmul.msk.f32.gmra.mxu2 %vm1008_vm9, %v17782_v44  ;;  %v21023_v54 = vunpack.i.h.bf16 %v17431_v8 }
 0x65b   : > { %10256 = vmatmul.msk.f32.vlgmr.msrb.gmra.mxu0 %vm1008_vm9, %v17736_v35  ;;  %12370 = vrot.lane.b32.xlu0 %v17544_v32, %s12802_s23 }
 0x65c   : > { %7110 = vmatpush.msrb.mxu0 %v7043_v43  ;;  %12375 = vrot.lane.b32.xlu1 %v16657_v33, %s12801_s16  ;;  %v17813_v48 = vpop.f32.mrf.mxu1  ;;  %v17821_v4 = vpop.f32.mrf.mxu0  ;;  %v12052_v43 = vunpack.i.l.bf16 %v17476_v58  ;;  %v12083_v33 = vunpack.i.h.bf16 %v17630_v53  ;;  %v7037_v34 = vsel %vm7032_vm2, %v21023_v54, %v12062_v20  ;;  %v12073_v53 = vunpack.i.h.bf16 %v17502_v21  ;;  %s12803_s16 = smov 89   ;;  %v17891_v58 = vld [vmem:[%s20464_s2 + $0x418] sm:$0xff] }
 0x65d   : > { %21021 = vst [vmem:[#allocation278_spill] sm:$0xff] %v17813_v48  ;;  %12380 = vrot.lane.b32.xlu2 %v17498_v19, %s12802_s23  ;;  %v17841_v19 = vld [vmem:[%s20464_s2 + $0x420] sm:$0xff] }
 0x65e   : > { %21022 = vst [vmem:[#allocation279_spill] sm:$0xff] %v17821_v4  ;;  %7111 = vmatpush.msrb.mxu0 %v7040_v10  ;;  %v21025_v10 = vunpack.i.h.bf16 %v17442_v30  ;;  %v7044_v21 = vsel %vm7032_vm2, %v12082_v3, %v12083_v33  ;;  %v7041_v37 = vsel %vm7032_vm2, %v12072_v11, %v12073_v53  ;;  %v7035_v4 = vsel %vm7032_vm2, %v12052_v43, %v12053_v5 }
 0x65f   : > { %v17835_v48 = vpop.f32.mrf.mxu3  ;;  %v17884_v33 = vpop.permute.xlu0 %12160  ;;  %v12047_v5 = vunpack.i.l.bf16 %v17442_v30 }
 0x660   : > { %21024 = vst [vmem:[#allocation280_spill] sm:$0xff] %v17835_v48  ;;  %7112 = vmatpush.msrb.mxu0 %v7037_v34  ;;  %10235 = vmatmul.msk.f32.gmra.mxu3 %vm1008_vm9, %v10231_v9  ;;  %v7034_v54 = vsel %vm7032_vm2, %v21025_v10, %v12052_v43  ;;  %v17851_v34 = vld [vmem:[#allocation4 + $0x90] sm:$0xff]  ;;  %v12063_v48 = vunpack.i.h.bf16 %v17517_v41  ;;  %v17865_v10 = vld [vmem:[#allocation4 + $0x18] sm:$0xff]  ;;  %v17895_v53 = vpop.permute.xlu1 %12150  ;;  %v17934_v43 = vpack.i.bf16 %v17606_v25, %v17425_v1 }
 0x661   : > { %v17847_v50 = vpop.f32.mrf.mxu2  ;;  %v17855_v9 = vpack.i.bf16 %v17606_v25, %v17851_v34 }
 0x662   : > { %21026 = vst [vmem:[#allocation281_spill] sm:$0xff] %v17847_v50  ;;  %7113 = vmatpush.msrb.mxu0 %v7034_v54  ;;  %10250 = vmatmul.msk.f32.gmra.mxu2 %vm1008_vm9, %v17833_v39  ;;  %v17869_v54 = vpack.i.bf16 %v17865_v10, %v17559_v22  ;;  %v12077_v50 = vunpack.i.l.bf16 %v17590_v26 }
 0x663   : > { %10257 = vmatmul.msk.f32.gmra.mxu0 %vm1008_vm9, %v17782_v44  ;;  %10264 = vmatmul.msk.f32.vlgmr.msra.gmra.mxu1 %vm1008_vm9, %v17841_v19 }
 0x664   : > { %7139 = vmatpush.msra.mxu1 %v7044_v21  ;;  %12385 = vrot.lane.b32.xlu0 %v17855_v9, %s12802_s23  ;;  %v17874_v41 = vpop.f32.mrf.mxu1  ;;  %v17882_v3 = vpop.f32.mrf.mxu0  ;;  %v12067_v21 = vunpack.i.l.bf16 %v17548_v57 }
 0x665   : > { %21027 = vst [vmem:[#allocation282_spill] sm:$0xff] %v17874_v41  ;;  %12390 = vrot.lane.b32.xlu1 %v17869_v54, %s12802_s23  ;;  %12395 = vrot.lane.b32.xlu2 %v17622_v7, %s12803_s16  ;;  %v7038_v41 = vsel %vm7032_vm2, %v12062_v20, %v12063_v48  ;;  %v21030_v20 = vunpack.i.h.bf16 %v17590_v26  ;;  %v17918_v26 = vld [vmem:[#allocation4 + $0x58] sm:$0xff] }
 0x666   : > { %21028 = vst [vmem:[#allocation283_spill] sm:$0xff] %v17882_v3  ;;  %7140 = vmatpush.msra.mxu1 %v7041_v37  ;;  %v17902_v37 = vld [vmem:[%s20464_s2 + $0x428] sm:$0xff]  ;;  %v12057_v3 = vunpack.i.l.bf16 %v17431_v8 }
 0x667   : > { %v17893_v11 = vpop.f32.mrf.mxu3  ;;  %v7042_v48 = vsel %vm7032_vm2, %v12077_v50, %v21030_v20  ;;  %v17922_v50 = vpack.i.bf16 %v17918_v26, %v17851_v34 }
 0x668   : > { %21029 = vst [vmem:[#allocation284_spill] sm:$0xff] %v17893_v11  ;;  %7141 = vmatpush.msra.mxu1 %v7038_v41  ;;  %10252 = vmatmul.msk.f32.vlgmr.msrb.gmra.mxu3 %vm1008_vm9, %v17736_v35  ;;  %v17912_v41 = vpack.i.bf16 %v12653_v56, %v17909_v61  ;;  %v21033_v56 = vunpack.i.h.bf16 %v17548_v57  ;;  %v21035_v57 = vunpack.i.h.bf16 %v17431_v8  ;;  %v17956_v11 = vpop.permute.xlu0 %12175  ;;  %v17961_v8 = vld [vmem:[%s20464_s2 + $0x430] sm:$0xff] }
 0x669   : > { %7081 = vmatpush.msrb.mxu3 %v7042_v48  ;;  %v17914_v35 = vpop.f32.mrf.mxu2  ;;  %v17940_v48 = vpop.permute.xlu2 %12155 }
 0x66a   : > { %21031 = vst [vmem:[#allocation285_spill] sm:$0xff] %v17912_v41  ;;  %7142 = vmatpush.msra.mxu1 %v7035_v4  ;;  %10251 = vmatmul.msk.f32.gmra.mxu2 %vm1008_vm9, %v17891_v58  ;;  %v7039_v4 = vsel %vm7032_vm2, %v12067_v21, %v21033_v56  ;;  %v7036_v21 = vsel %vm7032_vm2, %v12057_v3, %v21035_v57  ;;  %v20513_v56 = vunpack.i.h.bf16 %v17699_v47  ;;  %v12097_v57 = vunpack.i.l.bf16 %v17683_v18 }
 0x66b   : > { %21032 = vst [vmem:[#allocation286_spill] sm:$0xff] %v17914_v35  ;;  %10258 = vmatmul.msk.f32.gmra.mxu0 %vm1008_vm9, %v17833_v39  ;;  %10265 = vmatmul.msk.f32.gmra.mxu1 %vm1008_vm9, %v17902_v37  ;;  %v21037_v35 = vunpack.i.h.bf16 %v17442_v30 }
 0x66c   : > { %7082 = vmatpush.msrb.mxu3 %v7039_v4  ;;  %12400 = vrot.lane.b32.xlu0 %v17922_v50, %s12803_s16  ;;  %v17938_v20 = vpop.f32.mrf.mxu1  ;;  %v17949_v25 = vpop.f32.mrf.mxu0  ;;  %v12117_v4 = vunpack.i.l.bf16 %v17699_v47 }
 0x66d   : > { %21034 = vst [vmem:[#allocation287_spill] sm:$0xff] %v17938_v20  ;;  %12405 = vrot.lane.b32.xlu1 %v17934_v43, %s12803_s16  ;;  %12410 = vrot.lane.b32.xlu2 %v17912_v41, %s12802_s23  ;;  %v7033_v20 = vsel %vm7032_vm2, %v12047_v5, %v21037_v35  ;;  %v17971_v35 = vpop.permute.xlu1 %12165  ;;  %v17977_v5 = vpack.i.bf16 %v17494_v0, %v17559_v22 }
 0x66e   : > { %21036 = vst [vmem:[#allocation288_spill] sm:$0xff] %v17949_v25  ;;  %7083 = vmatpush.msrb.mxu3 %v7036_v21  ;;  %v12107_v21 = vunpack.i.l.bf16 %v17709_v38  ;;  %v17988_v25 = vld [vmem:[#allocation4 + $0x10] sm:$0xff] }
 0x66f   : > { %21040 = vst [vmem:[#allocation291_spill] sm:$0xff] %v17977_v5 }
 0x670   : > { %7084 = vmatpush.msrb.mxu3 %v7033_v20  ;;  %v17963_v3 = vpop.f32.mrf.mxu3 }
 0x671   : > { %21038 = vst [vmem:[#allocation289_spill] sm:$0xff] %v17963_v3  ;;  %10253 = vmatmul.msk.f32.gmra.mxu3 %vm1008_vm9, %v17782_v44  ;;  %v17969_v30 = vpop.f32.mrf.mxu2  ;;  %v7215_v44 = vsel %vm7205_vm3, %v12117_v4, %v20513_v56  ;;  %v7212_v4 = vsel %vm7205_vm3, %v12107_v21, %v21042_v12  ;;  %v18009_v56 = vpop.permute.xlu2 %12170  ;;  %v18019_v12 = vld [vmem:[%s20464_s2 + $0x438] sm:$0xff] }
 0x672   : > { %21039 = vst [vmem:[#allocation290_spill] sm:$0xff] %v17969_v30  ;;  %10268 = vmatmul.msk.f32.vlgmr.msra.gmra.mxu2 %vm1008_vm9, %v17841_v19  ;;  %v17992_v30 = vpack.i.bf16 %v17865_v10, %v17988_v25 }
 0x673   : > { %10259 = vmatmul.msk.f32.gmra.mxu0 %vm1008_vm9, %v17891_v58  ;;  %10266 = vmatmul.msk.f32.gmra.mxu1 %vm1008_vm9, %v17961_v8 }
 0x674   : > { %7254 = vmatpush.msra.mxu2 %v7215_v44  ;;  %12415 = vrot.lane.b32.xlu0 %v17544_v32, %s12803_s16  ;;  %v17996_v20 = vpop.f32.mrf.mxu1 }
 0x675   : > { %21041 = vst [vmem:[#allocation292_spill] sm:$0xff] %v17996_v20  ;;  %12420 = vrot.lane.b32.xlu1 %v17977_v5, %s12803_s16  ;;  %12425 = vrot.lane.b32.xlu2 %v17992_v30, %s12803_s16  ;;  %v18007_v44 = vpop.f32.mrf.mxu0  ;;  %v21044_v20 = vunpack.i.h.bf16 %v17683_v18  ;;  %v18053_v27 = vpop.permute.xlu1 %12180  ;;  %v21059_v5 = vunpack.i.h.bf16 %v17809_v52 }
 0x676   : > { %21043 = vst [vmem:[#allocation293_spill] sm:$0xff] %v18007_v44  ;;  %7255 = vmatpush.msra.mxu2 %v7212_v4  ;;  %v21046_v4 = vunpack.i.h.bf16 %v17581_v60 }
 0x677   : > { %v7209_v3 = vsel %vm7205_vm3, %v12097_v57, %v21044_v20  ;;  %v18031_v57 = vld [vmem:[%s20464_s2 + $0x440] sm:$0xff]  ;;  %v18035_v20 = vld [vmem:[#allocation4 + $0x48] sm:$0xff] }
 0x678   : > { %7256 = vmatpush.msra.mxu2 %v7209_v3  ;;  %v18021_v21 = vpop.f32.mrf.mxu3  ;;  %v7206_v44 = vsel %vm7205_vm3, %v12087_v15, %v21046_v4  ;;  %v18033_v3 = vld [vmem:[#allocation4 + $0x20] sm:$0xff]  ;;  %v18043_v4 = vpop.permute.xlu0 %12190  ;;  %v21049_v15 = vunpack.i.l.bf16 %v17762_v40 }
 0x679   : > { %21045 = vst [vmem:[#allocation294_spill] sm:$0xff] %v18021_v21  ;;  %10254 = vmatmul.msk.f32.gmra.mxu3 %vm1008_vm9, %v17833_v39  ;;  %v18039_v6 = vpack.i.bf16 %v18033_v3, %v18035_v20  ;;  %v12113_v21 = vunpack.i.h.bf16 %v17738_v59  ;;  %v18082_v23 = vpop.permute.xlu2 %12185 }
 0x67a   : > { %7257 = vmatpush.msra.mxu2 %v7206_v44  ;;  %v18045_v39 = vpop.f32.mrf.mxu2  ;;  %v7217_v44 = vsel %vm7205_vm3, %v21049_v15, %v12123_v13  ;;  %v21055_v15 = vunpack.i.l.bf16 %v17655_v55 }
 0x67b   : > { %21047 = vst [vmem:[#allocation295_spill] sm:$0xff] %v18039_v6  ;;  %10267 = vmatmul.msk.f32.gmra.mxu1 %vm1008_vm9, %v18019_v12  ;;  %10269 = vmatmul.msk.f32.gmra.mxu2 %vm1008_vm9, %v17902_v37  ;;  %v7214_v2 = vsel %vm7205_vm3, %v21051_v51, %v12113_v21  ;;  %v18089_v51 = vld [vmem:[%s20464_s2 + $0x448] sm:$0xff]  ;;  %v12147_v21 = vunpack.i.l.bf16 %v17809_v52 }
 0x67c   : > { %21048 = vst [vmem:[#allocation296_spill] sm:$0xff] %v18045_v39  ;;  %10280 = vmatmul.msk.f32.vlgmr.msra.gmra.mxu0 %vm1008_vm9, %v18031_v57  ;;  %12430 = vrot.lane.b32.xlu0 %v17912_v41, %s12803_s16 }
 0x67d   : > { %7312 = vmatpush.msra.mxu0 %v7217_v44  ;;  %12435 = vrot.lane.b32.xlu1 %v18039_v6, %s12802_s23  ;;  %v18064_v39 = vpop.f32.mrf.mxu0  ;;  %v18073_v13 = vpop.f32.mrf.mxu1  ;;  %v12157_v44 = vunpack.i.l.bf16 %v17940_v48  ;;  %v7385_v41 = vsel %vm7378_vm5, %v12147_v21, %v21059_v5  ;;  %v18142_v5 = vld [vmem:[%s20464_s2 + $0x450] sm:$0xff]  ;;  %v21062_v21 = vunpack.i.l.bf16 %v17762_v40  ;;  %v12459_v40 = vpack.i.bf16 %v17559_v22, %v17540_v28 }
 0x67e   : > { %21050 = vst [vmem:[#allocation297_spill] sm:$0xff] %v18064_v39  ;;  %12440 = vrot.lane.b32.xlu2 %v18039_v6, %s12803_s16  ;;  %v21053_v39 = vunpack.i.l.bf16 %v17645_v42  ;;  %v18122_v6 = vpop.permute.xlu1 %12195 }
 0x67f   : > { %21052 = vst [vmem:[#allocation298_spill] sm:$0xff] %v18073_v13  ;;  %7313 = vmatpush.msra.mxu0 %v7214_v2 }
 0x680   : > { %v7211_v14 = vsel %vm7205_vm3, %v21053_v39, %v12103_v46  ;;  %v18080_v45 = vpop.f32.mrf.mxu3  ;;  %v7208_v46 = vsel %vm7205_vm3, %v21055_v15, %v12093_v31  ;;  %v18106_v13 = vpop.permute.xlu0 %12205  ;;  %v21057_v31 = vunpack.i.h.bf16 %v17940_v48 }
 0x681   : > { %21054 = vst [vmem:[#allocation299_spill] sm:$0xff] %v18080_v45  ;;  %7314 = vmatpush.msra.mxu0 %v7211_v14  ;;  %10255 = vmatmul.msk.f32.gmra.mxu3 %vm1008_vm9, %v17891_v58  ;;  %v18100_v14 = vld [vmem:[#allocation4 + $0x88] sm:$0xff]  ;;  %v12137_v45 = vunpack.i.l.bf16 %v17823_v16 }
 0x682   : > { %v18096_v39 = vpop.f32.mrf.mxu2  ;;  %v12444_v58 = vpack.i.bf16 %v17851_v34, %v18100_v14  ;;  %v7388_v15 = vsel %vm7378_vm5, %v12157_v44, %v21057_v31 }
 0x683   : > { %21056 = vst [vmem:[#allocation300_spill] sm:$0xff] %v18096_v39  ;;  %7315 = vmatpush.msra.mxu0 %v7208_v46  ;;  %10270 = vmatmul.msk.f32.gmra.mxu2 %vm1008_vm9, %v17961_v8  ;;  %v12449_v46 = vpack.i.bf16 %v17425_v1, %v17909_v61  ;;  %v12128_v39 = vunpack.i.h.bf16 %v17792_v63  ;;  %v12178_v63 = vunpack.i.h.bf16 %v17956_v11 }
 0x684   : > { %10281 = vmatmul.msk.f32.gmra.mxu0 %vm1008_vm9, %v18089_v51  ;;  %10284 = vmatmul.msk.f32.vlgmr.msrb.gmra.mxu1 %vm1008_vm9, %v18031_v57 }
 0x685   : > { %7427 = vmatpush.msrb.mxu1 %v7388_v15  ;;  %12445 = vrot.lane.b32.xlu0 %v12444_v58, %s12804_s10  ;;  %v18118_v2 = vpop.f32.mrf.mxu0  ;;  %v18130_v44 = vpop.f32.mrf.mxu1  ;;  %v21060_v58 = vunpack.i.h.bf16 %v17823_v16 }
 0x686   : > { %21058 = vst [vmem:[#allocation301_spill] sm:$0xff] %v18118_v2  ;;  %12450 = vrot.lane.b32.xlu1 %v12449_v46, %s12804_s10  ;;  %12455 = vrot.lane.b32.xlu2 %v17610_v24, %s12804_s10  ;;  %v21063_v46 = vunpack.i.h.bf16 %v17699_v47  ;;  %v21066_v47 = vunpack.i.h.bf16 %v17709_v38  ;;  %v21069_v38 = vunpack.i.h.bf16 %v17683_v18 }
 0x687   : > { %7428 = vmatpush.msrb.mxu1 %v7385_v41  ;;  %v7382_v31 = vsel %vm7378_vm5, %v12137_v45, %v21060_v58  ;;  %v7379_v45 = vsel %vm7378_vm5, %v12127_v49, %v12128_v39  ;;  %v21065_v49 = vunpack.i.l.bf16 %v17738_v59  ;;  %v21068_v59 = vunpack.i.l.bf16 %v17645_v42  ;;  %v18197_v42 = vld [vmem:[%s20464_s2 + $0x458] sm:$0xff] }
 0x688   : > { %v18135_v15 = vpop.f32.mrf.mxu3  ;;  %v7216_v41 = vsel %vm7205_vm3, %v21063_v46, %v21062_v21  ;;  %v12464_v21 = vpack.i.bf16 %v17618_v36, %v18035_v20  ;;  %v18174_v28 = vpop.permute.xlu0 %12220 }
 0x689   : > { %21061 = vst [vmem:[#allocation302_spill] sm:$0xff] %v18135_v15  ;;  %7429 = vmatpush.msrb.mxu1 %v7382_v31  ;;  %10272 = vmatmul.msk.f32.vlgmr.msra.gmra.mxu3 %vm1008_vm9, %v17841_v19  ;;  %v18154_v31 = vpop.permute.xlu2 %12200  ;;  %v7213_v19 = vsel %vm7205_vm3, %v21066_v47, %v21065_v49  ;;  %v18187_v49 = vpop.permute.xlu1 %12210  ;;  %v21070_v47 = vunpack.i.l.bf16 %v17655_v55  ;;  %v21074_v55 = vunpack.i.h.bf16 %v17940_v48 }
 0x68a   : > { %7283 = vmatpush.msra.mxu3 %v7216_v41  ;;  %v18152_v58 = vpop.f32.mrf.mxu2  ;;  %v7210_v41 = vsel %vm7205_vm3, %v21069_v38, %v21068_v59  ;;  %v20519_v59 = vunpack.i.l.bf16 %v17895_v53 }
 0x68b   : > { %21064 = vst [vmem:[#allocation303_spill] sm:$0xff] %v18152_v58  ;;  %7430 = vmatpush.msrb.mxu1 %v7379_v45  ;;  %10271 = vmatmul.msk.f32.gmra.mxu2 %vm1008_vm9, %v18019_v12 }
 0x68c   : > { %10282 = vmatmul.msk.f32.gmra.mxu0 %vm1008_vm9, %v18142_v5  ;;  %10285 = vmatmul.msk.f32.gmra.mxu1 %vm1008_vm9, %v18089_v51 }
 0x68d   : > { %7284 = vmatpush.msra.mxu3 %v7213_v19  ;;  %12460 = vrot.lane.b32.xlu0 %v12459_v40, %s12804_s10  ;;  %v18172_v46 = vpop.f32.mrf.mxu0  ;;  %v18184_v45 = vpop.f32.mrf.mxu1  ;;  %v20520_v40 = vunpack.i.l.bf16 %v17884_v33  ;;  %v21071_v19 = vunpack.i.h.bf16 %v17581_v60  ;;  %v12474_v60 = vpack.i.bf16 %v17918_v26, %v18033_v3 }
 0x68e   : > { %21067 = vst [vmem:[#allocation304_spill] sm:$0xff] %v18172_v46  ;;  %12465 = vrot.lane.b32.xlu1 %v12464_v21, %s12804_s10  ;;  %12470 = vrot.lane.b32.xlu2 %v17992_v30, %s12804_s10 }
 0x68f   : > { %7285 = vmatpush.msra.mxu3 %v7210_v41  ;;  %v7207_v21 = vsel %vm7205_vm3, %v21071_v19, %v21070_v47  ;;  %v12484_v41 = vpack.i.bf16 %v17494_v0, %v17538_v62  ;;  %v20522_v19 = vunpack.i.l.bf16 %v17752_v17 }
 0x691   : > { %7286 = vmatpush.msra.mxu3 %v7207_v21  ;;  %v18199_v18 = vpop.f32.mrf.mxu3  ;;  %v18221_v47 = vpop.permute.xlu2 %12215  ;;  %v21075_v21 = vunpack.i.h.bf16 %v17809_v52 }
 0x692   : > { %21072 = vst [vmem:[#allocation305_spill] sm:$0xff] %v18199_v18  ;;  %10273 = vmatmul.msk.f32.gmra.mxu3 %vm1008_vm9, %v17902_v37  ;;  %v18204_v38 = vpop.f32.mrf.mxu2  ;;  %v7389_v37 = vsel %vm7378_vm5, %v21074_v55, %v20520_v40  ;;  %v18238_v55 = vpop.permute.xlu0 %12235  ;;  %v21193_v18 = vld [vmem:[#allocation31_spill] sm:$0xff] }
 0x693   : > { %21073 = vst [vmem:[#allocation306_spill] sm:$0xff] %v18204_v38  ;;  %10288 = vmatmul.msk.f32.vlgmr.msrb.gmra.mxu2 %vm1008_vm9, %v18031_v57  ;;  %v20521_v57 = vunpack.i.l.bf16 %v17858_v29  ;;  %v7386_v48 = vsel %vm7378_vm5, %v21075_v21, %v20519_v59  ;;  %v12198_v21 = vunpack.i.h.bf16 %v18122_v6  ;;  %v12197_v59 = vunpack.i.l.bf16 %v18122_v6  ;;  %v21191_v38 = vld [vmem:[#allocation24_spill] sm:$0xff] }
 0x694   : > { %10283 = vmatmul.msk.f32.gmra.mxu0 %vm1008_vm9, %v18197_v42  ;;  %10286 = vmatmul.msk.f32.gmra.mxu1 %vm1008_vm9, %v18142_v5  ;;  %v12188_v6 = vunpack.i.h.bf16 %v18082_v23 }
 0x695   : > { %7456 = vmatpush.msrb.mxu2 %v7389_v37  ;;  %12475 = vrot.lane.b32.xlu0 %v12474_v60, %s12804_s10  ;;  %v18234_v62 = vpop.f32.mrf.mxu1  ;;  %v21077_v37 = vunpack.i.h.bf16 %v17823_v16  ;;  %v10292_v16 = vld [vmem:[%s20464_s2 + $0x460] sm:$0xff] }
 0x696   : > { %12480 = vrot.lane.b32.xlu1 %v17622_v7, %s12805_s12  ;;  %12485 = vrot.lane.b32.xlu2 %v12484_v41, %s12804_s10  ;;  %21076 = vst [vmem:[#allocation307_spill] sm:$0xff] %v18234_v62  ;;  %v18236_v60 = vpop.f32.mrf.mxu0  ;;  %v18249_v41 = vpop.permute.xlu1 %12225  ;;  %s12696_s10 = scalar_lea.hbm %s20467_s5, 192 }
 0x697   : > { %7457 = vmatpush.msrb.mxu2 %v7386_v48  ;;  %v7383_v52 = vsel %vm7378_vm5, %v21077_v37, %v20521_v57  ;;  %v7380_v48 = vsel %vm7378_vm5, %v12128_v39, %v20522_v19  ;;  %v12187_v37 = vunpack.i.l.bf16 %v18082_v23  ;;  %v7561_v23 = vsel %vm7551_vm7, %v12197_v59, %v12198_v21 }
 0x698   : > { %v12163_v19 = vunpack.i.h.bf16 %v17884_v33 }
 0x699   : > { %7458 = vmatpush.msrb.mxu2 %v7383_v52  ;;  %v18247_v40 = vpop.f32.mrf.mxu3  ;;  %v18265_v52 = vpack.i.bf16 %v17425_v1, %v17918_v26  ;;  %v18281_v1 = vpack.i.bf16 %v17988_v25, %v17494_v0  ;;  %v18289_v39 = vpop.permute.xlu2 %12230  ;;  %v7558_v59 = vsel %vm7551_vm7, %v12187_v37, %v12188_v6  ;;  %v20523_v37 = vunpack.i.l.bf16 %v18154_v31 }
 0x69a   : > { %21078 = vst [vmem:[#allocation308_spill] sm:$0xff] %v18247_v40  ;;  %10274 = vmatmul.msk.f32.gmra.mxu3 %vm1008_vm9, %v17961_v8  ;;  %v12177_v8 = vunpack.i.l.bf16 %v17956_v11  ;;  %v12167_v11 = vunpack.i.l.bf16 %v17971_v35 }
 0x69b   : > { %7459 = vmatpush.msrb.mxu2 %v7380_v48  ;;  %v18267_v57 = vpop.f32.mrf.mxu2 }
 0x69c   : > { %21079 = vst [vmem:[#allocation309_spill] sm:$0xff] %v18267_v57  ;;  %10287 = vmatmul.msk.f32.gmra.mxu1 %vm1008_vm9, %v18197_v42  ;;  %10289 = vmatmul.msk.f32.gmra.mxu2 %vm1008_vm9, %v18089_v51  ;;  %v12168_v51 = vunpack.i.h.bf16 %v17971_v35  ;;  %v7555_v0 = vsel %vm7551_vm7, %v12177_v8, %v12178_v63  ;;  %v10293_v35 = vld [vmem:[%s20464_s2 + $0x468] sm:$0xff]  ;;  %v21190_v57 = vld [vmem:[#allocation8_spill] sm:$0xff] }
 0x69d   : > { %10300 = vmatmul.msk.f32.vlgmr.msrb.gmra.mxu0 %vm1008_vm9, %v10292_v16  ;;  %12490 = vrot.lane.b32.xlu0 %v18265_v52, %s12805_s12 }
 0x69e   : > { %7600 = vmatpush.msrb.mxu0 %v7561_v23  ;;  %12495 = vrot.lane.b32.xlu1 %v17544_v32, %s12805_s12  ;;  %v18285_v26 = vpop.f32.mrf.mxu1  ;;  %v18294_v48 = vpop.f32.mrf.mxu0 }
 0x69f   : > { %21080 = vst [vmem:[#allocation310_spill] sm:$0xff] %v18285_v26  ;;  %12500 = vrot.lane.b32.xlu2 %v18281_v1, %s12805_s12  ;;  %v18299_v23 = vpop.permute.xlu0 %12250  ;;  %v18311_v8 = vpop.permute.xlu1 %12240  ;;  %v21184_v26 = vld [vmem:[#allocation19_spill] sm:$0xff] }
 0x6a0   : > { %7601 = vmatpush.msrb.mxu0 %v7558_v59  ;;  %v7552_v59 = vsel %vm7551_vm7, %v12167_v11, %v12168_v51  ;;  %v7562_v11 = vsel %vm7551_vm7, %v12198_v21, %v20523_v37  ;;  %v12172_v21 = vunpack.i.l.bf16 %v18009_v56  ;;  %v12143_v37 = vunpack.i.h.bf16 %v17858_v29 }
 0x6a1   : > { %v18297_v25 = vpop.f32.mrf.mxu3 }
 0x6a2   : > { %21081 = vst [vmem:[#allocation311_spill] sm:$0xff] %v18297_v25  ;;  %7602 = vmatpush.msrb.mxu0 %v7555_v0  ;;  %10275 = vmatmul.msk.f32.gmra.mxu3 %vm1008_vm9, %v18019_v12  ;;  %v12504_v12 = vpack.i.bf16 %v17909_v61, %v17851_v34  ;;  %v12182_v0 = vunpack.i.l.bf16 %v18053_v27  ;;  %v7553_v2 = vsel %vm7551_vm7, %v12168_v51, %v12172_v21 }
 0x6a3   : > { %v18309_v46 = vpop.f32.mrf.mxu2  ;;  %v12524_v51 = vpack.i.bf16 %v18035_v20, %v17559_v22  ;;  %v12203_v22 = vunpack.i.h.bf16 %v18154_v31  ;;  %v21092_v20 = vunpack.i.l.bf16 %v17752_v17 }
 0x6a4   : > { %21082 = vst [vmem:[#allocation312_spill] sm:$0xff] %v18309_v46  ;;  %7603 = vmatpush.msrb.mxu0 %v7552_v59  ;;  %10290 = vmatmul.msk.f32.gmra.mxu2 %vm1008_vm9, %v18142_v5  ;;  %v21084_v5 = vunpack.i.l.bf16 %v18043_v4 }
 0x6a5   : > { %10301 = vmatmul.msk.f32.gmra.mxu0 %vm1008_vm9, %v10293_v35  ;;  %10304 = vmatmul.msk.f32.vlgmr.msra.gmra.mxu1 %vm1008_vm9, %v10292_v16 }
 0x6a6   : > { %7629 = vmatpush.msra.mxu1 %v7562_v11  ;;  %12505 = vrot.lane.b32.xlu0 %v12504_v12, %s12805_s12  ;;  %v18325_v59 = vpop.f32.mrf.mxu1  ;;  %v7559_v61 = vsel %vm7551_vm7, %v12188_v6, %v21084_v5  ;;  %v18334_v34 = vpop.f32.mrf.mxu0  ;;  %v12153_v12 = vunpack.i.h.bf16 %v17895_v53  ;;  %v7556_v6 = vsel %vm7551_vm7, %v12178_v63, %v12182_v0 }
 0x6a7   : > { %21083 = vst [vmem:[#allocation313_spill] sm:$0xff] %v18325_v59  ;;  %12510 = vrot.lane.b32.xlu1 %v17622_v7, %s12806_s13  ;;  %12515 = vrot.lane.b32.xlu2 %v17610_v24, %s12805_s12  ;;  %v18338_v11 = vpop.permute.xlu2 %12245  ;;  %v10294_v24 = vld [vmem:[%s20464_s2 + $0x470] sm:$0xff]  ;;  %v21086_v7 = vunpack.i.l.bf16 %v17884_v33  ;;  %v21088_v33 = vunpack.i.l.bf16 %v17895_v53  ;;  %v21090_v53 = vunpack.i.l.bf16 %v17858_v29  ;;  %v10295_v29 = vld [vmem:[%s20464_s2 + $0x478] sm:$0xff] }
 0x6a8   : > { %7630 = vmatpush.msra.mxu1 %v7559_v61 }
 0x6a9   : > { %v18343_v5 = vpop.f32.mrf.mxu3  ;;  %v7390_v61 = vsel %vm7378_vm5, %v21086_v7, %v12163_v19  ;;  %v7387_v19 = vsel %vm7378_vm5, %v21088_v33, %v12153_v12  ;;  %v18370_v7 = vpop.permute.xlu1 %12255  ;;  %v12193_v33 = vunpack.i.h.bf16 %v18043_v4 }
 0x6aa   : > { %21085 = vst [vmem:[#allocation314_spill] sm:$0xff] %v18343_v5  ;;  %7631 = vmatpush.msra.mxu1 %v7556_v6  ;;  %10296 = vmatmul.msk.f32.vlgmr.msrb.gmra.mxu3 %vm1008_vm9, %v10292_v16  ;;  %v18358_v6 = vpop.permute.xlu0 %12265  ;;  %v12133_v16 = vunpack.i.h.bf16 %v17752_v17 }
 0x6ab   : > { %7485 = vmatpush.msrb.mxu3 %v7390_v61  ;;  %v18356_v63 = vpop.f32.mrf.mxu2  ;;  %v18391_v61 = vld [vmem:[%s20464_s2 + $0x480] sm:$0xff] }
 0x6ac   : > { %21087 = vst [vmem:[#allocation315_spill] sm:$0xff] %v18356_v63  ;;  %7632 = vmatpush.msra.mxu1 %v7553_v2  ;;  %10291 = vmatmul.msk.f32.gmra.mxu2 %vm1008_vm9, %v18197_v42  ;;  %v7384_v42 = vsel %vm7378_vm5, %v21090_v53, %v12143_v37  ;;  %v21095_v53 = vunpack.i.l.bf16 %v18154_v31 }
 0x6ad   : > { %10302 = vmatmul.msk.f32.gmra.mxu0 %vm1008_vm9, %v10294_v24  ;;  %10305 = vmatmul.msk.f32.gmra.mxu1 %vm1008_vm9, %v10293_v35 }
 0x6ae   : > { %7486 = vmatpush.msrb.mxu3 %v7387_v19  ;;  %12520 = vrot.lane.b32.xlu0 %v18265_v52, %s12806_s13  ;;  %v18374_v2 = vpop.f32.mrf.mxu1  ;;  %v18382_v12 = vpop.f32.mrf.mxu0  ;;  %v7381_v52 = vsel %vm7378_vm5, %v21092_v20, %v12133_v16  ;;  %v12534_v16 = vpack.i.bf16 %v18033_v3, %v17865_v10  ;;  %v21097_v10 = vunpack.i.l.bf16 %v18043_v4  ;;  %v12242_v4 = vunpack.i.l.bf16 %v18311_v8 }
 0x6af   : > { %21089 = vst [vmem:[#allocation316_spill] sm:$0xff] %v18374_v2  ;;  %12525 = vrot.lane.b32.xlu1 %v12524_v51, %s12805_s12  ;;  %12530 = vrot.lane.b32.xlu2 %v17544_v32, %s12806_s13  ;;  %v18399_v19 = vpop.permute.xlu2 %12260  ;;  %v12183_v51 = vunpack.i.h.bf16 %v18053_v27  ;;  %v20525_v27 = vunpack.i.h.bf16 %v18249_v41 }
 0x6b0   : > { %21091 = vst [vmem:[#allocation317_spill] sm:$0xff] %v18382_v12  ;;  %7487 = vmatpush.msrb.mxu3 %v7384_v42  ;;  %v7563_v42 = vsel %vm7551_vm7, %v21095_v53, %v12203_v22  ;;  %v7560_v3 = vsel %vm7551_vm7, %v21097_v10, %v12193_v33  ;;  %v20524_v53 = vunpack.i.h.bf16 %v18238_v55  ;;  %v12212_v10 = vunpack.i.l.bf16 %v18187_v49  ;;  %v21192_v12 = vld [vmem:[#allocation11_spill] sm:$0xff] }
 0x6b1   : > { %v18429_v22 = vpop.permute.xlu1 %12270  ;;  %v1259_v15 = vadd.f32 %v21193_v18, %v21192_v12  ;;  %v21195_v12 = vld [vmem:[#allocation22_spill] sm:$0xff] }
 0x6b2   : > { %7488 = vmatpush.msrb.mxu3 %v7381_v52  ;;  %v18396_v37 = vpop.f32.mrf.mxu3  ;;  %v18414_v20 = vpop.permute.xlu0 %12280  ;;  %v12173_v52 = vunpack.i.h.bf16 %v18009_v56  ;;  %v12554_v56 = vpack.i.bf16 %v18100_v14, %v17618_v36  ;;  %v12218_v36 = vunpack.i.h.bf16 %v18221_v47 }
 0x6b3   : > { %21093 = vst [vmem:[#allocation318_spill] sm:$0xff] %v18396_v37  ;;  %10297 = vmatmul.msk.f32.gmra.mxu3 %vm1008_vm9, %v10293_v35  ;;  %v18402_v17 = vpop.f32.mrf.mxu2  ;;  %v12282_v37 = vunpack.i.l.bf16 %v18414_v20 }
 0x6b4   : > { %21094 = vst [vmem:[#allocation319_spill] sm:$0xff] %v18402_v17  ;;  %10312 = vmatmul.msk.f32.vlgmr.msra.gmra.mxu2 %vm1008_vm9, %v18391_v61  ;;  %v7554_v33 = vsel %vm7551_vm7, %v12172_v21, %v12173_v52  ;;  %v12232_v21 = vunpack.i.l.bf16 %v18289_v39 }
 0x6b5   : > { %10303 = vmatmul.msk.f32.gmra.mxu0 %vm1008_vm9, %v10295_v29  ;;  %10306 = vmatmul.msk.f32.gmra.mxu1 %vm1008_vm9, %v10294_v24 }
 0x6b6   : > { %7658 = vmatpush.msra.mxu2 %v7563_v42  ;;  %12535 = vrot.lane.b32.xlu0 %v12534_v16, %s12805_s12  ;;  %v18417_v35 = vpop.f32.mrf.mxu1  ;;  %v7557_v16 = vsel %vm7551_vm7, %v12182_v0, %v12183_v51  ;;  %v7735_v42 = vsel %vm7724_vm8, %v20524_v53, %v12242_v4  ;;  %s12807_s12 = smov 85   ;;  %v18488_v53 = vld [vmem:[%s20464_s2 + $0x490] sm:$0xff] }
 0x6b7   : > { %21096 = vst [vmem:[#allocation320_spill] sm:$0xff] %v18417_v35  ;;  %12540 = vrot.lane.b32.xlu1 %v18281_v1, %s12806_s13  ;;  %12545 = vrot.lane.b32.xlu2 %v17855_v9, %s12806_s13  ;;  %v18427_v31 = vpop.f32.mrf.mxu0  ;;  %v18439_v1 = vld [vmem:[%s20464_s2 + $0x488] sm:$0xff]  ;;  %v18450_v51 = vpop.permute.xlu2 %12275 }
 0x6b8   : > { %21098 = vst [vmem:[#allocation321_spill] sm:$0xff] %v18427_v31  ;;  %7659 = vmatpush.msra.mxu2 %v7560_v3 }
 0x6ba   : > { %7660 = vmatpush.msra.mxu2 %v7557_v16  ;;  %v18441_v9 = vpop.f32.mrf.mxu3  ;;  %v18472_v3 = vpop.permute.xlu0 %12295  ;;  %v7732_v16 = vsel %vm7724_vm8, %v20525_v27, %v12232_v21 }
 0x6bb   : > { %21099 = vst [vmem:[#allocation322_spill] sm:$0xff] %v18441_v9  ;;  %10298 = vmatmul.msk.f32.gmra.mxu3 %vm1008_vm9, %v10294_v24  ;;  %v12222_v24 = vunpack.i.l.bf16 %v18174_v28 }
 0x6bc   : > { %7661 = vmatpush.msra.mxu2 %v7554_v33  ;;  %v18448_v0 = vpop.f32.mrf.mxu2  ;;  %v12243_v33 = vunpack.i.h.bf16 %v18311_v8  ;;  %v12233_v8 = vunpack.i.h.bf16 %v18289_v39 }
 0x6bd   : > { %21100 = vst [vmem:[#allocation323_spill] sm:$0xff] %v18448_v0  ;;  %10307 = vmatmul.msk.f32.gmra.mxu1 %vm1008_vm9, %v10295_v29  ;;  %10313 = vmatmul.msk.f32.gmra.mxu2 %vm1008_vm9, %v18439_v1 }
 0x6be   : > { %10320 = vmatmul.msk.f32.vlgmr.msra.gmra.mxu0 %vm1008_vm9, %v18391_v61  ;;  %12550 = vrot.lane.b32.xlu0 %v17869_v54, %s12806_s13  ;;  %v7736_v39 = vsel %vm7724_vm8, %v12242_v4, %v12243_v33  ;;  %v12227_v33 = vunpack.i.l.bf16 %v18249_v41 }
 0x6bf   : > { %7802 = vmatpush.msra.mxu0 %v7735_v42  ;;  %12555 = vrot.lane.b32.xlu1 %v12554_v56, %s12807_s12  ;;  %v18467_v52 = vpop.f32.mrf.mxu0  ;;  %v18479_v54 = vpop.f32.mrf.mxu1  ;;  %v7729_v42 = vsel %vm7724_vm8, %v12218_v36, %v12222_v24 }
 0x6c0   : > { %21101 = vst [vmem:[#allocation324_spill] sm:$0xff] %v18467_v52  ;;  %12560 = vrot.lane.b32.xlu2 %v17922_v50, %s12807_s12  ;;  %v18482_v56 = vpop.permute.xlu1 %12285  ;;  %v18496_v50 = vld [vmem:[%s20464_s2 + $0x4a0] sm:$0xff] }
 0x6c1   : > { %21102 = vst [vmem:[#allocation325_spill] sm:$0xff] %v18479_v54  ;;  %7803 = vmatpush.msra.mxu0 %v7732_v16  ;;  %v21104_v16 = vunpack.i.h.bf16 %v18106_v13  ;;  %v12252_v54 = vunpack.i.l.bf16 %v18299_v23  ;;  %v12288_v63 = vunpack.i.h.bf16 %v18482_v56  ;;  %v12287_v25 = vunpack.i.l.bf16 %v18482_v56 }
 0x6c2   : > { %v18490_v14 = vpop.f32.mrf.mxu3  ;;  %v21127_v56 = vunpack.i.h.bf16 %v18450_v51 }
 0x6c3   : > { %21103 = vst [vmem:[#allocation326_spill] sm:$0xff] %v18490_v14  ;;  %7804 = vmatpush.msra.mxu0 %v7729_v42  ;;  %10299 = vmatmul.msk.f32.gmra.mxu3 %vm1008_vm9, %v10295_v29  ;;  %v7726_v27 = vsel %vm7724_vm8, %v21104_v16, %v12212_v10  ;;  %v12223_v42 = vunpack.i.h.bf16 %v18174_v28  ;;  %v12237_v29 = vunpack.i.l.bf16 %v18238_v55  ;;  %v18513_v14 = vpop.permute.xlu2 %12290  ;;  %v12213_v28 = vunpack.i.h.bf16 %v18187_v49  ;;  %v18534_v49 = vld [vmem:[%s20464_s2 + $0x498] sm:$0xff] }
 0x6c4   : > { %v18502_v9 = vpop.f32.mrf.mxu2  ;;  %v7733_v16 = vsel %vm7724_vm8, %v12232_v21, %v12233_v8  ;;  %v21109_v8 = vunpack.i.h.bf16 %v18238_v55 }
 0x6c5   : > { %21105 = vst [vmem:[#allocation327_spill] sm:$0xff] %v18502_v9  ;;  %7805 = vmatpush.msra.mxu0 %v7726_v27  ;;  %10314 = vmatmul.msk.f32.gmra.mxu2 %vm1008_vm9, %v18488_v53  ;;  %v21107_v9 = vld [vmem:[#allocation285_spill] sm:$0xff] }
 0x6c6   : > { %10321 = vmatmul.msk.f32.gmra.mxu0 %vm1008_vm9, %v18439_v1  ;;  %10328 = vmatmul.msk.f32.vlgmr.msrb.gmra.mxu1 %vm1008_vm9, %v18496_v50 }
 0x6c7   : > { %7831 = vmatpush.msrb.mxu1 %v7736_v39  ;;  %12565 = vrot.lane.b32.xlu0 %v17934_v43, %s12807_s12  ;;  %v18517_v27 = vpop.f32.mrf.mxu0  ;;  %v18525_v4 = vpop.f32.mrf.mxu1  ;;  %v7730_v43 = vsel %vm7724_vm8, %v12222_v24, %v12223_v42  ;;  %v7734_v24 = vsel %vm7724_vm8, %v12237_v29, %v21109_v8  ;;  %v12217_v42 = vunpack.i.l.bf16 %v18221_v47  ;;  %v21111_v47 = vunpack.i.h.bf16 %v18249_v41 }
 0x6c8   : > { %21106 = vst [vmem:[#allocation328_spill] sm:$0xff] %v18517_v27  ;;  %12570 = vrot.lane.b32.xlu1 %v21107_v9, %s12806_s13  ;;  %12575 = vrot.lane.b32.xlu2 %v17544_v32, %s12807_s12  ;;  %v18528_v39 = vpop.permute.xlu0 %12310  ;;  %v18543_v32 = vld [vmem:[%s20464_s2 + $0x4a8] sm:$0xff]  ;;  %v20526_v41 = vunpack.i.h.bf16 %v18450_v51 }
 0x6c9   : > { %21108 = vst [vmem:[#allocation285_spill] sm:$0xff] %v18525_v4  ;;  %7832 = vmatpush.msrb.mxu1 %v7733_v16  ;;  %v18549_v16 = vpop.permute.xlu1 %12300  ;;  %v7727_v4 = vsel %vm7724_vm8, %v12212_v10, %v12213_v28  ;;  %v7731_v55 = vsel %vm7724_vm8, %v12227_v33, %v21111_v47  ;;  %v21112_v10 = vld [vmem:[#allocation291_spill] sm:$0xff]  ;;  %v7728_v28 = vsel %vm7724_vm8, %v12217_v42, %v12218_v36  ;;  %v12277_v33 = vunpack.i.l.bf16 %v18450_v51 }
 0x6ca   : > { %v18536_v21 = vpop.f32.mrf.mxu3  ;;  %v20527_v36 = vunpack.i.h.bf16 %v18358_v6  ;;  %v12267_v42 = vunpack.i.l.bf16 %v18358_v6  ;;  %v21129_v51 = vunpack.i.h.bf16 %v18358_v6  ;;  %v18756_v6 = vld [vmem:[%s20464_s2 + $0x4d8] sm:$0xff] }
 0x6cb   : > { %7833 = vmatpush.msrb.mxu1 %v7730_v43  ;;  %10316 = vmatmul.msk.f32.vlgmr.msra.gmra.mxu3 %vm1008_vm9, %v18391_v61  ;;  %v12207_v61 = vunpack.i.l.bf16 %v18106_v13  ;;  %v18575_v8 = vpop.permute.xlu2 %12305 }
 0x6cc   : > { %7773 = vmatpush.msra.mxu3 %v7734_v24  ;;  %v18552_v43 = vpop.f32.mrf.mxu2  ;;  %v21115_v24 = vunpack.i.h.bf16 %v18106_v13 }
 0x6cd   : > { %21110 = vst [vmem:[#allocation329_spill] sm:$0xff] %v18552_v43  ;;  %7834 = vmatpush.msrb.mxu1 %v7727_v4  ;;  %10315 = vmatmul.msk.f32.gmra.mxu2 %vm1008_vm9, %v18534_v49  ;;  %v7904_v43 = vsel %vm7897_vm10, %v12267_v42, %v20527_v36  ;;  %v18633_v42 = vld [vmem:[%s20464_s2 + $0x4b8] sm:$0xff] }
 0x6ce   : > { %10322 = vmatmul.msk.f32.gmra.mxu0 %vm1008_vm9, %v18488_v53  ;;  %10329 = vmatmul.msk.f32.gmra.mxu1 %vm1008_vm9, %v18543_v32  ;;  %v7725_v47 = vsel %vm7724_vm8, %v12207_v61, %v21115_v24  ;;  %v21116_v24 = vld [vmem:[#allocation295_spill] sm:$0xff]  ;;  %v12247_v61 = vunpack.i.l.bf16 %v18338_v11 }
 0x6cf   : > { %7774 = vmatpush.msra.mxu3 %v7731_v55  ;;  %12580 = vrot.lane.b32.xlu0 %v21112_v10, %s12807_s12  ;;  %v18566_v29 = vpop.f32.mrf.mxu0  ;;  %v18573_v4 = vpop.f32.mrf.mxu1  ;;  %v12257_v10 = vunpack.i.l.bf16 %v18370_v7 }
 0x6d0   : > { %21113 = vst [vmem:[#allocation291_spill] sm:$0xff] %v18566_v29  ;;  %12585 = vrot.lane.b32.xlu1 %v17992_v30, %s12807_s12  ;;  %12590 = vrot.lane.b32.xlu2 %v21107_v9, %s12807_s12  ;;  %v18585_v30 = vld [vmem:[%s20464_s2 + $0x4b0] sm:$0xff]  ;;  %v18591_v55 = vpop.permute.xlu0 %12325 }
 0x6d1   : > { %21114 = vst [vmem:[#allocation330_spill] sm:$0xff] %v18573_v4  ;;  %7775 = vmatpush.msra.mxu3 %v7728_v28  ;;  %v18601_v28 = vpop.permute.xlu1 %12315 }
 0x6d2   : > { %v12317_v29 = vunpack.i.l.bf16 %v18601_v28 }
 0x6d3   : > { %7776 = vmatpush.msra.mxu3 %v7725_v47  ;;  %v18587_v9 = vpop.f32.mrf.mxu3  ;;  %v12283_v47 = vunpack.i.h.bf16 %v18414_v20  ;;  %v12273_v20 = vunpack.i.h.bf16 %v18429_v22 }
 0x6d4   : > { %10317 = vmatmul.msk.f32.gmra.mxu3 %vm1008_vm9, %v18439_v1  ;;  %v18595_v13 = vpop.f32.mrf.mxu2  ;;  %v7907_v1 = vsel %vm7897_vm10, %v12277_v33, %v20526_v41  ;;  %v21119_v33 = vunpack.i.h.bf16 %v18370_v7  ;;  %v18626_v41 = vpop.permute.xlu2 %12320 }
 0x6d5   : > { %10332 = vmatmul.msk.f32.vlgmr.msrb.gmra.mxu2 %vm1008_vm9, %v18496_v50 }
 0x6d6   : > { %10323 = vmatmul.msk.f32.gmra.mxu0 %vm1008_vm9, %v18534_v49  ;;  %10330 = vmatmul.msk.f32.gmra.mxu1 %vm1008_vm9, %v18585_v30 }
 0x6d7   : > { %7946 = vmatpush.msrb.mxu2 %v7907_v1  ;;  %12595 = vrot.lane.b32.xlu0 %v21116_v24, %s12806_s13  ;;  %v18619_v4 = vpop.f32.mrf.mxu1  ;;  %v7901_v1 = vsel %vm7897_vm10, %v12257_v10, %v21119_v33  ;;  %v18645_v10 = vld [vmem:[%s20464_s2 + $0x4c0] sm:$0xff]  ;;  %v12272_v33 = vunpack.i.l.bf16 %v18429_v22  ;;  %v7909_v22 = vsel %vm7897_vm10, %v12282_v37, %v12283_v47 }
 0x6d8   : > { %12600 = vrot.lane.b32.xlu1 %v21116_v24, %s12807_s12  ;;  %21117 = vst [vmem:[#allocation295_spill] sm:$0xff] %v18619_v4  ;;  %v18621_v0 = vpop.f32.mrf.mxu0  ;;  %v18651_v4 = vpop.permute.xlu0 %12340 }
 0x6d9   : > { %7947 = vmatpush.msrb.mxu2 %v7904_v43  ;;  %21118 = vst [vmem:[#allocation331_spill] sm:$0xff] %v18621_v0  ;;  %v21120_v43 = vunpack.i.h.bf16 %v18338_v11  ;;  %v12253_v0 = vunpack.i.h.bf16 %v18299_v23  ;;  %v7906_v17 = vsel %vm7897_vm10, %v12272_v33, %v12273_v20  ;;  %v18681_v23 = vld [vmem:[%s20464_s2 + $0x4c8] sm:$0xff]  ;;  %v12308_v20 = vunpack.i.h.bf16 %v18575_v8 }
 0x6db   : > { %7948 = vmatpush.msrb.mxu2 %v7901_v1  ;;  %v18635_v24 = vpop.f32.mrf.mxu3  ;;  %v7898_v36 = vsel %vm7897_vm10, %v12247_v61, %v21120_v43  ;;  %v12262_v61 = vunpack.i.l.bf16 %v18399_v19 }
 0x6dc   : > { %10318 = vmatmul.msk.f32.gmra.mxu3 %vm1008_vm9, %v18488_v53  ;;  %v12263_v53 = vunpack.i.h.bf16 %v18399_v19  ;;  %v7900_v19 = vsel %vm7897_vm10, %v12252_v54, %v12253_v0 }
 0x6dd   : > { %7949 = vmatpush.msrb.mxu2 %v7898_v36  ;;  %v18649_v1 = vpop.f32.mrf.mxu2  ;;  %v18662_v36 = vpop.permute.xlu1 %12330 }
 0x6de   : > { %10331 = vmatmul.msk.f32.gmra.mxu1 %vm1008_vm9, %v18633_v42  ;;  %10333 = vmatmul.msk.f32.gmra.mxu2 %vm1008_vm9, %v18543_v32  ;;  %v7903_v47 = vsel %vm7897_vm10, %v12262_v61, %v12263_v53 }
 0x6df   : > { %10344 = vmatmul.msk.f32.vlgmr.msrb.gmra.mxu0 %vm1008_vm9, %v18645_v10 }
 0x6e0   : > { %8004 = vmatpush.msrb.mxu0 %v7909_v22  ;;  %v18664_v43 = vpop.f32.mrf.mxu1  ;;  %v18669_v5 = vpop.f32.mrf.mxu0 }
 0x6e1   : > { %21121 = vst [vmem:[#allocation332_spill] sm:$0xff] %v18669_v5  ;;  %v18685_v22 = vpop.permute.xlu2 %12335  ;;  %v18701_v5 = vpop.permute.xlu0 %12355 }
 0x6e2   : > { %8005 = vmatpush.msrb.mxu0 %v7906_v17  ;;  %v12307_v17 = vunpack.i.l.bf16 %v18575_v8  ;;  %v21124_v8 = vunpack.i.h.bf16 %v18601_v28 }
 0x6e3   : > { %v18674_v35 = vpop.f32.mrf.mxu3 }
 0x6e4   : > { %21122 = vst [vmem:[#allocation333_spill] sm:$0xff] %v18674_v35  ;;  %8006 = vmatpush.msrb.mxu0 %v7903_v47  ;;  %10319 = vmatmul.msk.f32.gmra.mxu3 %vm1008_vm9, %v18534_v49  ;;  %v12298_v49 = vunpack.i.h.bf16 %v18472_v3  ;;  %v12297_v47 = vunpack.i.l.bf16 %v18472_v3  ;;  %v8080_v0 = vsel %vm8070_vm11, %v12317_v29, %v21124_v8  ;;  %v8077_v3 = vsel %vm8070_vm11, %v12307_v17, %v12308_v20  ;;  %v18720_v29 = vld [vmem:[%s20464_s2 + $0x4d0] sm:$0xff] }
 0x6e5   : > { %v18688_v53 = vpop.f32.mrf.mxu2  ;;  %v18710_v2 = vpop.permute.xlu1 %12345  ;;  %v7908_v17 = vsel %vm7897_vm10, %v21127_v56, %v12282_v37  ;;  %v8071_v8 = vsel %vm8070_vm11, %v12287_v25, %v12288_v63  ;;  %v7905_v37 = vsel %vm7897_vm10, %v21129_v51, %v12272_v33  ;;  %v20528_v33 = vunpack.i.l.bf16 %v18626_v41 }
 0x6e6   : > { %21123 = vst [vmem:[#allocation334_spill] sm:$0xff] %v18688_v53  ;;  %8007 = vmatpush.msrb.mxu0 %v7900_v19  ;;  %10334 = vmatmul.msk.f32.gmra.mxu2 %vm1008_vm9, %v18585_v30  ;;  %v8074_v46 = vsel %vm8070_vm11, %v12297_v47, %v12298_v49  ;;  %v21136_v51 = vunpack.i.h.bf16 %v18601_v28 }
 0x6e7   : > { %10345 = vmatmul.msk.f32.gmra.mxu0 %vm1008_vm9, %v18681_v23  ;;  %10348 = vmatmul.msk.f32.vlgmr.msra.gmra.mxu1 %vm1008_vm9, %v18645_v10 }
 0x6e8   : > { %8119 = vmatpush.msra.mxu1 %v8080_v0  ;;  %v18703_v19 = vpop.f32.mrf.mxu1  ;;  %v18708_v27 = vpop.f32.mrf.mxu0 }
 0x6e9   : > { %21125 = vst [vmem:[#allocation335_spill] sm:$0xff] %v18708_v27  ;;  %v18746_v56 = vpop.permute.xlu0 %12370 }
 0x6ea   : > { %8120 = vmatpush.msra.mxu1 %v8077_v3 }
 0x6eb   : > { %v18713_v40 = vpop.f32.mrf.mxu3 }
 0x6ec   : > { %21126 = vst [vmem:[#allocation336_spill] sm:$0xff] %v18713_v40  ;;  %8121 = vmatpush.msra.mxu1 %v8074_v46  ;;  %10336 = vmatmul.msk.f32.vlgmr.msrb.gmra.mxu3 %vm1008_vm9, %v18496_v50  ;;  %v18730_v46 = vpop.permute.xlu2 %12350  ;;  %v21131_v50 = vunpack.i.h.bf16 %v18370_v7 }
 0x6ed   : > { %7975 = vmatpush.msrb.mxu3 %v7908_v17  ;;  %v18726_v0 = vpop.f32.mrf.mxu2  ;;  %v21133_v17 = vunpack.i.h.bf16 %v18338_v11  ;;  %v18751_v27 = vpop.permute.xlu1 %12360 }
 0x6ee   : > { %21128 = vst [vmem:[#allocation337_spill] sm:$0xff] %v18726_v0  ;;  %8122 = vmatpush.msra.mxu1 %v8071_v8  ;;  %10335 = vmatmul.msk.f32.gmra.mxu2 %vm1008_vm9, %v18633_v42  ;;  %v7902_v47 = vsel %vm7897_vm10, %v21131_v50, %v12262_v61  ;;  %v20531_v61 = vunpack.i.l.bf16 %v18528_v39 }
 0x6ef   : > { %10346 = vmatmul.msk.f32.gmra.mxu0 %vm1008_vm9, %v18720_v29  ;;  %10349 = vmatmul.msk.f32.gmra.mxu1 %vm1008_vm9, %v18681_v23  ;;  %v7899_v8 = vsel %vm7897_vm10, %v21133_v17, %v12252_v54  ;;  %v20529_v54 = vunpack.i.l.bf16 %v18549_v16  ;;  %v20530_v17 = vunpack.i.l.bf16 %v18513_v14 }
 0x6f0   : > { %7976 = vmatpush.msrb.mxu3 %v7905_v37  ;;  %v18739_v25 = vpop.f32.mrf.mxu1  ;;  %v18744_v3 = vpop.f32.mrf.mxu0  ;;  %v8081_v37 = vsel %vm8070_vm11, %v21136_v51, %v20528_v33  ;;  %v12327_v51 = vunpack.i.l.bf16 %v18591_v55 }
 0x6f1   : > { %21130 = vst [vmem:[#allocation338_spill] sm:$0xff] %v18739_v25  ;;  %v8075_v28 = vsel %vm8070_vm11, %v12298_v49, %v20529_v54  ;;  %v10356_v49 = vld [vmem:[%s20464_s2 + $0x4e0] sm:$0xff]  ;;  %v21200_v25 = vld [vmem:[#allocation28_spill] sm:$0xff] }
 0x6f2   : > { %21132 = vst [vmem:[#allocation339_spill] sm:$0xff] %v18744_v3  ;;  %7977 = vmatpush.msrb.mxu3 %v7902_v47 }
 0x6f4   : > { %7978 = vmatpush.msrb.mxu3 %v7899_v8  ;;  %v18758_v7 = vpop.f32.mrf.mxu3  ;;  %v18780_v50 = vpop.permute.xlu2 %12365  ;;  %v12328_v8 = vunpack.i.h.bf16 %v18591_v55  ;;  %v12332_v55 = vunpack.i.l.bf16 %v18662_v36 }
 0x6f5   : > { %21134 = vst [vmem:[#allocation340_spill] sm:$0xff] %v18758_v7  ;;  %10337 = vmatmul.msk.f32.gmra.mxu3 %vm1008_vm9, %v18543_v32  ;;  %v18764_v11 = vpop.f32.mrf.mxu2  ;;  %v18807_v54 = vpop.permute.xlu1 %12375 }
 0x6f6   : > { %21135 = vst [vmem:[#allocation341_spill] sm:$0xff] %v18764_v11  ;;  %10352 = vmatmul.msk.f32.vlgmr.msra.gmra.mxu2 %vm1008_vm9, %v18645_v10  ;;  %v8078_v10 = vsel %vm8070_vm11, %v12308_v20, %v20531_v61  ;;  %v8072_v20 = vsel %vm8070_vm11, %v12288_v63, %v20530_v17  ;;  %v12338_v63 = vunpack.i.h.bf16 %v18685_v22  ;;  %v12342_v61 = vunpack.i.l.bf16 %v18651_v4 }
 0x6f7   : > { %10347 = vmatmul.msk.f32.gmra.mxu0 %vm1008_vm9, %v18756_v6  ;;  %10350 = vmatmul.msk.f32.gmra.mxu1 %vm1008_vm9, %v18720_v29 }
 0x6f8   : > { %8148 = vmatpush.msra.mxu2 %v8081_v37  ;;  %v18778_v32 = vpop.f32.mrf.mxu1  ;;  %v18793_v37 = vpop.permute.xlu0 %12385 }
 0x6f9   : > { %21137 = vst [vmem:[#allocation342_spill] sm:$0xff] %v18778_v32  ;;  %v18785_v47 = vpop.f32.mrf.mxu0  ;;  %v12362_v32 = vunpack.i.l.bf16 %v18751_v27 }
 0x6fa   : > { %21138 = vst [vmem:[#allocation343_spill] sm:$0xff] %v18785_v47  ;;  %8149 = vmatpush.msra.mxu2 %v8078_v10  ;;  %v12333_v10 = vunpack.i.h.bf16 %v18662_v36  ;;  %v8253_v36 = vsel %vm8243_vm12, %v12327_v51, %v12328_v8  ;;  %v12357_v51 = vunpack.i.l.bf16 %v18701_v5 }
 0x6fc   : > { %8150 = vmatpush.msra.mxu2 %v8075_v28  ;;  %v18795_v33 = vpop.f32.mrf.mxu3  ;;  %v8250_v3 = vsel %vm8243_vm12, %v12332_v55, %v12333_v10 }
 0x6fd   : > { %21139 = vst [vmem:[#allocation344_spill] sm:$0xff] %v18795_v33  ;;  %10338 = vmatmul.msk.f32.gmra.mxu3 %vm1008_vm9, %v18585_v30  ;;  %v12337_v30 = vunpack.i.l.bf16 %v18685_v22  ;;  %v20532_v22 = vunpack.i.l.bf16 %v18710_v2 }
 0x6fe   : > { %8151 = vmatpush.msra.mxu2 %v8072_v20  ;;  %v18809_v28 = vpop.f32.mrf.mxu2  ;;  %v12343_v20 = vunpack.i.h.bf16 %v18651_v4  ;;  %v10357_v4 = vld [vmem:[%s20464_s2 + $0x4e8] sm:$0xff] }
 0x6ff   : > { %21140 = vst [vmem:[#allocation345_spill] sm:$0xff] %v18809_v28  ;;  %10351 = vmatmul.msk.f32.gmra.mxu1 %vm1008_vm9, %v18756_v6  ;;  %10353 = vmatmul.msk.f32.gmra.mxu2 %vm1008_vm9, %v18681_v23  ;;  %v18826_v23 = vpop.permute.xlu2 %12380  ;;  %v8247_v28 = vsel %vm8243_vm12, %v12337_v30, %v12338_v63  ;;  %v18846_v30 = vpop.permute.xlu1 %12390 }
 0x700   : > { %10364 = vmatmul.msk.f32.vlgmr.msra.gmra.mxu0 %vm1008_vm9, %v10356_v49  ;;  %v18838_v55 = vpop.permute.xlu0 %12400 }
 0x701   : > { %8292 = vmatpush.msra.mxu0 %v8253_v36  ;;  %v18819_v17 = vpop.f32.mrf.mxu0  ;;  %v18824_v33 = vpop.f32.mrf.mxu1 }
 0x702   : > { %21141 = vst [vmem:[#allocation346_spill] sm:$0xff] %v18824_v33  ;;  %v12313_v33 = vunpack.i.h.bf16 %v18528_v39 }
 0x703   : > { %8293 = vmatpush.msra.mxu0 %v8250_v3  ;;  %v8244_v3 = vsel %vm8243_vm12, %v12342_v61, %v12343_v20  ;;  %v12323_v61 = vunpack.i.h.bf16 %v18626_v41 }
 0x704   : > { %v18830_v11 = vpop.f32.mrf.mxu3 }
 0x705   : > { %21142 = vst [vmem:[#allocation347_spill] sm:$0xff] %v18830_v11  ;;  %8294 = vmatpush.msra.mxu0 %v8247_v28  ;;  %10339 = vmatmul.msk.f32.gmra.mxu3 %vm1008_vm9, %v18633_v42  ;;  %v12367_v28 = vunpack.i.l.bf16 %v18780_v50  ;;  %v8254_v42 = vsel %vm8243_vm12, %v12328_v8, %v20532_v22  ;;  %v10358_v8 = vld [vmem:[%s20464_s2 + $0x4f0] sm:$0xff] }
 0x706   : > { %v18841_v36 = vpop.f32.mrf.mxu2 }
 0x707   : > { %21143 = vst [vmem:[#allocation348_spill] sm:$0xff] %v18841_v36  ;;  %8295 = vmatpush.msra.mxu0 %v8244_v3  ;;  %10354 = vmatmul.msk.f32.gmra.mxu2 %vm1008_vm9, %v18720_v29  ;;  %v12377_v3 = vunpack.i.l.bf16 %v18807_v54  ;;  %v8251_v29 = vsel %vm8243_vm12, %v12333_v10, %v12357_v51  ;;  %v8248_v7 = vsel %vm8243_vm12, %v12338_v63, %v12367_v28  ;;  %v18864_v52 = vpop.permute.xlu2 %12395  ;;  %v21147_v10 = vunpack.i.l.bf16 %v18626_v41 }
 0x708   : > { %10365 = vmatmul.msk.f32.gmra.mxu0 %vm1008_vm9, %v10357_v4  ;;  %10368 = vmatmul.msk.f32.vlgmr.msrb.gmra.mxu1 %vm1008_vm9, %v10356_v49  ;;  %v21149_v41 = vunpack.i.l.bf16 %v18528_v39 }
 0x709   : > { %8321 = vmatpush.msrb.mxu1 %v8254_v42  ;;  %v18854_v11 = vpop.f32.mrf.mxu0  ;;  %v18858_v36 = vpop.f32.mrf.mxu1  ;;  %v8082_v42 = vsel %vm8070_vm11, %v21147_v10, %v12323_v61  ;;  %v8245_v22 = vsel %vm8243_vm12, %v12343_v20, %v12377_v3 }
 0x70a   : > { %21144 = vst [vmem:[#allocation349_spill] sm:$0xff] %v18854_v11  ;;  %v8079_v61 = vsel %vm8070_vm11, %v21149_v41, %v12313_v33  ;;  %v18889_v10 = vpop.permute.xlu1 %12405  ;;  %v18903_v33 = vld [vmem:[%s20464_s2 + $0x500] sm:$0xff]  ;;  %v12358_v41 = vunpack.i.h.bf16 %v18701_v5  ;;  %v12378_v5 = vunpack.i.h.bf16 %v18807_v54  ;;  %v1253_v11 = vadd.f32 %v21191_v38, %v21190_v57  ;;  %v21194_v38 = vld [vmem:[#allocation20_spill] sm:$0xff] }
 0x70b   : > { %21145 = vst [vmem:[#allocation350_spill] sm:$0xff] %v18858_v36  ;;  %8322 = vmatpush.msrb.mxu1 %v8251_v29  ;;  %v12303_v29 = vunpack.i.h.bf16 %v18549_v16 }
 0x70c   : > { %v18862_v40 = vpop.f32.mrf.mxu3 }
 0x70d   : > { %21146 = vst [vmem:[#allocation351_spill] sm:$0xff] %v18862_v40  ;;  %8323 = vmatpush.msrb.mxu1 %v8248_v7  ;;  %10360 = vmatmul.msk.f32.vlgmr.msra.gmra.mxu3 %vm1008_vm9, %v10356_v49  ;;  %v12293_v7 = vunpack.i.h.bf16 %v18513_v14  ;;  %v18880_v49 = vpop.permute.xlu0 %12415  ;;  %v12348_v40 = vunpack.i.h.bf16 %v18710_v2 }
 0x70e   : > { %8177 = vmatpush.msra.mxu3 %v8082_v42  ;;  %v18875_v63 = vpop.f32.mrf.mxu2 }
 0x70f   : > { %21148 = vst [vmem:[#allocation352_spill] sm:$0xff] %v18875_v63  ;;  %8324 = vmatpush.msrb.mxu1 %v8245_v22  ;;  %10355 = vmatmul.msk.f32.gmra.mxu2 %vm1008_vm9, %v18756_v6  ;;  %v21151_v22 = vunpack.i.l.bf16 %v18549_v16  ;;  %v21153_v63 = vunpack.i.l.bf16 %v18513_v14  ;;  %v10359_v16 = vld [vmem:[%s20464_s2 + $0x4f8] sm:$0xff]  ;;  %v18914_v14 = vpop.permute.xlu2 %12410 }
 0x710   : > { %10366 = vmatmul.msk.f32.gmra.mxu0 %vm1008_vm9, %v10358_v8  ;;  %10369 = vmatmul.msk.f32.gmra.mxu1 %vm1008_vm9, %v10357_v4 }
 0x711   : > { %8178 = vmatpush.msra.mxu3 %v8079_v61  ;;  %v18887_v20 = vpop.f32.mrf.mxu0  ;;  %v8076_v6 = vsel %vm8070_vm11, %v21151_v22, %v12303_v29  ;;  %v18894_v42 = vpop.f32.mrf.mxu1  ;;  %v8073_v39 = vsel %vm8070_vm11, %v21153_v63, %v12293_v7  ;;  %v12368_v63 = vunpack.i.h.bf16 %v18780_v50  ;;  %v21156_v7 = vunpack.i.l.bf16 %v18710_v2 }
 0x712   : > { %21150 = vst [vmem:[#allocation353_spill] sm:$0xff] %v18887_v20  ;;  %v18932_v50 = vpop.permute.xlu1 %12420  ;;  %v12387_v2 = vunpack.i.l.bf16 %v18793_v37 }
 0x713   : > { %21152 = vst [vmem:[#allocation354_spill] sm:$0xff] %v18894_v42  ;;  %8179 = vmatpush.msra.mxu3 %v8076_v6  ;;  %v8255_v22 = vsel %vm8243_vm12, %v21156_v7, %v12348_v40  ;;  %v8252_v6 = vsel %vm8243_vm12, %v12357_v51, %v12358_v41  ;;  %v18939_v40 = vld [vmem:[%s20464_s2 + $0x508] sm:$0xff]  ;;  %v8246_v51 = vsel %vm8243_vm12, %v12377_v3, %v12378_v5  ;;  %v12353_v41 = vunpack.i.h.bf16 %v18730_v46 }
 0x714   : > { %v12388_v7 = vunpack.i.h.bf16 %v18793_v37  ;;  %v12392_v3 = vunpack.i.l.bf16 %v18846_v30  ;;  %v12393_v5 = vunpack.i.h.bf16 %v18846_v30 }
 0x715   : > { %8180 = vmatpush.msra.mxu3 %v8073_v39  ;;  %v18908_v29 = vpop.f32.mrf.mxu3  ;;  %v8427_v37 = vsel %vm8416_vm4, %v12353_v41, %v12387_v2 }
 0x716   : > { %21154 = vst [vmem:[#allocation355_spill] sm:$0xff] %v18908_v29  ;;  %10361 = vmatmul.msk.f32.gmra.mxu3 %vm1008_vm9, %v10357_v4  ;;  %v18912_v61 = vpop.f32.mrf.mxu2  ;;  %v18925_v4 = vpop.permute.xlu0 %12430 }
 0x717   : > { %21155 = vst [vmem:[#allocation356_spill] sm:$0xff] %v18912_v61  ;;  %10376 = vmatmul.msk.f32.vlgmr.msrb.gmra.mxu2 %vm1008_vm9, %v18903_v33  ;;  %v8249_v61 = vsel %vm8243_vm12, %v12367_v28, %v12368_v63  ;;  %v18953_v63 = vpop.permute.xlu2 %12425 }
 0x718   : > { %10367 = vmatmul.msk.f32.gmra.mxu0 %vm1008_vm9, %v10359_v16  ;;  %10370 = vmatmul.msk.f32.gmra.mxu1 %vm1008_vm9, %v10358_v8 }
 0x719   : > { %8350 = vmatpush.msrb.mxu2 %v8255_v22  ;;  %v18928_v39 = vpop.f32.mrf.mxu1  ;;  %v12373_v22 = vunpack.i.h.bf16 %v18746_v56 }
 0x71a   : > { %21157 = vst [vmem:[#allocation357_spill] sm:$0xff] %v18928_v39  ;;  %v18930_v29 = vpop.f32.mrf.mxu0  ;;  %v12412_v39 = vunpack.i.l.bf16 %v18914_v14  ;;  %v12436_v30 = vpop.permute.xlu1 %12435 }
 0x71b   : > { %8351 = vmatpush.msrb.mxu2 %v8252_v6  ;;  %21158 = vst [vmem:[#allocation358_spill] sm:$0xff] %v18930_v29  ;;  %v8421_v42 = vsel %vm8416_vm4, %v12373_v22, %v12392_v3 }
 0x71d   : > { %8352 = vmatpush.msrb.mxu2 %v8249_v61  ;;  %v18941_v54 = vpop.f32.mrf.mxu3  ;;  %v12363_v61 = vunpack.i.h.bf16 %v18751_v27 }
 0x71e   : > { %21159 = vst [vmem:[#allocation359_spill] sm:$0xff] %v18941_v54  ;;  %10362 = vmatmul.msk.f32.gmra.mxu3 %vm1008_vm9, %v10358_v8  ;;  %v18966_v54 = vpop.permute.xlu0 %12445 }
 0x71f   : > { %8353 = vmatpush.msrb.mxu2 %v8246_v51  ;;  %v18947_v28 = vpop.f32.mrf.mxu2  ;;  %v8424_v6 = vsel %vm8416_vm4, %v12363_v61, %v12388_v7  ;;  %v18998_v20 = vpop.permute.xlu2 %12440 }
 0x720   : > { %21160 = vst [vmem:[#allocation360_spill] sm:$0xff] %v18947_v28  ;;  %10371 = vmatmul.msk.f32.gmra.mxu1 %vm1008_vm9, %v10359_v16  ;;  %10377 = vmatmul.msk.f32.gmra.mxu2 %vm1008_vm9, %v18939_v40  ;;  %v12383_v28 = vunpack.i.h.bf16 %v18826_v23  ;;  %v12443_v53 = vunpack.i.h.bf16 %v18998_v20 }
 0x721   : > { %10384 = vmatmul.msk.f32.vlgmr.msrb.gmra.mxu0 %vm1008_vm9, %v18903_v33 }
 0x722   : > { %8494 = vmatpush.msrb.mxu0 %v8427_v37  ;;  %v18959_v8 = vpop.f32.mrf.mxu1  ;;  %v18964_v51 = vpop.f32.mrf.mxu0  ;;  %v18974_v37 = vld [vmem:[%s20464_s2 + $0x510] sm:$0xff]  ;;  %v8418_v29 = vsel %vm8416_vm4, %v12383_v28, %v12393_v5 }
 0x723   : > { %21161 = vst [vmem:[#allocation361_spill] sm:$0xff] %v18959_v8 }
 0x724   : > { %21162 = vst [vmem:[#allocation362_spill] sm:$0xff] %v18964_v51  ;;  %8495 = vmatpush.msrb.mxu0 %v8424_v6  ;;  %v18982_v6 = vld [vmem:[%s20464_s2 + $0x520] sm:$0xff]  ;;  %v12413_v51 = vunpack.i.h.bf16 %v18914_v14 }
 0x725   : > { %v18976_v8 = vpop.f32.mrf.mxu3 }
 0x726   : > { %21163 = vst [vmem:[#allocation363_spill] sm:$0xff] %v18976_v8  ;;  %8496 = vmatpush.msrb.mxu0 %v8421_v42  ;;  %10363 = vmatmul.msk.f32.gmra.mxu3 %vm1008_vm9, %v10359_v16  ;;  %v12437_v8 = vunpack.i.l.bf16 %v12436_v30  ;;  %v8428_v42 = vsel %vm8416_vm4, %v12387_v2, %v12412_v39  ;;  %v12352_v16 = vunpack.i.l.bf16 %v18730_v46  ;;  %v19008_v39 = vld [vmem:[%s20464_s2 + $0x518] sm:$0xff]  ;;  %v19012_v2 = vpop.permute.xlu0 %12460 }
 0x727   : > { %v18986_v36 = vpop.f32.mrf.mxu2 }
 0x728   : > { %21164 = vst [vmem:[#allocation364_spill] sm:$0xff] %v18986_v36  ;;  %8497 = vmatpush.msrb.mxu0 %v8418_v29  ;;  %10378 = vmatmul.msk.f32.gmra.mxu2 %vm1008_vm9, %v18974_v37  ;;  %v12438_v29 = vunpack.i.h.bf16 %v12436_v30  ;;  %v8425_v36 = vsel %vm8416_vm4, %v12388_v7, %v12413_v51  ;;  %v8422_v59 = vsel %vm8416_vm4, %v12392_v3, %v12437_v8  ;;  %v12372_v7 = vunpack.i.l.bf16 %v18746_v56  ;;  %v19039_v51 = vpop.permute.xlu1 %12450 }
 0x729   : > { %10385 = vmatmul.msk.f32.gmra.mxu0 %vm1008_vm9, %v18939_v40  ;;  %10392 = vmatmul.msk.f32.vlgmr.msra.gmra.mxu1 %vm1008_vm9, %v18982_v6  ;;  %v8426_v27 = vsel %vm8416_vm4, %v12352_v16, %v12353_v41  ;;  %v12397_v30 = vunpack.i.l.bf16 %v18864_v52 }
 0x72a   : > { %8523 = vmatpush.msra.mxu1 %v8428_v42  ;;  %v18996_v14 = vpop.f32.mrf.mxu1  ;;  %v19001_v31 = vpop.f32.mrf.mxu0  ;;  %v8419_v3 = vsel %vm8416_vm4, %v12393_v5, %v12438_v29  ;;  %v8420_v41 = vsel %vm8416_vm4, %v12372_v7, %v12373_v22  ;;  %v12403_v22 = vunpack.i.h.bf16 %v18838_v55  ;;  %v20534_v29 = vunpack.i.l.bf16 %v18889_v10 }
 0x72b   : > { %21165 = vst [vmem:[#allocation365_spill] sm:$0xff] %v18996_v14  ;;  %v19043_v42 = vpop.permute.xlu2 %12455  ;;  %v21181_v14 = vld [vmem:[#allocation16_spill] sm:$0xff] }
 0x72c   : > { %21166 = vst [vmem:[#allocation366_spill] sm:$0xff] %v19001_v31  ;;  %8524 = vmatpush.msra.mxu1 %v8425_v36  ;;  %v19019_v36 = vld [vmem:[%s20464_s2 + $0x528] sm:$0xff]  ;;  %v21183_v31 = vld [vmem:[#allocation14_spill] sm:$0xff] }
 0x72d   : > { %v19010_v46 = vpop.f32.mrf.mxu3  ;;  %v1227_v0 = vadd.f32 %v21184_v26, %v21183_v31  ;;  %v12442_v26 = vunpack.i.l.bf16 %v18998_v20 }
 0x72e   : > { %21167 = vst [vmem:[#allocation367_spill] sm:$0xff] %v19010_v46  ;;  %8525 = vmatpush.msra.mxu1 %v8422_v59  ;;  %10380 = vmatmul.msk.f32.vlgmr.msrb.gmra.mxu3 %vm1008_vm9, %v18903_v33  ;;  %v12382_v59 = vunpack.i.l.bf16 %v18826_v23  ;;  %v8423_v33 = vsel %vm8416_vm4, %v12362_v32, %v12363_v61  ;;  %v20533_v23 = vunpack.i.h.bf16 %v18864_v52  ;;  %v19049_v32 = vld [vmem:[%s20464_s2 + $0x530] sm:$0xff]  ;;  %v19059_v7 = vpop.permute.xlu0 %12475 }
 0x72f   : > { %8465 = vmatpush.msrb.mxu3 %v8426_v27  ;;  %v19024_v8 = vpop.f32.mrf.mxu2 }
 0x730   : > { %21168 = vst [vmem:[#allocation368_spill] sm:$0xff] %v19024_v8  ;;  %8526 = vmatpush.msra.mxu1 %v8419_v3  ;;  %10379 = vmatmul.msk.f32.gmra.mxu2 %vm1008_vm9, %v19008_v39  ;;  %v8417_v16 = vsel %vm8416_vm4, %v12382_v59, %v12383_v28  ;;  %v12417_v3 = vunpack.i.l.bf16 %v18880_v49  ;;  %v21175_v28 = vld [vmem:[#allocation13_spill] sm:$0xff]  ;;  %v21176_v8 = vld [vmem:[#allocation10_spill] sm:$0xff] }
 0x731   : > { %10386 = vmatmul.msk.f32.gmra.mxu0 %vm1008_vm9, %v18974_v37  ;;  %10393 = vmatmul.msk.f32.gmra.mxu1 %vm1008_vm9, %v19019_v36 }
 0x732   : > { %8466 = vmatpush.msrb.mxu3 %v8423_v33  ;;  %v19034_v56 = vpop.f32.mrf.mxu1  ;;  %v19037_v5 = vpop.f32.mrf.mxu0  ;;  %v12423_v33 = vunpack.i.h.bf16 %v18932_v50 }
 0x733   : > { %21169 = vst [vmem:[#allocation369_spill] sm:$0xff] %v19034_v56  ;;  %v1195_v56 = vadd.f32 %v21176_v8, %v21175_v28  ;;  %v21180_v8 = vld [vmem:[#allocation12_spill] sm:$0xff] }
 0x734   : > { %21170 = vst [vmem:[#allocation370_spill] sm:$0xff] %v19037_v5  ;;  %8467 = vmatpush.msrb.mxu3 %v8420_v41  ;;  %v8596_v41 = vsel %vm8589_vm13, %v12403_v22, %v20534_v29  ;;  %v21177_v5 = vunpack.i.h.bf16 %v18880_v49  ;;  %v19092_v22 = vld [vmem:[%s20464_s2 + $0x538] sm:$0xff] }
 0x735   : > { %v21179_v29 = vld [vmem:[#allocation9_spill] sm:$0xff] }
 0x736   : > { %8468 = vmatpush.msrb.mxu3 %v8417_v16  ;;  %v19051_v61 = vpop.f32.mrf.mxu3  ;;  %v1198_v28 = vadd.f32 %v21180_v8, %v21179_v29  ;;  %v21185_v29 = vld [vmem:[#allocation17_spill] sm:$0xff]  ;;  %v21186_v8 = vld [vmem:[#allocation23_spill] sm:$0xff] }
 0x737   : > { %21171 = vst [vmem:[#allocation371_spill] sm:$0xff] %v19051_v61  ;;  %10381 = vmatmul.msk.f32.gmra.mxu3 %vm1008_vm9, %v18939_v40  ;;  %v19057_v27 = vpop.f32.mrf.mxu2  ;;  %v8599_v40 = vsel %vm8589_vm13, %v12397_v30, %v20533_v23  ;;  %v8593_v30 = vsel %vm8589_vm13, %v12417_v3, %v21177_v5  ;;  %v19087_v23 = vpop.permute.xlu1 %12465  ;;  %v21182_v5 = vunpack.i.l.bf16 %v18953_v63  ;;  %v21338_v61 = vld [vmem:[#allocation128_spill] sm:$0xff] }
 0x738   : > { %21172 = vst [vmem:[#allocation372_spill] sm:$0xff] %v19057_v27  ;;  %10396 = vmatmul.msk.f32.vlgmr.msra.gmra.mxu2 %vm1008_vm9, %v18982_v6  ;;  %v1427_v57 = vadd.f32 %v21194_v38, %v1198_v28 }
 0x739   : > { %10387 = vmatmul.msk.f32.gmra.mxu0 %vm1008_vm9, %v19008_v39  ;;  %10394 = vmatmul.msk.f32.gmra.mxu1 %vm1008_vm9, %v19049_v32  ;;  %v8590_v3 = vsel %vm8589_vm13, %v12423_v33, %v21182_v5  ;;  %v21188_v5 = vld [vmem:[#allocation21_spill] sm:$0xff] }
 0x73a   : > { %8638 = vmatpush.msra.mxu2 %v8599_v40  ;;  %v19072_v59 = vpop.f32.mrf.mxu1  ;;  %v12432_v40 = vunpack.i.l.bf16 %v18925_v4 }
 0x73b   : > { %21173 = vst [vmem:[#allocation373_spill] sm:$0xff] %v19072_v59  ;;  %v19078_v16 = vpop.f32.mrf.mxu0  ;;  %v1424_v59 = vadd.f32 %v21181_v14, %v1195_v56  ;;  %v1230_v14 = vadd.f32 %v21186_v8, %v21185_v29  ;;  %v20535_v56 = vunpack.i.l.bf16 %v18838_v55  ;;  %v1428_v29 = vadd.f32 %v21195_v12, %v1227_v0  ;;  %v21196_v8 = vld [vmem:[#allocation26_spill] sm:$0xff]  ;;  %v21203_v0 = vld [vmem:[#allocation32_spill] sm:$0xff] }
 0x73c   : > { %21174 = vst [vmem:[#allocation374_spill] sm:$0xff] %v19078_v16  ;;  %8639 = vmatpush.msra.mxu2 %v8596_v41  ;;  %v19099_v16 = vpop.permute.xlu2 %12470 }
 0x73d   : > { %v8601_v18 = vsel %vm8589_vm13, %v20535_v56, %v12432_v40  ;;  %v21202_v40 = vunpack.i.h.bf16 %v18889_v10  ;;  %v21207_v56 = vld [vmem:[#allocation37_spill] sm:$0xff] }
 0x73e   : > { %8640 = vmatpush.msra.mxu2 %v8593_v30  ;;  %v19094_v41 = vpop.f32.mrf.mxu3  ;;  %v19109_v30 = vld [vmem:[%s20464_s2 + $0x540] sm:$0xff] }
 0x73f   : > { %21178 = vst [vmem:[#allocation13_spill] sm:$0xff] %v19094_v41  ;;  %10382 = vmatmul.msk.f32.gmra.mxu3 %vm1008_vm9, %v18974_v37  ;;  %v12433_v41 = vunpack.i.h.bf16 %v18925_v4  ;;  %v21189_v37 = vld [vmem:[#allocation25_spill] sm:$0xff] }
 0x740   : > { %8641 = vmatpush.msra.mxu2 %v8590_v3  ;;  %v19117_v33 = vpop.f32.mrf.mxu2  ;;  %v1233_v35 = vadd.f32 %v21189_v37, %v21188_v5  ;;  %v19132_v3 = vpop.permute.xlu0 %12490  ;;  %v1431_v5 = vadd.f32 %v21196_v8, %v1230_v14  ;;  %v21197_v37 = vld [vmem:[#allocation29_spill] sm:$0xff]  ;;  %v21206_v8 = vld [vmem:[#allocation36_spill] sm:$0xff] }
 0x741   : > { %21187 = vst [vmem:[#allocation10_spill] sm:$0xff] %v19117_v33  ;;  %10395 = vmatmul.msk.f32.gmra.mxu1 %vm1008_vm9, %v19092_v22  ;;  %10397 = vmatmul.msk.f32.gmra.mxu2 %vm1008_vm9, %v19019_v36  ;;  %v1426_v27 = vadd.f32 %v21197_v37, %v1253_v11  ;;  %v21201_v33 = vld [vmem:[#allocation34_spill] sm:$0xff]  ;;  %v8598_v28 = vsel %vm8589_vm13, %v21202_v40, %v12433_v41  ;;  %v21204_v14 = vld [vmem:[#allocation33_spill] sm:$0xff]  ;;  %v21205_v11 = vld [vmem:[#allocation35_spill] sm:$0xff] }
 0x742   : > { %10408 = vmatmul.msk.f32.vlgmr.msra.gmra.mxu0 %vm1008_vm9, %v19109_v30  ;;  %v1434_v62 = vadd.f32 %v21200_v25, %v1233_v35  ;;  %v1432_v46 = vadd.f32 %v21201_v33, %v1259_v15  ;;  %v1600_v12 = vadd.f32 %v21204_v14, %v1428_v29  ;;  %v1596_v37 = vadd.f32 %v21206_v8, %v1424_v59  ;;  %v21211_v29 = vld [vmem:[#allocation39_spill] sm:$0xff]  ;;  %v21213_v59 = vld [vmem:[#allocation41_spill] sm:$0xff] }
 0x743   : > { %8696 = vmatpush.msra.mxu0 %v8601_v18  ;;  %v19143_v31 = vpop.f32.mrf.mxu0  ;;  %v19145_v4 = vpop.f32.mrf.mxu1  ;;  %v1598_v38 = vadd.f32 %v21203_v0, %v1426_v27  ;;  %v1603_v18 = vadd.f32 %v21205_v11, %v1431_v5  ;;  %v20536_v35 = vunpack.i.h.bf16 %v18953_v63  ;;  %v12468_v15 = vunpack.i.h.bf16 %v19087_v23  ;;  %v21210_v27 = vld [vmem:[#allocation38_spill] sm:$0xff]  ;;  %v21212_v5 = vld [vmem:[#allocation40_spill] sm:$0xff]  ;;  %v21216_v8 = vld [vmem:[#allocation43_spill] sm:$0xff] }
 0x744   : > { %21198 = vst [vmem:[#allocation9_spill] sm:$0xff] %v19143_v31  ;;  %v1604_v31 = vadd.f32 %v21207_v56, %v1432_v46  ;;  %v21208_v25 = vunpack.i.l.bf16 %v18932_v50  ;;  %v1606_v33 = vadd.f32 %v21210_v27, %v1434_v62  ;;  %v1599_v40 = vadd.f32 %v21211_v29, %v1427_v57  ;;  %v19173_v46 = vld [vmem:[%s20464_s2 + $0x548] sm:$0xff]  ;;  %v19178_v62 = vpop.permute.xlu1 %12480  ;;  %v12486_v27 = vpop.permute.xlu2 %12485 }
 0x745   : > { %21199 = vst [vmem:[#allocation12_spill] sm:$0xff] %v19145_v4  ;;  %8697 = vmatpush.msra.mxu0 %v8598_v28  ;;  %v1768_v0 = vadd.f32 %v21212_v5, %v1596_v37  ;;  %v1770_v56 = vadd.f32 %v21213_v59, %v1598_v38  ;;  %v12478_v28 = vunpack.i.h.bf16 %v19059_v7  ;;  %v8592_v57 = vsel %vm8589_vm13, %v20536_v35, %v12443_v53  ;;  %v21218_v38 = vld [vmem:[#allocation45_spill] sm:$0xff] }
 0x746   : > { %v8595_v20 = vsel %vm8589_vm13, %v21208_v25, %v12442_v26  ;;  %v19163_v41 = vpop.f32.mrf.mxu3  ;;  %v20537_v26 = vunpack.i.l.bf16 %v18966_v54  ;;  %v21217_v25 = vld [vmem:[#allocation49_spill] sm:$0xff]  ;;  %v1776_v29 = vadd.f32 %v21218_v38, %v1604_v31  ;;  %v21226_v4 = vunpack.i.h.bf16 %v19039_v51 }
 0x747   : > { %21209 = vst [vmem:[#allocation16_spill] sm:$0xff] %v19163_v41  ;;  %8698 = vmatpush.msra.mxu0 %v8595_v20  ;;  %10383 = vmatmul.msk.f32.gmra.mxu3 %vm1008_vm9, %v19008_v39  ;;  %v21215_v39 = vld [vmem:[#allocation42_spill] sm:$0xff]  ;;  %v1941_v37 = vadd.f32 %v21216_v8, %v1768_v0  ;;  %v1772_v20 = vadd.f32 %v21217_v25, %v1600_v12  ;;  %v21220_v59 = vld [vmem:[#allocation53_spill] sm:$0xff]  ;;  %v12488_v41 = vunpack.i.h.bf16 %v12486_v27 }
 0x748   : > { %v19183_v14 = vpop.f32.mrf.mxu2  ;;  %v1771_v11 = vadd.f32 %v21215_v39, %v1599_v40  ;;  %v8772_v12 = vsel %vm8762_vm14, %v12468_v15, %v20537_v26  ;;  %v21219_v40 = vld [vmem:[#allocation46_spill] sm:$0xff]  ;;  %v21222_v8 = vld [vmem:[#allocation57_spill] sm:$0xff]  ;;  %v8769_v15 = vsel %vm8762_vm14, %v12478_v28, %v21226_v4 }
 0x749   : > { %21214 = vst [vmem:[#allocation14_spill] sm:$0xff] %v19183_v14  ;;  %8699 = vmatpush.msra.mxu0 %v8592_v57  ;;  %10398 = vmatmul.msk.f32.gmra.mxu2 %vm1008_vm9, %v19049_v32  ;;  %v1775_v57 = vadd.f32 %v21220_v59, %v1603_v18  ;;  %v21221_v39 = vld [vmem:[#allocation54_spill] sm:$0xff]  ;;  %v1778_v25 = vadd.f32 %v21222_v8, %v1606_v33  ;;  %v21225_v53 = vld [vmem:[#allocation61_spill] sm:$0xff]  ;;  %v12487_v14 = vunpack.i.l.bf16 %v12486_v27  ;;  %v21228_v18 = vld [vmem:[#allocation55_spill] sm:$0xff]  ;;  %v19216_v8 = vpop.permute.xlu0 %12505  ;;  %v20538_v27 = vunpack.i.l.bf16 %v19099_v16 }
 0x74a   : > { %10409 = vmatmul.msk.f32.gmra.mxu0 %vm1008_vm9, %v19173_v46  ;;  %10412 = vmatmul.msk.f32.vlgmr.msrb.gmra.mxu1 %vm1008_vm9, %v19109_v30  ;;  %v1944_v0 = vadd.f32 %v21219_v40, %v1771_v11  ;;  %v1945_v31 = vadd.f32 %v21221_v39, %v1772_v20  ;;  %v1943_v5 = vadd.f32 %v21225_v53, %v1770_v56  ;;  %v21227_v11 = vld [vmem:[#allocation52_spill] sm:$0xff]  ;;  %v21229_v20 = vld [vmem:[#allocation58_spill] sm:$0xff]  ;;  %v21232_v56 = vld [vmem:[#allocation65_spill] sm:$0xff] }
 0x74b   : > { %8811 = vmatpush.msrb.mxu1 %v8772_v12  ;;  %v19204_v38 = vpop.f32.mrf.mxu0  ;;  %v19206_v35 = vpop.f32.mrf.mxu1  ;;  %v2114_v40 = vadd.f32 %v21227_v11, %v1941_v37  ;;  %v1948_v39 = vadd.f32 %v21229_v20, %v1775_v57  ;;  %v21230_v33 = vld [vmem:[#allocation60_spill] sm:$0xff]  ;;  %v21231_v26 = vld [vmem:[#allocation62_spill] sm:$0xff] }
 0x74c   : > { %21223 = vst [vmem:[#allocation19_spill] sm:$0xff] %v19204_v38  ;;  %v2117_v59 = vadd.f32 %v21228_v18, %v1944_v0  ;;  %v2118_v12 = vadd.f32 %v21230_v33, %v1945_v31  ;;  %v1951_v38 = vadd.f32 %v21231_v26, %v1778_v25  ;;  %v2116_v53 = vadd.f32 %v21232_v56, %v1943_v5  ;;  %v21235_v37 = vld [vmem:[#allocation64_spill] sm:$0xff]  ;;  %v21243_v33 = vld [vmem:[#allocation71_spill] sm:$0xff] }
 0x74d   : > { %21224 = vst [vmem:[#allocation17_spill] sm:$0xff] %v19206_v35  ;;  %8812 = vmatpush.msrb.mxu1 %v8769_v15  ;;  %v21233_v35 = vunpack.i.l.bf16 %v19012_v2  ;;  %v2121_v0 = vadd.f32 %v21235_v37, %v1948_v39  ;;  %v21236_v57 = vld [vmem:[#allocation68_spill] sm:$0xff]  ;;  %v21237_v5 = vunpack.i.l.bf16 %v18838_v55  ;;  %v21238_v31 = vunpack.i.h.bf16 %v18864_v52  ;;  %v21240_v15 = vld [vmem:[#allocation69_spill] sm:$0xff] }
 0x74e   : > { %v19224_v28 = vpop.f32.mrf.mxu3  ;;  %v1949_v11 = vadd.f32 %v21236_v57, %v1776_v29  ;;  %v19233_v26 = vld [vmem:[%s20464_s2 + $0x550] sm:$0xff]  ;;  %v2291_v18 = vadd.f32 %v21240_v15, %v2118_v12  ;;  %v21241_v29 = vld [vmem:[#allocation70_spill] sm:$0xff]  ;;  %v21244_v55 = vld [vmem:[#allocation73_spill] sm:$0xff] }
 0x74f   : > { %v8766_v4 = vsel %vm8762_vm14, %v12487_v14, %v21233_v35  ;;  %21234 = vst [vmem:[#allocation23_spill] sm:$0xff] %v19224_v28  ;;  %10400 = vmatmul.msk.f32.vlgmr.msra.gmra.mxu3 %vm1008_vm9, %v18982_v6  ;;  %v8600_v35 = vsel %vm8589_vm13, %v21238_v31, %v21237_v5  ;;  %v21239_v14 = vld [vmem:[#allocation67_spill] sm:$0xff]  ;;  %v2289_v20 = vadd.f32 %v21241_v29, %v2116_v53  ;;  %v21245_v52 = vld [vmem:[#allocation76_spill] sm:$0xff]  ;;  %v21247_v53 = vld [vmem:[#allocation74_spill] sm:$0xff]  ;;  %v19255_v5 = vpop.permute.xlu1 %12495 }
 0x750   : > { %8813 = vmatpush.msrb.mxu1 %v8766_v4  ;;  %v2124_v25 = vadd.f32 %v21239_v14, %v1951_v38  ;;  %v8763_v6 = vsel %vm8762_vm14, %v12488_v41, %v20538_v27  ;;  %8667 = vmatpush.msra.mxu3 %v8600_v35  ;;  %v19246_v39 = vpop.f32.mrf.mxu2  ;;  %v2122_v56 = vadd.f32 %v21243_v33, %v1949_v11  ;;  %v21246_v38 = vld [vmem:[#allocation72_spill] sm:$0xff]  ;;  %v21248_v41 = vunpack.i.h.bf16 %v18889_v10  ;;  %v21250_v11 = vld [vmem:[#allocation77_spill] sm:$0xff]  ;;  %v21251_v35 = vld [vmem:[#allocation78_spill] sm:$0xff] }
 0x751   : > { %21242 = vst [vmem:[#allocation21_spill] sm:$0xff] %v19246_v39  ;;  %v2287_v4 = vadd.f32 %v21244_v55, %v2114_v40  ;;  %v2290_v37 = vadd.f32 %v21245_v52, %v2117_v59  ;;  %10399 = vmatmul.msk.f32.gmra.mxu2 %vm1008_vm9, %v19092_v22  ;;  %v2294_v12 = vadd.f32 %v21246_v38, %v2121_v0  ;;  %v21249_v40 = vunpack.i.l.bf16 %v18889_v10  ;;  %v21252_v14 = vld [vmem:[#allocation80_spill] sm:$0xff]  ;;  %v21253_v15 = vld [vmem:[#allocation89_spill] sm:$0xff]  ;;  %v21256_v55 = vld [vmem:[#allocation75_spill] sm:$0xff] }
 0x752   : > { %8814 = vmatpush.msrb.mxu1 %v8763_v6  ;;  %v2297_v57 = vadd.f32 %v21247_v53, %v2124_v25  ;;  %10410 = vmatmul.msk.f32.gmra.mxu0 %vm1008_vm9, %v19233_v26  ;;  %v2462_v0 = vadd.f32 %v21251_v35, %v2289_v20  ;;  %v2464_v29 = vadd.f32 %v21253_v15, %v2291_v18  ;;  %v21257_v38 = vld [vmem:[#allocation93_spill] sm:$0xff]  ;;  %v21339_v47 = vunpack.i.h.bf16 %v19255_v5 }
 0x753   : > { %10413 = vmatmul.msk.f32.gmra.mxu1 %vm1008_vm9, %v19173_v46  ;;  %v8597_v59 = vsel %vm8589_vm13, %v21249_v40, %v21248_v41  ;;  %v2460_v31 = vadd.f32 %v21250_v11, %v2287_v4  ;;  %v2463_v25 = vadd.f32 %v21252_v14, %v2290_v37  ;;  %v19270_v6 = vpop.f32.mrf.mxu0  ;;  %v19272_v33 = vpop.f32.mrf.mxu1  ;;  %v2295_v52 = vadd.f32 %v21256_v55, %v2122_v56  ;;  %v21258_v10 = vld [vmem:[#allocation97_spill] sm:$0xff]  ;;  %v21263_v11 = vld [vmem:[#allocation94_spill] sm:$0xff]  ;;  %v21264_v14 = vld [vmem:[#allocation100_spill] sm:$0xff] }
 0x754   : > { %8668 = vmatpush.msra.mxu3 %v8597_v59  ;;  %21254 = vst [vmem:[#allocation25_spill] sm:$0xff] %v19270_v6  ;;  %v2467_v53 = vadd.f32 %v21257_v38, %v2294_v12  ;;  %v2470_v27 = vadd.f32 %v21258_v10, %v2297_v57  ;;  %v21259_v41 = vunpack.i.l.bf16 %v18932_v50  ;;  %v21260_v4 = vunpack.i.h.bf16 %v18880_v49  ;;  %v21261_v37 = vld [vmem:[#allocation81_spill] sm:$0xff]  ;;  %v21265_v56 = vld [vmem:[#allocation98_spill] sm:$0xff] }
 0x755   : > { %21255 = vst [vmem:[#allocation8_spill] sm:$0xff] %v19272_v33  ;;  %v2632_v40 = vadd.f32 %v21261_v37, %v2460_v31  ;;  %v21262_v18 = vld [vmem:[#allocation85_spill] sm:$0xff]  ;;  %v2636_v35 = vadd.f32 %v21263_v11, %v2464_v29  ;;  %v2634_v15 = vadd.f32 %v21264_v14, %v2462_v0  ;;  %v21267_v50 = vunpack.i.h.bf16 %v18953_v63  ;;  %v21269_v31 = vld [vmem:[#allocation84_spill] sm:$0xff]  ;;  %v19297_v0 = vpop.permute.xlu0 %12520  ;;  %v21275_v14 = vld [vmem:[#allocation102_spill] sm:$0xff] }
 0x756   : > { %v8594_v20 = vsel %vm8589_vm13, %v21260_v4, %v21259_v41  ;;  %v2635_v59 = vadd.f32 %v21262_v18, %v2463_v25  ;;  %v2639_v55 = vadd.f32 %v21265_v56, %v2467_v53  ;;  %v21266_v12 = vld [vmem:[#allocation101_spill] sm:$0xff]  ;;  %v21268_v49 = vunpack.i.l.bf16 %v18953_v63  ;;  %v21270_v25 = vld [vmem:[#allocation99_spill] sm:$0xff]  ;;  %v21271_v29 = vld [vmem:[#allocation104_spill] sm:$0xff] }
 0x757   : > { %8669 = vmatpush.msra.mxu3 %v8594_v20  ;;  %v2642_v38 = vadd.f32 %v21266_v12, %v2470_v27  ;;  %v2468_v41 = vadd.f32 %v21269_v31, %v2295_v52  ;;  %v2808_v4 = vadd.f32 %v21270_v25, %v2636_v35  ;;  %v2806_v37 = vadd.f32 %v21271_v29, %v2634_v15  ;;  %v19302_v27 = vld [vmem:[%s20464_s2 + $0x558] sm:$0xff]  ;;  %v19304_v53 = vpop.f32.mrf.mxu3  ;;  %v21273_v20 = vld [vmem:[#allocation92_spill] sm:$0xff]  ;;  %v21274_v18 = vld [vmem:[#allocation95_spill] sm:$0xff] }
 0x758   : > { %v8591_v10 = vsel %vm8589_vm13, %v21268_v49, %v21267_v50  ;;  %21272 = vst [vmem:[#allocation24_spill] sm:$0xff] %v19304_v53  ;;  %v2804_v63 = vadd.f32 %v21273_v20, %v2632_v40  ;;  %v2807_v11 = vadd.f32 %v21274_v18, %v2635_v59  ;;  %v2811_v52 = vadd.f32 %v21275_v14, %v2639_v55  ;;  %v21276_v56 = vld [vmem:[#allocation105_spill] sm:$0xff]  ;;  %v19312_v15 = vpop.f32.mrf.mxu2  ;;  %v21278_v12 = vld [vmem:[#allocation106_spill] sm:$0xff]  ;;  %v21279_v49 = vld [vmem:[#allocation103_spill] sm:$0xff] }
 0x759   : > { %8670 = vmatpush.msra.mxu3 %v8591_v10  ;;  %v2814_v35 = vadd.f32 %v21276_v56, %v2642_v38  ;;  %21277 = vst [vmem:[#allocation11_spill] sm:$0xff] %v19312_v15  ;;  %v2640_v50 = vadd.f32 %v21278_v12, %v2468_v41  ;;  %v21280_v10 = vld [vmem:[#allocation107_spill] sm:$0xff]  ;;  %v21281_v25 = vld [vmem:[#allocation108_spill] sm:$0xff]  ;;  %v21282_v57 = vld [vmem:[#allocation109_spill] sm:$0xff]  ;;  %10416 = vmatmul.msk.f32.vlgmr.msrb.gmra.mxu2 %vm1008_vm9, %v19109_v30  ;;  %v21284_v41 = vunpack.i.h.bf16 %v18966_v54  ;;  %v19343_v15 = vpop.permute.xlu1 %12510 }
 0x75a   : > { %10401 = vmatmul.msk.f32.gmra.mxu3 %vm1008_vm9, %v19019_v36  ;;  %v2809_v31 = vadd.f32 %v21280_v10, %v21279_v49  ;;  %v2980_v29 = vadd.f32 %v21281_v25, %v2808_v4  ;;  %v2978_v40 = vadd.f32 %v21282_v57, %v2806_v37  ;;  %v21283_v59 = vld [vmem:[#allocation114_spill] sm:$0xff]  ;;  %10411 = vmatmul.msk.f32.gmra.mxu0 %vm1008_vm9, %v19302_v27  ;;  %v21285_v4 = vunpack.i.l.bf16 %v18966_v54  ;;  %v21286_v37 = vld [vmem:[#allocation111_spill] sm:$0xff]  ;;  %v21287_v20 = vld [vmem:[#allocation112_spill] sm:$0xff] }
 0x75b   : > { %v2976_v55 = vadd.f32 %v21283_v59, %v2804_v63  ;;  %10414 = vmatmul.msk.f32.gmra.mxu1 %vm1008_vm9, %v19233_v26  ;;  %v2812_v30 = vadd.f32 %v21286_v37, %v2640_v50  ;;  %v2983_v63 = vadd.f32 %v21287_v20, %v2811_v52  ;;  %v21288_v18 = vld [vmem:[#allocation113_spill] sm:$0xff]  ;;  %v21289_v56 = vld [vmem:[#allocation110_spill] sm:$0xff]  ;;  %v21290_v12 = vld [vmem:[#allocation115_spill] sm:$0xff]  ;;  %v19338_v10 = vpop.f32.mrf.mxu1  ;;  %v21294_v50 = vunpack.i.l.bf16 %v19043_v42 }
 0x75c   : > { %v8773_v57 = vsel %vm8762_vm14, %v21285_v4, %v21284_v41  ;;  %v2981_v14 = vadd.f32 %v21288_v18, %v2809_v31  ;;  %v2815_v49 = vadd.f32 %v21290_v12, %v21289_v56  ;;  %21291 = vst [vmem:[#allocation31_spill] sm:$0xff] %v19338_v10  ;;  %v21292_v25 = vld [vmem:[#allocation27_spill] sm:$0xff]  ;;  %v21295_v52 = vunpack.i.h.bf16 %v19039_v51  ;;  %v19350_v41 = vpop.f32.mrf.mxu0  ;;  %v21297_v4 = vld [vmem:[#allocation116_spill] sm:$0xff]  ;;  %v21298_v37 = vld [vmem:[#allocation117_spill] sm:$0xff]  ;;  %v19359_v10 = vpop.permute.xlu2 %12500 }
 0x75d   : > { %8840 = vmatpush.msrb.mxu2 %v8773_v57  ;;  %v2979_v59 = vadd.f32 %v21292_v25, %v2807_v11  ;;  %v21293_v36 = vld [vmem:[#allocation59_spill] sm:$0xff]  ;;  %21296 = vst [vmem:[#allocation20_spill] sm:$0xff] %v19350_v41  ;;  %v2986_v57 = vadd.f32 %v21297_v4, %v2814_v35  ;;  %v2984_v20 = vadd.f32 %v21298_v37, %v2812_v30  ;;  %v21299_v18 = vld [vmem:[#allocation44_spill] sm:$0xff]  ;;  %v21303_v53 = vld [vmem:[#allocation18_spill] sm:$0xff]  ;;  %v12502_v58 = vunpack.i.l.bf16 %v19359_v10 }
 0x75e   : > { %v3149_v38 = vadd.f32 %v21293_v36, %v2976_v55  ;;  %v8770_v31 = vsel %vm8762_vm14, %v21295_v52, %v21294_v50  ;;  %v2987_v11 = vadd.f32 %v21299_v18, %v2815_v49  ;;  %v21300_v56 = vld [vmem:[#allocation79_spill] sm:$0xff]  ;;  %v21301_v36 = vld [vmem:[#allocation48_spill] sm:$0xff]  ;;  %v21304_v50 = vunpack.i.h.bf16 %v19012_v2  ;;  %v21308_v37 = vld [vmem:[#allocation30_spill] sm:$0xff] }
 0x75f   : > { %v3151_v55 = vadd.f32 %v21300_v56, %v2978_v40  ;;  %8841 = vmatpush.msrb.mxu2 %v8770_v31  ;;  %v3152_v12 = vadd.f32 %v21301_v36, %v2979_v59  ;;  %v21302_v25 = vld [vmem:[#allocation15_spill] sm:$0xff]  ;;  %v21305_v52 = vunpack.i.l.bf16 %v19012_v2  ;;  %v3157_v40 = vadd.f32 %v21308_v37, %v2984_v20  ;;  %v21311_v18 = vld [vmem:[#allocation88_spill] sm:$0xff] }
 0x760   : > { %v3154_v6 = vadd.f32 %v21302_v25, %v2981_v14  ;;  %v3322_v28 = vadd.f32 %v21303_v53, %v3149_v38  ;;  %v21306_v30 = vld [vmem:[#allocation83_spill] sm:$0xff]  ;;  %v12482_v59 = vunpack.i.l.bf16 %v19178_v62  ;;  %v19371_v14 = vpop.f32.mrf.mxu3  ;;  %v21313_v25 = vld [vmem:[#allocation50_spill] sm:$0xff] }
 0x761   : > { %v8767_v35 = vsel %vm8762_vm14, %v21305_v52, %v21304_v50  ;;  %v21307_v4 = vld [vmem:[#allocation51_spill] sm:$0xff]  ;;  %21309 = vst [vmem:[#allocation22_spill] sm:$0xff] %v19371_v14  ;;  %v3160_v39 = vadd.f32 %v21313_v25, %v2987_v11  ;;  %v21314_v50 = vunpack.i.h.bf16 %v19099_v16  ;;  %v21315_v52 = vunpack.i.l.bf16 %v19099_v16  ;;  %v21319_v25 = vld [vmem:[#allocation82_spill] sm:$0xff]  ;;  %10417 = vmatmul.msk.f32.gmra.mxu2 %vm1008_vm9, %v19173_v46  ;;  %v21328_v11 = vld [vmem:[#allocation120_spill] sm:$0xff] }
 0x762   : > { %v3155_v49 = vadd.f32 %v21307_v4, %v21306_v30  ;;  %8842 = vmatpush.msrb.mxu2 %v8767_v35  ;;  %v21310_v53 = vld [vmem:[#allocation63_spill] sm:$0xff]  ;;  %10402 = vmatmul.msk.f32.gmra.mxu3 %vm1008_vm9, %v19049_v32  ;;  %v19387_v35 = vld [vmem:[%s20464_s2 + $0x560] sm:$0xff]  ;;  %v21317_v4 = vld [vmem:[#allocation56_spill] sm:$0xff] }
 0x763   : > { %v3325_v38 = vadd.f32 %v21310_v53, %v3152_v12  ;;  %v21312_v56 = vld [vmem:[#allocation47_spill] sm:$0xff]  ;;  %v8764_v20 = vsel %vm8762_vm14, %v21315_v52, %v21314_v50  ;;  %v21316_v12 = vld [vmem:[#allocation86_spill] sm:$0xff]  ;;  %v3153_v37 = vadd.f32 %v21317_v4, %v2980_v29  ;;  %v12492_v53 = vunpack.i.l.bf16 %v19132_v3  ;;  %10415 = vmatmul.msk.f32.gmra.mxu1 %vm1008_vm9, %v19302_v27  ;;  %10428 = vmatmul.msk.f32.vlgmr.msrb.gmra.mxu0 %vm1008_vm9, %v19387_v35 }
 0x764   : > { %v3158_v36 = vadd.f32 %v21312_v56, %v21311_v18  ;;  %v3328_v30 = vadd.f32 %v21316_v12, %v3155_v49  ;;  %v19393_v18 = vpop.permute.xlu0 %12535  ;;  %8843 = vmatpush.msrb.mxu2 %v8764_v20  ;;  %v19395_v56 = vpop.f32.mrf.mxu2  ;;  %v21320_v32 = vld [vmem:[#allocation91_spill] sm:$0xff]  ;;  %v21321_v52 = vld [vmem:[#allocation66_spill] sm:$0xff]  ;;  %v12497_v12 = vunpack.i.l.bf16 %v19255_v5  ;;  %v21331_v20 = vld [vmem:[#allocation121_spill] sm:$0xff] }
 0x765   : > { %21318 = vst [vmem:[#allocation26_spill] sm:$0xff] %v19395_v56  ;;  %v3323_v50 = vadd.f32 %v21320_v32, %v21319_v25  ;;  %v21322_v14 = vld [vmem:[#allocation87_spill] sm:$0xff]  ;;  %v21323_v29 = vld [vmem:[#allocation90_spill] sm:$0xff]  ;;  %v3159_v56 = vadd.f32 %v21328_v11, %v2986_v57  ;;  %v21335_v57 = vld [vmem:[#allocation124_spill] sm:$0xff] }
 0x766   : > { %v3331_v31 = vadd.f32 %v21321_v52, %v3158_v36  ;;  %v3495_v33 = vadd.f32 %v21322_v14, %v3322_v28  ;;  %v3156_v49 = vadd.f32 %v21323_v29, %v2983_v63  ;;  %v21324_v36 = vunpack.i.h.bf16 %v19178_v62  ;;  %v21325_v14 = vld [vmem:[#allocation96_spill] sm:$0xff]  ;;  %v21326_v25 = vld [vmem:[#allocation118_spill] sm:$0xff]  ;;  %v21327_v52 = vld [vmem:[#allocation119_spill] sm:$0xff]  ;;  %v19417_v63 = vpop.f32.mrf.mxu0  ;;  %v19419_v29 = vpop.f32.mrf.mxu1 }
 0x767   : > { %v3326_v4 = vadd.f32 %v21325_v14, %v3153_v37  ;;  %v3498_v32 = vadd.f32 %v21326_v25, %v3325_v38  ;;  %v3496_v46 = vadd.f32 %v21327_v52, %v3323_v50  ;;  %21329 = vst [vmem:[#allocation29_spill] sm:$0xff] %v19417_v63  ;;  %v21333_v38 = vld [vmem:[#allocation122_spill] sm:$0xff]  ;;  %v21334_v50 = vld [vmem:[#allocation123_spill] sm:$0xff]  ;;  %v3332_v11 = vadd.f32 %v21335_v57, %v3159_v56  ;;  %v19431_v52 = vpop.permute.xlu1 %12525  ;;  %v21342_v56 = vld [vmem:[#allocation129_spill] sm:$0xff]  ;;  %v19444_v57 = vpop.permute.xlu2 %12515 }
 0x768   : > { %v8945_v28 = vsel %vm8935_vm15, %v12482_v59, %v21324_v36  ;;  %21330 = vst [vmem:[#allocation28_spill] sm:$0xff] %v19419_v29  ;;  %v3329_v41 = vadd.f32 %v21331_v20, %v3156_v49  ;;  %v21332_v59 = vunpack.i.h.bf16 %v19132_v3  ;;  %v3501_v36 = vadd.f32 %v21333_v38, %v3328_v30  ;;  %v21337_v49 = vld [vmem:[#allocation126_spill] sm:$0xff]  ;;  %v19439_v30 = vpop.f32.mrf.mxu3 }
 0x769   : > { %8984 = vmatpush.msrb.mxu0 %v8945_v28  ;;  %v3499_v14 = vadd.f32 %v21334_v50, %v3326_v4  ;;  %v21336_v28 = vld [vmem:[#allocation125_spill] sm:$0xff]  ;;  %v3504_v20 = vadd.f32 %v21337_v49, %v3331_v31  ;;  %v3327_v29 = vadd.f32 %v21338_v61, %v3154_v6  ;;  %v20539_v63 = vunpack.i.l.bf16 %v19216_v8  ;;  %21340 = vst [vmem:[#allocation34_spill] sm:$0xff] %v19439_v30  ;;  %v21341_v4 = vld [vmem:[#allocation127_spill] sm:$0xff]  ;;  %v21345_v31 = vld [vmem:[#allocation132_spill] sm:$0xff] }
 0x76a   : > { %v8942_v37 = vsel %vm8935_vm15, %v12492_v53, %v21332_v59  ;;  %v3324_v25 = vadd.f32 %v21336_v28, %v3151_v55  ;;  %v8939_v53 = vsel %vm8935_vm15, %v12497_v12, %v21339_v47  ;;  %v3502_v59 = vadd.f32 %v21341_v4, %v3329_v41  ;;  %v21343_v55 = vld [vmem:[#allocation130_spill] sm:$0xff]  ;;  %10403 = vmatmul.msk.f32.gmra.mxu3 %vm1008_vm9, %v19092_v22  ;;  %v19451_v61 = vld [vmem:[%s20464_s2 + $0x568] sm:$0xff]  ;;  %v21346_v41 = vld [vmem:[#allocation133_spill] sm:$0xff] }
 0x76b   : > { %8985 = vmatpush.msrb.mxu0 %v8942_v37  ;;  %v3669_v50 = vadd.f32 %v21343_v55, %v3496_v46  ;;  %v21344_v47 = vld [vmem:[#allocation131_spill] sm:$0xff]  ;;  %v3330_v12 = vadd.f32 %v21345_v31, %v3157_v40  ;;  %v3500_v37 = vadd.f32 %v21346_v41, %v3327_v29  ;;  %v21347_v28 = vunpack.i.h.bf16 %v19359_v10  ;;  %v21349_v49 = vld [vmem:[#allocation134_spill] sm:$0xff]  ;;  %10418 = vmatmul.msk.f32.gmra.mxu2 %vm1008_vm9, %v19233_v26  ;;  %v21356_v41 = vld [vmem:[#allocation140_spill] sm:$0xff] }
 0x76c   : > { %v3497_v38 = vadd.f32 %v21342_v56, %v3324_v25  ;;  %v3505_v6 = vadd.f32 %v21344_v47, %v3332_v11  ;;  %v19459_v25 = vpop.f32.mrf.mxu2  ;;  %v21350_v22 = vld [vmem:[#allocation135_spill] sm:$0xff]  ;;  %v21351_v56 = vld [vmem:[#allocation136_spill] sm:$0xff]  ;;  %v21352_v11 = vld [vmem:[#allocation137_spill] sm:$0xff]  ;;  %v19469_v31 = vpop.permute.xlu0 %12550  ;;  %10429 = vmatmul.msk.f32.gmra.mxu0 %vm1008_vm9, %v19451_v61  ;;  %10432 = vmatmul.msk.f32.vlgmr.msra.gmra.mxu1 %vm1008_vm9, %v19387_v35 }
 0x76d   : > { %8986 = vmatpush.msrb.mxu0 %v8939_v53  ;;  %v8936_v46 = vsel %vm8935_vm15, %v12502_v58, %v21347_v28  ;;  %21348 = vst [vmem:[#allocation32_spill] sm:$0xff] %v19459_v25  ;;  %v3672_v53 = vadd.f32 %v21349_v49, %v3499_v14  ;;  %v3333_v55 = vadd.f32 %v21351_v56, %v3160_v39  ;;  %v21353_v58 = vunpack.i.h.bf16 %v19178_v62  ;;  %v21354_v39 = vld [vmem:[#allocation138_spill] sm:$0xff]  ;;  %v21357_v56 = vld [vmem:[#allocation139_spill] sm:$0xff] }
 0x76e   : > { %v3670_v4 = vadd.f32 %v21350_v22, %v3497_v38  ;;  %v3503_v40 = vadd.f32 %v21352_v11, %v3330_v12  ;;  %v3675_v14 = vadd.f32 %v21354_v39, %v3502_v59  ;;  %v21355_v38 = vld [vmem:[#allocation141_spill] sm:$0xff]  ;;  %v3668_v28 = vadd.f32 %v21356_v41, %v3495_v33  ;;  %v19484_v49 = vpop.f32.mrf.mxu0  ;;  %v19486_v22 = vpop.f32.mrf.mxu1  ;;  %v21358_v47 = vld [vmem:[#allocation142_spill] sm:$0xff]  ;;  %v21361_v33 = vld [vmem:[#allocation143_spill] sm:$0xff] }
 0x76f   : > { %8987 = vmatpush.msrb.mxu0 %v8936_v46  ;;  %v8946_v26 = vsel %vm8935_vm15, %v21353_v58, %v20539_v63  ;;  %v3506_v12 = vadd.f32 %v21355_v38, %v3333_v55  ;;  %v12452_v46 = vunpack.i.l.bf16 %v19039_v51  ;;  %v3673_v11 = vadd.f32 %v21357_v56, %v3500_v37  ;;  %v21362_v51 = vld [vmem:[#allocation144_spill] sm:$0xff]  ;;  %v21363_v38 = vld [vmem:[#allocation145_spill] sm:$0xff]  ;;  %v21364_v63 = vld [vmem:[#allocation146_spill] sm:$0xff] }
 0x770   : > { %9013 = vmatpush.msra.mxu1 %v8946_v26  ;;  %v3678_v29 = vadd.f32 %v21358_v47, %v3505_v6  ;;  %v21359_v58 = vunpack.i.l.bf16 %v19444_v57  ;;  %v21360_v59 = vunpack.i.h.bf16 %v19132_v3  ;;  %v3676_v39 = vadd.f32 %v21361_v33, %v3503_v40  ;;  %v21365_v37 = vld [vmem:[#allocation147_spill] sm:$0xff]  ;;  %v21366_v6 = vld [vmem:[#allocation148_spill] sm:$0xff]  ;;  %v19508_v40 = vpop.f32.mrf.mxu3 }
 0x771   : > { %v3671_v26 = vadd.f32 %v21362_v51, %v3498_v32  ;;  %v3840_v41 = vadd.f32 %v21363_v38, %v3668_v28  ;;  %v3679_v30 = vadd.f32 %v21364_v63, %v3506_v12  ;;  %v3842_v56 = vadd.f32 %v21365_v37, %v3670_v4  ;;  %21369 = vst [vmem:[#allocation33_spill] sm:$0xff] %v19508_v40  ;;  %v21370_v32 = vld [vmem:[#allocation149_spill] sm:$0xff]  ;;  %v21371_v28 = vld [vmem:[#allocation150_spill] sm:$0xff]  ;;  %v19512_v63 = vpop.permute.xlu1 %12540  ;;  %v21373_v4 = vld [vmem:[#allocation151_spill] sm:$0xff] }
 0x772   : > { %v8943_v55 = vsel %vm8935_vm15, %v21360_v59, %v21359_v58  ;;  %v3674_v47 = vadd.f32 %v21366_v6, %v3501_v36  ;;  %v12458_v62 = vunpack.i.h.bf16 %v19043_v42  ;;  %v21367_v25 = vunpack.i.l.bf16 %v19431_v52  ;;  %10424 = vmatmul.msk.f32.vlgmr.msrb.gmra.mxu3 %vm1008_vm9, %v19387_v35  ;;  %v19519_v36 = vld [vmem:[%s20464_s2 + $0x570] sm:$0xff]  ;;  %v21378_v6 = vld [vmem:[#allocation153_spill] sm:$0xff] }
 0x773   : > { %9014 = vmatpush.msra.mxu1 %v8943_v55  ;;  %v21368_v3 = vunpack.i.h.bf16 %v19255_v5  ;;  %v3843_v59 = vadd.f32 %v21370_v32, %v3671_v26  ;;  %v3845_v33 = vadd.f32 %v21371_v28, %v3673_v11  ;;  %v21372_v5 = vunpack.i.h.bf16 %v18966_v54  ;;  %v21374_v55 = vld [vmem:[#allocation152_spill] sm:$0xff]  ;;  %v21379_v54 = vld [vmem:[#allocation154_spill] sm:$0xff]  ;;  %10419 = vmatmul.msk.f32.gmra.mxu2 %vm1008_vm9, %v19302_v27  ;;  %v21382_v32 = vld [vmem:[#allocation157_spill] sm:$0xff] }
 0x774   : > { %v4012_v12 = vadd.f32 %v21373_v4, %v3840_v41  ;;  %v3677_v51 = vadd.f32 %v21374_v55, %v3504_v20  ;;  %v12467_v11 = vunpack.i.l.bf16 %v19087_v23  ;;  %v21375_v26 = vunpack.i.l.bf16 %v19393_v18  ;;  %v19532_v37 = vpop.f32.mrf.mxu2  ;;  %v21381_v23 = vld [vmem:[#allocation155_spill] sm:$0xff]  ;;  %10430 = vmatmul.msk.f32.gmra.mxu0 %vm1008_vm9, %v19519_v36  ;;  %10433 = vmatmul.msk.f32.gmra.mxu1 %vm1008_vm9, %v19451_v61  ;;  %v21387_v55 = vld [vmem:[#allocation161_spill] sm:$0xff] }
 0x775   : > { %v8940_v58 = vsel %vm8935_vm15, %v21368_v3, %v21367_v25  ;;  %v8774_v25 = vsel %vm8762_vm14, %v21372_v5, %v12452_v46  ;;  %v21376_v38 = vunpack.i.h.bf16 %v19359_v10  ;;  %21377 = vst [vmem:[#allocation35_spill] sm:$0xff] %v19532_v37  ;;  %v3846_v3 = vadd.f32 %v21378_v6, %v3674_v47  ;;  %v21380_v46 = vld [vmem:[#allocation156_spill] sm:$0xff]  ;;  %v21384_v47 = vld [vmem:[#allocation158_spill] sm:$0xff]  ;;  %v21385_v27 = vld [vmem:[#allocation159_spill] sm:$0xff] }
 0x776   : > { %9015 = vmatpush.msra.mxu1 %v8940_v58  ;;  %8869 = vmatpush.msrb.mxu3 %v8774_v25  ;;  %v19536_v58 = vadd.f32 %v21379_v54, %v3676_v39  ;;  %v3841_v41 = vadd.f32 %v21380_v46, %v3669_v50  ;;  %v4015_v20 = vadd.f32 %v21381_v23, %v3843_v59  ;;  %v12477_v28 = vunpack.i.l.bf16 %v19059_v7  ;;  %v21386_v59 = vld [vmem:[#allocation160_spill] sm:$0xff]  ;;  %v19557_v7 = vpop.f32.mrf.mxu0  ;;  %v21390_v6 = vld [vmem:[#allocation163_spill] sm:$0xff]  ;;  %v19564_v46 = vpop.permute.xlu2 %12530 }
 0x777   : > { %v8937_v35 = vsel %vm8935_vm15, %v21376_v38, %v21375_v26  ;;  %v3849_v10 = vadd.f32 %v21382_v32, %v3677_v51  ;;  %v21383_v39 = vunpack.i.l.bf16 %v19043_v42  ;;  %v19552_v5 = vadd.f32 %v21384_v47, %v3679_v30  ;;  %v19559_v26 = vpop.f32.mrf.mxu1  ;;  %v21389_v38 = vld [vmem:[#allocation162_spill] sm:$0xff]  ;;  %v21391_v54 = vld [vmem:[#allocation164_spill] sm:$0xff]  ;;  %v19566_v30 = vpop.permute.xlu0 %12565 }
 0x778   : > { %9016 = vmatpush.msra.mxu1 %v8937_v35  ;;  %v4018_v25 = vadd.f32 %v21385_v27, %v3846_v3  ;;  %v3844_v4 = vadd.f32 %v21386_v59, %v3672_v53  ;;  %v4013_v51 = vadd.f32 %v21387_v55, %v3841_v41  ;;  %21388 = vst [vmem:[#allocation36_spill] sm:$0xff] %v19559_v26  ;;  %v21392_v3 = vunpack.i.h.bf16 %v19012_v2  ;;  %v21393_v41 = vld [vmem:[#allocation165_spill] sm:$0xff]  ;;  %v21394_v32 = vld [vmem:[#allocation166_spill] sm:$0xff]  ;;  %v21396_v27 = vld [vmem:[#allocation168_spill] sm:$0xff] }
 0x779   : > { %v8771_v50 = vsel %vm8762_vm14, %v21383_v39, %v12458_v62  ;;  %v4021_v35 = vadd.f32 %v21389_v38, %v3849_v10  ;;  %v4184_v42 = vadd.f32 %v21390_v6, %v4012_v12  ;;  %v3847_v62 = vadd.f32 %v21391_v54, %v3675_v14  ;;  %v21397_v12 = vld [vmem:[#allocation169_spill] sm:$0xff]  ;;  %v21398_v14 = vld [vmem:[#allocation172_spill] sm:$0xff] }
 0x77a   : > { %8870 = vmatpush.msrb.mxu3 %v8771_v50  ;;  %v8768_v53 = vsel %vm8762_vm14, %v21392_v3, %v12467_v11  ;;  %v4016_v23 = vadd.f32 %v21393_v41, %v3844_v4  ;;  %v4187_v39 = vadd.f32 %v21394_v32, %v4015_v20  ;;  %v21395_v50 = vld [vmem:[#allocation167_spill] sm:$0xff]  ;;  %v3850_v10 = vadd.f32 %v21396_v27, %v3678_v29  ;;  %v19584_v11 = vld [vmem:[%s20464_s2 + $0x580] sm:$0xff]  ;;  %v21402_v54 = vld [vmem:[#allocation173_spill] sm:$0xff] }
 0x77b   : > { %v4185_v47 = vadd.f32 %v21395_v50, %v4013_v51  ;;  %v4019_v59 = vadd.f32 %v21397_v12, %v3847_v62  ;;  %v4014_v55 = vadd.f32 %v21398_v14, %v3842_v56  ;;  %v12508_v38 = vunpack.i.h.bf16 %v19216_v8  ;;  %v21400_v20 = vld [vmem:[#allocation170_spill] sm:$0xff]  ;;  %v21401_v51 = vld [vmem:[#allocation171_spill] sm:$0xff]  ;;  %v21403_v62 = vld [vmem:[#allocation176_spill] sm:$0xff]  ;;  %v19595_v56 = vpop.f32.mrf.mxu3  ;;  %10425 = vmatmul.msk.f32.gmra.mxu3 %vm1008_vm9, %v19451_v61  ;;  %10440 = vmatmul.msk.f32.vlgmr.msra.gmra.mxu2 %vm1008_vm9, %v19584_v11 }
 0x77c   : > { %8871 = vmatpush.msrb.mxu3 %v8768_v53  ;;  %v21399_v6 = vunpack.i.h.bf16 %v19099_v16  ;;  %v4190_v4 = vadd.f32 %v21400_v20, %v4018_v25  ;;  %v4188_v29 = vadd.f32 %v21401_v51, %v4016_v23  ;;  %v4022_v3 = vadd.f32 %v21402_v54, %v3850_v10  ;;  %v19593_v16 = vld [vmem:[%s20464_s2 + $0x578] sm:$0xff]  ;;  %21404 = vst [vmem:[#allocation37_spill] sm:$0xff] %v19595_v56  ;;  %v21406_v32 = vld [vmem:[#allocation175_spill] sm:$0xff]  ;;  %v21409_v10 = vld [vmem:[#allocation178_spill] sm:$0xff]  ;;  %v19611_v54 = vpop.permute.xlu1 %12555 }
 0x77d   : > { %v4017_v53 = vadd.f32 %v21403_v62, %v3845_v33  ;;  %v4191_v50 = vadd.f32 %v21406_v32, %v4019_v59  ;;  %v21407_v27 = vld [vmem:[#allocation177_spill] sm:$0xff]  ;;  %v12518_v23 = vunpack.i.h.bf16 %v19444_v57  ;;  %v19603_v33 = vpop.f32.mrf.mxu2  ;;  %v21410_v14 = vld [vmem:[#allocation179_spill] sm:$0xff]  ;;  %v21412_v51 = vld [vmem:[#allocation192_spill] sm:$0xff]  ;;  %10431 = vmatmul.msk.f32.gmra.mxu0 %vm1008_vm9, %v19593_v16  ;;  %10434 = vmatmul.msk.f32.gmra.mxu1 %vm1008_vm9, %v19519_v36 }
 0x77e   : > { %v8765_v2 = vsel %vm8762_vm14, %v21399_v6, %v12477_v28  ;;  %v21405_v28 = vld [vmem:[#allocation174_spill] sm:$0xff]  ;;  %v4186_v25 = vadd.f32 %v21407_v27, %v4014_v55  ;;  %21408 = vst [vmem:[#allocation38_spill] sm:$0xff] %v19603_v33  ;;  %v4194_v12 = vadd.f32 %v21409_v10, %v4022_v3  ;;  %v4358_v6 = vadd.f32 %v21410_v14, %v4185_v47  ;;  %v21414_v62 = vld [vmem:[#allocation188_spill] sm:$0xff]  ;;  %v21416_v3 = vld [vmem:[#allocation183_spill] sm:$0xff] }
 0x77f   : > { %8872 = vmatpush.msrb.mxu3 %v8765_v2  ;;  %v4193_v41 = vadd.f32 %v21405_v28, %v4021_v35  ;;  %v21411_v2 = vld [vmem:[#allocation181_spill] sm:$0xff]  ;;  %v4360_v35 = vadd.f32 %v21412_v51, %v4187_v39  ;;  %v21413_v59 = vld [vmem:[#allocation182_spill] sm:$0xff]  ;;  %v4357_v61 = vadd.f32 %v21414_v62, %v4184_v42  ;;  %v12528_v28 = vunpack.i.h.bf16 %v19431_v52  ;;  %v21417_v32 = vld [vmem:[#allocation187_spill] sm:$0xff] }
 0x780   : > { %v19608_v20 = vadd.f32 %v21411_v2, %v4017_v53  ;;  %v4359_v55 = vadd.f32 %v21413_v59, %v4186_v25  ;;  %v21415_v47 = vunpack.i.l.bf16 %v19216_v8  ;;  %v4361_v53 = vadd.f32 %v21416_v3, %v4188_v29  ;;  %v21418_v10 = vld [vmem:[#allocation196_spill] sm:$0xff]  ;;  %v21419_v14 = vld [vmem:[#allocation197_spill] sm:$0xff]  ;;  %v19629_v2 = vpop.f32.mrf.mxu1  ;;  %v19637_v29 = vpop.f32.mrf.mxu0 }
 0x781   : > { %v4364_v27 = vadd.f32 %v21417_v32, %v4191_v50  ;;  %v4363_v25 = vadd.f32 %v21418_v10, %v4190_v4  ;;  %v4533_v42 = vadd.f32 %v21419_v14, %v4360_v35  ;;  %21420 = vst [vmem:[#allocation39_spill] sm:$0xff] %v19629_v2  ;;  %v21421_v51 = vld [vmem:[#allocation193_spill] sm:$0xff]  ;;  %v21422_v62 = vld [vmem:[#allocation200_spill] sm:$0xff]  ;;  %v12538_v33 = vunpack.i.h.bf16 %v19393_v18  ;;  %v21424_v50 = vld [vmem:[#allocation191_spill] sm:$0xff] }
 0x782   : > { %v8947_v39 = vsel %vm8935_vm15, %v21415_v47, %v12508_v38  ;;  %v4530_v59 = vadd.f32 %v21421_v51, %v4357_v61  ;;  %v4366_v56 = vadd.f32 %v21422_v62, %v4193_v41  ;;  %v21423_v8 = vunpack.i.l.bf16 %v19444_v57  ;;  %v21425_v4 = vld [vmem:[#allocation195_spill] sm:$0xff]  ;;  %v21426_v35 = vld [vmem:[#allocation201_spill] sm:$0xff]  ;;  %v21430_v62 = vld [vmem:[#allocation204_spill] sm:$0xff]  ;;  %v19646_v57 = vpop.permute.xlu2 %12545 }
 0x783   : > { %9042 = vmatpush.msra.mxu2 %v8947_v39  ;;  %v4367_v47 = vadd.f32 %v21424_v50, %v4194_v12  ;;  %v4532_v3 = vadd.f32 %v21425_v4, %v4359_v55  ;;  %v4536_v39 = vadd.f32 %v21426_v35, %v4363_v25  ;;  %v21427_v32 = vld [vmem:[#allocation203_spill] sm:$0xff]  ;;  %v21429_v41 = vld [vmem:[#allocation205_spill] sm:$0xff]  ;;  %v4531_v40 = vadd.f32 %v21430_v62, %v4358_v6  ;;  %v21433_v25 = vld [vmem:[#allocation208_spill] sm:$0xff]  ;;  %v19662_v6 = vpop.f32.mrf.mxu3 }
 0x784   : > { %v8944_v38 = vsel %vm8935_vm15, %v21423_v8, %v12518_v23  ;;  %v4706_v10 = vadd.f32 %v21427_v32, %v4533_v42  ;;  %v21428_v61 = vld [vmem:[#allocation199_spill] sm:$0xff]  ;;  %v4539_v51 = vadd.f32 %v21429_v41, %v4366_v56  ;;  %v19648_v23 = vpop.permute.xlu0 %12580  ;;  %v21431_v8 = vunpack.i.l.bf16 %v19431_v52  ;;  %21435 = vst [vmem:[#allocation40_spill] sm:$0xff] %v19662_v6  ;;  %v21436_v35 = vld [vmem:[#allocation209_spill] sm:$0xff]  ;;  %v21437_v32 = vld [vmem:[#allocation210_spill] sm:$0xff]  ;;  %10426 = vmatmul.msk.f32.gmra.mxu3 %vm1008_vm9, %v19519_v36 }
 0x785   : > { %9043 = vmatpush.msra.mxu2 %v8944_v38  ;;  %v4703_v14 = vadd.f32 %v21428_v61, %v4530_v59  ;;  %v21432_v55 = vld [vmem:[#allocation207_spill] sm:$0xff]  ;;  %v4534_v4 = vadd.f32 %v21433_v25, %v4361_v53  ;;  %v20540_v59 = vunpack.i.h.bf16 %v19343_v15  ;;  %v4704_v52 = vadd.f32 %v21436_v35, %v4531_v40  ;;  %v21440_v41 = vld [vmem:[#allocation212_spill] sm:$0xff]  ;;  %v19676_v40 = vpop.f32.mrf.mxu2  ;;  %10435 = vmatmul.msk.f32.gmra.mxu1 %vm1008_vm9, %v19593_v16  ;;  %v21446_v36 = vld [vmem:[#allocation245_spill] sm:$0xff] }
 0x786   : > { %v8941_v12 = vsel %vm8935_vm15, %v21431_v8, %v12528_v28  ;;  %v4709_v50 = vadd.f32 %v21432_v55, %v4536_v39  ;;  %v21434_v42 = vld [vmem:[#allocation215_spill] sm:$0xff]  ;;  %v4712_v28 = vadd.f32 %v21437_v32, %v4539_v51  ;;  %v21439_v53 = vunpack.i.l.bf16 %v19393_v18  ;;  %v21441_v8 = vld [vmem:[#allocation240_spill] sm:$0xff]  ;;  %21442 = vst [vmem:[#allocation41_spill] sm:$0xff] %v19676_v40  ;;  %v21443_v51 = vld [vmem:[#allocation213_spill] sm:$0xff]  ;;  %10448 = vmatmul.msk.f32.vlgmr.msra.gmra.mxu0 %vm1008_vm9, %v19584_v11 }
 0x787   : > { %v4879_v38 = vadd.f32 %v21434_v42, %v4706_v10  ;;  %9044 = vmatpush.msra.mxu2 %v8941_v12  ;;  %v19660_v56 = vld [vmem:[%s20464_s2 + $0x588] sm:$0xff]  ;;  %v4537_v62 = vadd.f32 %v21440_v41, %v4364_v27  ;;  %v12547_v55 = vunpack.i.l.bf16 %v19646_v57  ;;  %v21444_v42 = vld [vmem:[#allocation214_spill] sm:$0xff]  ;;  %v21445_v35 = vld [vmem:[#allocation236_spill] sm:$0xff]  ;;  %v20541_v32 = vunpack.i.h.bf16 %v19564_v46 }
 0x788   : > { %v21438_v61 = vld [vmem:[#allocation211_spill] sm:$0xff]  ;;  %v8938_v10 = vsel %vm8935_vm15, %v21439_v53, %v12538_v33  ;;  %v4877_v18 = vadd.f32 %v21444_v42, %v4704_v52  ;;  %10441 = vmatmul.msk.f32.gmra.mxu2 %vm1008_vm9, %v19660_v56  ;;  %v21447_v52 = vld [vmem:[#allocation216_spill] sm:$0xff]  ;;  %v21448_v53 = vld [vmem:[#allocation217_spill] sm:$0xff]  ;;  %v19699_v42 = vpop.f32.mrf.mxu1  ;;  %v21459_v25 = vunpack.i.l.bf16 %v19469_v31 }
 0x789   : > { %v4876_v39 = vadd.f32 %v21438_v61, %v4703_v14  ;;  %v5052_v12 = vadd.f32 %v21441_v8, %v4879_v38  ;;  %9045 = vmatpush.msra.mxu2 %v8938_v10  ;;  %v4707_v14 = vadd.f32 %v21443_v51, %v4534_v4  ;;  %v12548_v38 = vunpack.i.h.bf16 %v19646_v57  ;;  %v12571_v61 = vpop.permute.xlu1 %12570  ;;  %v21449_v41 = vld [vmem:[#allocation218_spill] sm:$0xff]  ;;  %v21450_v51 = vld [vmem:[#allocation241_spill] sm:$0xff]  ;;  %v19697_v57 = vpop.f32.mrf.mxu0  ;;  %21451 = vst [vmem:[#allocation42_spill] sm:$0xff] %v19699_v42  ;;  %v21471_v2 = vld [vmem:[#allocation284_spill] sm:$0xff] }
 0x78a   : > { %v9119_v4 = vsel %vm9108_vm0, %v20540_v59, %v12547_v55  ;;  %v4710_v10 = vadd.f32 %v21448_v53, %v4537_v62  ;;  %v21453_v59 = vunpack.i.h.bf16 %v19297_v0  ;;  %v21454_v62 = vld [vmem:[#allocation219_spill] sm:$0xff]  ;;  %v21458_v6 = vld [vmem:[#allocation262_spill] sm:$0xff] }
 0x78b   : > { %v5049_v33 = vadd.f32 %v21445_v35, %v4876_v39  ;;  %v5224_v27 = vadd.f32 %v21446_v36, %v5052_v12  ;;  %v4540_v39 = vadd.f32 %v21447_v52, %v4367_v47  ;;  %v4880_v8 = vadd.f32 %v21449_v41, %v4707_v14  ;;  %9186 = vmatpush.msra.mxu0 %v9119_v4  ;;  %v21452_v35 = vld [vmem:[#allocation250_spill] sm:$0xff]  ;;  %v21455_v14 = vld [vmem:[#allocation221_spill] sm:$0xff] }
 0x78c   : > { %v9116_v47 = vsel %vm9108_vm0, %v21453_v59, %v12548_v38  ;;  %v4882_v52 = vadd.f32 %v21454_v62, %v4709_v50  ;;  %v21457_v41 = vld [vmem:[#allocation246_spill] sm:$0xff]  ;;  %v9113_v59 = vsel %vm9108_vm0, %v20541_v32, %v21459_v25  ;;  %v19721_v50 = vld [vmem:[%s20464_s2 + $0x590] sm:$0xff]  ;;  %10427 = vmatmul.msk.f32.gmra.mxu3 %vm1008_vm9, %v19593_v16  ;;  %v21465_v32 = vld [vmem:[#allocation289_spill] sm:$0xff] }
 0x78d   : > { %v5221_v12 = vadd.f32 %v21450_v51, %v5049_v33  ;;  %v5397_v36 = vadd.f32 %v21452_v35, %v5224_v27  ;;  %v4713_v53 = vadd.f32 %v21455_v14, %v4540_v39  ;;  %v21456_v33 = vld [vmem:[#allocation220_spill] sm:$0xff]  ;;  %9187 = vmatpush.msra.mxu0 %v9116_v47  ;;  %v12572_v35 = vunpack.i.l.bf16 %v12571_v61  ;;  %v21461_v39 = vld [vmem:[#allocation222_spill] sm:$0xff]  ;;  %v12596_v14 = vpop.permute.xlu0 %12595  ;;  %v21469_v16 = vld [vmem:[#allocation225_spill] sm:$0xff] }
 0x78e   : > { %v4705_v4 = vadd.f32 %v21456_v33, %v4532_v3  ;;  %v19723_v3 = vpop.f32.mrf.mxu3  ;;  %v21462_v47 = vld [vmem:[#allocation244_spill] sm:$0xff]  ;;  %v19733_v25 = vld [vmem:[%s20464_s2 + $0x5a0] sm:$0xff]  ;;  %v21464_v33 = vld [vmem:[#allocation223_spill] sm:$0xff]  ;;  %v12597_v37 = vunpack.i.l.bf16 %v12596_v14  ;;  %10449 = vmatmul.msk.f32.gmra.mxu0 %vm1008_vm9, %v19660_v56 }
 0x78f   : > { %v5394_v51 = vadd.f32 %v21457_v41, %v5221_v12  ;;  %v5570_v40 = vadd.f32 %v21458_v6, %v5397_v36  ;;  %21460 = vst [vmem:[#allocation43_spill] sm:$0xff] %v19723_v3  ;;  %v4883_v12 = vadd.f32 %v21461_v39, %v4710_v10  ;;  %v5055_v6 = vadd.f32 %v21462_v47, %v4882_v52  ;;  %v21463_v36 = vld [vmem:[#allocation259_spill] sm:$0xff]  ;;  %v19737_v3 = vpop.permute.xlu2 %12560  ;;  %v19744_v39 = vpop.f32.mrf.mxu2 }
 0x790   : > { %9188 = vmatpush.msra.mxu0 %v9113_v59  ;;  %v4885_v41 = vadd.f32 %v21464_v33, %v4712_v28  ;;  %v12573_v10 = vunpack.i.h.bf16 %v12571_v61  ;;  %v21466_v52 = vunpack.i.h.bf16 %v19469_v31  ;;  %21468 = vst [vmem:[#allocation49_spill] sm:$0xff] %v19744_v39  ;;  %v19747_v47 = vadd.f32 %v21469_v16, %v4705_v4  ;;  %10442 = vmatmul.msk.f32.gmra.mxu2 %vm1008_vm9, %v19721_v50  ;;  %v21473_v61 = vld [vmem:[#allocation296_spill] sm:$0xff] }
 0x791   : > { %v5567_v62 = vadd.f32 %v21463_v36, %v5394_v51  ;;  %v5743_v27 = vadd.f32 %v21465_v32, %v5570_v40  ;;  %v21467_v51 = vunpack.i.h.bf16 %v19512_v63  ;;  %v21470_v36 = vld [vmem:[#allocation249_spill] sm:$0xff]  ;;  %v21472_v40 = vld [vmem:[#allocation226_spill] sm:$0xff]  ;;  %10456 = vmatmul.msk.f32.vlgmr.msrb.gmra.mxu1 %vm1008_vm9, %v19733_v25  ;;  %v9120_v4 = vsel %vm9108_vm0, %v12547_v55, %v12572_v35 }
 0x792   : > { %v5227_v42 = vadd.f32 %v21470_v36, %v5055_v6  ;;  %v4886_v32 = vadd.f32 %v21472_v40, %v4713_v53  ;;  %v21474_v6 = vld [vmem:[#allocation227_spill] sm:$0xff]  ;;  %v12512_v16 = vunpack.i.l.bf16 %v19343_v15  ;;  %9215 = vmatpush.msrb.mxu1 %v9120_v4  ;;  %v19764_v53 = vpop.f32.mrf.mxu0  ;;  %v21479_v36 = vld [vmem:[#allocation248_spill] sm:$0xff]  ;;  %v12598_v39 = vunpack.i.h.bf16 %v12596_v14  ;;  %v21480_v35 = vld [vmem:[#allocation230_spill] sm:$0xff] }
 0x793   : > { %v9110_v59 = vsel %vm9108_vm0, %v21467_v51, %v21466_v52  ;;  %v5740_v28 = vadd.f32 %v21471_v2, %v5567_v62  ;;  %v5916_v33 = vadd.f32 %v21473_v61, %v5743_v27  ;;  %v5050_v52 = vadd.f32 %v21474_v6, %v4877_v18  ;;  %v21475_v2 = vld [vmem:[#allocation254_spill] sm:$0xff]  ;;  %21477 = vst [vmem:[#allocation45_spill] sm:$0xff] %v19764_v53  ;;  %v19766_v27 = vpop.f32.mrf.mxu1  ;;  %v21484_v4 = vld [vmem:[#allocation253_spill] sm:$0xff] }
 0x794   : > { %9189 = vmatpush.msra.mxu0 %v9110_v59  ;;  %v5400_v62 = vadd.f32 %v21475_v2, %v5227_v42  ;;  %v21476_v51 = vld [vmem:[#allocation290_spill] sm:$0xff]  ;;  %21478 = vst [vmem:[#allocation46_spill] sm:$0xff] %v19766_v27  ;;  %v5058_v40 = vadd.f32 %v21479_v36, %v4885_v41  ;;  %v9117_v55 = vsel %vm9108_vm0, %v12548_v38, %v12573_v10  ;;  %v12522_v41 = vunpack.i.l.bf16 %v19297_v0  ;;  %v19784_v38 = vld [vmem:[%s20464_s2 + $0x598] sm:$0xff] }
 0x795   : > { %v5913_v59 = vadd.f32 %v21476_v51, %v5740_v28  ;;  %v6089_v61 = vadd.f32 %v18130_v44, %v5916_v33  ;;  %v5053_v18 = vadd.f32 %v21480_v35, %v4880_v8  ;;  %v21481_v6 = vld [vmem:[#allocation234_spill] sm:$0xff]  ;;  %9216 = vmatpush.msrb.mxu1 %v9117_v55  ;;  %v21485_v44 = vunpack.i.l.bf16 %v19469_v31  ;;  %10444 = vmatmul.msk.f32.vlgmr.msra.gmra.mxu3 %vm1008_vm9, %v19584_v11 }
 0x796   : > { %v5056_v42 = vadd.f32 %v21481_v6, %v4883_v12  ;;  %v21482_v2 = vld [vmem:[#allocation266_spill] sm:$0xff]  ;;  %v5230_v53 = vadd.f32 %v21484_v4, %v5058_v40  ;;  %v19786_v8 = vpop.f32.mrf.mxu3  ;;  %v21491_v6 = vld [vmem:[#allocation300_spill] sm:$0xff]  ;;  %10450 = vmatmul.msk.f32.gmra.mxu0 %vm1008_vm9, %v19721_v50 }
 0x797   : > { %v5573_v28 = vadd.f32 %v21482_v2, %v5400_v62  ;;  %v21483_v51 = vld [vmem:[#allocation298_spill] sm:$0xff]  ;;  %v6262_v27 = vadd.f32 %v18294_v48, %v6089_v61  ;;  %v9114_v14 = vsel %vm9108_vm0, %v21485_v44, %v12597_v37  ;;  %v19795_v48 = vld [vmem:[%s20464_s2 + $0x5a8] sm:$0xff]  ;;  %v21487_v37 = vunpack.i.h.bf16 %v19343_v15  ;;  %v19806_v11 = vpop.f32.mrf.mxu2 }
 0x798   : > { %v6086_v26 = vadd.f32 %v21483_v51, %v5913_v59  ;;  %v21486_v12 = vld [vmem:[#allocation294_spill] sm:$0xff]  ;;  %9217 = vmatpush.msrb.mxu1 %v9114_v14  ;;  %v21488_v59 = vld [vmem:[#allocation252_spill] sm:$0xff]  ;;  %v12532_v61 = vunpack.i.l.bf16 %v19564_v46  ;;  %10443 = vmatmul.msk.f32.gmra.mxu2 %vm1008_vm9, %v19784_v38 }
 0x799   : > { %v5746_v10 = vadd.f32 %v21486_v12, %v5573_v28  ;;  %v9118_v62 = vsel %vm9108_vm0, %v12512_v16, %v21487_v37  ;;  %v5222_v36 = vadd.f32 %v21488_v59, %v5050_v52  ;;  %v6435_v40 = vadd.f32 %v18587_v9, %v6262_v27  ;;  %v21490_v55 = vld [vmem:[#allocation258_spill] sm:$0xff]  ;;  %v21492_v9 = vld [vmem:[#allocation256_spill] sm:$0xff]  ;;  %10457 = vmatmul.msk.f32.gmra.mxu1 %vm1008_vm9, %v19795_v48  ;;  %v21494_v27 = vld [vmem:[#allocation257_spill] sm:$0xff] }
 0x79a   : > { %v6259_v33 = vadd.f32 %v18236_v60, %v6086_v26  ;;  %v21489_v60 = vunpack.i.h.bf16 %v19469_v31  ;;  %9157 = vmatpush.msra.mxu3 %v9118_v62  ;;  %v5403_v35 = vadd.f32 %v21490_v55, %v5230_v53  ;;  %v5225_v52 = vadd.f32 %v21492_v9, %v5053_v18  ;;  %v19815_v31 = vpop.permute.xlu2 %12575  ;;  %v21495_v51 = vld [vmem:[#allocation270_spill] sm:$0xff]  ;;  %v19829_v44 = vpop.f32.mrf.mxu0  ;;  %v21499_v59 = vld [vmem:[#allocation263_spill] sm:$0xff] }
 0x79b   : > { %v5919_v2 = vadd.f32 %v21491_v6, %v5746_v10  ;;  %v6608_v16 = vadd.f32 %v18649_v1, %v6435_v40  ;;  %v5395_v28 = vadd.f32 %v21494_v27, %v5222_v36  ;;  %v19831_v14 = vpop.f32.mrf.mxu1  ;;  %v21496_v12 = vld [vmem:[#allocation238_spill] sm:$0xff]  ;;  %v21498_v37 = vunpack.i.h.bf16 %v19564_v46  ;;  %v21500_v36 = vld [vmem:[#allocation299_spill] sm:$0xff] }
 0x79c   : > { %v9111_v26 = vsel %vm9108_vm0, %v21489_v60, %v12598_v39  ;;  %v6432_v15 = vadd.f32 %v18536_v21, %v6259_v33  ;;  %v12542_v39 = vunpack.i.l.bf16 %v19512_v63  ;;  %v21493_v21 = vunpack.i.h.bf16 %v19297_v0  ;;  %v21497_v33 = vld [vmem:[#allocation261_spill] sm:$0xff] }
 0x79d   : > { %9218 = vmatpush.msrb.mxu1 %v9111_v26  ;;  %v5576_v18 = vadd.f32 %v21495_v51, %v5403_v35  ;;  %v6092_v1 = vadd.f32 %v18184_v45, %v5919_v2  ;;  %v19834_v10 = vadd.f32 %v21496_v12, %v4886_v32  ;;  %v5398_v0 = vadd.f32 %v21497_v33, %v5225_v52  ;;  %v21502_v35 = vld [vmem:[#allocation260_spill] sm:$0xff]  ;;  %v21503_v2 = vld [vmem:[#allocation267_spill] sm:$0xff] }
 0x79e   : > { %v9115_v53 = vsel %vm9108_vm0, %v12522_v41, %v21493_v21  ;;  %v6605_v4 = vadd.f32 %v18595_v13, %v6432_v15  ;;  %v6781_v41 = vadd.f32 %v18703_v19, %v6608_v16  ;;  %v9112_v62 = vsel %vm9108_vm0, %v12532_v61, %v21498_v37  ;;  %v19848_v19 = vpop.permute.xlu1 %12585  ;;  %v7781_v52 = vpop.f32.mrf.mxu3  ;;  %v21505_v16 = vld [vmem:[#allocation275_spill] sm:$0xff]  ;;  %10445 = vmatmul.msk.f32.gmra.mxu3 %vm1008_vm9, %v19660_v56 }
 0x79f   : > { %9158 = vmatpush.msra.mxu3 %v9115_v53  ;;  %v5568_v45 = vadd.f32 %v21499_v59, %v5395_v28  ;;  %v5749_v13 = vadd.f32 %v21500_v36, %v5576_v18  ;;  %v6265_v40 = vadd.f32 %v18334_v34, %v6092_v1  ;;  %v12558_v26 = vunpack.i.h.bf16 %v19611_v54  ;;  %v21508_v28 = vld [vmem:[#allocation334_spill] sm:$0xff]  ;;  %v21509_v1 = vld [vmem:[#allocation367_spill] sm:$0xff]  ;;  %10451 = vmatmul.msk.f32.gmra.mxu0 %vm1008_vm9, %v19784_v38 }
 0x7a0   : > { %v6778_v60 = vadd.f32 %v18664_v43, %v6605_v4  ;;  %v6954_v32 = vadd.f32 %v18819_v17, %v6781_v41  ;;  %v12557_v55 = vunpack.i.l.bf16 %v19611_v54  ;;  %v21501_v46 = vunpack.i.h.bf16 %v19512_v63  ;;  %v21504_v43 = vld [vmem:[#allocation343_spill] sm:$0xff]  ;;  %v19860_v17 = vld [vmem:[%s20464_s2 + $0x5b0] sm:$0xff]  ;;  %10460 = vmatmul.msk.f32.vlgmr.msrb.gmra.mxu2 %vm1008_vm9, %v19733_v25  ;;  %v21513_v36 = vld [vmem:[#allocation338_spill] sm:$0xff] }
 0x7a1   : > { %9159 = vmatpush.msra.mxu3 %v9112_v62  ;;  %v5228_v6 = vadd.f32 %v21502_v35, %v5056_v42  ;;  %v5571_v15 = vadd.f32 %v21503_v2, %v5398_v0  ;;  %v6438_v34 = vadd.f32 %v18635_v24, %v6265_v40  ;;  %v5741_v21 = vadd.f32 %v21505_v16, %v5568_v45  ;;  %v21506_v63 = vld [vmem:[#allocation303_spill] sm:$0xff]  ;;  %v7951_v24 = vpop.f32.mrf.mxu2  ;;  %v21510_v0 = vld [vmem:[#allocation10_spill] sm:$0xff]  ;;  %v21514_v40 = vld [vmem:[#allocation372_spill] sm:$0xff] }
 0x7a2   : > { %v9109_v61 = vsel %vm9108_vm0, %v12542_v39, %v21501_v46  ;;  %v6951_v9 = vadd.f32 %v21504_v43, %v6778_v60  ;;  %v5922_v53 = vadd.f32 %v21506_v63, %v5749_v13  ;;  %v21507_v39 = vld [vmem:[#allocation371_spill] sm:$0xff]  ;;  %v12567_v42 = vunpack.i.l.bf16 %v19566_v30  ;;  %10458 = vmatmul.msk.f32.gmra.mxu1 %vm1008_vm9, %v19860_v17  ;;  %v12591_v46 = vpop.permute.xlu2 %12590  ;;  %v21515_v2 = vld [vmem:[#allocation17_spill] sm:$0xff]  ;;  %v21517_v16 = vld [vmem:[#allocation302_spill] sm:$0xff] }
 0x7a3   : > { %9160 = vmatpush.msra.mxu3 %v9109_v61  ;;  %v7159_v27 = vadd.f32 %v21507_v39, %v6954_v32  ;;  %v6611_v51 = vadd.f32 %v21508_v28, %v6438_v34  ;;  %v12563_v18 = vunpack.i.h.bf16 %v19737_v3  ;;  %v12578_v12 = vunpack.i.h.bf16 %v19815_v31  ;;  %v21511_v37 = vld [vmem:[#allocation279_spill] sm:$0xff]  ;;  %v19887_v32 = vpop.f32.mrf.mxu1  ;;  %v21516_v43 = vld [vmem:[#allocation265_spill] sm:$0xff] }
 0x7a4   : > { %v7156_v4 = vadd.f32 %v21509_v1, %v6951_v9  ;;  %v12577_v33 = vunpack.i.l.bf16 %v19815_v31  ;;  %v9291_v56 = vsel %vm9281_vm1, %v12557_v55, %v12558_v26  ;;  %v5744_v62 = vadd.f32 %v21511_v37, %v5571_v15  ;;  %v21512_v59 = vld [vmem:[#allocation307_spill] sm:$0xff]  ;;  %v19895_v15 = vpop.f32.mrf.mxu0  ;;  %v21523_v37 = vld [vmem:[#allocation306_spill] sm:$0xff] }
 0x7a5   : > { %v7332_v41 = vadd.f32 %v21510_v0, %v7159_v27  ;;  %v6095_v45 = vadd.f32 %v21512_v59, %v5922_v53  ;;  %v6784_v13 = vadd.f32 %v21513_v36, %v6611_v51  ;;  %9330 = vmatpush.msrb.mxu2 %v9291_v56  ;;  %v12583_v61 = vunpack.i.h.bf16 %v19648_v23  ;;  %v21518_v53 = vld [vmem:[#allocation305_spill] sm:$0xff]  ;;  %v21519_v27 = vld [vmem:[#allocation12_spill] sm:$0xff] }
 0x7a6   : > { %v7329_v60 = vadd.f32 %v21514_v40, %v7156_v4  ;;  %v12587_v35 = vunpack.i.l.bf16 %v19848_v19  ;;  %v9288_v55 = vsel %vm9281_vm1, %v12563_v18, %v12567_v42  ;;  %v5401_v9 = vadd.f32 %v21516_v43, %v5228_v6  ;;  %v21520_v51 = vld [vmem:[#allocation317_spill] sm:$0xff]  ;;  %v21525_v40 = vld [vmem:[#allocation20_spill] sm:$0xff]  ;;  %v12601_v43 = vpop.permute.xlu1 %12600  ;;  %10446 = vmatmul.msk.f32.gmra.mxu3 %vm1008_vm9, %v19721_v50 }
 0x7a7   : > { %v7505_v34 = vadd.f32 %v21515_v2, %v7332_v41  ;;  %v5914_v63 = vadd.f32 %v21517_v16, %v5741_v21  ;;  %v5917_v39 = vadd.f32 %v21518_v53, %v5744_v62  ;;  %9331 = vmatpush.msrb.mxu2 %v9288_v55  ;;  %v6268_v1 = vadd.f32 %v21520_v51, %v6095_v45  ;;  %v21521_v4 = vld [vmem:[#allocation349_spill] sm:$0xff] }
 0x7a8   : > { %v7502_v28 = vadd.f32 %v21519_v27, %v7329_v60  ;;  %v6957_v0 = vadd.f32 %v21521_v4, %v6784_v13  ;;  %v21522_v41 = vld [vmem:[#allocation29_spill] sm:$0xff]  ;;  %v9285_v18 = vsel %vm9281_vm1, %v12577_v33, %v12578_v12  ;;  %v12592_v21 = vunpack.i.l.bf16 %v12591_v46  ;;  %v7784_v13 = vpop.f32.mrf.mxu3  ;;  %10461 = vmatmul.msk.f32.gmra.mxu2 %vm1008_vm9, %v19795_v48 }
 0x7a9   : > { %v7678_v56 = vadd.f32 %v21522_v41, %v7505_v34  ;;  %v6087_v59 = vadd.f32 %v21523_v37, %v5914_v63  ;;  %v21524_v6 = vld [vmem:[#allocation309_spill] sm:$0xff]  ;;  %9332 = vmatpush.msrb.mxu2 %v9285_v18  ;;  %v9282_v16 = vsel %vm9281_vm1, %v12583_v61, %v12587_v35  ;;  %v19925_v63 = vld [vmem:[%s20464_s2 + $0x5c0] sm:$0xff]  ;;  %v12562_v53 = vunpack.i.l.bf16 %v19737_v3 }
 0x7aa   : > { %v6090_v36 = vadd.f32 %v21524_v6, %v5917_v39  ;;  %v7675_v62 = vadd.f32 %v21525_v40, %v7502_v28  ;;  %v19913_v45 = vld [vmem:[%s20464_s2 + $0x5b8] sm:$0xff]  ;;  %v12593_v39 = vunpack.i.h.bf16 %v12591_v46  ;;  %v12568_v27 = vunpack.i.h.bf16 %v19566_v30  ;;  %v21529_v61 = vld [vmem:[#allocation14_spill] sm:$0xff]  ;;  %10472 = vmatmul.msk.f32.vlgmr.msrb.gmra.mxu0 %vm1008_vm9, %v19925_v63 }
 0x7ab   : > { %v21526_v60 = vld [vmem:[#allocation333_spill] sm:$0xff]  ;;  %v7851_v33 = vadd.f32 %v7781_v52, %v7678_v56  ;;  %9333 = vmatpush.msrb.mxu2 %v9282_v16  ;;  %v7954_v52 = vpop.f32.mrf.mxu2  ;;  %10459 = vmatmul.msk.f32.gmra.mxu1 %vm1008_vm9, %v19913_v45  ;;  %v12602_v46 = vunpack.i.l.bf16 %v12601_v43  ;;  %v21531_v18 = vld [vmem:[#allocation310_spill] sm:$0xff] }
 0x7ac   : > { %v6441_v2 = vadd.f32 %v21526_v60, %v6268_v1  ;;  %v21527_v34 = vld [vmem:[#allocation13_spill] sm:$0xff]  ;;  %v7848_v28 = vadd.f32 %v19786_v8, %v7675_v62  ;;  %v9293_v8 = vsel %vm9281_vm1, %v12562_v53, %v12592_v21  ;;  %v6260_v37 = vadd.f32 %v21531_v18, %v6087_v59  ;;  %v21533_v62 = vld [vmem:[#allocation342_spill] sm:$0xff]  ;;  %v21535_v59 = vld [vmem:[#allocation264_spill] sm:$0xff] }
 0x7ad   : > { %v7162_v55 = vadd.f32 %v21527_v34, %v6957_v0  ;;  %v21528_v51 = vld [vmem:[#allocation337_spill] sm:$0xff]  ;;  %v8024_v50 = vadd.f32 %v7954_v52, %v7851_v33  ;;  %v21530_v0 = vld [vmem:[#allocation271_spill] sm:$0xff]  ;;  %9388 = vmatpush.msrb.mxu0 %v9293_v8  ;;  %v12603_v33 = vunpack.i.h.bf16 %v12601_v43  ;;  %v9290_v16 = vsel %vm9281_vm1, %v12568_v27, %v12593_v39  ;;  %v21539_v8 = vld [vmem:[#allocation324_spill] sm:$0xff] }
 0x7ae   : > { %v6614_v1 = vadd.f32 %v21528_v51, %v6441_v2  ;;  %v5574_v41 = vadd.f32 %v21530_v0, %v5401_v9  ;;  %v8021_v56 = vadd.f32 %v7951_v24, %v7848_v28  ;;  %v21532_v6 = vld [vmem:[#allocation313_spill] sm:$0xff]  ;;  %v21534_v2 = vld [vmem:[#allocation8_spill] sm:$0xff]  ;;  %v8124_v9 = vpop.f32.mrf.mxu1  ;;  %v12582_v24 = vunpack.i.l.bf16 %v19648_v23  ;;  %10447 = vmatmul.msk.f32.gmra.mxu3 %vm1008_vm9, %v19784_v38 }
 0x7af   : > { %v7335_v4 = vadd.f32 %v21529_v61, %v7162_v55  ;;  %v6263_v40 = vadd.f32 %v21532_v6, %v6090_v36  ;;  %v19946_v55 = vpop.f32.mrf.mxu0  ;;  %v5231_v36 = vadd.f32 %v21535_v59, %v19834_v10  ;;  %v21536_v28 = vld [vmem:[#allocation321_spill] sm:$0xff]  ;;  %9389 = vmatpush.msrb.mxu0 %v9290_v16  ;;  %v12588_v18 = vunpack.i.h.bf16 %v19848_v19  ;;  %v21540_v6 = vld [vmem:[#allocation336_spill] sm:$0xff]  ;;  %v21589_v19 = vld [vmem:[#allocation347_spill] sm:$0xff] }
 0x7b0   : > { %v6787_v60 = vadd.f32 %v21533_v62, %v6614_v1  ;;  %v19952_v21 = vadd.f32 %v8124_v9, %v8021_v56  ;;  %v6433_v52 = vadd.f32 %v21536_v28, %v6260_v37  ;;  %v21537_v51 = vld [vmem:[#allocation353_spill] sm:$0xff]  ;;  %v9287_v39 = vsel %vm9281_vm1, %v12582_v24, %v12602_v46  ;;  %v7787_v56 = vpop.f32.mrf.mxu3  ;;  %v21541_v62 = vld [vmem:[#allocation16_spill] sm:$0xff]  ;;  %10462 = vmatmul.msk.f32.gmra.mxu2 %vm1008_vm9, %v19860_v17 }
 0x7b1   : > { %v7508_v34 = vadd.f32 %v21534_v2, %v7335_v4  ;;  %v21538_v4 = vld [vmem:[#allocation283_spill] sm:$0xff]  ;;  %v6436_v43 = vadd.f32 %v21539_v8, %v6263_v40  ;;  %9390 = vmatpush.msrb.mxu0 %v9287_v39  ;;  %v21544_v46 = vld [vmem:[#allocation340_spill] sm:$0xff]  ;;  %v9284_v16 = vsel %vm9281_vm1, %v12588_v18, %v12603_v33  ;;  %v21545_v59 = vld [vmem:[#allocation341_spill] sm:$0xff]  ;;  %v9286_v30 = vsel %vm9281_vm1, %v12578_v12, %v12582_v24 }
 0x7b2   : > { %v6960_v1 = vadd.f32 %v21537_v51, %v6787_v60  ;;  %v5747_v0 = vadd.f32 %v21538_v4, %v5574_v41  ;;  %v6606_v10 = vadd.f32 %v21540_v6, %v6433_v52  ;;  %v21542_v41 = vld [vmem:[#allocation269_spill] sm:$0xff]  ;;  %v21543_v60 = vld [vmem:[#allocation308_spill] sm:$0xff]  ;;  %v21550_v33 = vld [vmem:[#allocation186_spill] sm:$0xff]  ;;  %v9283_v31 = vsel %vm9281_vm1, %v12587_v35, %v12588_v18 }
 0x7b3   : > { %v7681_v61 = vadd.f32 %v19484_v49, %v7508_v34  ;;  %v19972_v49 = vld [vmem:[%s20464_s2 + $0x5c8] sm:$0xff]  ;;  %v5404_v40 = vadd.f32 %v21542_v41, %v5231_v36  ;;  %v6609_v9 = vadd.f32 %v21544_v46, %v6436_v43  ;;  %v21546_v52 = vld [vmem:[#allocation21_spill] sm:$0xff]  ;;  %9391 = vmatpush.msrb.mxu0 %v9284_v16  ;;  %10476 = vmatmul.msk.f32.vlgmr.msra.gmra.mxu1 %vm1008_vm9, %v19925_v63  ;;  %v21551_v39 = vld [vmem:[#allocation274_spill] sm:$0xff] }
 0x7b4   : > { %v7165_v37 = vadd.f32 %v21541_v62, %v6960_v1  ;;  %v5920_v34 = vadd.f32 %v21543_v60, %v5747_v0  ;;  %v6779_v28 = vadd.f32 %v21545_v59, %v6606_v10  ;;  %v21547_v36 = vld [vmem:[#allocation231_spill] sm:$0xff]  ;;  %v21549_v0 = vld [vmem:[#allocation345_spill] sm:$0xff]  ;;  %10473 = vmatmul.msk.f32.gmra.mxu0 %vm1008_vm9, %v19972_v49  ;;  %v4362_v43 = vadd.f32 %v21550_v33, %v19608_v20  ;;  %v21552_v10 = vld [vmem:[#allocation346_spill] sm:$0xff] }
 0x7b5   : > { %v7854_v2 = vadd.f32 %v7784_v13, %v7681_v61  ;;  %v7957_v13 = vpop.f32.mrf.mxu2  ;;  %v5051_v1 = vadd.f32 %v21547_v36, %v19747_v47  ;;  %v21548_v61 = vld [vmem:[#allocation312_spill] sm:$0xff]  ;;  %v6782_v8 = vadd.f32 %v21549_v0, %v6609_v9  ;;  %v5577_v6 = vadd.f32 %v21551_v39, %v5404_v40  ;;  %v21554_v60 = vld [vmem:[#allocation243_spill] sm:$0xff]  ;;  %v21556_v16 = vld [vmem:[#allocation350_spill] sm:$0xff] }
 0x7b6   : > { %v7338_v38 = vadd.f32 %v21546_v52, %v7165_v37  ;;  %v6093_v4 = vadd.f32 %v21548_v61, %v5920_v34  ;;  %v6952_v62 = vadd.f32 %v21552_v10, %v6779_v28  ;;  %v21553_v37 = vld [vmem:[#allocation31_spill] sm:$0xff]  ;;  %v8127_v41 = vpop.f32.mrf.mxu1  ;;  %v21555_v46 = vld [vmem:[#allocation316_spill] sm:$0xff]  ;;  %v21559_v61 = vld [vmem:[#allocation358_spill] sm:$0xff]  ;;  %10464 = vmatmul.msk.f32.vlgmr.msrb.gmra.mxu3 %vm1008_vm9, %v19733_v25 }
 0x7b7   : > { %v8027_v51 = vadd.f32 %v7957_v13, %v7854_v2  ;;  %v19997_v47 = vpop.f32.mrf.mxu0  ;;  %v5223_v34 = vadd.f32 %v21554_v60, %v5051_v1  ;;  %v6955_v13 = vadd.f32 %v21556_v16, %v6782_v8  ;;  %v20002_v59 = vadd.f32 %v8127_v41, %v8024_v50  ;;  %v21557_v52 = vld [vmem:[#allocation180_spill] sm:$0xff]  ;;  %v21560_v0 = vld [vmem:[#allocation198_spill] sm:$0xff]  ;;  %v21564_v50 = vld [vmem:[#allocation311_spill] sm:$0xff] }
 0x7b8   : > { %v7511_v2 = vadd.f32 %v21553_v37, %v7338_v38  ;;  %v6266_v9 = vadd.f32 %v21555_v46, %v6093_v4  ;;  %v4020_v20 = vadd.f32 %v21557_v52, %v19536_v58  ;;  %v21558_v36 = vld [vmem:[#allocation288_spill] sm:$0xff]  ;;  %v7157_v28 = vadd.f32 %v21559_v61, %v6952_v62  ;;  %v21563_v4 = vld [vmem:[#allocation362_spill] sm:$0xff]  ;;  %v7980_v8 = vpop.f32.mrf.mxu3  ;;  %v21565_v46 = vld [vmem:[#allocation23_spill] sm:$0xff]  ;;  %10463 = vmatmul.msk.f32.gmra.mxu2 %vm1008_vm9, %v19913_v45 }
 0x7b9   : > { %v5750_v40 = vadd.f32 %v21558_v36, %v5577_v6  ;;  %v4535_v33 = vadd.f32 %v21560_v0, %v4362_v43  ;;  %v21561_v39 = vld [vmem:[#allocation268_spill] sm:$0xff]  ;;  %v7160_v60 = vadd.f32 %v21563_v4, %v6955_v13  ;;  %v9292_v43 = vsel %vm9281_vm1, %v12558_v26, %v12562_v53  ;;  %v21566_v6 = vld [vmem:[#allocation185_spill] sm:$0xff]  ;;  %v21571_v61 = vld [vmem:[#allocation315_spill] sm:$0xff] }
 0x7ba   : > { %v7684_v38 = vadd.f32 %v19557_v7, %v7511_v2  ;;  %v5396_v10 = vadd.f32 %v21561_v39, %v5223_v34  ;;  %v21562_v1 = vld [vmem:[#allocation328_spill] sm:$0xff]  ;;  %v7330_v16 = vadd.f32 %v21565_v46, %v7157_v28  ;;  %v4192_v62 = vadd.f32 %v21566_v6, %v4020_v20  ;;  %9359 = vmatpush.msrb.mxu3 %v9292_v43  ;;  %v21570_v36 = vld [vmem:[#allocation273_spill] sm:$0xff]  ;;  %v21574_v20 = vld [vmem:[#allocation26_spill] sm:$0xff] }
 0x7bb   : > { %v6439_v37 = vadd.f32 %v21562_v1, %v6266_v9  ;;  %v5923_v41 = vadd.f32 %v21564_v50, %v5750_v40  ;;  %v20020_v7 = vld [vmem:[%s20464_s2 + $0x5d0] sm:$0xff]  ;;  %10477 = vmatmul.msk.f32.gmra.mxu1 %vm1008_vm9, %v19972_v49  ;;  %v21575_v39 = vld [vmem:[#allocation229_spill] sm:$0xff]  ;;  %v21576_v1 = vld [vmem:[#allocation278_spill] sm:$0xff] }
 0x7bc   : > { %v7857_v58 = vadd.f32 %v7787_v56, %v7684_v38  ;;  %v21567_v2 = vld [vmem:[#allocation224_spill] sm:$0xff]  ;;  %v5569_v40 = vadd.f32 %v21570_v36, %v5396_v10  ;;  %v21572_v38 = vld [vmem:[#allocation11_spill] sm:$0xff]  ;;  %10474 = vmatmul.msk.f32.gmra.mxu0 %vm1008_vm9, %v20020_v7  ;;  %v21590_v35 = vld [vmem:[#allocation22_spill] sm:$0xff] }
 0x7bd   : > { %v4708_v34 = vadd.f32 %v21567_v2, %v4535_v33  ;;  %v21568_v9 = vld [vmem:[#allocation344_spill] sm:$0xff]  ;;  %v7960_v25 = vpop.f32.mrf.mxu2  ;;  %v6096_v28 = vadd.f32 %v21571_v61, %v5923_v41  ;;  %v7503_v3 = vadd.f32 %v21572_v38, %v7330_v16  ;;  %v9289_v33 = vsel %vm9281_vm1, %v12567_v42, %v12568_v27  ;;  %v21580_v27 = vld [vmem:[#allocation190_spill] sm:$0xff]  ;;  %v21587_v61 = vld [vmem:[#allocation247_spill] sm:$0xff] }
 0x7be   : > { %v6612_v56 = vadd.f32 %v21568_v9, %v6439_v37  ;;  %v21569_v13 = vld [vmem:[#allocation24_spill] sm:$0xff]  ;;  %v8030_v54 = vadd.f32 %v7960_v25, %v7857_v58  ;;  %v5742_v37 = vadd.f32 %v21576_v1, %v5569_v40  ;;  %9360 = vmatpush.msrb.mxu3 %v9289_v33  ;;  %v8130_v16 = vpop.f32.mrf.mxu1  ;;  %v21579_v58 = vld [vmem:[#allocation354_spill] sm:$0xff]  ;;  %v4365_v2 = vadd.f32 %v21580_v27, %v4192_v62  ;;  %v21583_v25 = vld [vmem:[#allocation291_spill] sm:$0xff] }
 0x7bf   : > { %v7333_v52 = vadd.f32 %v21569_v13, %v7160_v60  ;;  %v21573_v26 = vld [vmem:[#allocation348_spill] sm:$0xff]  ;;  %v4881_v10 = vadd.f32 %v21575_v39, %v4708_v34  ;;  %v20051_v46 = vpop.f32.mrf.mxu0  ;;  %v20060_v42 = vadd.f32 %v8130_v16, %v8027_v51  ;;  %v21581_v34 = vld [vmem:[#allocation235_spill] sm:$0xff]  ;;  %v21586_v51 = vld [vmem:[#allocation202_spill] sm:$0xff]  ;;  %10465 = vmatmul.msk.f32.gmra.mxu3 %vm1008_vm9, %v19795_v48 }
 0x7c0   : > { %v6785_v53 = vadd.f32 %v21573_v26, %v6612_v56  ;;  %v21577_v4 = vld [vmem:[#allocation320_spill] sm:$0xff]  ;;  %v21582_v56 = vld [vmem:[#allocation293_spill] sm:$0xff]  ;;  %9361 = vmatpush.msrb.mxu3 %v9286_v30  ;;  %v4538_v62 = vadd.f32 %v21586_v51, %v4365_v2  ;;  %10480 = vmatmul.msk.f32.vlgmr.msra.gmra.mxu2 %vm1008_vm9, %v19925_v63  ;;  %v21597_v48 = vld [vmem:[#allocation194_spill] sm:$0xff] }
 0x7c1   : > { %v7506_v0 = vadd.f32 %v21574_v20, %v7333_v52  ;;  %v6269_v60 = vadd.f32 %v21577_v4, %v6096_v28  ;;  %v21578_v50 = vld [vmem:[#allocation28_spill] sm:$0xff]  ;;  %v5054_v9 = vadd.f32 %v21581_v34, %v4881_v10  ;;  %v5915_v13 = vadd.f32 %v21582_v56, %v5742_v37  ;;  %v20081_v38 = vld [vmem:[%s20464_s2 + $0x5d8] sm:$0xff]  ;;  %v21594_v4 = vld [vmem:[#allocation319_spill] sm:$0xff] }
 0x7c2   : > { %v7676_v41 = vadd.f32 %v21578_v50, %v7503_v3  ;;  %v6958_v43 = vadd.f32 %v21579_v58, %v6785_v53  ;;  %v21585_v12 = vld [vmem:[#allocation184_spill] sm:$0xff]  ;;  %9362 = vmatpush.msrb.mxu3 %v9283_v31  ;;  %v21588_v3 = vld [vmem:[#allocation314_spill] sm:$0xff]  ;;  %v21599_v27 = vld [vmem:[#allocation277_spill] sm:$0xff] }
 0x7c3   : > { %v7679_v6 = vadd.f32 %v19486_v22, %v7506_v0  ;;  %v6442_v36 = vadd.f32 %v21583_v25, %v6269_v60  ;;  %v21584_v22 = vld [vmem:[#allocation366_spill] sm:$0xff]  ;;  %v4023_v24 = vadd.f32 %v21585_v12, %v19552_v5  ;;  %v6088_v26 = vadd.f32 %v21588_v3, %v5915_v13  ;;  %v21591_v0 = vld [vmem:[#allocation189_spill] sm:$0xff]  ;;  %v21592_v33 = vld [vmem:[#allocation228_spill] sm:$0xff]  ;;  %10478 = vmatmul.msk.f32.gmra.mxu1 %vm1008_vm9, %v20020_v7 }
 0x7c4   : > { %v7849_v52 = vadd.f32 %v19637_v29, %v7676_v41  ;;  %v7163_v40 = vadd.f32 %v21584_v22, %v6958_v43  ;;  %v5226_v29 = vadd.f32 %v21587_v61, %v5054_v9  ;;  %v4711_v39 = vadd.f32 %v21592_v33, %v4538_v62  ;;  %v21593_v10 = vld [vmem:[#allocation272_spill] sm:$0xff]  ;;  %10475 = vmatmul.msk.f32.gmra.mxu0 %vm1008_vm9, %v20081_v38  ;;  %v21600_v34 = vld [vmem:[#allocation325_spill] sm:$0xff]  ;;  %v21604_v31 = vld [vmem:[#allocation239_spill] sm:$0xff] }
 0x7c5   : > { %v7852_v23 = vadd.f32 %v19697_v57, %v7679_v6  ;;  %v7983_v57 = vpop.f32.mrf.mxu3  ;;  %v6615_v53 = vadd.f32 %v21589_v19, %v6442_v36  ;;  %v8153_v20 = vpop.f32.mrf.mxu2  ;;  %v6261_v60 = vadd.f32 %v21594_v4, %v6088_v26  ;;  %v21595_v50 = vld [vmem:[#allocation352_spill] sm:$0xff]  ;;  %v21598_v6 = vld [vmem:[#allocation233_spill] sm:$0xff]  ;;  %v21606_v61 = vld [vmem:[#allocation331_spill] sm:$0xff] }
 0x7c6   : > { %v8022_v28 = vadd.f32 %v7980_v8, %v7849_v52  ;;  %v7336_v18 = vadd.f32 %v21590_v35, %v7163_v40  ;;  %v4195_v8 = vadd.f32 %v21591_v0, %v4023_v24  ;;  %v5399_v1 = vadd.f32 %v21593_v10, %v5226_v29  ;;  %v21596_v16 = vld [vmem:[#allocation32_spill] sm:$0xff]  ;;  %v8133_v63 = vpop.f32.mrf.mxu1  ;;  %v21601_v56 = vld [vmem:[#allocation357_spill] sm:$0xff]  ;;  %v21603_v40 = vld [vmem:[#allocation206_spill] sm:$0xff] }
 0x7c7   : > { %v8025_v5 = vadd.f32 %v7983_v57, %v7852_v23  ;;  %v6788_v41 = vadd.f32 %v21595_v50, %v6615_v53  ;;  %v4884_v30 = vadd.f32 %v21598_v6, %v4711_v39  ;;  %v6434_v9 = vadd.f32 %v21600_v34, %v6261_v60  ;;  %v21602_v52 = vld [vmem:[#allocation36_spill] sm:$0xff]  ;;  %v8297_v22 = vpop.f32.mrf.mxu0  ;;  %v21605_v24 = vld [vmem:[#allocation282_spill] sm:$0xff]  ;;  %v21608_v3 = vld [vmem:[#allocation45_spill] sm:$0xff]  ;;  %10466 = vmatmul.msk.f32.gmra.mxu3 %vm1008_vm9, %v19860_v17 }
 0x7c8   : > { %v8195_v37 = vadd.f32 %v8153_v20, %v8022_v28  ;;  %v7509_v58 = vadd.f32 %v21596_v16, %v7336_v18  ;;  %v4368_v43 = vadd.f32 %v21597_v48, %v4195_v8  ;;  %v5572_v2 = vadd.f32 %v21599_v27, %v5399_v1  ;;  %v21607_v28 = vld [vmem:[#allocation370_spill] sm:$0xff]  ;;  %v21609_v19 = vld [vmem:[#allocation232_spill] sm:$0xff]  ;;  %v21611_v18 = vld [vmem:[#allocation297_spill] sm:$0xff]  ;;  %10481 = vmatmul.msk.f32.gmra.mxu2 %vm1008_vm9, %v19972_v49 }
 0x7c9   : > { %v6961_v13 = vadd.f32 %v21601_v56, %v6788_v41  ;;  %v20106_v36 = vadd.f32 %v8133_v63, %v8030_v54  ;;  %v5057_v12 = vadd.f32 %v21604_v31, %v4884_v30  ;;  %v20112_v62 = vadd.f32 %v8297_v22, %v19952_v21  ;;  %v21610_v54 = vld [vmem:[#allocation251_spill] sm:$0xff]  ;;  %v20123_v0 = vld [vmem:[%s20464_s2 + $0x5e0] sm:$0xff]  ;;  %v21614_v4 = vld [vmem:[#allocation237_spill] sm:$0xff] }
 0x7ca   : > { %v7682_v25 = vadd.f32 %v21602_v52, %v7509_v58  ;;  %v4541_v23 = vadd.f32 %v21603_v40, %v4368_v43  ;;  %v5745_v51 = vadd.f32 %v21605_v24, %v5572_v2  ;;  %v6607_v29 = vadd.f32 %v21606_v61, %v6434_v9  ;;  %v21612_v21 = vld [vmem:[#allocation351_spill] sm:$0xff]  ;;  %v21613_v39 = vld [vmem:[#allocation34_spill] sm:$0xff]  ;;  %v21615_v50 = vld [vmem:[#allocation276_spill] sm:$0xff] }
 0x7cb   : > { %v7166_v57 = vadd.f32 %v21607_v28, %v6961_v13  ;;  %v5229_v35 = vadd.f32 %v21610_v54, %v5057_v12  ;;  %v21616_v16 = vld [vmem:[#allocation318_spill] sm:$0xff]  ;;  %v21617_v43 = vld [vmem:[#allocation356_spill] sm:$0xff]  ;;  %v21618_v30 = vld [vmem:[#allocation35_spill] sm:$0xff]  ;;  %10479 = vmatmul.msk.f32.gmra.mxu1 %vm1008_vm9, %v20081_v38 }
 0x7cc   : > { %v7855_v26 = vadd.f32 %v21608_v3, %v7682_v25  ;;  %v4714_v53 = vadd.f32 %v21609_v19, %v4541_v23  ;;  %v5918_v20 = vadd.f32 %v21611_v18, %v5745_v51  ;;  %v6780_v33 = vadd.f32 %v21612_v21, %v6607_v29  ;;  %10492 = vmatmul.msk.f32.vlgmr.msra.gmra.mxu0 %vm1008_vm9, %v20123_v0  ;;  %v21619_v2 = vld [vmem:[#allocation281_spill] sm:$0xff]  ;;  %v21620_v34 = vld [vmem:[#allocation323_spill] sm:$0xff]  ;;  %v21621_v56 = vld [vmem:[#allocation242_spill] sm:$0xff] }
 0x7cd   : > { %v7986_v8 = vpop.f32.mrf.mxu3  ;;  %v7339_v10 = vadd.f32 %v21613_v39, %v7166_v57  ;;  %v5402_v41 = vadd.f32 %v21615_v50, %v5229_v35  ;;  %v8156_v48 = vpop.f32.mrf.mxu2  ;;  %v21622_v52 = vld [vmem:[#allocation361_spill] sm:$0xff]  ;;  %v21623_v25 = vld [vmem:[#allocation39_spill] sm:$0xff]  ;;  %v21627_v57 = vld [vmem:[#allocation374_spill] sm:$0xff] }
 0x7ce   : > { %v8028_v1 = vadd.f32 %v7986_v8, %v7855_v26  ;;  %v4887_v60 = vadd.f32 %v21614_v4, %v4714_v53  ;;  %v6091_v58 = vadd.f32 %v21616_v16, %v5918_v20  ;;  %v6953_v6 = vadd.f32 %v21617_v43, %v6780_v33  ;;  %v8326_v23 = vpop.f32.mrf.mxu1  ;;  %v21624_v31 = vld [vmem:[#allocation287_spill] sm:$0xff]  ;;  %v21625_v24 = vld [vmem:[#allocation285_spill] sm:$0xff]  ;;  %v21629_v54 = vld [vmem:[#allocation332_spill] sm:$0xff] }
 0x7cf   : > { %v7512_v27 = vadd.f32 %v21618_v30, %v7339_v10  ;;  %v8198_v17 = vadd.f32 %v8156_v48, %v8025_v5  ;;  %v5575_v63 = vadd.f32 %v21619_v2, %v5402_v41  ;;  %v8300_v40 = vpop.f32.mrf.mxu0  ;;  %v20150_v5 = vadd.f32 %v8326_v23, %v8195_v37  ;;  %v21626_v29 = vld [vmem:[#allocation255_spill] sm:$0xff]  ;;  %v21628_v19 = vld [vmem:[#allocation301_spill] sm:$0xff]  ;;  %v21630_v8 = vld [vmem:[#allocation280_spill] sm:$0xff]  ;;  %10467 = vmatmul.msk.f32.gmra.mxu3 %vm1008_vm9, %v19913_v45 }
 0x7d0   : > { %v6264_v9 = vadd.f32 %v21620_v34, %v6091_v58  ;;  %v5060_v13 = vadd.f32 %v21621_v56, %v4887_v60  ;;  %v7158_v49 = vadd.f32 %v21622_v52, %v6953_v6  ;;  %v20148_v61 = vadd.f32 %v8300_v40, %v20002_v59  ;;  %v10485_v18 = vld [vmem:[%s20464_s2 + $0x5e8] sm:$0xff]  ;;  %v21631_v21 = vld [vmem:[#allocation33_spill] sm:$0xff]  ;;  %v21632_v39 = vld [vmem:[#allocation322_spill] sm:$0xff]  ;;  %10482 = vmatmul.msk.f32.gmra.mxu2 %vm1008_vm9, %v20020_v7 }
 0x7d1   : > { %v7685_v22 = vadd.f32 %v21623_v25, %v7512_v27  ;;  %v5748_v12 = vadd.f32 %v21624_v31, %v5575_v63  ;;  %v21634_v50 = vld [vmem:[#allocation286_spill] sm:$0xff]  ;;  %v21636_v45 = vld [vmem:[#allocation327_spill] sm:$0xff]  ;;  %v21637_v6 = vld [vmem:[#allocation360_spill] sm:$0xff] }
 0x7d2   : > { %v6437_v51 = vadd.f32 %v21625_v24, %v6264_v9  ;;  %v5232_v28 = vadd.f32 %v21626_v29, %v5060_v13  ;;  %v7331_v3 = vadd.f32 %v21627_v57, %v7158_v49  ;;  %v21635_v16 = vld [vmem:[#allocation38_spill] sm:$0xff]  ;;  %v21638_v27 = vld [vmem:[#allocation292_spill] sm:$0xff]  ;;  %v21641_v52 = vld [vmem:[#allocation365_spill] sm:$0xff] }
 0x7d3   : > { %v7858_v26 = vadd.f32 %v19829_v44, %v7685_v22  ;;  %v5921_v53 = vadd.f32 %v21628_v19, %v5748_v12  ;;  %v21633_v44 = vld [vmem:[#allocation355_spill] sm:$0xff]  ;;  %10496 = vmatmul.msk.f32.vlgmr.msrb.gmra.mxu1 %vm1008_vm9, %v20123_v0  ;;  %v21639_v63 = vld [vmem:[#allocation42_spill] sm:$0xff]  ;;  %v21644_v24 = vld [vmem:[#allocation9_spill] sm:$0xff] }
 0x7d4   : > { %v6610_v35 = vadd.f32 %v21629_v54, %v6437_v51  ;;  %v5405_v59 = vadd.f32 %v21630_v8, %v5232_v28  ;;  %v7504_v37 = vadd.f32 %v21631_v21, %v7331_v3  ;;  %10493 = vmatmul.msk.f32.gmra.mxu0 %vm1008_vm9, %v10485_v18  ;;  %v21640_v56 = vld [vmem:[#allocation330_spill] sm:$0xff]  ;;  %v21643_v31 = vld [vmem:[#allocation335_spill] sm:$0xff]  ;;  %v10486_v29 = vld [vmem:[%s20464_s2 + $0x5f0] sm:$0xff] }
 0x7d5   : > { %v7989_v20 = vpop.f32.mrf.mxu3  ;;  %v6094_v10 = vadd.f32 %v21632_v39, %v5921_v53  ;;  %v8159_v60 = vpop.f32.mrf.mxu2  ;;  %v21645_v57 = vld [vmem:[#allocation326_spill] sm:$0xff]  ;;  %v21647_v19 = vld [vmem:[#allocation37_spill] sm:$0xff]  ;;  %v21649_v8 = vld [vmem:[#allocation364_spill] sm:$0xff]  ;;  %v12808_v39 = vmov 1  }
 0x7d6   : > { %v8031_v33 = vadd.f32 %v7989_v20, %v7858_v26  ;;  %v6783_v4 = vadd.f32 %v21633_v44, %v6610_v35  ;;  %v5578_v41 = vadd.f32 %v21634_v50, %v5405_v59  ;;  %v7677_v58 = vadd.f32 %v21635_v16, %v7504_v37  ;;  %v8329_v9 = vpop.f32.mrf.mxu1  ;;  %v21648_v54 = vld [vmem:[#allocation329_spill] sm:$0xff]  ;;  %12605 = vset.pattern.permute.xlu0 %v12808_v39 }
 0x7d7   : > { %v8201_v48 = vadd.f32 %v8159_v60, %v8028_v1  ;;  %v6267_v43 = vadd.f32 %v21636_v45, %v6094_v10  ;;  %v8303_v7 = vpop.f32.mrf.mxu0  ;;  %v20182_v22 = vadd.f32 %v8329_v9, %v8198_v17  ;;  %v21642_v1 = vld [vmem:[#allocation304_spill] sm:$0xff]  ;;  %10488 = vmatmul.msk.f32.vlgmr.msra.gmra.mxu3 %vm1008_vm9, %v20123_v0  ;;  %v21646_v17 = vld [vmem:[#allocation359_spill] sm:$0xff]  ;;  %v21650_v21 = vld [vmem:[#allocation41_spill] sm:$0xff]  ;;  %12606 = vset.pattern.permute.xlu1 %v12808_v39 }
 0x7d8   : > { %v6956_v30 = vadd.f32 %v21637_v6, %v6783_v4  ;;  %v5751_v2 = vadd.f32 %v21638_v27, %v5578_v41  ;;  %v7850_v34 = vadd.f32 %v21639_v63, %v7677_v58  ;;  %v20180_v25 = vadd.f32 %v8303_v7, %v20060_v42  ;;  %10483 = vmatmul.msk.f32.gmra.mxu2 %vm1008_vm9, %v20081_v38  ;;  %v9418_v0 = vld [vmem:[%s20465_s3 + $0x8] sm:$0xff]  ;;  %v21652_v60 = vld [vmem:[#allocation369_spill] sm:$0xff]  ;;  %v10500_v45 = vld [vmem:[%s20464_s2 + $0x600] sm:$0xff] }
 0x7d9   : > { %v6440_v13 = vadd.f32 %v21640_v56, %v6267_v43  ;;  %v21651_v38 = vld [vmem:[#allocation295_spill] sm:$0xff]  ;;  %9428 = vperm.xlu0 %12605, %v9418_v0   ;;  %12604 = vset.pattern.permute.xlu2 %v12808_v39  ;;  %v10487_v63 = vld [vmem:[%s20464_s2 + $0x5f8] sm:$0xff] }
 0x7da   : > { %v7161_v49 = vadd.f32 %v21641_v52, %v6956_v30  ;;  %v5924_v40 = vadd.f32 %v21642_v1, %v5751_v2  ;;  %v8023_v23 = vadd.f32 %v19895_v15, %v7850_v34  ;;  %v21654_v43 = vld [vmem:[#allocation339_spill] sm:$0xff]  ;;  %v9419_v52 = vld [vmem:[%s20465_s3 + $0x10] sm:$0xff]  ;;  %v21659_v1 = vld [vmem:[#allocation49_spill] sm:$0xff] }
 0x7db   : > { %v6613_v12 = vadd.f32 %v21643_v31, %v6440_v13  ;;  %10497 = vmatmul.msk.f32.gmra.mxu1 %vm1008_vm9, %v10485_v18  ;;  %v21655_v30 = vld [vmem:[#allocation19_spill] sm:$0xff]  ;;  %9433 = vperm.xlu1 %12606, %v9419_v52   ;;  %v21660_v31 = vld [vmem:[#allocation373_spill] sm:$0xff] }
 0x7dc   : > { %v7334_v51 = vadd.f32 %v21644_v24, %v7161_v49  ;;  %v6097_v3 = vadd.f32 %v21645_v57, %v5924_v40  ;;  %10494 = vmatmul.msk.f32.gmra.mxu0 %vm1008_vm9, %v10486_v29  ;;  %v21658_v49 = vld [vmem:[#allocation368_spill] sm:$0xff]  ;;  %v9417_v57 = vld [vmem:[%s20465_s3] sm:$0xff] }
 0x7dd   : > { %v8182_v28 = vpop.f32.mrf.mxu3  ;;  %v6786_v26 = vadd.f32 %v21646_v17, %v6613_v12  ;;  %v8162_v15 = vpop.f32.mrf.mxu2  ;;  %9423 = vperm.xlu2 %12604, %v9417_v57   ;;  %v21661_v17 = vld [vmem:[#allocation25_spill] sm:$0xff] }
 0x7de   : > { %v8196_v42 = vadd.f32 %v8182_v28, %v8023_v23  ;;  %v7507_v53 = vadd.f32 %v21647_v19, %v7334_v51  ;;  %v6270_v35 = vadd.f32 %v21648_v54, %v6097_v3  ;;  %v8204_v20 = vadd.f32 %v8162_v15, %v8031_v33  ;;  %v8332_v4 = vpop.f32.mrf.mxu1  ;;  %v21653_v33 = vld [vmem:[#allocation46_spill] sm:$0xff] }
 0x7df   : > { %v6959_v59 = vadd.f32 %v21649_v8, %v6786_v26  ;;  %v8306_v44 = vpop.f32.mrf.mxu0  ;;  %v8374_v58 = vadd.f32 %v8332_v4, %v8201_v48  ;;  %10489 = vmatmul.msk.f32.gmra.mxu3 %vm1008_vm9, %v10485_v18  ;;  %v21657_v48 = vld [vmem:[#allocation40_spill] sm:$0xff] }
 0x7e0   : > { %v7680_v37 = vadd.f32 %v21650_v21, %v7507_v53  ;;  %v6443_v10 = vadd.f32 %v21651_v38, %v6270_v35  ;;  %v20210_v16 = vadd.f32 %v8306_v44, %v20106_v36  ;;  %v21656_v36 = vld [vmem:[#allocation363_spill] sm:$0xff]  ;;  %10504 = vmatmul.msk.f32.vlgmr.msrb.gmra.mxu2 %vm1008_vm9, %v10500_v45 }
 0x7e1   : > { %v7164_v50 = vadd.f32 %v21652_v60, %v6959_v59  ;;  %v21662_v53 = vld [vmem:[#allocation43_spill] sm:$0xff] }
 0x7e2   : > { %v7853_v41 = vadd.f32 %v21653_v33, %v7680_v37  ;;  %v6616_v6 = vadd.f32 %v21654_v43, %v6443_v10  ;;  %v10502_v37 = vld [vmem:[%s20464_s2 + $0x610] sm:$0xff] }
 0x7e3   : > { %v7337_v27 = vadd.f32 %v21655_v30, %v7164_v50  ;;  %10498 = vmatmul.msk.f32.gmra.mxu1 %vm1008_vm9, %v10486_v29  ;;  %v10503_v50 = vld [vmem:[%s20464_s2 + $0x618] sm:$0xff] }
 0x7e4   : > { %v8026_v2 = vadd.f32 %v19946_v55, %v7853_v41  ;;  %v6789_v7 = vadd.f32 %v21656_v36, %v6616_v6  ;;  %10495 = vmatmul.msk.f32.gmra.mxu0 %vm1008_vm9, %v10487_v63 }
 0x7e5   : > { %v8185_v34 = vpop.f32.mrf.mxu3  ;;  %v7510_v9 = vadd.f32 %v21657_v48, %v7337_v27  ;;  %v8355_v13 = vpop.f32.mrf.mxu2 }
 0x7e6   : > { %v8199_v56 = vadd.f32 %v8185_v34, %v8026_v2  ;;  %v8369_v55 = vadd.f32 %v8355_v13, %v8196_v42  ;;  %v6962_v18 = vadd.f32 %v21658_v49, %v6789_v7  ;;  %v8335_v23 = vpop.f32.mrf.mxu1  ;;  %v10501_v42 = vld [vmem:[%s20464_s2 + $0x608] sm:$0xff] }
 0x7e7   : > { %v7683_v40 = vadd.f32 %v21659_v1, %v7510_v9  ;;  %v8377_v51 = vadd.f32 %v8335_v23, %v8204_v20  ;;  %v8499_v28 = vpop.f32.mrf.mxu0  ;;  %10490 = vmatmul.msk.f32.gmra.mxu3 %vm1008_vm9, %v10486_v29  ;;  %v9420_v29 = vld [vmem:[%s20465_s3 + $0x18] sm:$0xff] }
 0x7e8   : > { %v7167_v12 = vadd.f32 %v21660_v31, %v6962_v18  ;;  %v20238_v3 = vadd.f32 %v8499_v28, %v20150_v5  ;;  %10505 = vmatmul.msk.f32.gmra.mxu2 %vm1008_vm9, %v10501_v42  ;;  %9438 = vperm.xlu2 %12604, %v9420_v29  }
 0x7e9   : > { %v7856_v24 = vadd.f32 %v19831_v14, %v7683_v40 }
 0x7ea   : > { %v7340_v26 = vadd.f32 %v21661_v17, %v7167_v12 }
 0x7eb   : > { %v8029_v19 = vadd.f32 %v19997_v47, %v7856_v24  ;;  %10499 = vmatmul.msk.f32.gmra.mxu1 %vm1008_vm9, %v10487_v63 }
 0x7ec   : > { %v7513_v15 = vadd.f32 %v21662_v53, %v7340_v26  ;;  %10512 = vmatmul.msk.f32.vlgmr.msrb.gmra.mxu0 %vm1008_vm9, %v10500_v45 }
 0x7ed   : > { %v8188_v14 = vpop.f32.mrf.mxu3  ;;  %v8358_v5 = vpop.f32.mrf.mxu2 }
 0x7ee   : > { %v8202_v54 = vadd.f32 %v8188_v14, %v8029_v19  ;;  %v7686_v35 = vadd.f32 %v19806_v11, %v7513_v15  ;;  %v8372_v20 = vadd.f32 %v8358_v5, %v8199_v56  ;;  %v8528_v47 = vpop.f32.mrf.mxu1 }
 0x7ef   : > { %v8502_v8 = vpop.f32.mrf.mxu0  ;;  %v8542_v21 = vadd.f32 %v8528_v47, %v8369_v55  ;;  %10491 = vmatmul.msk.f32.gmra.mxu3 %vm1008_vm9, %v10487_v63 }
 0x7f0   : > { %v7859_v0 = vadd.f32 %v19887_v32, %v7686_v35  ;;  %v8544_v59 = vadd.f32 %v8502_v8, %v20182_v22  ;;  %10506 = vmatmul.msk.f32.gmra.mxu2 %vm1008_vm9, %v10502_v37 }
 0x7f2   : > { %v8032_v39 = vadd.f32 %v20051_v46, %v7859_v0 }
 0x7f4   : > { %10513 = vmatmul.msk.f32.gmra.mxu0 %vm1008_vm9, %v10501_v42 }
 0x7f5   : > { %v8191_v11 = vpop.f32.mrf.mxu3  ;;  %v8361_v38 = vpop.f32.mrf.mxu2 }
 0x7f6   : > { %v8205_v32 = vadd.f32 %v8191_v11, %v8032_v39  ;;  %v8375_v10 = vadd.f32 %v8361_v38, %v8202_v54  ;;  %v8531_v22 = vpop.f32.mrf.mxu1 }
 0x7f7   : > { %v8505_v44 = vpop.f32.mrf.mxu0  ;;  %v8545_v60 = vadd.f32 %v8531_v22, %v8372_v20  ;;  %10508 = vmatmul.msk.f32.vlgmr.msrb.gmra.mxu3 %vm1008_vm9, %v10500_v45 }
 0x7f8   : > { %v8547_v4 = vadd.f32 %v8505_v44, %v8374_v58  ;;  %10507 = vmatmul.msk.f32.gmra.mxu2 %vm1008_vm9, %v10503_v50 }
 0x7fc   : > { %10514 = vmatmul.msk.f32.gmra.mxu0 %vm1008_vm9, %v10502_v37 }
 0x7fd   : > { %v8470_v46 = vpop.f32.mrf.mxu3  ;;  %v8364_v41 = vpop.f32.mrf.mxu2 }
 0x7fe   : > { %v8540_v33 = vadd.f32 %v8470_v46, %v20112_v62  ;;  %v8378_v43 = vadd.f32 %v8364_v41, %v8205_v32  ;;  %v8534_v30 = vpop.f32.mrf.mxu1 }
 0x7ff   : > { %v8508_v6 = vpop.f32.mrf.mxu0  ;;  %v8548_v58 = vadd.f32 %v8534_v30, %v8375_v10  ;;  %10509 = vmatmul.msk.f32.gmra.mxu3 %vm1008_vm9, %v10501_v42 }
 0x800   : > { %v8550_v27 = vadd.f32 %v8508_v6, %v8377_v51 }
 0x804   : > { %10515 = vmatmul.msk.f32.gmra.mxu0 %vm1008_vm9, %v10503_v50 }
 0x805   : > { %v8473_v2 = vpop.f32.mrf.mxu3  ;;  %v8643_v63 = vpop.f32.mrf.mxu2 }
 0x806   : > { %v8543_v45 = vadd.f32 %v8473_v2, %v20148_v61  ;;  %v20273_v34 = vadd.f32 %v8643_v63, %v8540_v33  ;;  %v8537_v36 = vpop.f32.mrf.mxu1 }
 0x807   : > { %v8551_v62 = vadd.f32 %v8537_v36, %v8378_v43  ;;  %v8701_v7 = vpop.f32.mrf.mxu0  ;;  %10510 = vmatmul.msk.f32.gmra.mxu3 %vm1008_vm9, %v10502_v37 }
 0x808   : > { %v20275_v48 = vadd.f32 %v8701_v7, %v8542_v21 }
 0x80d   : > { %v8476_v9 = vpop.f32.mrf.mxu3  ;;  %v8646_v13 = vpop.f32.mrf.mxu2 }
 0x80e   : > { %v8546_v56 = vadd.f32 %v8476_v9, %v20180_v25  ;;  %v20279_v55 = vadd.f32 %v8646_v13, %v8543_v45  ;;  %v8816_v49 = vpop.f32.mrf.mxu1 }
 0x80f   : > { %v8704_v52 = vpop.f32.mrf.mxu0  ;;  %10511 = vmatmul.msk.f32.gmra.mxu3 %vm1008_vm9, %v10503_v50  ;;  %v8886_v45 = vadd.f32 %v8816_v49, %v20273_v34 }
 0x810   : > { %v20281_v18 = vadd.f32 %v8704_v52, %v8545_v60 }
 0x815   : > { %v8479_v61 = vpop.f32.mrf.mxu3  ;;  %v8649_v40 = vpop.f32.mrf.mxu2 }
 0x816   : > { %v8549_v1 = vadd.f32 %v8479_v61, %v20210_v16  ;;  %v20285_v23 = vadd.f32 %v8649_v40, %v8546_v56  ;;  %v8819_v24 = vpop.f32.mrf.mxu1 }
 0x817   : > { %v8707_v31 = vpop.f32.mrf.mxu0  ;;  %v8889_v40 = vadd.f32 %v8819_v24, %v20279_v55 }
 0x818   : > { %v20287_v12 = vadd.f32 %v8707_v31, %v8548_v58 }
 0x81d   : > { %v8672_v25 = vpop.f32.mrf.mxu3  ;;  %v8652_v28 = vpop.f32.mrf.mxu2 }
 0x81e   : > { %v8714_v51 = vadd.f32 %v8672_v25, %v20238_v3  ;;  %v20290_v57 = vadd.f32 %v8652_v28, %v8549_v1 }
 0x81f   : > { %v8710_v42 = vpop.f32.mrf.mxu0  ;;  %v20294_v26 = vpop.f32.mrf.mxu1 }
 0x820   : > { %v20292_v17 = vadd.f32 %v8710_v42, %v8551_v62 }
 0x825   : > { %v8675_v19 = vpop.f32.mrf.mxu3  ;;  %v8845_v14 = vpop.f32.mrf.mxu2 }
 0x826   : > { %v8717_v16 = vadd.f32 %v8675_v19, %v8544_v59  ;;  %v20296_v53 = vadd.f32 %v8845_v14, %v8714_v51 }
 0x827   : > { %v8989_v15 = vpop.f32.mrf.mxu0 }
 0x828   : > { %v20298_v5 = vpop.f32.mrf.mxu1  ;;  %v9059_v36 = vadd.f32 %v8989_v15, %v8886_v45 }
 0x82d   : > { %v8678_v54 = vpop.f32.mrf.mxu3  ;;  %v8848_v20 = vpop.f32.mrf.mxu2 }
 0x82e   : > { %v8720_v35 = vadd.f32 %v8678_v54, %v8547_v4  ;;  %v20300_v3 = vadd.f32 %v8848_v20, %v8717_v16 }
 0x830   : > { %v20302_v21 = vpop.f32.mrf.mxu1 }
 0x831   : > { %v8992_v0 = vpop.f32.mrf.mxu0 }
 0x832   : > { %v9062_v49 = vadd.f32 %v8992_v0, %v8889_v40  ;;  %v8892_v0 = vadd.f32 %v20294_v26, %v20285_v23 }
 0x835   : > { %v8681_v8 = vpop.f32.mrf.mxu3  ;;  %v8851_v29 = vpop.f32.mrf.mxu2 }
 0x836   : > { %v8723_v47 = vadd.f32 %v8681_v8, %v8550_v27  ;;  %v20304_v37 = vadd.f32 %v8851_v29, %v8720_v35 }
 0x837   : > { %v20330_v1 = vpop.permute.xlu2 %9423 }
 0x838   : > { %v20308_v38 = vpop.f32.mrf.mxu1 }
 0x839   : > { %v8995_v59 = vpop.f32.mrf.mxu0 }
 0x83d   : > { %v8874_v39 = vpop.f32.mrf.mxu3  ;;  %v8854_v11 = vpop.f32.mrf.mxu2 }
 0x83e   : > { %v20306_v32 = vadd.f32 %v8854_v11, %v8723_v47  ;;  %v8888_v62 = vadd.f32 %v8874_v39, %v20275_v48  ;;  %v9065_v39 = vadd.f32 %v8995_v59, %v8892_v0  ;;  %v8895_v59 = vadd.f32 %v20298_v5, %v20290_v57 }
 0x840   : > { %v20314_v60 = vpop.f32.mrf.mxu1 }
 0x841   : > { %v20310_v10 = vpop.f32.mrf.mxu0 }
 0x845   : > { %v8877_v44 = vpop.f32.mrf.mxu3  ;;  %v9047_v22 = vpop.f32.mrf.mxu2 }
 0x846   : > { %v9061_v56 = vadd.f32 %v9047_v22, %v8888_v62  ;;  %v8891_v42 = vadd.f32 %v8877_v44, %v20281_v18 }
 0x848   : > { %v20318_v41 = vpop.f32.mrf.mxu1 }
 0x849   : > { %v20312_v4 = vpop.f32.mrf.mxu0 }
 0x84b   : > { %v20336_v20 = vpop.permute.xlu0 %9428 }
 0x84d   : > { %v8880_v50 = vpop.f32.mrf.mxu3  ;;  %v9050_v46 = vpop.f32.mrf.mxu2 }
 0x84e   : > { %v9064_v15 = vadd.f32 %v9050_v46, %v8891_v42  ;;  %v8894_v22 = vadd.f32 %v8880_v50, %v20287_v12  ;;  %v9434_v23 = vpop.permute.xlu1 %9433  ;;  %v9060_v12 = vadd.f32 %v20302_v21, %v20296_v53 }
 0x850   : > { %v9220_v2 = vpop.f32.mrf.mxu1  ;;  %v9233_v40 = vadd.f32 %v20312_v4, %v9060_v12  ;;  %v12663_v12 = vld [vmem:[#allocation4 + $0x40] sm:$0xff] }
 0x851   : > { %v20316_v33 = vpop.f32.mrf.mxu0  ;;  %v9234_v61 = vadd.f32 %v9220_v2, %v9061_v56 }
 0x855   : > { %v20320_v43 = vpop.f32.mrf.mxu3  ;;  %v9053_v6 = vpop.f32.mrf.mxu2 }
 0x858   : > { %v9223_v31 = vpop.f32.mrf.mxu1 }
 0x859   : > { %v20322_v30 = vpop.f32.mrf.mxu0  ;;  %v9237_v24 = vadd.f32 %v9223_v31, %v9064_v15  ;;  %v8897_v31 = vadd.f32 %v20320_v43, %v20292_v17  ;;  %v9063_v43 = vadd.f32 %v20308_v38, %v20300_v3  ;;  %v9066_v38 = vadd.f32 %v20314_v60, %v20304_v37 }
 0x85d   : > { %v9162_v27 = vpop.f32.mrf.mxu3  ;;  %v20324_v58 = vpop.f32.mrf.mxu2 }
 0x85e   : > { %v9232_v7 = vadd.f32 %v9162_v27, %v9059_v36  ;;  %v9067_v36 = vadd.f32 %v9053_v6, %v8894_v22  ;;  %v9068_v6 = vadd.f32 %v20310_v10, %v8895_v59  ;;  %v9069_v22 = vadd.f32 %v20318_v41, %v20306_v32 }
 0x860   : > { %v9226_v11 = vpop.f32.mrf.mxu1 }
 0x861   : > { %v20327_v63 = vpop.f32.mrf.mxu0 }
 0x865   : > { %v9165_v9 = vpop.f32.mrf.mxu3  ;;  %v9335_v13 = vpop.f32.mrf.mxu2 }
 0x866   : > { %v9405_v52 = vadd.f32 %v9335_v13, %v9232_v7  ;;  %v9235_v19 = vadd.f32 %v9165_v9, %v9062_v49  ;;  %v9240_v9 = vadd.f32 %v9226_v11, %v9067_v36  ;;  %v9070_v49 = vadd.f32 %v20324_v58, %v8897_v31 }
 0x868   : > { %v9441_v25 = vadd.f32 %v20330_v1, %v9405_v52 }
 0x869   : > { %v9393_v51 = vpop.f32.mrf.mxu0 }
 0x86a   : > { %v9407_v34 = vadd.f32 %v9393_v51, %v9234_v61  ;;  %v9453_v28 = vmul.f32 0.2, %v9441_v25  ;;  %v9229_v51 = vpop.f32.mrf.mxu1 }
 0x86b   : > { %v9243_v10 = vadd.f32 %v9229_v51, %v9070_v49  ;;  %v12665_v51 = vld [vmem:[#allocation4 + $0x8] sm:$0xff] }
 0x86c   : > { %v9443_v48 = vadd.f32 %v20330_v1, %v9407_v34  ;;  %v9465_v16 = vmax.f32 %v9441_v25, %v9453_v28 }
 0x86d   : > { %v9168_v14 = vpop.f32.mrf.mxu3  ;;  %v9338_v35 = vpop.f32.mrf.mxu2 }
 0x86e   : > { %v9455_v54 = vmul.f32 0.2, %v9443_v48  ;;  %v9408_v55 = vadd.f32 %v9338_v35, %v9235_v19  ;;  %9489 = vrot.lane.b32.xlu1 %v9465_v16, %s12767_s7  ;;  %v9238_v27 = vadd.f32 %v9168_v14, %v9065_v39  ;;  %v9439_v19 = vpop.permute.xlu2 %9438 }
 0x870   : > { %v9467_v8 = vmax.f32 %v9443_v48, %v9455_v54  ;;  %v9444_v18 = vadd.f32 %v20336_v20, %v9408_v55  ;;  %v9236_v54 = vadd.f32 %v20316_v33, %v9063_v43  ;;  %v9239_v33 = vadd.f32 %v20322_v30, %v9066_v38  ;;  %v12674_v38 = vld [vmem:[#allocation4 + $0x88] sm:$0xff] }
 0x871   : > { %v9396_v47 = vpop.f32.mrf.mxu0 }
 0x872   : > { %v9410_v29 = vadd.f32 %v9396_v47, %v9237_v24  ;;  %9493 = vrot.lane.b32.xlu0 %v9467_v8, %s12767_s7  ;;  %v9456_v44 = vmul.f32 0.2, %v9444_v18 }
 0x874   : > { %v9446_v46 = vadd.f32 %v20336_v20, %v9410_v29  ;;  %v9468_v2 = vmax.f32 %v9444_v18, %v9456_v44 }
 0x875   : > { %v9171_v45 = vpop.f32.mrf.mxu3  ;;  %v9341_v7 = vpop.f32.mrf.mxu2 }
 0x876   : > { %v9458_v62 = vmul.f32 0.2, %v9446_v46  ;;  %v9411_v26 = vadd.f32 %v9341_v7, %v9238_v27  ;;  %9495 = vrot.lane.b32.xlu1 %v9468_v2, %s12767_s7  ;;  %v9241_v34 = vadd.f32 %v9171_v45, %v9068_v6  ;;  %v12664_v6 = vld [vmem:[#allocation4 + $0x50] sm:$0xff] }
 0x878   : > { %v9470_v56 = vmax.f32 %v9446_v46, %v9458_v62  ;;  %v9447_v13 = vadd.f32 %v9434_v23, %v9411_v26  ;;  %v12660_v62 = vld [vmem:[#allocation4] sm:$0xff]  ;;  %v12661_v26 = vld [vmem:[#allocation4 + $0x18] sm:$0xff] }
 0x879   : > { %v9399_v52 = vpop.f32.mrf.mxu0 }
 0x87a   : > { %v9413_v50 = vadd.f32 %v9399_v52, %v9240_v9  ;;  %9499 = vrot.lane.b32.xlu0 %v9470_v56, %s12767_s7  ;;  %v9459_v61 = vmul.f32 0.2, %v9447_v13  ;;  %v12662_v9 = vld [vmem:[#allocation4 + $0x28] sm:$0xff] }
 0x87c   : > { %v9449_v25 = vadd.f32 %v9434_v23, %v9413_v50  ;;  %v9471_v57 = vmax.f32 %v9447_v13, %v9459_v61 }
 0x87d   : > { %v9364_v5 = vpop.f32.mrf.mxu3  ;;  %v9344_v53 = vpop.f32.mrf.mxu2 }
 0x87e   : > { %v9461_v28 = vmul.f32 0.2, %v9449_v25  ;;  %v9406_v21 = vadd.f32 %v9364_v5, %v9233_v40  ;;  %v9414_v42 = vadd.f32 %v9344_v53, %v9241_v34  ;;  %9501 = vrot.lane.b32.xlu1 %v9471_v57, %s12767_s7  ;;  %v12666_v5 = vld [vmem:[#allocation4 + $0x68] sm:$0xff] }
 0x880   : > { %v9473_v48 = vmax.f32 %v9449_v25, %v9461_v28  ;;  %v9442_v4 = vadd.f32 %v20330_v1, %v9406_v21  ;;  %v9450_v16 = vadd.f32 %v9439_v19, %v9414_v42  ;;  %v12667_v28 = vld [vmem:[#allocation4 + $0x78] sm:$0xff] }
 0x881   : > { %v9402_v17 = vpop.f32.mrf.mxu0 }
 0x882   : > { %v9454_v14 = vmul.f32 0.2, %v9442_v4  ;;  %v9416_v15 = vadd.f32 %v9402_v17, %v9243_v10  ;;  %9505 = vrot.lane.b32.xlu0 %v9473_v48, %s12767_s7  ;;  %v9462_v58 = vmul.f32 0.2, %v9450_v16  ;;  %v12668_v48 = vld [vmem:[#allocation4 + $0x10] sm:$0xff]  ;;  %v12670_v17 = vld [vmem:[#allocation4 + $0x38] sm:$0xff] }
 0x884   : > { %v9466_v35 = vmax.f32 %v9442_v4, %v9454_v14  ;;  %v9452_v55 = vadd.f32 %v9439_v19, %v9416_v15  ;;  %v9474_v24 = vmax.f32 %v9450_v16, %v9462_v58  ;;  %v12669_v4 = vld [vmem:[#allocation4 + $0x60] sm:$0xff] }
 0x885   : > { %v9367_v8 = vpop.f32.mrf.mxu3 }
 0x886   : > { %v9464_v0 = vmul.f32 0.2, %v9452_v55  ;;  %v9409_v18 = vadd.f32 %v9367_v8, %v9236_v54  ;;  %9491 = vrot.lane.b32.xlu2 %v9466_v35, %s12767_s7  ;;  %9507 = vrot.lane.b32.xlu1 %v9474_v24, %s12767_s7  ;;  %v12671_v35 = vld [vmem:[#allocation4 + $0x30] sm:$0xff]  ;;  %v12672_v24 = vld [vmem:[#allocation4 + $0x80] sm:$0xff] }
 0x888   : > { %v9476_v1 = vmax.f32 %v9452_v55, %v9464_v0  ;;  %v9445_v3 = vadd.f32 %v20336_v20, %v9409_v18  ;;  %v9242_v20 = vadd.f32 %v20327_v63, %v9069_v22  ;;  %v12673_v0 = vld [vmem:[#allocation4 + $0x58] sm:$0xff] }
 0x88a   : > { %v9457_v47 = vmul.f32 0.2, %v9445_v3  ;;  %9511 = vrot.lane.b32.xlu0 %v9476_v1, %s12767_s7 }
 0x88c   : > { %v9469_v29 = vmax.f32 %v9445_v3, %v9457_v47 }
 0x88d   : > { %v9370_v39 = vpop.f32.mrf.mxu3 }
 0x88e   : > { %v9412_v11 = vadd.f32 %v9370_v39, %v9239_v33  ;;  %9497 = vrot.lane.b32.xlu2 %v9469_v29, %s12767_s7  ;;  %v12675_v33 = vld [vmem:[#allocation4 + $0x90] sm:$0xff] }
 0x890   : > { %v9448_v44 = vadd.f32 %v9434_v23, %v9412_v11 }
 0x892   : > { %v9460_v46 = vmul.f32 0.2, %v9448_v44 }
 0x894   : > { %v9472_v27 = vmax.f32 %v9448_v44, %v9460_v46 }
 0x895   : > { %v9373_v2 = vpop.f32.mrf.mxu3 }
 0x896   : > { %v9415_v37 = vadd.f32 %v9373_v2, %v9242_v20  ;;  %9503 = vrot.lane.b32.xlu2 %v9472_v27, %s12767_s7 }
 0x898   : > { %v9451_v60 = vadd.f32 %v9439_v19, %v9415_v37 }
 0x89a   : > { %v9463_v45 = vmul.f32 0.2, %v9451_v60 }
 0x89c   : > { %v9475_v30 = vmax.f32 %v9451_v60, %v9463_v45 }
 0x89e   : > { %9509 = vrot.lane.b32.xlu2 %v9475_v30, %s12767_s7  ;;  %s215_s7 = sand.u32 1, %s12730_s19  }
 0x89f   : > { %s10529_s13 = smul.u32 96, %s215_s7  ;;  %s9638_s15 = scalar_lea.sflag [#allocation6], %s215_s7 }
 0x8a1   : > { %s20403_s6 = scalar_lea.vmem [#allocation5], %s10529_s13 }
 0x8e0   : > { %v9490_v36 = vpop.permute.xlu1 %9489  ;;  %v9492_v32 = vpop.permute.xlu2 %9491 }
 0x8e1   : > { %v9537_v7 = vadd.f32 %v12660_v62, %v9490_v36  ;;  %v9513_v40 = vsel %vm868_vm6, %v9490_v36, %v9492_v32 }
 0x8e2   : > { %v9538_v34 = vadd.f32 %v12665_v51, %v9513_v40 }
 0x8e3   : > { %9569 = vrot.lane.b32.xlu1 %v9537_v7, %s12783_s17 }
 0x8e4   : > { %v9494_v23 = vpop.permute.xlu0 %9493 }
 0x8e5   : > { %v9540_v63 = vadd.f32 %v12661_v26, %v9494_v23  ;;  %v9514_v21 = vsel %vm868_vm6, %v9492_v32, %v9494_v23 }
 0x8e6   : > { %v9539_v19 = vadd.f32 %v12668_v48, %v9514_v21 }
 0x8e8   : > { %v9496_v41 = vpop.permute.xlu1 %9495  ;;  %v9498_v13 = vpop.permute.xlu2 %9497 }
 0x8e9   : > { %v9541_v56 = vadd.f32 %v12662_v9, %v9496_v41  ;;  %v9515_v15 = vsel %vm868_vm6, %v9496_v41, %v9498_v13 }
 0x8ea   : > { %v9542_v55 = vadd.f32 %v12671_v35, %v9515_v15 }
 0x8eb   : > { %9575 = vrot.lane.b32.xlu1 %v9540_v63, %s12783_s17  ;;  %9577 = vrot.lane.b32.xlu2 %v9541_v56, %s12783_s17 }
 0x8ec   : > { %v9500_v59 = vpop.permute.xlu0 %9499 }
 0x8ed   : > { %v9544_v50 = vadd.f32 %v12663_v12, %v9500_v59  ;;  %v9516_v10 = vsel %vm868_vm6, %v9498_v13, %v9500_v59 }
 0x8ee   : > { %v9543_v43 = vadd.f32 %v12670_v17, %v9516_v10 }
 0x8f0   : > { %v9502_v52 = vpop.permute.xlu1 %9501  ;;  %v9504_v57 = vpop.permute.xlu2 %9503 }
 0x8f1   : > { %v9545_v61 = vadd.f32 %v12664_v6, %v9502_v52  ;;  %v9517_v54 = vsel %vm868_vm6, %v9502_v52, %v9504_v57 }
 0x8f2   : > { %v9546_v18 = vadd.f32 %v12673_v0, %v9517_v54 }
 0x8f3   : > { %9583 = vrot.lane.b32.xlu2 %v9544_v50, %s12783_s17  ;;  %9585 = vrot.lane.b32.xlu0 %v9545_v61, %s12783_s17 }
 0x8f4   : > { %v9506_v31 = vpop.permute.xlu0 %9505 }
 0x8f5   : > { %v9548_v49 = vadd.f32 %v12666_v5, %v9506_v31  ;;  %v9518_v42 = vsel %vm868_vm6, %v9504_v57, %v9506_v31 }
 0x8f6   : > { %v9547_v16 = vadd.f32 %v12669_v4, %v9518_v42 }
 0x8f8   : > { %v9508_v25 = vpop.permute.xlu1 %9507  ;;  %v9510_v14 = vpop.permute.xlu2 %9509 }
 0x8f9   : > { %v9549_v53 = vadd.f32 %v12667_v28, %v9508_v25  ;;  %v9519_v58 = vsel %vm868_vm6, %v9508_v25, %v9510_v14 }
 0x8fa   : > { %v9550_v8 = vadd.f32 %v12672_v24, %v9519_v58 }
 0x8fb   : > { %9571 = vrot.lane.b32.xlu2 %v9538_v34, %s12783_s17  ;;  %9591 = vrot.lane.b32.xlu0 %v9548_v49, %s12783_s17 }
 0x8fc   : > { %9593 = vrot.lane.b32.xlu1 %v9549_v53, %s12783_s17  ;;  %v9512_v1 = vpop.permute.xlu0 %9511 }
 0x8fd   : > { %v9520_v3 = vsel %vm868_vm6, %v9510_v14, %v9512_v1  ;;  %v9552_v29 = vadd.f32 %v12675_v33, %v9512_v1 }
 0x8fe   : > { %v9551_v47 = vadd.f32 %v12674_v38, %v9520_v3 }
 0x903   : > { %9589 = vrot.lane.b32.xlu2 %v9547_v16, %s12783_s17  ;;  %9573 = vrot.lane.b32.xlu0 %v9539_v19, %s12783_s17 }
 0x904   : > { %9581 = vrot.lane.b32.xlu1 %v9543_v43, %s12783_s17 }
 0x90b   : > { %9579 = vrot.lane.b32.xlu0 %v9542_v55, %s12783_s17  ;;  %9595 = vrot.lane.b32.xlu2 %v9550_v8, %s12783_s17 }
 0x90c   : > { %9587 = vrot.lane.b32.xlu1 %v9546_v18, %s12783_s17 }
 0x913   : > { %9597 = vrot.lane.b32.xlu0 %v9551_v47, %s12783_s17 }
 0x914   : > { %9599 = vrot.lane.b32.xlu1 %v9552_v29, %s12783_s17  ;;  %s10530_s17 = smul.u32 96, %s12862_s22  ;;  %s9650_s22 = sshll.u32 %s20403_s6, 4  ;;  %s9651_s22 = int_to_ptr.vmem [resolvable:$true] %s9650_s22 }
 0x916   : > { %s9649_s25 = scalar_lea.hbm %s20467_s5, %s10530_s17 }
 0x917   : > { %s9652_s26 = sshll.u32 %s9649_s25, 4  ;;  %s9653_s26 = int_to_ptr.hbm [resolvable:$true] %s9652_s26 }
 0x918   : > { %s12690_s11 = sshra.s32 %s9653_s26, 4  ;;  %s12691_s11 = int_to_ptr.hbm [resolvable:$true] %s12690_s11 }
 0x919   : > { %s12692_s30 = scalar_lea.hbm %s12691_s11, 96  ;;  %p12697_p0 = scmp.lt.s32.totalorder %s12691_s11, %s20467_s5 }
 0x91a   : > { %p12693_p11 = scmp.ne.s32.totalorder %s12691_s11, %s12692_s30  ;;  %p12698_p1 = scmp.lt.s32.totalorder %s12696_s10, %s12692_s30 }
 0x91c   : > { %p12694_p12 = pnand %p12693_p11, %p12879_p5  ;;  %p12699_p2 = por %p12698_p1, %p12697_p0 }
 0x91e   : > { %p12695_p13 = pneg %p12694_p12 }
 0x920   : > { %p12700_p3 = pnand %p12699_p2, %p12695_p13 }
 0x945   : > { %v9578_v39 = vpop.permute.xlu2 %9577 }
 0x94d   : > { %v9584_v11 = vpop.permute.xlu2 %9583 }
 0x955   : > { %v9572_v44 = vpop.permute.xlu2 %9571  ;;  %v9570_v22 = vpop.permute.xlu1 %9569 }
 0x956   : > { %v9601_v46 = vsel %vm1008_vm9, %v9570_v22, %v9572_v44 }
 0x957   : > { %9625 = vst [vmem:[%s20403_s6] sm:$0xff] %v9601_v46 }
 0x95d   : > { %v9590_v20 = vpop.permute.xlu2 %9589  ;;  %v9576_v2 = vpop.permute.xlu1 %9575 }
 0x965   : > { %v9586_v27 = vpop.permute.xlu0 %9585  ;;  %v9596_v60 = vpop.permute.xlu2 %9595 }
 0x96d   : > { %v9592_v37 = vpop.permute.xlu0 %9591 }
 0x96e   : > { %v9609_v45 = vsel %vm1008_vm9, %v9590_v20, %v9592_v37  ;;  %v9594_v30 = vpop.permute.xlu1 %9593 }
 0x96f   : > { %9633 = vst [vmem:[%s20403_s6 + $0x40] sm:$0xff] %v9609_v45  ;;  %v9610_v36 = vsel %vm1008_vm9, %v9594_v30, %v9596_v60 }
 0x970   : > { %9634 = vst [vmem:[%s20403_s6 + $0x48] sm:$0xff] %v9610_v36 }
 0x975   : > { %v9574_v62 = vpop.permute.xlu0 %9573 }
 0x976   : > { %v9602_v7 = vsel %vm1008_vm9, %v9572_v44, %v9574_v62  ;;  %v9603_v23 = vsel %vm1008_vm9, %v9574_v62, %v9576_v2  ;;  %v9582_v32 = vpop.permute.xlu1 %9581 }
 0x977   : > { %9626 = vst [vmem:[%s20403_s6 + $0x8] sm:$0xff] %v9602_v7  ;;  %v9606_v41 = vsel %vm1008_vm9, %v9582_v32, %v9584_v11 }
 0x978   : > { %9627 = vst [vmem:[%s20403_s6 + $0x10] sm:$0xff] %v9603_v23 }
 0x979   : > { %9630 = vst [vmem:[%s20403_s6 + $0x28] sm:$0xff] %v9606_v41 }
 0x97d   : > { %v9580_v26 = vpop.permute.xlu0 %9579 }
 0x97e   : > { %v9604_v63 = vsel %vm1008_vm9, %v9578_v39, %v9580_v26  ;;  %v9605_v9 = vsel %vm1008_vm9, %v9580_v26, %v9582_v32  ;;  %v9588_v56 = vpop.permute.xlu1 %9587 }
 0x97f   : > { %9628 = vst [vmem:[%s20403_s6 + $0x18] sm:$0xff] %v9604_v63  ;;  %v9607_v59 = vsel %vm1008_vm9, %v9586_v27, %v9588_v56  ;;  %v9608_v13 = vsel %vm1008_vm9, %v9588_v56, %v9590_v20 }
 0x980   : > { %9629 = vst [vmem:[%s20403_s6 + $0x20] sm:$0xff] %v9605_v9 }
 0x981   : > { %9631 = vst [vmem:[%s20403_s6 + $0x30] sm:$0xff] %v9607_v59 }
 0x982   : > { %9632 = vst [vmem:[%s20403_s6 + $0x38] sm:$0xff] %v9608_v13 }
 0x985   : > { %v9598_v52 = vpop.permute.xlu0 %9597 }
 0x986   : > { %v9611_v12 = vsel %vm1008_vm9, %v9596_v60, %v9598_v52  ;;  %v9600_v50 = vpop.permute.xlu1 %9599 }
 0x987   : > { %9635 = vst [vmem:[%s20403_s6 + $0x50] sm:$0xff] %v9611_v12  ;;  %v9612_v6 = vsel %vm1008_vm9, %v9598_v52, %v9600_v50 }
 0x988   : > { %9636 = vst [vmem:[%s20403_s6 + $0x58] sm:$0xff] %v9612_v6 }
 0x989   : > { %12703 = shalt.err (!%p12700_p3)
}
 0x98a   : > { %s12809_s7 = smov 384   ;;  %s12810_s13 = smov 24  }
 0x98b   : > { %10531 = dma.vmem_to_hbm [thread:$0]  (%p12879_p5), %s9651_s22, 1536, %s9653_s26, %s9638_s15, %s12809_s7, %s12809_s7, %s12810_s13  }
 0x98c PF: > { %p10537_p4 = scmp.ge.s32.totalorder %s12738_s21, 2  ;;  %s9667_s6 = sand.u32 1, %s12726_s18  }
 0x98d   : > { %s9668_s17 = scalar_lea.sflag [#allocation6], %s9667_s6 }
 0x98e   : > { %p10534_p7 = pnand %p10537_p4, %p12883_p6 }
 0x990   : > { %p10535_p8 = pneg %p10534_p7 }
 0x992   : > { %12721 = dma.done.wait (%p10535_p8), %s9668_s17, 1536  }
 0x993   : > { %12723 = vsyncadd (%p10535_p8), %s9668_s17, 4294965760  ;;  %p15_p9 = scmp.ge.s32.totalorder %s12866_s24, 4   ;;  %s21663_s18 = smov %s12730_s19 }
 0x994   : > { %s21664_s19 = smov %s12734_s20  ;;  %s21665_s20 = smov %s12877_s27 }
 0x995   : > { %s21666_s21 = smov %s12866_s24  ;;  %17 = sbr.rel (!%p15_p9) target bundleno = 3 (0x3), region = 136 }
 0x99a   :  { %9674 = vsyncpa [#allocation6], 1 }
 0x99b   :  { %9676 = vsyncpa [#allocation6 + $0x1], 1 }

</bundles_post_ra>
